<compile_context>
chip_gen: v7x
topology: tpu7x:2x2x1
jax: 0.10.0
libtpu: 0.0.40
codegen_flags: <defaults>
</compile_context>

<pallas_src>
from functools import partial

import jax
import jax.numpy as jnp
from jax.experimental import pallas as pl
from jax.experimental.pallas import tpu as pltpu  # noqa: F401  (no manual DMA needed anymore)

BN_EPS = 1e-5


# ---------------------------------------------------------------------------
# im2col helper (wrapper-side, plain XLA): builds the (N*H*W, 9*C) patch matrix
# for a 3x3 / stride-1 / pad-1 conv.  Column order is (kh, kw, cin), matching a
# (3, 3, Cin, Cout) -> (9*Cin, Cout) row-major weight reshape.
# ---------------------------------------------------------------------------
def _im2col_3x3(x):
    N, H, W, C = x.shape
    xp = jnp.pad(x, ((0, 0), (1, 1), (1, 1), (0, 0)))
    cols = [xp[:, kh:kh + H, kw:kw + W, :] for kh in range(3) for kw in range(3)]
    return jnp.concatenate(cols, axis=-1).reshape(N * H * W, 9 * C)


def _pad_k(patches, k):
    """Zero-pad the contraction dim of the patch matrix to match the weight rows."""
    cur = patches.shape[1]
    if cur < k:
        patches = jnp.pad(patches, ((0, 0), (0, k - cur)))
    return patches


# ---------------------------------------------------------------------------
# Shared conv + BN(batch stats) + ReLU + 2x2 max-pool body (values, not refs).
# Returns the pooled activation with shape (N*H/2, W/2, C), f32.
# ---------------------------------------------------------------------------
def _conv_bn_relu_pool(p_ref, w_ref, g_ref, beta_ref, *, N, H, W, C):
    # conv as a single im2col matmul over the whole batch; f32 accumulation.
    # (conv bias omitted: exactly cancelled by the BN mean subtraction below)
    acc = jnp.dot(p_ref[...], w_ref[...], preferred_element_type=jnp.float32)

    # BatchNorm2d training-mode batch statistics (biased variance, centered form).
    mean = jnp.mean(acc, axis=0, keepdims=True)               # (1, C)
    var = jnp.mean((acc - mean) ** 2, axis=0, keepdims=True)
    scale = g_ref[...] * jax.lax.rsqrt(var + BN_EPS)
    shift = beta_ref[...] - mean * scale
    z = jnp.maximum(acc * scale + shift, 0.0)                 # (N*H*W, C)

    # 2x2 / stride-2 max pool (leading-dim reshapes only; C stays in lanes).
    z = z.reshape(N * H, W, C)
    z = jnp.max(z.reshape(N * H // 2, 2, W, C), axis=1)       # pool H pairs
    z = jnp.max(z.reshape(N * H // 2, W // 2, 2, C), axis=2)  # pool W pairs
    return z                                                  # (N*H/2, W/2, C)


# ---------------------------------------------------------------------------
# Kernel 1: conv1 + BN + ReLU + pool, bf16 output.
# ---------------------------------------------------------------------------
def _block1_kernel(p_ref, w_ref, g_ref, beta_ref, o_ref, *, N, H, W, C):
    z = _conv_bn_relu_pool(p_ref, w_ref, g_ref, beta_ref, N=N, H=H, W=W, C=C)
    o_ref[...] = z.astype(o_ref.dtype)                        # (N*H/2, W/2, C) bf16


def block1(x_nhwc, w1m, gamma1, beta1):
    N, H, W, _ = x_nhwc.shape
    K, C = w1m.shape
    patches = _pad_k(_im2col_3x3(x_nhwc), K).astype(jnp.bfloat16)

    kernel = partial(_block1_kernel, N=N, H=H, W=W, C=C)
    out = pl.pallas_call(
        kernel,
        out_shape=jax.ShapeDtypeStruct((N * H // 2, W // 2, C), jnp.bfloat16),
        grid=(1,),
        in_specs=[
            pl.BlockSpec((N * H * W, K), lambda i: (0, 0)),
            pl.BlockSpec((K, C), lambda i: (0, 0)),
            pl.BlockSpec((1, C), lambda i: (0, 0)),
            pl.BlockSpec((1, C), lambda i: (0, 0)),
        ],
        out_specs=pl.BlockSpec((N * H // 2, W // 2, C), lambda i: (0, 0, 0)),
    )(patches, w1m, gamma1.reshape(1, C), beta1.reshape(1, C))
    return out.reshape(N, H // 2, W // 2, C)                  # free metadata reshape


# ---------------------------------------------------------------------------
# Kernel 2: conv2 + BN + ReLU + pool + collapsed classifier (F, NC_pad) matmul,
# evaluated as an accumulation over spatial positions (no cross-lane flatten).
# ---------------------------------------------------------------------------
def _block2_cls_kernel(p_ref, w_ref, g_ref, beta_ref, w12_ref, b12_ref, o_ref,
                       *, N, H, W, C):
    z = _conv_bn_relu_pool(p_ref, w_ref, g_ref, beta_ref, N=N, H=H, W=W, C=C)
    H2, W2 = H // 2, W // 2
    p2 = z.reshape(N, H2, W2, C)                              # leading split only

    # out[n, k] = sum_{h,w} p2[n, h, w, :] @ W12[h*W2+w]  (+ b12)
    NCp = b12_ref.shape[-1]
    out = jnp.zeros((N, NCp), jnp.float32)
    for h2 in range(H2):                                      # static unroll (H2*W2 tiny)
        for w2 in range(W2):
            xs = p2[:, h2, w2, :].astype(jnp.bfloat16)        # (N, C)
            out = out + jnp.dot(xs, w12_ref[h2 * W2 + w2],    # (C, NCp) weight slice
                                preferred_element_type=jnp.float32)
    o_ref[...] = out + b12_ref[...]                           # (N, NCp), lane-dense


def block2_classifier(p1, w2m, gamma2, beta2, w12, b12):
    N, H, W, C = p1.shape
    K = w2m.shape[0]
    patches = _pad_k(_im2col_3x3(p1), K).astype(jnp.bfloat16)
    P, Cw, NCp = w12.shape
    assert P == (H // 2) * (W // 2) and Cw == C, "collapsed classifier shape mismatch"

    kernel = partial(_block2_cls_kernel, N=N, H=H, W=W, C=C)
    return pl.pallas_call(
        kernel,
        out_shape=jax.ShapeDtypeStruct((N, NCp), jnp.float32),
        grid=(1,),
        in_specs=[
            pl.BlockSpec((N * H * W, K), lambda i: (0, 0)),
            pl.BlockSpec((K, C), lambda i: (0, 0)),
            pl.BlockSpec((1, C), lambda i: (0, 0)),
            pl.BlockSpec((1, C), lambda i: (0, 0)),
            pl.BlockSpec((P, C, NCp), lambda i: (0, 0, 0)),
            pl.BlockSpec((1, NCp), lambda i: (0, 0)),
        ],
        out_specs=pl.BlockSpec((N, NCp), lambda i: (0, 0)),
    )(patches, w2m, gamma2.reshape(1, C), beta2.reshape(1, C), w12,
      b12.reshape(1, NCp))


# ---------------------------------------------------------------------------
# Full forward.
# ---------------------------------------------------------------------------
def customized_cnn1_forward(x_nchw, params, *, num_classes=2):
    x = jnp.transpose(x_nchw, (0, 2, 3, 1)).astype(jnp.float32)   # NCHW -> NHWC
    p1 = block1(x, params["w1m"], params["gamma1"], params["beta1"])
    logits = block2_classifier(p1, params["w2m"], params["gamma2"], params["beta2"],
                               params["w12"], params["b12"])
    return logits[:, :num_classes]                                # drop lane padding


def init_params(key, cin=3, c=64, hw=16, hidden=1000, num_classes=2):
    h2 = hw // 4
    feat = h2 * h2 * c                      # flatten in NHWC (h, w, c) order
    ks = jax.random.split(key, 4)
    w1 = 0.05 * jax.random.normal(ks[0], (3, 3, cin, c), jnp.float32)   # HWIO
    w2 = 0.05 * jax.random.normal(ks[1], (3, 3, c, c), jnp.float32)
    # im2col weight matrices, rows in (kh, kw, cin) order; conv1 K padded 27 -> 32.
    k1_pad = (-9 * cin) % 8
    w1m = jnp.pad(w1.reshape(9 * cin, c), ((0, k1_pad), (0, 0))).astype(jnp.bfloat16)
    w2m = w2.reshape(9 * c, c).astype(jnp.bfloat16)

    # Classifier: Linear(feat, hidden) -> Linear(hidden, num_classes), NO activation
    # between them in the reference module, so collapse at init (one-time cost):
    #   W12 = fc1_w @ fc2_w   (feat, num_classes)      b12 = fc1_b @ fc2_w + fc2_b
    # fc1_w rows are stored directly in NHWC-flatten (h, w, c) order (a one-time row
    # permutation of the PyTorch NCHW-flatten weight).
    fc1_w = 0.02 * jax.random.normal(ks[2], (feat, hidden), jnp.float32)
    fc1_b = jnp.zeros((hidden,), jnp.float32)
    fc2_w = 0.02 * jax.random.normal(ks[3], (hidden, num_classes), jnp.float32)
    fc2_b = jnp.zeros((num_classes,), jnp.float32)
    w12 = fc1_w @ fc2_w                                    # (feat, num_classes) f32
    b12 = fc1_b @ fc2_w + fc2_b                            # (num_classes,)

    # Pad the class dim to 128 lanes (unmasked lane-dense output store) and view the
    # rows as (spatial position, C) blocks for the per-position accumulation.
    nc_pad = 128
    w12 = jnp.pad(w12, ((0, 0), (0, nc_pad - num_classes)))
    b12 = jnp.pad(b12, (0, nc_pad - num_classes)).astype(jnp.float32)
    w12 = w12.reshape(h2 * h2, c, nc_pad).astype(jnp.bfloat16)

    # Conv biases are intentionally omitted: with training-mode BatchNorm right after
    # each conv, the bias is exactly cancelled by the batch-mean subtraction.
    return {
        "w1m": w1m,
        "gamma1": jnp.ones((c,), jnp.float32),
        "beta1": jnp.zeros((c,), jnp.float32),
        "w2m": w2m,
        "gamma2": jnp.ones((c,), jnp.float32),
        "beta2": jnp.zeros((c,), jnp.float32),
        "w12": w12,
        "b12": b12,
    }


if __name__ == "__main__":
    key = jax.random.PRNGKey(0)
    k_x, k_p = jax.random.split(key)

    # PyTorch-convention input: NCHW, batch=2, 3 channels, 16x16 spatial.
    x = jax.random.normal(k_x, (2, 3, 16, 16), jnp.float32)
    params = init_params(k_p, cin=3, c=64, hw=16, hidden=1000, num_classes=2)

    fwd = jax.jit(customized_cnn1_forward)
    out = jax.block_until_ready(fwd(x, params))

    assert out.shape == (2, 2) and out.dtype == jnp.float32
    assert bool(jnp.all(jnp.isfinite(out)))
    print("KERNEL_OK")
</pallas_src>

<mosaic_0001>
module attributes {stable_mosaic.version = 11 : i64} {
  func.func @_block1_kernel(%arg0: i32, %arg1: memref<512x32xbf16, #tpu.memory_space<vmem>>, %arg2: memref<32x64xbf16, #tpu.memory_space<vmem>>, %arg3: memref<1x64xf32, #tpu.memory_space<vmem>>, %arg4: memref<1x64xf32, #tpu.memory_space<vmem>>, %arg5: memref<16x8x64xbf16, #tpu.memory_space<vmem>>) attributes {dimension_semantics = [#tpu.dimension_semantics<arbitrary>], iteration_bounds = array<i64: 1>, scalar_prefetch = 0 : i64, scratch_operands = 0 : i64, tpu.core_type = #tpu.core_type<tc>, window_params = [{pipeline_mode = #tpu.pipeline_mode<synchronous>, transform_indices = @transform_0, window_bounds = array<i64: 512, 32>}, {pipeline_mode = #tpu.pipeline_mode<synchronous>, transform_indices = @transform_1, window_bounds = array<i64: 32, 64>}, {pipeline_mode = #tpu.pipeline_mode<synchronous>, transform_indices = @transform_2, window_bounds = array<i64: 1, 64>}, {pipeline_mode = #tpu.pipeline_mode<synchronous>, transform_indices = @transform_3, window_bounds = array<i64: 1, 64>}, {pipeline_mode = #tpu.pipeline_mode<synchronous>, transform_indices = @transform_4, window_bounds = array<i64: 16, 8, 64>}]} {
    %c0 = arith.constant 0 : index
    %c0_0 = arith.constant 0 : index
    %0 = vector.load %arg1[%c0, %c0_0] : memref<512x32xbf16, #tpu.memory_space<vmem>>, vector<512x32xbf16>
    %c0_1 = arith.constant 0 : index
    %c0_2 = arith.constant 0 : index
    %1 = vector.load %arg2[%c0_1, %c0_2] : memref<32x64xbf16, #tpu.memory_space<vmem>>, vector<32x64xbf16>
    %cst = arith.constant dense<0.000000e+00> : vector<512x64xf32>
    %2 = tpu.matmul %0, %1, %cst {dimension_numbers = #tpu.dot_dimension_numbers<[1], [0], [0], [1], [0, 0, 1, 1], [], []>} : vector<512x32xbf16>, vector<32x64xbf16>, vector<512x64xf32> -> vector<512x64xf32>
    %cst_3 = arith.constant dense<0.000000e+00> : vector<64xf32>
    %3 = vector.multi_reduction <add>, %2, %cst_3 [0] : vector<512x64xf32> to vector<64xf32>
    %4 = vector.shape_cast %3 : vector<64xf32> to vector<1x64xf32>
    %cst_4 = arith.constant 5.120000e+02 : f32
    %5 = vector.broadcast %cst_4 : f32 to vector<1x64xf32>
    %6 = arith.divf %4, %5 : vector<1x64xf32>
    %7 = vector.broadcast %6 : vector<1x64xf32> to vector<512x64xf32>
    %8 = arith.subf %2, %7 : vector<512x64xf32>
    %9 = arith.mulf %8, %8 : vector<512x64xf32>
    %cst_5 = arith.constant dense<0.000000e+00> : vector<64xf32>
    %10 = vector.multi_reduction <add>, %9, %cst_5 [0] : vector<512x64xf32> to vector<64xf32>
    %11 = vector.shape_cast %10 : vector<64xf32> to vector<1x64xf32>
    %cst_6 = arith.constant 5.120000e+02 : f32
    %12 = vector.broadcast %cst_6 : f32 to vector<1x64xf32>
    %13 = arith.divf %11, %12 : vector<1x64xf32>
    %c0_7 = arith.constant 0 : index
    %c0_8 = arith.constant 0 : index
    %14 = vector.load %arg3[%c0_7, %c0_8] : memref<1x64xf32, #tpu.memory_space<vmem>>, vector<1x64xf32>
    %cst_9 = arith.constant 9.99999974E-6 : f32
    %15 = vector.broadcast %cst_9 : f32 to vector<1x64xf32>
    %16 = arith.addf %13, %15 : vector<1x64xf32>
    %17 = math.rsqrt %16 : vector<1x64xf32>
    %18 = arith.mulf %14, %17 : vector<1x64xf32>
    %c0_10 = arith.constant 0 : index
    %c0_11 = arith.constant 0 : index
    %19 = vector.load %arg4[%c0_10, %c0_11] : memref<1x64xf32, #tpu.memory_space<vmem>>, vector<1x64xf32>
    %20 = arith.mulf %6, %18 : vector<1x64xf32>
    %21 = arith.subf %19, %20 : vector<1x64xf32>
    %22 = vector.broadcast %18 : vector<1x64xf32> to vector<512x64xf32>
    %23 = arith.mulf %2, %22 : vector<512x64xf32>
    %24 = vector.broadcast %21 : vector<1x64xf32> to vector<512x64xf32>
    %25 = arith.addf %23, %24 : vector<512x64xf32>
    %cst_12 = arith.constant 0.000000e+00 : f32
    %26 = vector.broadcast %cst_12 : f32 to vector<512x64xf32>
    %27 = arith.maximumf %25, %26 : vector<512x64xf32>
    %28 = vector.shape_cast %27 : vector<512x64xf32> to vector<32x16x64xf32>
    %29 = vector.shape_cast %28 : vector<32x16x64xf32> to vector<16x2x16x64xf32>
    %cst_13 = arith.constant dense<0xFF800000> : vector<16x16x64xf32>
    %30 = vector.multi_reduction <maximumf>, %29, %cst_13 [1] : vector<16x2x16x64xf32> to vector<16x16x64xf32>
    %31 = vector.shape_cast %30 : vector<16x16x64xf32> to vector<16x8x2x64xf32>
    %cst_14 = arith.constant dense<0xFF800000> : vector<16x8x64xf32>
    %32 = vector.multi_reduction <maximumf>, %31, %cst_14 [2] : vector<16x8x2x64xf32> to vector<16x8x64xf32>
    %33 = arith.truncf %32 : vector<16x8x64xf32> to vector<16x8x64xbf16>
    %c0_15 = arith.constant 0 : index
    %c0_16 = arith.constant 0 : index
    %c0_17 = arith.constant 0 : index
    %34 = vector.load %arg5[%c0_15, %c0_16, %c0_17] : memref<16x8x64xbf16, #tpu.memory_space<vmem>>, vector<16x8x64xbf16>
    tpu.vector_store %arg5[%c0_15, %c0_16, %c0_17], %33 {strides = array<i32>} : memref<16x8x64xbf16, #tpu.memory_space<vmem>>, vector<16x8x64xbf16>,
    return
  }
  func.func @transform_0(%arg0: i32) -> (i32, i32) {
    %c0_i32 = arith.constant 0 : i32
    %c0_i32_0 = arith.constant 0 : i32
    %c0_i32_1 = arith.constant 0 : i32
    return %c0_i32, %c0_i32_0 : i32, i32
  }
  func.func @transform_1(%arg0: i32) -> (i32, i32) {
    %c0_i32 = arith.constant 0 : i32
    %c0_i32_0 = arith.constant 0 : i32
    %c0_i32_1 = arith.constant 0 : i32
    return %c0_i32, %c0_i32_0 : i32, i32
  }
  func.func @transform_2(%arg0: i32) -> (i32, i32) {
    %c0_i32 = arith.constant 0 : i32
    %c0_i32_0 = arith.constant 0 : i32
    %c0_i32_1 = arith.constant 0 : i32
    return %c0_i32, %c0_i32_0 : i32, i32
  }
  func.func @transform_3(%arg0: i32) -> (i32, i32) {
    %c0_i32 = arith.constant 0 : i32
    %c0_i32_0 = arith.constant 0 : i32
    %c0_i32_1 = arith.constant 0 : i32
    return %c0_i32, %c0_i32_0 : i32, i32
  }
  func.func @transform_4(%arg0: i32) -> (i32, i32, i32) {
    %c0_i32 = arith.constant 0 : i32
    %c0_i32_0 = arith.constant 0 : i32
    %c0_i32_1 = arith.constant 0 : i32
    %c0_i32_2 = arith.constant 0 : i32
    return %c0_i32, %c0_i32_0, %c0_i32_1 : i32, i32, i32
  }
}

module attributes {stable_mosaic.version = 11 : i64} {
  func.func @_block2_cls_kernel(%arg0: i32, %arg1: memref<128x576xbf16, #tpu.memory_space<vmem>>, %arg2: memref<576x64xbf16, #tpu.memory_space<vmem>>, %arg3: memref<1x64xf32, #tpu.memory_space<vmem>>, %arg4: memref<1x64xf32, #tpu.memory_space<vmem>>, %arg5: memref<16x64x128xbf16, #tpu.memory_space<vmem>>, %arg6: memref<1x128xf32, #tpu.memory_space<vmem>>, %arg7: memref<2x128xf32, #tpu.memory_space<vmem>>) attributes {dimension_semantics = [#tpu.dimension_semantics<arbitrary>], iteration_bounds = array<i64: 1>, scalar_prefetch = 0 : i64, scratch_operands = 0 : i64, tpu.core_type = #tpu.core_type<tc>, window_params = [{pipeline_mode = #tpu.pipeline_mode<synchronous>, transform_indices = @transform_0, window_bounds = array<i64: 128, 576>}, {pipeline_mode = #tpu.pipeline_mode<synchronous>, transform_indices = @transform_1, window_bounds = array<i64: 576, 64>}, {pipeline_mode = #tpu.pipeline_mode<synchronous>, transform_indices = @transform_2, window_bounds = array<i64: 1, 64>}, {pipeline_mode = #tpu.pipeline_mode<synchronous>, transform_indices = @transform_3, window_bounds = array<i64: 1, 64>}, {pipeline_mode = #tpu.pipeline_mode<synchronous>, transform_indices = @transform_4, window_bounds = array<i64: 16, 64, 128>}, {pipeline_mode = #tpu.pipeline_mode<synchronous>, transform_indices = @transform_5, window_bounds = array<i64: 1, 128>}, {pipeline_mode = #tpu.pipeline_mode<synchronous>, transform_indices = @transform_6, window_bounds = array<i64: 2, 128>}]} {
    %c0 = arith.constant 0 : index
    %c0_0 = arith.constant 0 : index
    %0 = vector.load %arg1[%c0, %c0_0] : memref<128x576xbf16, #tpu.memory_space<vmem>>, vector<128x576xbf16>
    %c0_1 = arith.constant 0 : index
    %c0_2 = arith.constant 0 : index
    %1 = vector.load %arg2[%c0_1, %c0_2] : memref<576x64xbf16, #tpu.memory_space<vmem>>, vector<576x64xbf16>
    %cst = arith.constant dense<0.000000e+00> : vector<128x64xf32>
    %2 = tpu.matmul %0, %1, %cst {dimension_numbers = #tpu.dot_dimension_numbers<[1], [0], [0], [1], [0, 0, 1, 1], [], []>} : vector<128x576xbf16>, vector<576x64xbf16>, vector<128x64xf32> -> vector<128x64xf32>
    %cst_3 = arith.constant dense<0.000000e+00> : vector<64xf32>
    %3 = vector.multi_reduction <add>, %2, %cst_3 [0] : vector<128x64xf32> to vector<64xf32>
    %4 = vector.shape_cast %3 : vector<64xf32> to vector<1x64xf32>
    %cst_4 = arith.constant 1.280000e+02 : f32
    %5 = vector.broadcast %cst_4 : f32 to vector<1x64xf32>
    %6 = arith.divf %4, %5 : vector<1x64xf32>
    %7 = vector.broadcast %6 : vector<1x64xf32> to vector<128x64xf32>
    %8 = arith.subf %2, %7 : vector<128x64xf32>
    %9 = arith.mulf %8, %8 : vector<128x64xf32>
    %cst_5 = arith.constant dense<0.000000e+00> : vector<64xf32>
    %10 = vector.multi_reduction <add>, %9, %cst_5 [0] : vector<128x64xf32> to vector<64xf32>
    %11 = vector.shape_cast %10 : vector<64xf32> to vector<1x64xf32>
    %cst_6 = arith.constant 1.280000e+02 : f32
    %12 = vector.broadcast %cst_6 : f32 to vector<1x64xf32>
    %13 = arith.divf %11, %12 : vector<1x64xf32>
    %c0_7 = arith.constant 0 : index
    %c0_8 = arith.constant 0 : index
    %14 = vector.load %arg3[%c0_7, %c0_8] : memref<1x64xf32, #tpu.memory_space<vmem>>, vector<1x64xf32>
    %cst_9 = arith.constant 9.99999974E-6 : f32
    %15 = vector.broadcast %cst_9 : f32 to vector<1x64xf32>
    %16 = arith.addf %13, %15 : vector<1x64xf32>
    %17 = math.rsqrt %16 : vector<1x64xf32>
    %18 = arith.mulf %14, %17 : vector<1x64xf32>
    %c0_10 = arith.constant 0 : index
    %c0_11 = arith.constant 0 : index
    %19 = vector.load %arg4[%c0_10, %c0_11] : memref<1x64xf32, #tpu.memory_space<vmem>>, vector<1x64xf32>
    %20 = arith.mulf %6, %18 : vector<1x64xf32>
    %21 = arith.subf %19, %20 : vector<1x64xf32>
    %22 = vector.broadcast %18 : vector<1x64xf32> to vector<128x64xf32>
    %23 = arith.mulf %2, %22 : vector<128x64xf32>
    %24 = vector.broadcast %21 : vector<1x64xf32> to vector<128x64xf32>
    %25 = arith.addf %23, %24 : vector<128x64xf32>
    %cst_12 = arith.constant 0.000000e+00 : f32
    %26 = vector.broadcast %cst_12 : f32 to vector<128x64xf32>
    %27 = arith.maximumf %25, %26 : vector<128x64xf32>
    %28 = vector.shape_cast %27 : vector<128x64xf32> to vector<16x8x64xf32>
    %29 = vector.shape_cast %28 : vector<16x8x64xf32> to vector<8x2x8x64xf32>
    %cst_13 = arith.constant dense<0xFF800000> : vector<8x8x64xf32>
    %30 = vector.multi_reduction <maximumf>, %29, %cst_13 [1] : vector<8x2x8x64xf32> to vector<8x8x64xf32>
    %31 = vector.shape_cast %30 : vector<8x8x64xf32> to vector<8x4x2x64xf32>
    %cst_14 = arith.constant dense<0xFF800000> : vector<8x4x64xf32>
    %32 = vector.multi_reduction <maximumf>, %31, %cst_14 [2] : vector<8x4x2x64xf32> to vector<8x4x64xf32>
    %33 = vector.shape_cast %32 : vector<8x4x64xf32> to vector<2x4x4x64xf32>
    %cst_15 = arith.constant 0.000000e+00 : f32
    %34 = vector.broadcast %cst_15 : f32 to vector<2x128xf32>
    %35 = vector.extract_strided_slice %33 {offsets = [0, 0, 0, 0], sizes = [2, 1, 1, 64], strides = [1, 1, 1, 1]} : vector<2x4x4x64xf32> to vector<2x1x1x64xf32>
    %36 = vector.shape_cast %35 : vector<2x1x1x64xf32> to vector<2x64xf32>
    %37 = arith.truncf %36 : vector<2x64xf32> to vector<2x64xbf16>
    %c0_16 = arith.constant 0 : index
    %c0_17 = arith.constant 0 : index
    %c0_18 = arith.constant 0 : index
    %38 = vector.load %arg5[%c0_16, %c0_17, %c0_18] : memref<16x64x128xbf16, #tpu.memory_space<vmem>>, vector<1x64x128xbf16>
    %39 = vector.shape_cast %38 : vector<1x64x128xbf16> to vector<64x128xbf16>
    %cst_19 = arith.constant dense<0.000000e+00> : vector<2x128xf32>
    %40 = tpu.matmul %37, %39, %cst_19 {dimension_numbers = #tpu.dot_dimension_numbers<[1], [0], [0], [1], [0, 0, 1, 1], [], []>} : vector<2x64xbf16>, vector<64x128xbf16>, vector<2x128xf32> -> vector<2x128xf32>
    %41 = arith.addf %34, %40 : vector<2x128xf32>
    %42 = vector.extract_strided_slice %33 {offsets = [0, 0, 1, 0], sizes = [2, 1, 1, 64], strides = [1, 1, 1, 1]} : vector<2x4x4x64xf32> to vector<2x1x1x64xf32>
    %43 = vector.shape_cast %42 : vector<2x1x1x64xf32> to vector<2x64xf32>
    %44 = arith.truncf %43 : vector<2x64xf32> to vector<2x64xbf16>
    %c1 = arith.constant 1 : index
    %c0_20 = arith.constant 0 : index
    %c0_21 = arith.constant 0 : index
    %45 = vector.load %arg5[%c1, %c0_20, %c0_21] : memref<16x64x128xbf16, #tpu.memory_space<vmem>>, vector<1x64x128xbf16>
    %46 = vector.shape_cast %45 : vector<1x64x128xbf16> to vector<64x128xbf16>
    %cst_22 = arith.constant dense<0.000000e+00> : vector<2x128xf32>
    %47 = tpu.matmul %44, %46, %cst_22 {dimension_numbers = #tpu.dot_dimension_numbers<[1], [0], [0], [1], [0, 0, 1, 1], [], []>} : vector<2x64xbf16>, vector<64x128xbf16>, vector<2x128xf32> -> vector<2x128xf32>
    %48 = arith.addf %41, %47 : vector<2x128xf32>
    %49 = vector.extract_strided_slice %33 {offsets = [0, 0, 2, 0], sizes = [2, 1, 1, 64], strides = [1, 1, 1, 1]} : vector<2x4x4x64xf32> to vector<2x1x1x64xf32>
    %50 = vector.shape_cast %49 : vector<2x1x1x64xf32> to vector<2x64xf32>
    %51 = arith.truncf %50 : vector<2x64xf32> to vector<2x64xbf16>
    %c2 = arith.constant 2 : index
    %c0_23 = arith.constant 0 : index
    %c0_24 = arith.constant 0 : index
    %52 = vector.load %arg5[%c2, %c0_23, %c0_24] : memref<16x64x128xbf16, #tpu.memory_space<vmem>>, vector<1x64x128xbf16>
    %53 = vector.shape_cast %52 : vector<1x64x128xbf16> to vector<64x128xbf16>
    %cst_25 = arith.constant dense<0.000000e+00> : vector<2x128xf32>
    %54 = tpu.matmul %51, %53, %cst_25 {dimension_numbers = #tpu.dot_dimension_numbers<[1], [0], [0], [1], [0, 0, 1, 1], [], []>} : vector<2x64xbf16>, vector<64x128xbf16>, vector<2x128xf32> -> vector<2x128xf32>
    %55 = arith.addf %48, %54 : vector<2x128xf32>
    %56 = vector.extract_strided_slice %33 {offsets = [0, 0, 3, 0], sizes = [2, 1, 1, 64], strides = [1, 1, 1, 1]} : vector<2x4x4x64xf32> to vector<2x1x1x64xf32>
    %57 = vector.shape_cast %56 : vector<2x1x1x64xf32> to vector<2x64xf32>
    %58 = arith.truncf %57 : vector<2x64xf32> to vector<2x64xbf16>
    %c3 = arith.constant 3 : index
    %c0_26 = arith.constant 0 : index
    %c0_27 = arith.constant 0 : index
    %59 = vector.load %arg5[%c3, %c0_26, %c0_27] : memref<16x64x128xbf16, #tpu.memory_space<vmem>>, vector<1x64x128xbf16>
    %60 = vector.shape_cast %59 : vector<1x64x128xbf16> to vector<64x128xbf16>
    %cst_28 = arith.constant dense<0.000000e+00> : vector<2x128xf32>
    %61 = tpu.matmul %58, %60, %cst_28 {dimension_numbers = #tpu.dot_dimension_numbers<[1], [0], [0], [1], [0, 0, 1, 1], [], []>} : vector<2x64xbf16>, vector<64x128xbf16>, vector<2x128xf32> -> vector<2x128xf32>
    %62 = arith.addf %55, %61 : vector<2x128xf32>
    %63 = vector.extract_strided_slice %33 {offsets = [0, 1, 0, 0], sizes = [2, 1, 1, 64], strides = [1, 1, 1, 1]} : vector<2x4x4x64xf32> to vector<2x1x1x64xf32>
    %64 = vector.shape_cast %63 : vector<2x1x1x64xf32> to vector<2x64xf32>
    %65 = arith.truncf %64 : vector<2x64xf32> to vector<2x64xbf16>
    %c4 = arith.constant 4 : index
    %c0_29 = arith.constant 0 : index
    %c0_30 = arith.constant 0 : index
    %66 = vector.load %arg5[%c4, %c0_29, %c0_30] : memref<16x64x128xbf16, #tpu.memory_space<vmem>>, vector<1x64x128xbf16>
    %67 = vector.shape_cast %66 : vector<1x64x128xbf16> to vector<64x128xbf16>
    %cst_31 = arith.constant dense<0.000000e+00> : vector<2x128xf32>
    %68 = tpu.matmul %65, %67, %cst_31 {dimension_numbers = #tpu.dot_dimension_numbers<[1], [0], [0], [1], [0, 0, 1, 1], [], []>} : vector<2x64xbf16>, vector<64x128xbf16>, vector<2x128xf32> -> vector<2x128xf32>
    %69 = arith.addf %62, %68 : vector<2x128xf32>
    %70 = vector.extract_strided_slice %33 {offsets = [0, 1, 1, 0], sizes = [2, 1, 1, 64], strides = [1, 1, 1, 1]} : vector<2x4x4x64xf32> to vector<2x1x1x64xf32>
    %71 = vector.shape_cast %70 : vector<2x1x1x64xf32> to vector<2x64xf32>
    %72 = arith.truncf %71 : vector<2x64xf32> to vector<2x64xbf16>
    %c5 = arith.constant 5 : index
    %c0_32 = arith.constant 0 : index
    %c0_33 = arith.constant 0 : index
    %73 = vector.load %arg5[%c5, %c0_32, %c0_33] : memref<16x64x128xbf16, #tpu.memory_space<vmem>>, vector<1x64x128xbf16>
    %74 = vector.shape_cast %73 : vector<1x64x128xbf16> to vector<64x128xbf16>
    %cst_34 = arith.constant dense<0.000000e+00> : vector<2x128xf32>
    %75 = tpu.matmul %72, %74, %cst_34 {dimension_numbers = #tpu.dot_dimension_numbers<[1], [0], [0], [1], [0, 0, 1, 1], [], []>} : vector<2x64xbf16>, vector<64x128xbf16>, vector<2x128xf32> -> vector<2x128xf32>
    %76 = arith.addf %69, %75 : vector<2x128xf32>
    %77 = vector.extract_strided_slice %33 {offsets = [0, 1, 2, 0], sizes = [2, 1, 1, 64], strides = [1, 1, 1, 1]} : vector<2x4x4x64xf32> to vector<2x1x1x64xf32>
    %78 = vector.shape_cast %77 : vector<2x1x1x64xf32> to vector<2x64xf32>
    %79 = arith.truncf %78 : vector<2x64xf32> to vector<2x64xbf16>
    %c6 = arith.constant 6 : index
    %c0_35 = arith.constant 0 : index
    %c0_36 = arith.constant 0 : index
    %80 = vector.load %arg5[%c6, %c0_35, %c0_36] : memref<16x64x128xbf16, #tpu.memory_space<vmem>>, vector<1x64x128xbf16>
    %81 = vector.shape_cast %80 : vector<1x64x128xbf16> to vector<64x128xbf16>
    %cst_37 = arith.constant dense<0.000000e+00> : vector<2x128xf32>
    %82 = tpu.matmul %79, %81, %cst_37 {dimension_numbers = #tpu.dot_dimension_numbers<[1], [0], [0], [1], [0, 0, 1, 1], [], []>} : vector<2x64xbf16>, vector<64x128xbf16>, vector<2x128xf32> -> vector<2x128xf32>
    %83 = arith.addf %76, %82 : vector<2x128xf32>
    %84 = vector.extract_strided_slice %33 {offsets = [0, 1, 3, 0], sizes = [2, 1, 1, 64], strides = [1, 1, 1, 1]} : vector<2x4x4x64xf32> to vector<2x1x1x64xf32>
    %85 = vector.shape_cast %84 : vector<2x1x1x64xf32> to vector<2x64xf32>
    %86 = arith.truncf %85 : vector<2x64xf32> to vector<2x64xbf16>
    %c7 = arith.constant 7 : index
    %c0_38 = arith.constant 0 : index
    %c0_39 = arith.constant 0 : index
    %87 = vector.load %arg5[%c7, %c0_38, %c0_39] : memref<16x64x128xbf16, #tpu.memory_space<vmem>>, vector<1x64x128xbf16>
    %88 = vector.shape_cast %87 : vector<1x64x128xbf16> to vector<64x128xbf16>
    %cst_40 = arith.constant dense<0.000000e+00> : vector<2x128xf32>
    %89 = tpu.matmul %86, %88, %cst_40 {dimension_numbers = #tpu.dot_dimension_numbers<[1], [0], [0], [1], [0, 0, 1, 1], [], []>} : vector<2x64xbf16>, vector<64x128xbf16>, vector<2x128xf32> -> vector<2x128xf32>
    %90 = arith.addf %83, %89 : vector<2x128xf32>
    %91 = vector.extract_strided_slice %33 {offsets = [0, 2, 0, 0], sizes = [2, 1, 1, 64], strides = [1, 1, 1, 1]} : vector<2x4x4x64xf32> to vector<2x1x1x64xf32>
    %92 = vector.shape_cast %91 : vector<2x1x1x64xf32> to vector<2x64xf32>
    %93 = arith.truncf %92 : vector<2x64xf32> to vector<2x64xbf16>
    %c8 = arith.constant 8 : index
    %c0_41 = arith.constant 0 : index
    %c0_42 = arith.constant 0 : index
    %94 = vector.load %arg5[%c8, %c0_41, %c0_42] : memref<16x64x128xbf16, #tpu.memory_space<vmem>>, vector<1x64x128xbf16>
    %95 = vector.shape_cast %94 : vector<1x64x128xbf16> to vector<64x128xbf16>
    %cst_43 = arith.constant dense<0.000000e+00> : vector<2x128xf32>
    %96 = tpu.matmul %93, %95, %cst_43 {dimension_numbers = #tpu.dot_dimension_numbers<[1], [0], [0], [1], [0, 0, 1, 1], [], []>} : vector<2x64xbf16>, vector<64x128xbf16>, vector<2x128xf32> -> vector<2x128xf32>
    %97 = arith.addf %90, %96 : vector<2x128xf32>
    %98 = vector.extract_strided_slice %33 {offsets = [0, 2, 1, 0], sizes = [2, 1, 1, 64], strides = [1, 1, 1, 1]} : vector<2x4x4x64xf32> to vector<2x1x1x64xf32>
    %99 = vector.shape_cast %98 : vector<2x1x1x64xf32> to vector<2x64xf32>
    %100 = arith.truncf %99 : vector<2x64xf32> to vector<2x64xbf16>
    %c9 = arith.constant 9 : index
    %c0_44 = arith.constant 0 : index
    %c0_45 = arith.constant 0 : index
    %101 = vector.load %arg5[%c9, %c0_44, %c0_45] : memref<16x64x128xbf16, #tpu.memory_space<vmem>>, vector<1x64x128xbf16>
    %102 = vector.shape_cast %101 : vector<1x64x128xbf16> to vector<64x128xbf16>
    %cst_46 = arith.constant dense<0.000000e+00> : vector<2x128xf32>
    %103 = tpu.matmul %100, %102, %cst_46 {dimension_numbers = #tpu.dot_dimension_numbers<[1], [0], [0], [1], [0, 0, 1, 1], [], []>} : vector<2x64xbf16>, vector<64x128xbf16>, vector<2x128xf32> -> vector<2x128xf32>
    %104 = arith.addf %97, %103 : vector<2x128xf32>
    %105 = vector.extract_strided_slice %33 {offsets = [0, 2, 2, 0], sizes = [2, 1, 1, 64], strides = [1, 1, 1, 1]} : vector<2x4x4x64xf32> to vector<2x1x1x64xf32>
    %106 = vector.shape_cast %105 : vector<2x1x1x64xf32> to vector<2x64xf32>
    %107 = arith.truncf %106 : vector<2x64xf32> to vector<2x64xbf16>
    %c10 = arith.constant 10 : index
    %c0_47 = arith.constant 0 : index
    %c0_48 = arith.constant 0 : index
    %108 = vector.load %arg5[%c10, %c0_47, %c0_48] : memref<16x64x128xbf16, #tpu.memory_space<vmem>>, vector<1x64x128xbf16>
    %109 = vector.shape_cast %108 : vector<1x64x128xbf16> to vector<64x128xbf16>
    %cst_49 = arith.constant dense<0.000000e+00> : vector<2x128xf32>
    %110 = tpu.matmul %107, %109, %cst_49 {dimension_numbers = #tpu.dot_dimension_numbers<[1], [0], [0], [1], [0, 0, 1, 1], [], []>} : vector<2x64xbf16>, vector<64x128xbf16>, vector<2x128xf32> -> vector<2x128xf32>
    %111 = arith.addf %104, %110 : vector<2x128xf32>
    %112 = vector.extract_strided_slice %33 {offsets = [0, 2, 3, 0], sizes = [2, 1, 1, 64], strides = [1, 1, 1, 1]} : vector<2x4x4x64xf32> to vector<2x1x1x64xf32>
    %113 = vector.shape_cast %112 : vector<2x1x1x64xf32> to vector<2x64xf32>
    %114 = arith.truncf %113 : vector<2x64xf32> to vector<2x64xbf16>
    %c11 = arith.constant 11 : index
    %c0_50 = arith.constant 0 : index
    %c0_51 = arith.constant 0 : index
    %115 = vector.load %arg5[%c11, %c0_50, %c0_51] : memref<16x64x128xbf16, #tpu.memory_space<vmem>>, vector<1x64x128xbf16>
    %116 = vector.shape_cast %115 : vector<1x64x128xbf16> to vector<64x128xbf16>
    %cst_52 = arith.constant dense<0.000000e+00> : vector<2x128xf32>
    %117 = tpu.matmul %114, %116, %cst_52 {dimension_numbers = #tpu.dot_dimension_numbers<[1], [0], [0], [1], [0, 0, 1, 1], [], []>} : vector<2x64xbf16>, vector<64x128xbf16>, vector<2x128xf32> -> vector<2x128xf32>
    %118 = arith.addf %111, %117 : vector<2x128xf32>
    %119 = vector.extract_strided_slice %33 {offsets = [0, 3, 0, 0], sizes = [2, 1, 1, 64], strides = [1, 1, 1, 1]} : vector<2x4x4x64xf32> to vector<2x1x1x64xf32>
    %120 = vector.shape_cast %119 : vector<2x1x1x64xf32> to vector<2x64xf32>
    %121 = arith.truncf %120 : vector<2x64xf32> to vector<2x64xbf16>
    %c12 = arith.constant 12 : index
    %c0_53 = arith.constant 0 : index
    %c0_54 = arith.constant 0 : index
    %122 = vector.load %arg5[%c12, %c0_53, %c0_54] : memref<16x64x128xbf16, #tpu.memory_space<vmem>>, vector<1x64x128xbf16>
    %123 = vector.shape_cast %122 : vector<1x64x128xbf16> to vector<64x128xbf16>
    %cst_55 = arith.constant dense<0.000000e+00> : vector<2x128xf32>
    %124 = tpu.matmul %121, %123, %cst_55 {dimension_numbers = #tpu.dot_dimension_numbers<[1], [0], [0], [1], [0, 0, 1, 1], [], []>} : vector<2x64xbf16>, vector<64x128xbf16>, vector<2x128xf32> -> vector<2x128xf32>
    %125 = arith.addf %118, %124 : vector<2x128xf32>
    %126 = vector.extract_strided_slice %33 {offsets = [0, 3, 1, 0], sizes = [2, 1, 1, 64], strides = [1, 1, 1, 1]} : vector<2x4x4x64xf32> to vector<2x1x1x64xf32>
    %127 = vector.shape_cast %126 : vector<2x1x1x64xf32> to vector<2x64xf32>
    %128 = arith.truncf %127 : vector<2x64xf32> to vector<2x64xbf16>
    %c13 = arith.constant 13 : index
    %c0_56 = arith.constant 0 : index
    %c0_57 = arith.constant 0 : index
    %129 = vector.load %arg5[%c13, %c0_56, %c0_57] : memref<16x64x128xbf16, #tpu.memory_space<vmem>>, vector<1x64x128xbf16>
    %130 = vector.shape_cast %129 : vector<1x64x128xbf16> to vector<64x128xbf16>
    %cst_58 = arith.constant dense<0.000000e+00> : vector<2x128xf32>
    %131 = tpu.matmul %128, %130, %cst_58 {dimension_numbers = #tpu.dot_dimension_numbers<[1], [0], [0], [1], [0, 0, 1, 1], [], []>} : vector<2x64xbf16>, vector<64x128xbf16>, vector<2x128xf32> -> vector<2x128xf32>
    %132 = arith.addf %125, %131 : vector<2x128xf32>
    %133 = vector.extract_strided_slice %33 {offsets = [0, 3, 2, 0], sizes = [2, 1, 1, 64], strides = [1, 1, 1, 1]} : vector<2x4x4x64xf32> to vector<2x1x1x64xf32>
    %134 = vector.shape_cast %133 : vector<2x1x1x64xf32> to vector<2x64xf32>
    %135 = arith.truncf %134 : vector<2x64xf32> to vector<2x64xbf16>
    %c14 = arith.constant 14 : index
    %c0_59 = arith.constant 0 : index
    %c0_60 = arith.constant 0 : index
    %136 = vector.load %arg5[%c14, %c0_59, %c0_60] : memref<16x64x128xbf16, #tpu.memory_space<vmem>>, vector<1x64x128xbf16>
    %137 = vector.shape_cast %136 : vector<1x64x128xbf16> to vector<64x128xbf16>
    %cst_61 = arith.constant dense<0.000000e+00> : vector<2x128xf32>
    %138 = tpu.matmul %135, %137, %cst_61 {dimension_numbers = #tpu.dot_dimension_numbers<[1], [0], [0], [1], [0, 0, 1, 1], [], []>} : vector<2x64xbf16>, vector<64x128xbf16>, vector<2x128xf32> -> vector<2x128xf32>
    %139 = arith.addf %132, %138 : vector<2x128xf32>
    %140 = vector.extract_strided_slice %33 {offsets = [0, 3, 3, 0], sizes = [2, 1, 1, 64], strides = [1, 1, 1, 1]} : vector<2x4x4x64xf32> to vector<2x1x1x64xf32>
    %141 = vector.shape_cast %140 : vector<2x1x1x64xf32> to vector<2x64xf32>
    %142 = arith.truncf %141 : vector<2x64xf32> to vector<2x64xbf16>
    %c15 = arith.constant 15 : index
    %c0_62 = arith.constant 0 : index
    %c0_63 = arith.constant 0 : index
    %143 = vector.load %arg5[%c15, %c0_62, %c0_63] : memref<16x64x128xbf16, #tpu.memory_space<vmem>>, vector<1x64x128xbf16>
    %144 = vector.shape_cast %143 : vector<1x64x128xbf16> to vector<64x128xbf16>
    %cst_64 = arith.constant dense<0.000000e+00> : vector<2x128xf32>
    %145 = tpu.matmul %142, %144, %cst_64 {dimension_numbers = #tpu.dot_dimension_numbers<[1], [0], [0], [1], [0, 0, 1, 1], [], []>} : vector<2x64xbf16>, vector<64x128xbf16>, vector<2x128xf32> -> vector<2x128xf32>
    %146 = arith.addf %139, %145 : vector<2x128xf32>
    %c0_65 = arith.constant 0 : index
    %c0_66 = arith.constant 0 : index
    %147 = vector.load %arg6[%c0_65, %c0_66] : memref<1x128xf32, #tpu.memory_space<vmem>>, vector<1x128xf32>
    %148 = vector.broadcast %147 : vector<1x128xf32> to vector<2x128xf32>
    %149 = arith.addf %146, %148 : vector<2x128xf32>
    %c0_67 = arith.constant 0 : index
    %c0_68 = arith.constant 0 : index
    %150 = vector.load %arg7[%c0_67, %c0_68] : memref<2x128xf32, #tpu.memory_space<vmem>>, vector<2x128xf32>
    tpu.vector_store %arg7[%c0_67, %c0_68], %149 {strides = array<i32>} : memref<2x128xf32, #tpu.memory_space<vmem>>, vector<2x128xf32>,
    return
  }
  func.func @transform_0(%arg0: i32) -> (i32, i32) {
    %c0_i32 = arith.constant 0 : i32
    %c0_i32_0 = arith.constant 0 : i32
    %c0_i32_1 = arith.constant 0 : i32
    return %c0_i32, %c0_i32_0 : i32, i32
  }
  func.func @transform_1(%arg0: i32) -> (i32, i32) {
    %c0_i32 = arith.constant 0 : i32
    %c0_i32_0 = arith.constant 0 : i32
    %c0_i32_1 = arith.constant 0 : i32
    return %c0_i32, %c0_i32_0 : i32, i32
  }
  func.func @transform_2(%arg0: i32) -> (i32, i32) {
    %c0_i32 = arith.constant 0 : i32
    %c0_i32_0 = arith.constant 0 : i32
    %c0_i32_1 = arith.constant 0 : i32
    return %c0_i32, %c0_i32_0 : i32, i32
  }
  func.func @transform_3(%arg0: i32) -> (i32, i32) {
    %c0_i32 = arith.constant 0 : i32
    %c0_i32_0 = arith.constant 0 : i32
    %c0_i32_1 = arith.constant 0 : i32
    return %c0_i32, %c0_i32_0 : i32, i32
  }
  func.func @transform_4(%arg0: i32) -> (i32, i32, i32) {
    %c0_i32 = arith.constant 0 : i32
    %c0_i32_0 = arith.constant 0 : i32
    %c0_i32_1 = arith.constant 0 : i32
    %c0_i32_2 = arith.constant 0 : i32
    return %c0_i32, %c0_i32_0, %c0_i32_1 : i32, i32, i32
  }
  func.func @transform_5(%arg0: i32) -> (i32, i32) {
    %c0_i32 = arith.constant 0 : i32
    %c0_i32_0 = arith.constant 0 : i32
    %c0_i32_1 = arith.constant 0 : i32
    return %c0_i32, %c0_i32_0 : i32, i32
  }
  func.func @transform_6(%arg0: i32) -> (i32, i32) {
    %c0_i32 = arith.constant 0 : i32
    %c0_i32_0 = arith.constant 0 : i32
    %c0_i32_1 = arith.constant 0 : i32
    return %c0_i32, %c0_i32_0 : i32, i32
  }
}

</mosaic_0001>

<bundles_post_ra>
// kernel: customized_cnn1_forward.2
= control target key start
LH: loop header
LB: loop body
LE: loop exit
PB: predicated region body
PF: predicated region fallthrough
CT: control target
= control target key end

     0   :  { %vm258_vm0 = vcmask 261120   ;;  %vm644_vm1 = vcmask 523264   ;;  %vm2053_vm2 = vcmask 517120   ;;  %vm3590_vm3 = vcmask 1041409   ;;  %s7992_s1 = inlined_call_operand.vmem [shape: bf16[32,64], index: 1, kind: input, shape index: {}]   ;;  %s7993_s0 = inlined_call_operand.vmem [shape: bf16[512,32], index: 0, kind: input, shape index: {}]   ;;  %s7994_s2 = inlined_call_operand.vmem [shape: f32[1,64], index: 2, kind: input, shape index: {}]   ;;  %s7995_s3 = inlined_call_operand.vmem [shape: f32[1,64], index: 3, kind: input, shape index: {}]   ;;  %s7996_s4 = inlined_call_operand.vmem [shape: bf16[16,8,64], index: 4, kind: output, shape index: {}]  }
   0x1   :  { %v4191_v0 = vld [vmem:[%s7992_s1] sm:$0xff]   ;;  %v4192_v1 = vld [vmem:[%s7992_s1 + $0x8] sm:$0xff]   ;;  %v4195_v4 = vld [vmem:[%s7993_s0 + $0x10] sm:$0xff]   ;;  %vm3592_vm4 = vcmask 1042434   ;;  %vm3594_vm5 = vcmask 1043459   ;;  %vm3596_vm6 = vcmask 1044484  }
   0x2   :  { %4118 = vmatprep.subr.bf16.mxu0 %v4191_v0  ;;  %v4193_v2 = vld [vmem:[%s7993_s0] sm:$0xff]   ;;  %4186 = vmatprep.subr.bf16.mxu1 %v4191_v0  ;;  %v4194_v3 = vld [vmem:[%s7993_s0 + $0x8] sm:$0xff]   ;;  %v4196_v5 = vld [vmem:[%s7993_s0 + $0x18] sm:$0xff]   ;;  %vm3598_vm7 = vcmask 1045509   ;;  %vm3600_vm8 = vcmask 1046534   ;;  %vm3602_vm9 = vcmask 1047559  }
   0x3   :  { %4119 = vmatpush3.bf16.msra.mxu0 %v4191_v0  ;;  %4188 = vmatpush3.bf16.msra.mxu1 %v4191_v0  ;;  %v4197_v6 = vld [vmem:[%s7993_s0 + $0x20] sm:$0xff]   ;;  %v4210_v8 = vld [vmem:[%s7993_s0 + $0x88] sm:$0xff]   ;;  %v4211_v9 = vld [vmem:[%s7993_s0 + $0x90] sm:$0xff]   ;;  %vm3741_vm10 = vcmask 519168  }
   0x4   :  { %4120 = vmatprep.subr.bf16.mxu0 %v4192_v1  ;;  %4122 = vmatprep.mubr.msk.bf16.mxu0 %vm258_vm0, %v4193_v2  ;;  %v4209_v7 = vld [vmem:[%s7993_s0 + $0x80] sm:$0xff]   ;;  %v4198_v10 = vld [vmem:[%s7993_s0 + $0x28] sm:$0xff]   ;;  %v4199_v11 = vld [vmem:[%s7993_s0 + $0x30] sm:$0xff]  }
   0x5   :  { %4187 = vmatprep.subr.bf16.mxu1 %v4192_v1  ;;  %4154 = vmatprep.mubr.msk.bf16.mxu1 %vm258_vm0, %v4209_v7  ;;  %v4212_v12 = vld [vmem:[%s7993_s0 + $0x98] sm:$0xff]   ;;  %v4213_v13 = vld [vmem:[%s7993_s0 + $0xa0] sm:$0xff]   ;;  %v4214_v16 = vld [vmem:[%s7993_s0 + $0xa8] sm:$0xff]  }
   0x6   :  { %v4200_v14 = vld [vmem:[%s7993_s0 + $0x38] sm:$0xff]   ;;  %v4201_v15 = vld [vmem:[%s7993_s0 + $0x40] sm:$0xff]   ;;  %v4215_v17 = vld [vmem:[%s7993_s0 + $0xb0] sm:$0xff]  }
   0x7   :  { %4121 = vmatpush3.bf16.msra.mxu0 %v4192_v1  ;;  %4189 = vmatpush3.bf16.msra.mxu1 %v4192_v1  ;;  %v4202_v18 = vld [vmem:[%s7993_s0 + $0x48] sm:$0xff]   ;;  %v4203_v19 = vld [vmem:[%s7993_s0 + $0x50] sm:$0xff]   ;;  %v4216_v20 = vld [vmem:[%s7993_s0 + $0xb8] sm:$0xff]  }
   0x8   :  { %v4217_v21 = vld [vmem:[%s7993_s0 + $0xc0] sm:$0xff]   ;;  %v4204_v22 = vld [vmem:[%s7993_s0 + $0x58] sm:$0xff]   ;;  %v4218_v24 = vld [vmem:[%s7993_s0 + $0xc8] sm:$0xff]  }
   0x9   :  { %v4205_v23 = vld [vmem:[%s7993_s0 + $0x60] sm:$0xff]   ;;  %v4219_v25 = vld [vmem:[%s7993_s0 + $0xd0] sm:$0xff]   ;;  %v4206_v26 = vld [vmem:[%s7993_s0 + $0x68] sm:$0xff]  }
   0xa   :  { %4123 = vmatmul.mubr.msk.bf16.vlgmr.msra.gmra.mrb[0].mxu0 %vm258_vm0, %v4194_v3  ;;  %4155 = vmatmul.mubr.msk.bf16.vlgmr.msra.gmra.mrb[0].mxu1 %vm258_vm0, %v4210_v8  ;;  %v4207_v27 = vld [vmem:[%s7993_s0 + $0x70] sm:$0xff]   ;;  %v4220_v28 = vld [vmem:[%s7993_s0 + $0xd8] sm:$0xff]   ;;  %v4221_v29 = vld [vmem:[%s7993_s0 + $0xe0] sm:$0xff]  }
   0xb   :  { %4126 = vmatprep.mubr.msk.bf16.mxu0 %vm258_vm0, %v4195_v4  ;;  %4158 = vmatprep.mubr.msk.bf16.mxu1 %vm258_vm0, %v4211_v9  ;;  %v4208_v30 = vld [vmem:[%s7993_s0 + $0x78] sm:$0xff]   ;;  %v4222_v31 = vld [vmem:[%s7993_s0 + $0xe8] sm:$0xff]   ;;  %v4223_v32 = vld [vmem:[%s7993_s0 + $0xf0] sm:$0xff]  }
   0xc   :  { %v4224_v33 = vld [vmem:[%s7993_s0 + $0xf8] sm:$0xff]  }
  0x12   :  { %4127 = vmatmul.mubr.msk.bf16.gmra.mrb[4].mxu0 %vm258_vm0, %v4196_v5  ;;  %4159 = vmatmul.mubr.msk.bf16.gmra.mrb[4].mxu1 %vm258_vm0, %v4212_v12 }
  0x13   :  { %4130 = vmatprep.mubr.msk.bf16.mxu0 %vm258_vm0, %v4197_v6  ;;  %4162 = vmatprep.mubr.msk.bf16.mxu1 %vm258_vm0, %v4213_v13 }
  0x1a   :  { %4131 = vmatmul.mubr.msk.bf16.gmra.mrb[8].mxu0 %vm258_vm0, %v4198_v10  ;;  %4163 = vmatmul.mubr.msk.bf16.gmra.mrb[8].mxu1 %vm258_vm0, %v4214_v16 }
  0x1b   :  { %4134 = vmatprep.mubr.msk.bf16.mxu0 %vm258_vm0, %v4199_v11  ;;  %4166 = vmatprep.mubr.msk.bf16.mxu1 %vm258_vm0, %v4215_v17 }
  0x22   :  { %4135 = vmatmul.mubr.msk.bf16.gmra.mrb[12].mxu0 %vm258_vm0, %v4200_v14  ;;  %4167 = vmatmul.mubr.msk.bf16.gmra.mrb[12].mxu1 %vm258_vm0, %v4216_v20 }
  0x23   :  { %4138 = vmatprep.mubr.msk.bf16.mxu0 %vm258_vm0, %v4201_v15  ;;  %4170 = vmatprep.mubr.msk.bf16.mxu1 %vm258_vm0, %v4217_v21 }
  0x2a   :  { %4139 = vmatmul.mubr.msk.bf16.gmra.mrb[16].mxu0 %vm258_vm0, %v4202_v18  ;;  %4171 = vmatmul.mubr.msk.bf16.gmra.mrb[16].mxu1 %vm258_vm0, %v4218_v24 }
  0x2b   :  { %4142 = vmatprep.mubr.msk.bf16.mxu0 %vm258_vm0, %v4203_v19  ;;  %4174 = vmatprep.mubr.msk.bf16.mxu1 %vm258_vm0, %v4219_v25 }
  0x32   :  { %4143 = vmatmul.mubr.msk.bf16.gmra.mrb[20].mxu0 %vm258_vm0, %v4204_v22  ;;  %4175 = vmatmul.mubr.msk.bf16.gmra.mrb[20].mxu1 %vm258_vm0, %v4220_v28 }
  0x33   :  { %4146 = vmatprep.mubr.msk.bf16.mxu0 %vm258_vm0, %v4205_v23  ;;  %4178 = vmatprep.mubr.msk.bf16.mxu1 %vm258_vm0, %v4221_v29 }
  0x3a   :  { %4147 = vmatmul.mubr.msk.bf16.gmra.mrb[24].mxu0 %vm258_vm0, %v4206_v26  ;;  %4179 = vmatmul.mubr.msk.bf16.gmra.mrb[24].mxu1 %vm258_vm0, %v4222_v31 }
  0x3b   :  { %4150 = vmatprep.mubr.msk.bf16.mxu0 %vm258_vm0, %v4207_v27  ;;  %4182 = vmatprep.mubr.msk.bf16.mxu1 %vm258_vm0, %v4223_v32 }
  0x42   :  { %4151 = vmatmul.mubr.msk.bf16.gmra.mrb[28].mxu0 %vm258_vm0, %v4208_v30  ;;  %4183 = vmatmul.mubr.msk.bf16.gmra.mrb[28].mxu1 %vm258_vm0, %v4224_v33 }
  0xdd   :  { %v4387_v34 = vpop.f32.mrb[0].mxu0  ;;  %v4413_v51 = vpop.f32.mrb[0].mxu1 }
  0xde   :  { %v4389_v35 = vpop.f32.mrb[1].mxu0  ;;  %v648_v41 = vsel %vm644_vm1, %v4387_v34, 0.0  ;;  %8214 = vst [vmem:[#allocation4_spill] sm:$0xff] %v4413_v51  ;;  %v4417_v53 = vpop.f32.mrb[1].mxu1 }
  0xdf   :  { %v4391_v36 = vpop.f32.mrb[2].mxu0  ;;  %v645_v38 = vsel %vm644_vm1, %v4389_v35, 0.0  ;;  %8215 = vst [vmem:[#allocation5_spill] sm:$0xff] %v4417_v53  ;;  %v4419_v55 = vpop.f32.mrb[2].mxu1 }
  0xe0   :  { %v4393_v37 = vpop.f32.mrb[3].mxu0  ;;  %v650_v43 = vsel %vm644_vm1, %v4391_v36, 0.0  ;;  %8216 = vst [vmem:[#allocation6_spill] sm:$0xff] %v4419_v55  ;;  %v4423_v57 = vpop.f32.mrb[3].mxu1 }
  0xe1   :  { %v646_v39 = vsel %vm644_vm1, %v4393_v37, 0.0  ;;  %8217 = vst [vmem:[#allocation7_spill] sm:$0xff] %v4423_v57 }
  0xe2   :  { %v647_v40 = vadd.f32 %v646_v39, %v645_v38 }
  0xe4   :  { %v649_v42 = vadd.f32 %v648_v41, %v647_v40 }
  0xe5   :  { %v4403_v44 = vpop.f32.mrb[4].mxu0  ;;  %v4437_v3 = vpop.f32.mrb[4].mxu1 }
  0xe6   :  { %v4405_v45 = vpop.f32.mrb[5].mxu0  ;;  %v651_v46 = vadd.f32 %v650_v43, %v649_v42  ;;  %v656_v56 = vsel %vm644_vm1, %v4403_v44, 0.0  ;;  %v4441_v5 = vpop.f32.mrb[5].mxu1 }
  0xe7   :  { %8212 = vst [vmem:[#allocation2_spill] sm:$0xff] %v4405_v45  ;;  %v652_v47 = vsel %vm644_vm1, %v4405_v45, 0.0  ;;  %v4409_v48 = vpop.f32.mrb[6].mxu0  ;;  %v4443_v7 = vpop.f32.mrb[6].mxu1 }
  0xe8   :  { %v653_v49 = vadd.f32 %v652_v47, %v651_v46  ;;  %v4411_v50 = vpop.f32.mrb[7].mxu0  ;;  %v658_v59 = vsel %vm644_vm1, %v4409_v48, 0.0  ;;  %v4447_v9 = vpop.f32.mrb[7].mxu1 }
  0xe9   :  { %8213 = vst [vmem:[#allocation3_spill] sm:$0xff] %v4411_v50  ;;  %v654_v52 = vsel %vm644_vm1, %v4411_v50, 0.0 }
  0xea   :  { %v655_v54 = vadd.f32 %v654_v52, %v653_v49 }
  0xec   :  { %v657_v58 = vadd.f32 %v656_v56, %v655_v54 }
  0xed   :  { %v4427_v60 = vpop.f32.mrb[8].mxu0  ;;  %v4461_v19 = vpop.f32.mrb[8].mxu1 }
  0xee   :  { %v4429_v61 = vpop.f32.mrb[9].mxu0  ;;  %v659_v62 = vadd.f32 %v658_v59, %v657_v58  ;;  %v664_v8 = vsel %vm644_vm1, %v4427_v60, 0.0  ;;  %v4465_v21 = vpop.f32.mrb[9].mxu1 }
  0xef   :  { %v660_v63 = vsel %vm644_vm1, %v4429_v61, 0.0  ;;  %v4433_v0 = vpop.f32.mrb[10].mxu0  ;;  %v4467_v23 = vpop.f32.mrb[10].mxu1 }
  0xf0   :  { %v661_v1 = vadd.f32 %v660_v63, %v659_v62  ;;  %v4435_v2 = vpop.f32.mrb[11].mxu0  ;;  %v666_v11 = vsel %vm644_vm1, %v4433_v0, 0.0  ;;  %v4471_v25 = vpop.f32.mrb[11].mxu1 }
  0xf1   :  { %v662_v4 = vsel %vm644_vm1, %v4435_v2, 0.0 }
  0xf2   :  { %v663_v6 = vadd.f32 %v662_v4, %v661_v1 }
  0xf4   :  { %v665_v10 = vadd.f32 %v664_v8, %v663_v6 }
  0xf5   :  { %v4451_v12 = vpop.f32.mrb[12].mxu0  ;;  %v4485_v39 = vpop.f32.mrb[12].mxu1 }
  0xf6   :  { %v4453_v13 = vpop.f32.mrb[13].mxu0  ;;  %v667_v14 = vadd.f32 %v666_v11, %v665_v10  ;;  %v672_v24 = vsel %vm644_vm1, %v4451_v12, 0.0  ;;  %v4489_v41 = vpop.f32.mrb[13].mxu1 }
  0xf7   :  { %v668_v15 = vsel %vm644_vm1, %v4453_v13, 0.0  ;;  %v4457_v16 = vpop.f32.mrb[14].mxu0  ;;  %v4491_v43 = vpop.f32.mrb[14].mxu1 }
  0xf8   :  { %v669_v17 = vadd.f32 %v668_v15, %v667_v14  ;;  %v4459_v18 = vpop.f32.mrb[15].mxu0  ;;  %v674_v27 = vsel %vm644_vm1, %v4457_v16, 0.0  ;;  %v4495_v47 = vpop.f32.mrb[15].mxu1 }
  0xf9   :  { %v670_v20 = vsel %vm644_vm1, %v4459_v18, 0.0 }
  0xfa   :  { %v671_v22 = vadd.f32 %v670_v20, %v669_v17 }
  0xfc   :  { %v673_v26 = vadd.f32 %v672_v24, %v671_v22 }
  0xfd   :  { %v4475_v28 = vpop.f32.mrb[16].mxu0  ;;  %v4509_v4 = vpop.f32.mrb[16].mxu1 }
  0xfe   :  { %v4477_v29 = vpop.f32.mrb[17].mxu0  ;;  %v675_v30 = vadd.f32 %v674_v27, %v673_v26  ;;  %v680_v46 = vsel %vm644_vm1, %v4475_v28, 0.0  ;;  %v4513_v8 = vpop.f32.mrb[17].mxu1 }
  0xff   :  { %v676_v31 = vsel %vm644_vm1, %v4477_v29, 0.0  ;;  %v4481_v32 = vpop.f32.mrb[18].mxu0  ;;  %v4515_v11 = vpop.f32.mrb[18].mxu1 }
 0x100   :  { %v677_v33 = vadd.f32 %v676_v31, %v675_v30  ;;  %v4483_v38 = vpop.f32.mrb[19].mxu0  ;;  %v682_v52 = vsel %vm644_vm1, %v4481_v32, 0.0  ;;  %v4519_v15 = vpop.f32.mrb[19].mxu1 }
 0x101   :  { %v678_v40 = vsel %vm644_vm1, %v4483_v38, 0.0 }
 0x102   :  { %v679_v42 = vadd.f32 %v678_v40, %v677_v33 }
 0x104   :  { %v681_v49 = vadd.f32 %v680_v46, %v679_v42 }
 0x105   :  { %v4499_v54 = vpop.f32.mrb[20].mxu0  ;;  %v4533_v40 = vpop.f32.mrb[20].mxu1 }
 0x106   :  { %8218 = vst [vmem:[#allocation8_spill] sm:$0xff] %v4499_v54  ;;  %v4501_v56 = vpop.f32.mrb[21].mxu0  ;;  %v683_v58 = vadd.f32 %v682_v52, %v681_v49  ;;  %v688_v14 = vsel %vm644_vm1, %v4499_v54, 0.0  ;;  %8226 = vst [vmem:[#allocation16_spill] sm:$0xff] %v4533_v40  ;;  %v4537_v46 = vpop.f32.mrb[21].mxu1 }
 0x107   :  { %8219 = vst [vmem:[#allocation9_spill] sm:$0xff] %v4501_v56  ;;  %v684_v59 = vsel %vm644_vm1, %v4501_v56, 0.0  ;;  %v4505_v62 = vpop.f32.mrb[22].mxu0  ;;  %v4539_v52 = vpop.f32.mrb[22].mxu1 }
 0x108   :  { %8220 = vst [vmem:[#allocation10_spill] sm:$0xff] %v4505_v62  ;;  %v685_v63 = vadd.f32 %v684_v59, %v683_v58  ;;  %v4507_v1 = vpop.f32.mrb[23].mxu0  ;;  %v690_v20 = vsel %vm644_vm1, %v4505_v62, 0.0  ;;  %8227 = vst [vmem:[#allocation17_spill] sm:$0xff] %v4539_v52  ;;  %v4543_v59 = vpop.f32.mrb[23].mxu1 }
 0x109   :  { %8221 = vst [vmem:[#allocation11_spill] sm:$0xff] %v4507_v1  ;;  %v686_v6 = vsel %vm644_vm1, %v4507_v1, 0.0 }
 0x10a   :  { %v687_v10 = vadd.f32 %v686_v6, %v685_v63 }
 0x10c   :  { %v689_v17 = vadd.f32 %v688_v14, %v687_v10 }
 0x10d   :  { %v4523_v22 = vpop.f32.mrb[24].mxu0 }
 0x10e   :  { %8222 = vst [vmem:[#allocation12_spill] sm:$0xff] %v4523_v22  ;;  %v4525_v24 = vpop.f32.mrb[25].mxu0  ;;  %v691_v26 = vadd.f32 %v690_v20, %v689_v17  ;;  %v696_v58 = vsel %vm644_vm1, %v4523_v22, 0.0 }
 0x10f   :  { %8223 = vst [vmem:[#allocation13_spill] sm:$0xff] %v4525_v24  ;;  %v692_v27 = vsel %vm644_vm1, %v4525_v24, 0.0  ;;  %v4529_v30 = vpop.f32.mrb[26].mxu0 }
 0x110   :  { %8224 = vst [vmem:[#allocation14_spill] sm:$0xff] %v4529_v30  ;;  %v693_v31 = vadd.f32 %v692_v27, %v691_v26  ;;  %v4531_v33 = vpop.f32.mrb[27].mxu0  ;;  %v698_v6 = vsel %vm644_vm1, %v4529_v30, 0.0 }
 0x111   :  { %8225 = vst [vmem:[#allocation15_spill] sm:$0xff] %v4531_v33  ;;  %v694_v42 = vsel %vm644_vm1, %v4531_v33, 0.0 }
 0x112   :  { %v695_v49 = vadd.f32 %v694_v42, %v693_v31  ;;  %v4557_v42 = vpop.f32.mrb[24].mxu1 }
 0x113   :  { %8232 = vst [vmem:[#allocation22_spill] sm:$0xff] %v4557_v42 }
 0x114   :  { %v697_v63 = vadd.f32 %v696_v58, %v695_v49  ;;  %v4561_v58 = vpop.f32.mrb[25].mxu1 }
 0x115   :  { %v4547_v10 = vpop.f32.mrb[28].mxu0  ;;  %8233 = vst [vmem:[#allocation23_spill] sm:$0xff] %v4561_v58  ;;  %v4563_v22 = vpop.f32.mrb[26].mxu1 }
 0x116   :  { %8228 = vst [vmem:[#allocation18_spill] sm:$0xff] %v4547_v10  ;;  %v4549_v14 = vpop.f32.mrb[29].mxu0  ;;  %v699_v17 = vadd.f32 %v698_v6, %v697_v63  ;;  %8234 = vst [vmem:[#allocation24_spill] sm:$0xff] %v4563_v22  ;;  %v704_v63 = vsel %vm644_vm1, %v4547_v10, 0.0  ;;  %v4567_v6 = vpop.f32.mrb[27].mxu1 }
 0x117   :  { %8229 = vst [vmem:[#allocation19_spill] sm:$0xff] %v4549_v14  ;;  %v700_v20 = vsel %vm644_vm1, %v4549_v14, 0.0  ;;  %v4553_v26 = vpop.f32.mrb[30].mxu0  ;;  %8235 = vst [vmem:[#allocation25_spill] sm:$0xff] %v4567_v6 }
 0x118   :  { %8230 = vst [vmem:[#allocation20_spill] sm:$0xff] %v4553_v26  ;;  %v701_v27 = vadd.f32 %v700_v20, %v699_v17  ;;  %v4555_v31 = vpop.f32.mrb[31].mxu0  ;;  %v706_v17 = vsel %vm644_vm1, %v4553_v26, 0.0  ;;  %v708_v20 = vsel %vm644_vm1, %v4417_v53, 0.0 }
 0x119   :  { %8231 = vst [vmem:[#allocation21_spill] sm:$0xff] %v4555_v31  ;;  %v702_v49 = vsel %vm644_vm1, %v4555_v31, 0.0  ;;  %v4573_v31 = vpop.f32.mrb[28].mxu1 }
 0x11a   :  { %v703_v30 = vadd.f32 %v702_v49, %v701_v27  ;;  %8236 = vst [vmem:[#allocation26_spill] sm:$0xff] %v4573_v31  ;;  %v710_v27 = vsel %vm644_vm1, %v4423_v57, 0.0  ;;  %v4577_v49 = vpop.f32.mrb[29].mxu1  ;;  %v718_v57 = vsel %vm644_vm1, %v4447_v9, 0.0 }
 0x11b   :  { %8237 = vst [vmem:[#allocation27_spill] sm:$0xff] %v4577_v49  ;;  %v4579_v10 = vpop.f32.mrb[30].mxu1 }
 0x11c   :  { %v705_v14 = vadd.f32 %v704_v63, %v703_v30  ;;  %8238 = vst [vmem:[#allocation28_spill] sm:$0xff] %v4579_v10  ;;  %v712_v30 = vsel %vm644_vm1, %v4413_v51, 0.0  ;;  %v4583_v63 = vpop.f32.mrb[31].mxu1  ;;  %v722_v51 = vsel %vm644_vm1, %v4443_v7, 0.0 }
 0x11d   :  { %8239 = vst [vmem:[#allocation29_spill] sm:$0xff] %v4583_v63 }
 0x11e   :  { %v707_v33 = vadd.f32 %v706_v17, %v705_v14  ;;  %v714_v14 = vsel %vm644_vm1, %v4419_v55, 0.0 }
 0x120   :  { %v709_v24 = vadd.f32 %v708_v20, %v707_v33  ;;  %v716_v33 = vsel %vm644_vm1, %v4441_v5, 0.0 }
 0x122   :  { %v711_v62 = vadd.f32 %v710_v27, %v709_v24  ;;  %v720_v27 = vsel %vm644_vm1, %v4437_v3, 0.0 }
 0x124   :  { %v713_v26 = vadd.f32 %v712_v30, %v711_v62  ;;  %v724_v62 = vsel %vm644_vm1, %v4465_v21, 0.0 }
 0x126   :  { %v715_v17 = vadd.f32 %v714_v14, %v713_v26  ;;  %v726_v26 = vsel %vm644_vm1, %v4471_v25, 0.0 }
 0x128   :  { %v717_v20 = vadd.f32 %v716_v33, %v715_v17  ;;  %v728_v33 = vsel %vm644_vm1, %v4461_v19, 0.0  ;;  %v730_v17 = vsel %vm644_vm1, %v4467_v23, 0.0 }
 0x12a   :  { %v719_v24 = vadd.f32 %v718_v57, %v717_v20  ;;  %v732_v20 = vsel %vm644_vm1, %v4489_v41, 0.0 }
 0x12c   :  { %v721_v53 = vadd.f32 %v720_v27, %v719_v24 }
 0x12e   :  { %v723_v30 = vadd.f32 %v722_v51, %v721_v53  ;;  %v734_v51 = vsel %vm644_vm1, %v4495_v47, 0.0 }
 0x130   :  { %v725_v55 = vadd.f32 %v724_v62, %v723_v30  ;;  %v736_v62 = vsel %vm644_vm1, %v4485_v39, 0.0  ;;  %v738_v30 = vsel %vm644_vm1, %v4491_v43, 0.0 }
 0x132   :  { %v727_v14 = vadd.f32 %v726_v26, %v725_v55  ;;  %v740_v26 = vsel %vm644_vm1, %v4513_v8, 0.0 }
 0x134   :  { %v729_v57 = vadd.f32 %v728_v33, %v727_v14 }
 0x136   :  { %v731_v24 = vadd.f32 %v730_v17, %v729_v57  ;;  %v742_v57 = vsel %vm644_vm1, %v4519_v15, 0.0 }
 0x138   :  { %v733_v27 = vadd.f32 %v732_v20, %v731_v24  ;;  %v744_v20 = vsel %vm644_vm1, %v4509_v4, 0.0 }
 0x13a   :  { %v735_v53 = vadd.f32 %v734_v51, %v733_v27  ;;  %v746_v27 = vsel %vm644_vm1, %v4515_v11, 0.0  ;;  %v748_v51 = vsel %vm644_vm1, %v4537_v46, 0.0 }
 0x13c   :  { %v737_v55 = vadd.f32 %v736_v62, %v735_v53 }
 0x13e   :  { %v739_v14 = vadd.f32 %v738_v30, %v737_v55  ;;  %v750_v55 = vsel %vm644_vm1, %v4543_v59, 0.0 }
 0x140   :  { %v741_v33 = vadd.f32 %v740_v26, %v739_v14  ;;  %v752_v26 = vsel %vm644_vm1, %v4533_v40, 0.0 }
 0x142   :  { %v743_v17 = vadd.f32 %v742_v57, %v741_v33  ;;  %v754_v33 = vsel %vm644_vm1, %v4539_v52, 0.0  ;;  %v756_v57 = vsel %vm644_vm1, %v4561_v58, 0.0 }
 0x144   :  { %v745_v24 = vadd.f32 %v744_v20, %v743_v17 }
 0x146   :  { %v747_v53 = vadd.f32 %v746_v27, %v745_v24  ;;  %v758_v24 = vsel %vm644_vm1, %v4567_v6, 0.0 }
 0x148   :  { %v749_v62 = vadd.f32 %v748_v51, %v747_v53  ;;  %v760_v51 = vsel %vm644_vm1, %v4557_v42, 0.0 }
 0x14a   :  { %v751_v30 = vadd.f32 %v750_v55, %v749_v62  ;;  %v762_v62 = vsel %vm644_vm1, %v4563_v22, 0.0  ;;  %v764_v55 = vsel %vm644_vm1, %v4577_v49, 0.0 }
 0x14c   :  { %v753_v14 = vadd.f32 %v752_v26, %v751_v30 }
 0x14e   :  { %v755_v17 = vadd.f32 %v754_v33, %v753_v14  ;;  %v766_v14 = vsel %vm644_vm1, %v4583_v63, 0.0 }
 0x150   :  { %v757_v20 = vadd.f32 %v756_v57, %v755_v17  ;;  %v768_v57 = vsel %vm644_vm1, %v4573_v31, 0.0 }
 0x152   :  { %v759_v27 = vadd.f32 %v758_v24, %v757_v20  ;;  %v770_v20 = vsel %vm644_vm1, %v4579_v10, 0.0 }
 0x154   :  { %v761_v53 = vadd.f32 %v760_v51, %v759_v27 }
 0x156   :  { %v763_v30 = vadd.f32 %v762_v62, %v761_v53 }
 0x158   :  { %v765_v26 = vadd.f32 %v764_v55, %v763_v30 }
 0x15a   :  { %v767_v33 = vadd.f32 %v766_v14, %v765_v26 }
 0x15c   :  { %v769_v17 = vadd.f32 %v768_v57, %v767_v33 }
 0x15e   :  { %v771_v24 = vadd.f32 %v770_v20, %v769_v17 }
 0x160   :  { %v772_v27 = vrot.slane %v771_v24, 4 }
 0x162   :  { %v773_v51 = vadd.f32 %v772_v27, %v771_v24 }
 0x164   :  { %v774_v22 = vrot.slane %v773_v51, 2 }
 0x166   :  { %v775_v42 = vadd.f32 %v774_v22, %v773_v51 }
 0x168   :  { %v776_v6 = vrot.slane %v775_v42, 1 }
 0x16a   :  { %v777_v49 = vadd.f32 %v776_v6, %v775_v42 }
 0x16c   :  { %v4643_v53 = vmul.f32 0.001953125, %v777_v49 }
 0x16e   :  { %v780_v62 = vsub.f32 %v4389_v35, %v4643_v53  ;;  %v781_v55 = vsub.f32 %v4393_v37, %v4643_v53  ;;  %v782_v30 = vsub.f32 %v4387_v34, %v4643_v53  ;;  %v783_v26 = vsub.f32 %v4391_v36, %v4643_v53 }
 0x16f   :  { %v784_v22 = vsub.f32 %v4405_v45, %v4643_v53  ;;  %v785_v6 = vsub.f32 %v4411_v50, %v4643_v53  ;;  %v786_v24 = vsub.f32 %v4403_v44, %v4643_v53 }
 0x170   :  { %v844_v14 = vmul.f32 %v780_v62, %v780_v62  ;;  %v845_v33 = vmul.f32 %v781_v55, %v781_v55  ;;  %v846_v42 = vmul.f32 %v782_v30, %v782_v30  ;;  %v847_v49 = vmul.f32 %v783_v26, %v783_v26 }
 0x171   :  { %v848_v27 = vmul.f32 %v784_v22, %v784_v22  ;;  %v787_v55 = vsub.f32 %v4409_v48, %v4643_v53  ;;  %v849_v30 = vmul.f32 %v785_v6, %v785_v6  ;;  %v788_v26 = vsub.f32 %v4429_v61, %v4643_v53 }
 0x172   :  { %v908_v57 = vsel %vm644_vm1, %v844_v14, 0.0  ;;  %v909_v17 = vsel %vm644_vm1, %v845_v33, 0.0  ;;  %v911_v51 = vsel %vm644_vm1, %v846_v42, 0.0  ;;  %v913_v45 = vsel %vm644_vm1, %v847_v49, 0.0 }
 0x173   :  { %v910_v20 = vadd.f32 %v909_v17, %v908_v57  ;;  %v850_v14 = vmul.f32 %v786_v24, %v786_v24  ;;  %v915_v33 = vsel %vm644_vm1, %v848_v27, 0.0  ;;  %v789_v22 = vsub.f32 %v4435_v2, %v4643_v53 }
 0x174   :  { %v851_v17 = vmul.f32 %v787_v55, %v787_v55  ;;  %v917_v42 = vsel %vm644_vm1, %v849_v30, 0.0  ;;  %v790_v6 = vsub.f32 %v4427_v60, %v4643_v53  ;;  %v791_v24 = vsub.f32 %v4433_v0, %v4643_v53 }
 0x175   :  { %v912_v62 = vadd.f32 %v911_v51, %v910_v20  ;;  %v852_v51 = vmul.f32 %v788_v26, %v788_v26  ;;  %v792_v55 = vsub.f32 %v4453_v13, %v4643_v53  ;;  %v793_v26 = vsub.f32 %v4459_v18, %v4643_v53 }
 0x177   :  { %v914_v50 = vadd.f32 %v913_v45, %v912_v62  ;;  %v919_v45 = vsel %vm644_vm1, %v850_v14, 0.0  ;;  %v853_v62 = vmul.f32 %v789_v22, %v789_v22  ;;  %v923_v30 = vsel %vm644_vm1, %v852_v51, 0.0 }
 0x178   :  { %v794_v22 = vsub.f32 %v4451_v12, %v4643_v53 }
 0x179   :  { %v916_v57 = vadd.f32 %v915_v33, %v914_v50  ;;  %v921_v50 = vsel %vm644_vm1, %v851_v17, 0.0  ;;  %v854_v33 = vmul.f32 %v790_v6, %v790_v6  ;;  %v925_v14 = vsel %vm644_vm1, %v853_v62, 0.0 }
 0x17a   :  { %v795_v6 = vsub.f32 %v4457_v16, %v4643_v53 }
 0x17b   :  { %v918_v20 = vadd.f32 %v917_v42, %v916_v57  ;;  %v855_v42 = vmul.f32 %v791_v24, %v791_v24  ;;  %v927_v17 = vsel %vm644_vm1, %v854_v33, 0.0  ;;  %v796_v24 = vsub.f32 %v4477_v29, %v4643_v53 }
 0x17d   :  { %v920_v49 = vadd.f32 %v919_v45, %v918_v20  ;;  %v856_v45 = vmul.f32 %v792_v55, %v792_v55  ;;  %v929_v51 = vsel %vm644_vm1, %v855_v42, 0.0  ;;  %v797_v55 = vsub.f32 %v4483_v38, %v4643_v53 }
 0x17f   :  { %v922_v27 = vadd.f32 %v921_v50, %v920_v49  ;;  %v857_v50 = vmul.f32 %v793_v26, %v793_v26  ;;  %v931_v62 = vsel %vm644_vm1, %v856_v45, 0.0  ;;  %v798_v26 = vsub.f32 %v4475_v28, %v4643_v53 }
 0x181   :  { %v924_v57 = vadd.f32 %v923_v30, %v922_v27  ;;  %v858_v30 = vmul.f32 %v794_v22, %v794_v22  ;;  %v933_v33 = vsel %vm644_vm1, %v857_v50, 0.0  ;;  %v799_v22 = vsub.f32 %v4481_v32, %v4643_v53 }
 0x183   :  { %v926_v20 = vadd.f32 %v925_v14, %v924_v57  ;;  %v859_v14 = vmul.f32 %v795_v6, %v795_v6  ;;  %v935_v42 = vsel %vm644_vm1, %v858_v30, 0.0  ;;  %v800_v6 = vsub.f32 %v4501_v56, %v4643_v53 }
 0x185   :  { %v928_v49 = vadd.f32 %v927_v17, %v926_v20  ;;  %v860_v17 = vmul.f32 %v796_v24, %v796_v24  ;;  %v937_v45 = vsel %vm644_vm1, %v859_v14, 0.0  ;;  %v801_v24 = vsub.f32 %v4507_v1, %v4643_v53 }
 0x187   :  { %v930_v27 = vadd.f32 %v929_v51, %v928_v49  ;;  %v861_v51 = vmul.f32 %v797_v55, %v797_v55  ;;  %v939_v50 = vsel %vm644_vm1, %v860_v17, 0.0  ;;  %v802_v55 = vsub.f32 %v4499_v54, %v4643_v53 }
 0x188   :  { %v865_v56 = vmul.f32 %v801_v24, %v801_v24 }
 0x189   :  { %v932_v57 = vadd.f32 %v931_v62, %v930_v27  ;;  %v862_v62 = vmul.f32 %v798_v26, %v798_v26  ;;  %v941_v30 = vsel %vm644_vm1, %v861_v51, 0.0  ;;  %v866_v1 = vmul.f32 %v802_v55, %v802_v55 }
 0x18b   :  { %v934_v20 = vadd.f32 %v933_v33, %v932_v57  ;;  %v863_v33 = vmul.f32 %v799_v22, %v799_v22  ;;  %v943_v14 = vsel %vm644_vm1, %v862_v62, 0.0  ;;  %v949_v62 = vsel %vm644_vm1, %v865_v56, 0.0 }
 0x18d   :  { %v936_v49 = vadd.f32 %v935_v42, %v934_v20  ;;  %v864_v42 = vmul.f32 %v800_v6, %v800_v6  ;;  %v945_v17 = vsel %vm644_vm1, %v863_v33, 0.0  ;;  %v951_v33 = vsel %vm644_vm1, %v866_v1, 0.0 }
 0x18f   :  { %v938_v27 = vadd.f32 %v937_v45, %v936_v49  ;;  %v8240_v45 = vld [vmem:[#allocation10_spill] sm:$0xff]  ;;  %v947_v51 = vsel %vm644_vm1, %v864_v42, 0.0 }
 0x190   :  { %v803_v26 = vsub.f32 %v8240_v45, %v4643_v53 }
 0x191   :  { %v940_v57 = vadd.f32 %v939_v50, %v938_v27  ;;  %v8241_v50 = vld [vmem:[#allocation13_spill] sm:$0xff] }
 0x192   :  { %v804_v22 = vsub.f32 %v8241_v50, %v4643_v53  ;;  %v867_v54 = vmul.f32 %v803_v26, %v803_v26 }
 0x193   :  { %v942_v20 = vadd.f32 %v941_v30, %v940_v57  ;;  %v8242_v30 = vld [vmem:[#allocation15_spill] sm:$0xff] }
 0x194   :  { %v805_v6 = vsub.f32 %v8242_v30, %v4643_v53  ;;  %v868_v45 = vmul.f32 %v804_v22, %v804_v22  ;;  %v953_v42 = vsel %vm644_vm1, %v867_v54, 0.0 }
 0x195   :  { %v944_v49 = vadd.f32 %v943_v14, %v942_v20  ;;  %v8243_v14 = vld [vmem:[#allocation12_spill] sm:$0xff] }
 0x196   :  { %v806_v24 = vsub.f32 %v8243_v14, %v4643_v53  ;;  %v869_v50 = vmul.f32 %v805_v6, %v805_v6  ;;  %v955_v56 = vsel %vm644_vm1, %v868_v45, 0.0 }
 0x197   :  { %v946_v27 = vadd.f32 %v945_v17, %v944_v49  ;;  %v8244_v17 = vld [vmem:[#allocation14_spill] sm:$0xff] }
 0x198   :  { %v807_v55 = vsub.f32 %v8244_v17, %v4643_v53  ;;  %v870_v30 = vmul.f32 %v806_v24, %v806_v24  ;;  %v957_v1 = vsel %vm644_vm1, %v869_v50, 0.0 }
 0x199   :  { %v948_v57 = vadd.f32 %v947_v51, %v946_v27  ;;  %v8245_v51 = vld [vmem:[#allocation19_spill] sm:$0xff] }
 0x19a   :  { %v808_v26 = vsub.f32 %v8245_v51, %v4643_v53  ;;  %v871_v14 = vmul.f32 %v807_v55, %v807_v55  ;;  %v959_v54 = vsel %vm644_vm1, %v870_v30, 0.0 }
 0x19b   :  { %v950_v20 = vadd.f32 %v949_v62, %v948_v57  ;;  %v8246_v62 = vld [vmem:[#allocation21_spill] sm:$0xff] }
 0x19c   :  { %v809_v22 = vsub.f32 %v8246_v62, %v4643_v53  ;;  %v872_v17 = vmul.f32 %v808_v26, %v808_v26  ;;  %v961_v45 = vsel %vm644_vm1, %v871_v14, 0.0 }
 0x19d   :  { %v952_v49 = vadd.f32 %v951_v33, %v950_v20  ;;  %v8247_v33 = vld [vmem:[#allocation18_spill] sm:$0xff] }
 0x19e   :  { %v810_v6 = vsub.f32 %v8247_v33, %v4643_v53  ;;  %v873_v51 = vmul.f32 %v809_v22, %v809_v22  ;;  %v963_v50 = vsel %vm644_vm1, %v872_v17, 0.0 }
 0x19f   :  { %v954_v27 = vadd.f32 %v953_v42, %v952_v49  ;;  %v8248_v42 = vld [vmem:[#allocation20_spill] sm:$0xff] }
 0x1a0   :  { %v811_v24 = vsub.f32 %v8248_v42, %v4643_v53  ;;  %v874_v62 = vmul.f32 %v810_v6, %v810_v6  ;;  %v965_v30 = vsel %vm644_vm1, %v873_v51, 0.0 }
 0x1a1   :  { %v956_v57 = vadd.f32 %v955_v56, %v954_v27  ;;  %v8249_v56 = vld [vmem:[#allocation5_spill] sm:$0xff] }
 0x1a2   :  { %v812_v55 = vsub.f32 %v8249_v56, %v4643_v53  ;;  %v875_v33 = vmul.f32 %v811_v24, %v811_v24  ;;  %v967_v14 = vsel %vm644_vm1, %v874_v62, 0.0  ;;  %v816_v24 = vsub.f32 %v4441_v5, %v4643_v53 }
 0x1a3   :  { %v958_v20 = vadd.f32 %v957_v1, %v956_v57  ;;  %v8250_v1 = vld [vmem:[#allocation7_spill] sm:$0xff] }
 0x1a4   :  { %v813_v26 = vsub.f32 %v8250_v1, %v4643_v53  ;;  %v876_v42 = vmul.f32 %v812_v55, %v812_v55  ;;  %v969_v17 = vsel %vm644_vm1, %v875_v33, 0.0  ;;  %v817_v55 = vsub.f32 %v4447_v9, %v4643_v53 }
 0x1a5   :  { %v960_v49 = vadd.f32 %v959_v54, %v958_v20  ;;  %v8251_v54 = vld [vmem:[#allocation4_spill] sm:$0xff] }
 0x1a6   :  { %v814_v22 = vsub.f32 %v8251_v54, %v4643_v53  ;;  %v877_v56 = vmul.f32 %v813_v26, %v813_v26  ;;  %v971_v51 = vsel %vm644_vm1, %v876_v42, 0.0  ;;  %v818_v26 = vsub.f32 %v4437_v3, %v4643_v53 }
 0x1a7   :  { %v962_v27 = vadd.f32 %v961_v45, %v960_v49  ;;  %v8252_v45 = vld [vmem:[#allocation6_spill] sm:$0xff] }
 0x1a8   :  { %v815_v6 = vsub.f32 %v8252_v45, %v4643_v53  ;;  %v973_v62 = vsel %vm644_vm1, %v877_v56, 0.0 }
 0x1a9   :  { %v964_v57 = vadd.f32 %v963_v50, %v962_v27  ;;  %v878_v50 = vmul.f32 %v814_v22, %v814_v22  ;;  %v819_v22 = vsub.f32 %v4443_v7, %v4643_v53 }
 0x1ab   :  { %v966_v20 = vadd.f32 %v965_v30, %v964_v57  ;;  %v879_v30 = vmul.f32 %v815_v6, %v815_v6  ;;  %v975_v33 = vsel %vm644_vm1, %v878_v50, 0.0  ;;  %v820_v6 = vsub.f32 %v4465_v21, %v4643_v53 }
 0x1ad   :  { %v968_v49 = vadd.f32 %v967_v14, %v966_v20  ;;  %v880_v14 = vmul.f32 %v816_v24, %v816_v24  ;;  %v977_v42 = vsel %vm644_vm1, %v879_v30, 0.0  ;;  %v821_v24 = vsub.f32 %v4471_v25, %v4643_v53 }
 0x1af   :  { %v970_v27 = vadd.f32 %v969_v17, %v968_v49  ;;  %v881_v17 = vmul.f32 %v817_v55, %v817_v55  ;;  %v979_v56 = vsel %vm644_vm1, %v880_v14, 0.0  ;;  %v822_v55 = vsub.f32 %v4461_v19, %v4643_v53 }
 0x1b1   :  { %v972_v57 = vadd.f32 %v971_v51, %v970_v27  ;;  %v882_v51 = vmul.f32 %v818_v26, %v818_v26  ;;  %v981_v50 = vsel %vm644_vm1, %v881_v17, 0.0  ;;  %v823_v26 = vsub.f32 %v4467_v23, %v4643_v53 }
 0x1b3   :  { %v974_v20 = vadd.f32 %v973_v62, %v972_v57  ;;  %v883_v62 = vmul.f32 %v819_v22, %v819_v22  ;;  %v983_v30 = vsel %vm644_vm1, %v882_v51, 0.0  ;;  %v824_v22 = vsub.f32 %v4489_v41, %v4643_v53 }
 0x1b5   :  { %v976_v49 = vadd.f32 %v975_v33, %v974_v20  ;;  %v884_v33 = vmul.f32 %v820_v6, %v820_v6  ;;  %v985_v14 = vsel %vm644_vm1, %v883_v62, 0.0  ;;  %v825_v6 = vsub.f32 %v4495_v47, %v4643_v53 }
 0x1b7   :  { %v978_v27 = vadd.f32 %v977_v42, %v976_v49  ;;  %v885_v42 = vmul.f32 %v821_v24, %v821_v24  ;;  %v987_v17 = vsel %vm644_vm1, %v884_v33, 0.0  ;;  %v826_v24 = vsub.f32 %v4485_v39, %v4643_v53 }
 0x1b9   :  { %v980_v57 = vadd.f32 %v979_v56, %v978_v27  ;;  %v886_v56 = vmul.f32 %v822_v55, %v822_v55  ;;  %v989_v51 = vsel %vm644_vm1, %v885_v42, 0.0  ;;  %v827_v55 = vsub.f32 %v4491_v43, %v4643_v53 }
 0x1bb   :  { %v982_v20 = vadd.f32 %v981_v50, %v980_v57  ;;  %v887_v50 = vmul.f32 %v823_v26, %v823_v26  ;;  %v991_v62 = vsel %vm644_vm1, %v886_v56, 0.0  ;;  %v828_v26 = vsub.f32 %v4513_v8, %v4643_v53 }
 0x1bd   :  { %v984_v49 = vadd.f32 %v983_v30, %v982_v20  ;;  %v888_v30 = vmul.f32 %v824_v22, %v824_v22  ;;  %v993_v33 = vsel %vm644_vm1, %v887_v50, 0.0  ;;  %v829_v22 = vsub.f32 %v4519_v15, %v4643_v53 }
 0x1bf   :  { %v986_v27 = vadd.f32 %v985_v14, %v984_v49  ;;  %v889_v14 = vmul.f32 %v825_v6, %v825_v6  ;;  %v995_v42 = vsel %vm644_vm1, %v888_v30, 0.0  ;;  %v830_v6 = vsub.f32 %v4509_v4, %v4643_v53 }
 0x1c1   :  { %v988_v57 = vadd.f32 %v987_v17, %v986_v27  ;;  %v890_v17 = vmul.f32 %v826_v24, %v826_v24  ;;  %v997_v56 = vsel %vm644_vm1, %v889_v14, 0.0  ;;  %v831_v24 = vsub.f32 %v4515_v11, %v4643_v53 }
 0x1c3   :  { %v990_v20 = vadd.f32 %v989_v51, %v988_v57  ;;  %v891_v51 = vmul.f32 %v827_v55, %v827_v55  ;;  %v999_v50 = vsel %vm644_vm1, %v890_v17, 0.0  ;;  %v832_v55 = vsub.f32 %v4537_v46, %v4643_v53 }
 0x1c5   :  { %v992_v49 = vadd.f32 %v991_v62, %v990_v20  ;;  %v892_v62 = vmul.f32 %v828_v26, %v828_v26  ;;  %v1001_v30 = vsel %vm644_vm1, %v891_v51, 0.0  ;;  %v833_v26 = vsub.f32 %v4543_v59, %v4643_v53 }
 0x1c7   :  { %v994_v27 = vadd.f32 %v993_v33, %v992_v49  ;;  %v893_v33 = vmul.f32 %v829_v22, %v829_v22  ;;  %v1003_v14 = vsel %vm644_vm1, %v892_v62, 0.0  ;;  %v834_v22 = vsub.f32 %v4533_v40, %v4643_v53 }
 0x1c9   :  { %v996_v57 = vadd.f32 %v995_v42, %v994_v27  ;;  %v894_v42 = vmul.f32 %v830_v6, %v830_v6  ;;  %v1005_v17 = vsel %vm644_vm1, %v893_v33, 0.0  ;;  %v835_v6 = vsub.f32 %v4539_v52, %v4643_v53 }
 0x1cb   :  { %v998_v20 = vadd.f32 %v997_v56, %v996_v57  ;;  %v895_v56 = vmul.f32 %v831_v24, %v831_v24  ;;  %v1007_v51 = vsel %vm644_vm1, %v894_v42, 0.0  ;;  %v836_v24 = vsub.f32 %v4561_v58, %v4643_v53 }
 0x1cc   :  { %v899_v40 = vmul.f32 %v835_v6, %v835_v6 }
 0x1cd   :  { %v1000_v49 = vadd.f32 %v999_v50, %v998_v20  ;;  %v896_v50 = vmul.f32 %v832_v55, %v832_v55  ;;  %v1009_v62 = vsel %vm644_vm1, %v895_v56, 0.0  ;;  %v900_v52 = vmul.f32 %v836_v24, %v836_v24 }
 0x1ce   :  { %v841_v24 = vsub.f32 %v4583_v63, %v4643_v53 }
 0x1cf   :  { %v1002_v27 = vadd.f32 %v1001_v30, %v1000_v49  ;;  %v897_v30 = vmul.f32 %v833_v26, %v833_v26  ;;  %v1011_v33 = vsel %vm644_vm1, %v896_v50, 0.0  ;;  %v1017_v50 = vsel %vm644_vm1, %v899_v40, 0.0 }
 0x1d1   :  { %v1004_v57 = vadd.f32 %v1003_v14, %v1002_v27  ;;  %v898_v14 = vmul.f32 %v834_v22, %v834_v22  ;;  %v1013_v42 = vsel %vm644_vm1, %v897_v30, 0.0  ;;  %v1019_v30 = vsel %vm644_vm1, %v900_v52, 0.0 }
 0x1d3   :  { %v1006_v20 = vadd.f32 %v1005_v17, %v1004_v57  ;;  %v8253_v17 = vld [vmem:[#allocation25_spill] sm:$0xff]  ;;  %v1015_v56 = vsel %vm644_vm1, %v898_v14, 0.0 }
 0x1d4   :  { %v837_v55 = vsub.f32 %v8253_v17, %v4643_v53 }
 0x1d5   :  { %v1008_v49 = vadd.f32 %v1007_v51, %v1006_v20  ;;  %v8254_v51 = vld [vmem:[#allocation22_spill] sm:$0xff] }
 0x1d6   :  { %v838_v26 = vsub.f32 %v8254_v51, %v4643_v53  ;;  %v901_v58 = vmul.f32 %v837_v55, %v837_v55  ;;  %v842_v55 = vsub.f32 %v4573_v31, %v4643_v53 }
 0x1d7   :  { %v1010_v27 = vadd.f32 %v1009_v62, %v1008_v49  ;;  %v8255_v62 = vld [vmem:[#allocation24_spill] sm:$0xff] }
 0x1d8   :  { %v839_v22 = vsub.f32 %v8255_v62, %v4643_v53  ;;  %v902_v17 = vmul.f32 %v838_v26, %v838_v26  ;;  %v1021_v14 = vsel %vm644_vm1, %v901_v58, 0.0  ;;  %v843_v26 = vsub.f32 %v4579_v10, %v4643_v53 }
 0x1d9   :  { %v1012_v57 = vadd.f32 %v1011_v33, %v1010_v27  ;;  %v8256_v33 = vld [vmem:[#allocation27_spill] sm:$0xff] }
 0x1da   :  { %v840_v6 = vsub.f32 %v8256_v33, %v4643_v53  ;;  %v1023_v40 = vsel %vm644_vm1, %v902_v17, 0.0  ;;  %v907_v58 = vmul.f32 %v843_v26, %v843_v26 }
 0x1db   :  { %v1014_v20 = vadd.f32 %v1013_v42, %v1012_v57  ;;  %v903_v42 = vmul.f32 %v839_v22, %v839_v22 }
 0x1dc   :  { %v1033_v17 = vsel %vm644_vm1, %v907_v58, 0.0 }
 0x1dd   :  { %v1016_v49 = vadd.f32 %v1015_v56, %v1014_v20  ;;  %v904_v56 = vmul.f32 %v840_v6, %v840_v6  ;;  %v1025_v52 = vsel %vm644_vm1, %v903_v42, 0.0 }
 0x1df   :  { %v1018_v27 = vadd.f32 %v1017_v50, %v1016_v49  ;;  %v905_v50 = vmul.f32 %v841_v24, %v841_v24  ;;  %v1027_v22 = vsel %vm644_vm1, %v904_v56, 0.0  ;;  %v1050_v56 = vlaneseq }
 0x1e1   :  { %v1020_v57 = vadd.f32 %v1019_v30, %v1018_v27  ;;  %v906_v30 = vmul.f32 %v842_v55, %v842_v55  ;;  %v4837_v26 = vshrl.u32 %v1050_v56, 7  ;;  %v8260_v56 = vld [vmem:[#allocation11_spill] sm:$0xff] }
 0x1e3   :  { %v1022_v20 = vadd.f32 %v1021_v14, %v1020_v57  ;;  %v1029_v57 = vsel %vm644_vm1, %v905_v50, 0.0  ;;  %v1031_v6 = vsel %vm644_vm1, %v906_v30, 0.0  ;;  %v8042_v50 = vsub.s32 0, %v4837_v26 }
 0x1e5   :  { %v1024_v49 = vadd.f32 %v1023_v40, %v1022_v20 }
 0x1e7   :  { %v1026_v27 = vadd.f32 %v1025_v52, %v1024_v49 }
 0x1e9   :  { %v1028_v63 = vadd.f32 %v1027_v22, %v1026_v27 }
 0x1eb   :  { %v1030_v14 = vadd.f32 %v1029_v57, %v1028_v63  ;;  %v1042_v63 = vld [vmem:[%s7994_s2] sm:$0x1]  ;;  %v8269_v57 = vld [vmem:[#allocation19_spill] sm:$0xff] }
 0x1ed   :  { %v1032_v31 = vadd.f32 %v1031_v6, %v1030_v14  ;;  %v8270_v14 = vld [vmem:[#allocation21_spill] sm:$0xff] }
 0x1ef   :  { %v1034_v20 = vadd.f32 %v1033_v17, %v1032_v31  ;;  %v4227_v31 = vmov 1983009808  }
 0x1f0   :  { %v4843_v30 = vunpack.c.l.s4 %v4227_v31  ;;  %v8263_v31 = vld [vmem:[#allocation13_spill] sm:$0xff] }
 0x1f1   :  { %v1035_v40 = vrot.slane %v1034_v20, 4 }
 0x1f3   :  { %v1036_v10 = vadd.f32 %v1035_v40, %v1034_v20  ;;  %v8257_v40 = vld [vmem:[#allocation2_spill] sm:$0xff] }
 0x1f5   :  { %v1037_v24 = vrot.slane %v1036_v10, 2 }
 0x1f7   :  { %v1038_v33 = vadd.f32 %v1037_v24, %v1036_v10  ;;  %v4848_v10 = vld [vmem:[%s7995_s3] sm:$0x1] }
 0x1f9   :  { %v1039_v42 = vrot.slane %v1038_v33, 1 }
 0x1fb   :  { %v1040_v49 = vadd.f32 %v1039_v42, %v1038_v33  ;;  %v8258_v42 = vld [vmem:[#allocation3_spill] sm:$0xff] }
 0x1fd   :  { %v1041_v55 = vmul.f32 0.001953125, %v1040_v49 }
 0x1ff   :  { %v1043_v52 = vadd.f32 1e-05, %v1041_v55 }
 0x201   :  { %4225 = vrsqrt.f32 %v1043_v52  ;;  %v8259_v52 = vld [vmem:[#allocation9_spill] sm:$0xff] }
 0x20b   :  { %v4226_v27 = vpop.eup %4225 }
 0x20c   :  { %v1045_v22 = vmul.f32 %v4226_v27, %v1042_v63  ;;  %v8261_v63 = vld [vmem:[#allocation8_spill] sm:$0xff]  ;;  %v8262_v27 = vld [vmem:[#allocation10_spill] sm:$0xff] }
 0x20e   :  { %v4851_v33 = vmul.f32 %v1045_v22, %v4643_v53  ;;  %v4855_v58 = vrot.slane %v1045_v22, %v8042_v50  ;;  %v8264_v22 = vld [vmem:[#allocation15_spill] sm:$0xff]  ;;  %v8271_v50 = vld [vmem:[#allocation18_spill] sm:$0xff] }
 0x210   :  { %v4862_v6 = vmul.f32 %v4855_v58, %v4389_v35  ;;  %v4866_v17 = vmul.f32 %v4855_v58, %v4393_v37  ;;  %v4870_v53 = vmul.f32 %v4387_v34, %v4855_v58  ;;  %v4874_v20 = vmul.f32 %v4391_v36, %v4855_v58 }
 0x211   :  { %v4878_v24 = vmul.f32 %v4855_v58, %v8257_v40  ;;  %v4882_v35 = vmul.f32 %v4855_v58, %v8258_v42  ;;  %v4886_v37 = vmul.f32 %v4403_v44, %v4855_v58  ;;  %v4890_v34 = vmul.f32 %v4409_v48, %v4855_v58  ;;  %v8266_v42 = vld [vmem:[#allocation12_spill] sm:$0xff] }
 0x212   :  { %v4894_v36 = vmul.f32 %v4855_v58, %v4429_v61  ;;  %v4898_v49 = vmul.f32 %v4855_v58, %v4435_v2  ;;  %v4902_v55 = vmul.f32 %v4427_v60, %v4855_v58  ;;  %v4906_v44 = vmul.f32 %v4433_v0, %v4855_v58 }
 0x213   :  { %v4910_v48 = vmul.f32 %v4855_v58, %v4453_v13  ;;  %v4914_v61 = vmul.f32 %v4855_v58, %v4459_v18  ;;  %v4918_v2 = vmul.f32 %v4451_v12, %v4855_v58  ;;  %v4922_v60 = vmul.f32 %v4457_v16, %v4855_v58 }
 0x214   :  { %v4926_v0 = vmul.f32 %v4855_v58, %v4477_v29  ;;  %v4930_v13 = vmul.f32 %v4855_v58, %v4483_v38  ;;  %v4934_v18 = vmul.f32 %v4475_v28, %v4855_v58  ;;  %v4938_v12 = vmul.f32 %v4481_v32, %v4855_v58 }
 0x215   :  { %v4942_v16 = vmul.f32 %v4855_v58, %v8259_v52  ;;  %v4946_v29 = vmul.f32 %v4855_v58, %v8260_v56  ;;  %v4950_v38 = vmul.f32 %v8261_v63, %v4855_v58  ;;  %v4954_v28 = vmul.f32 %v8262_v27, %v4855_v58  ;;  %v8268_v56 = vld [vmem:[#allocation14_spill] sm:$0xff] }
 0x216   :  { %v4958_v32 = vmul.f32 %v4855_v58, %v8263_v31  ;;  %v4962_v40 = vmul.f32 %v4855_v58, %v8264_v22  ;;  %v4966_v52 = vmul.f32 %v8266_v42, %v4855_v58  ;;  %v4970_v63 = vmul.f32 %v8268_v56, %v4855_v58 }
 0x217   :  { %v4974_v27 = vmul.f32 %v4855_v58, %v8269_v57  ;;  %v4978_v31 = vmul.f32 %v4855_v58, %v8270_v14  ;;  %v4982_v22 = vmul.f32 %v8271_v50, %v4855_v58  ;;  %v4994_v57 = vmul.f32 %v4855_v58, %v8250_v1 }
 0x218   :  { %8265 = vst [vmem:[#allocation7_spill] sm:$0xff] %v4962_v40  ;;  %8267 = vst [vmem:[#allocation4_spill] sm:$0xff] %v4966_v52  ;;  %v8272_v40 = vld [vmem:[#allocation20_spill] sm:$0xff]  ;;  %v8273_v52 = vld [vmem:[#allocation5_spill] sm:$0xff]  ;;  %v4998_v14 = vmul.f32 %v8251_v54, %v4855_v58  ;;  %v5002_v50 = vmul.f32 %v8252_v45, %v4855_v58  ;;  %v5014_v1 = vmul.f32 %v4437_v3, %v4855_v58 }
 0x219   :  { %v4986_v42 = vmul.f32 %v8272_v40, %v4855_v58  ;;  %v4990_v56 = vmul.f32 %v4855_v58, %v8273_v52  ;;  %v5006_v40 = vmul.f32 %v4855_v58, %v4441_v5  ;;  %v5010_v52 = vmul.f32 %v4855_v58, %v4447_v9 }
 0x21a   :  { %v5018_v54 = vmul.f32 %v4443_v7, %v4855_v58  ;;  %v5022_v45 = vmul.f32 %v4855_v58, %v4465_v21  ;;  %v5026_v5 = vmul.f32 %v4855_v58, %v4471_v25  ;;  %v5030_v9 = vmul.f32 %v4461_v19, %v4855_v58 }
 0x21b   :  { %v5034_v3 = vmul.f32 %v4467_v23, %v4855_v58  ;;  %v5038_v7 = vmul.f32 %v4855_v58, %v4489_v41  ;;  %v5042_v21 = vmul.f32 %v4855_v58, %v4495_v47  ;;  %v5046_v25 = vmul.f32 %v4485_v39, %v4855_v58 }
 0x21c   :  { %v5050_v19 = vmul.f32 %v4491_v43, %v4855_v58  ;;  %v5054_v23 = vmul.f32 %v4855_v58, %v4513_v8  ;;  %v5058_v41 = vmul.f32 %v4855_v58, %v4519_v15  ;;  %v5062_v47 = vmul.f32 %v4509_v4, %v4855_v58 }
 0x21d   :  { %v5066_v39 = vmul.f32 %v4515_v11, %v4855_v58  ;;  %v5070_v43 = vmul.f32 %v4855_v58, %v4537_v46  ;;  %v5074_v8 = vmul.f32 %v4855_v58, %v4543_v59  ;;  %v5094_v59 = vmul.f32 %v8254_v51, %v4855_v58 }
 0x21e   :  { %8274 = vst [vmem:[#allocation6_spill] sm:$0xff] %v5054_v23  ;;  %8275 = vst [vmem:[#allocation22_spill] sm:$0xff] %v5058_v41  ;;  %v8278_v23 = vld [vmem:[#allocation16_spill] sm:$0xff]  ;;  %v8280_v41 = vld [vmem:[#allocation17_spill] sm:$0xff] }
 0x21f   :  { %8276 = vst [vmem:[#allocation24_spill] sm:$0xff] %v5062_v47  ;;  %8277 = vst [vmem:[#allocation2_spill] sm:$0xff] %v5066_v39  ;;  %v5078_v15 = vmul.f32 %v8278_v23, %v4855_v58  ;;  %v5082_v4 = vmul.f32 %v8280_v41, %v4855_v58  ;;  %v8282_v47 = vld [vmem:[#allocation23_spill] sm:$0xff]  ;;  %v8284_v39 = vld [vmem:[#allocation25_spill] sm:$0xff]  ;;  %v5098_v23 = vmul.f32 %v8255_v62, %v4855_v58 }
 0x220   :  { %v5086_v11 = vmul.f32 %v4855_v58, %v8282_v47  ;;  %v5090_v46 = vmul.f32 %v4855_v58, %v8284_v39  ;;  %8286 = vst [vmem:[#allocation10_spill] sm:$0xff] %v5094_v59  ;;  %v8292_v59 = vsub.s32 0, %v4837_v26  ;;  %v8293_v62 = vsub.f32 %v4848_v10, %v4851_v33 }
 0x221   :  { %8279 = vst [vmem:[#allocation3_spill] sm:$0xff] %v5078_v15  ;;  %8281 = vst [vmem:[#allocation9_spill] sm:$0xff] %v5082_v4  ;;  %v8288_v15 = vld [vmem:[#allocation27_spill] sm:$0xff]  ;;  %v8289_v4 = vld [vmem:[#allocation29_spill] sm:$0xff] }
 0x222   :  { %8283 = vst [vmem:[#allocation11_spill] sm:$0xff] %v5086_v11  ;;  %8285 = vst [vmem:[#allocation8_spill] sm:$0xff] %v5090_v46  ;;  %v5102_v41 = vmul.f32 %v4855_v58, %v8288_v15  ;;  %v5106_v47 = vmul.f32 %v4855_v58, %v8289_v4  ;;  %v8290_v11 = vld [vmem:[#allocation26_spill] sm:$0xff]  ;;  %v8291_v46 = vld [vmem:[#allocation28_spill] sm:$0xff]  ;;  %v8294_v15 = vunpack.c.0.s8 %v4843_v30 }
 0x223   :  { %8287 = vst [vmem:[#allocation13_spill] sm:$0xff] %v5098_v23  ;;  %v5110_v39 = vmul.f32 %v8290_v11, %v4855_v58  ;;  %v5114_v51 = vmul.f32 %v8291_v46, %v4855_v58  ;;  %v5121_v23 = vrot.slane %v8293_v62, %v8292_v59 }
 0x224   :  { %v5126_v4 = vsub.s32 %v8294_v15, %v4837_v26 }
 0x225   :  { %v5130_v11 = vadd.f32 %v5121_v23, %v4862_v6  ;;  %v5134_v58 = vadd.f32 %v5121_v23, %v4866_v17  ;;  %v5138_v46 = vadd.f32 %v5121_v23, %v4870_v53  ;;  %v5142_v10 = vadd.f32 %v5121_v23, %v4874_v20  ;;  %v8304_v15 = vld [vmem:[#allocation6_spill] sm:$0xff] }
 0x226   :  { %8295 = vst [vmem:[#allocation15_spill] sm:$0xff] %v5126_v4  ;;  %v5146_v26 = vadd.f32 %v5121_v23, %v4878_v24  ;;  %v5150_v30 = vadd.f32 %v5121_v23, %v4882_v35  ;;  %v5154_v33 = vadd.f32 %v5121_v23, %v4886_v37  ;;  %v5158_v6 = vadd.f32 %v5121_v23, %v4890_v34  ;;  %v8310_v4 = vld [vmem:[#allocation2_spill] sm:$0xff] }
 0x227   :  { %v5162_v17 = vadd.f32 %v5121_v23, %v4894_v36  ;;  %v5166_v53 = vadd.f32 %v5121_v23, %v4898_v49  ;;  %v5170_v20 = vadd.f32 %v5121_v23, %v4902_v55  ;;  %v5174_v24 = vadd.f32 %v5121_v23, %v4906_v44 }
 0x228   :  { %v5178_v35 = vadd.f32 %v5121_v23, %v4910_v48  ;;  %v5182_v37 = vadd.f32 %v5121_v23, %v4914_v61  ;;  %v5186_v34 = vadd.f32 %v5121_v23, %v4918_v2  ;;  %v5190_v36 = vadd.f32 %v5121_v23, %v4922_v60 }
 0x229   :  { %v5194_v49 = vadd.f32 %v5121_v23, %v4926_v0  ;;  %v5198_v55 = vadd.f32 %v5121_v23, %v4930_v13  ;;  %v5202_v44 = vadd.f32 %v5121_v23, %v4934_v18  ;;  %v5206_v48 = vadd.f32 %v5121_v23, %v4938_v12  ;;  %v8296_v18 = vld [vmem:[#allocation7_spill] sm:$0xff] }
 0x22a   :  { %v5210_v61 = vadd.f32 %v5121_v23, %v4942_v16  ;;  %v5214_v2 = vadd.f32 %v5121_v23, %v4946_v29  ;;  %v5218_v60 = vadd.f32 %v5121_v23, %v4950_v38  ;;  %v5222_v0 = vadd.f32 %v5121_v23, %v4954_v28  ;;  %v8297_v16 = vld [vmem:[#allocation4_spill] sm:$0xff] }
 0x22b   :  { %v5226_v13 = vadd.f32 %v5121_v23, %v4958_v32  ;;  %v5230_v12 = vadd.f32 %v5121_v23, %v8296_v18  ;;  %v5234_v29 = vadd.f32 %v5121_v23, %v8297_v16  ;;  %v5238_v38 = vadd.f32 %v5121_v23, %v4970_v63  ;;  %v8306_v18 = vld [vmem:[#allocation22_spill] sm:$0xff]  ;;  %v8308_v16 = vld [vmem:[#allocation24_spill] sm:$0xff] }
 0x22c   :  { %v5242_v28 = vadd.f32 %v5121_v23, %v4974_v27  ;;  %v5246_v32 = vadd.f32 %v5121_v23, %v4978_v31  ;;  %v5250_v59 = vadd.f32 %v5121_v23, %v4982_v22  ;;  %v5254_v62 = vadd.f32 %v5121_v23, %v4986_v42 }
 0x22d   :  { %v5258_v63 = vadd.f32 %v5121_v23, %v4990_v56  ;;  %v5262_v27 = vadd.f32 %v5121_v23, %v4994_v57  ;;  %v5266_v31 = vadd.f32 %v5121_v23, %v4998_v14  ;;  %v5270_v22 = vadd.f32 %v5121_v23, %v5002_v50 }
 0x22e   :  { %v5274_v42 = vadd.f32 %v5121_v23, %v5006_v40  ;;  %v5278_v56 = vadd.f32 %v5121_v23, %v5010_v52  ;;  %v5282_v57 = vadd.f32 %v5121_v23, %v5014_v1  ;;  %v5286_v14 = vadd.f32 %v5121_v23, %v5018_v54 }
 0x22f   :  { %v5290_v50 = vadd.f32 %v5121_v23, %v5022_v45  ;;  %v5294_v40 = vadd.f32 %v5121_v23, %v5026_v5  ;;  %v5298_v52 = vadd.f32 %v5121_v23, %v5030_v9  ;;  %v5302_v1 = vadd.f32 %v5121_v23, %v5034_v3 }
 0x230   :  { %8298 = vst [vmem:[#allocation12_spill] sm:$0xff] %v5278_v56  ;;  %8299 = vst [vmem:[#allocation14_spill] sm:$0xff] %v5286_v14  ;;  %v5306_v54 = vadd.f32 %v5121_v23, %v5038_v7  ;;  %v5310_v45 = vadd.f32 %v5121_v23, %v5042_v21  ;;  %v5314_v5 = vadd.f32 %v5121_v23, %v5046_v25 }
 0x231   :  { %8300 = vst [vmem:[#allocation19_spill] sm:$0xff] %v5290_v50  ;;  %8301 = vst [vmem:[#allocation21_spill] sm:$0xff] %v5294_v40  ;;  %v5318_v9 = vadd.f32 %v5121_v23, %v5050_v19  ;;  %v5322_v3 = vadd.f32 %v5121_v23, %v8304_v15  ;;  %v5326_v7 = vadd.f32 %v5121_v23, %v8306_v18 }
 0x232   :  { %8302 = vst [vmem:[#allocation18_spill] sm:$0xff] %v5298_v52  ;;  %v5330_v21 = vadd.f32 %v5121_v23, %v8308_v16  ;;  %v5334_v25 = vadd.f32 %v5121_v23, %v8310_v4  ;;  %v5338_v19 = vadd.f32 %v5121_v23, %v5070_v43  ;;  %v5342_v15 = vadd.f32 %v5121_v23, %v5074_v8 }
 0x233   :  { %8303 = vst [vmem:[#allocation20_spill] sm:$0xff] %v5318_v9  ;;  %8305 = vst [vmem:[#allocation5_spill] sm:$0xff] %v5322_v3  ;;  %v8314_v3 = vld [vmem:[#allocation3_spill] sm:$0xff] }
 0x234   :  { %8307 = vst [vmem:[#allocation16_spill] sm:$0xff] %v5326_v7  ;;  %8309 = vst [vmem:[#allocation17_spill] sm:$0xff] %v5330_v21  ;;  %v5346_v18 = vadd.f32 %v5121_v23, %v8314_v3  ;;  %v8315_v7 = vld [vmem:[#allocation9_spill] sm:$0xff]  ;;  %v8316_v21 = vld [vmem:[#allocation11_spill] sm:$0xff] }
 0x235   :  { %8311 = vst [vmem:[#allocation23_spill] sm:$0xff] %v5334_v25  ;;  %8312 = vst [vmem:[#allocation25_spill] sm:$0xff] %v5338_v19  ;;  %v5350_v16 = vadd.f32 %v5121_v23, %v8315_v7  ;;  %v5354_v4 = vadd.f32 %v5121_v23, %v8316_v21  ;;  %v8317_v25 = vld [vmem:[#allocation8_spill] sm:$0xff]  ;;  %v8318_v19 = vld [vmem:[#allocation10_spill] sm:$0xff]  ;;  %v5370_v7 = vadd.f32 %v5121_v23, %v5102_v41 }
 0x236   :  { %8313 = vst [vmem:[#allocation27_spill] sm:$0xff] %v5342_v15  ;;  %v5358_v43 = vadd.f32 %v5121_v23, %v8317_v25  ;;  %v5362_v8 = vadd.f32 %v5121_v23, %v8318_v19  ;;  %v8320_v15 = vld [vmem:[#allocation13_spill] sm:$0xff]  ;;  %v5374_v21 = vadd.f32 %v5121_v23, %v5106_v47  ;;  %v5378_v25 = vadd.f32 %v5121_v23, %v5110_v39 }
 0x237   :  { %v5366_v3 = vadd.f32 %v5121_v23, %v8320_v15  ;;  %8322 = vst [vmem:[#allocation28_spill] sm:$0xff] %v5370_v7  ;;  %v5382_v19 = vadd.f32 %v5121_v23, %v5114_v51  ;;  %v8333_v56 = vmov %v5370_v7  ;;  %v8336_v7 = vmax.f32 %v5130_v11, 0.0 }
 0x238   :  { %8319 = vst [vmem:[#allocation29_spill] sm:$0xff] %v5362_v8  ;;  %8323 = vst [vmem:[#allocation7_spill] sm:$0xff] %v5374_v21  ;;  %v8335_v50 = vmov %v5378_v25  ;;  %v8337_v21 = vmax.f32 %v5138_v46, 0.0  ;;  %v8339_v51 = vmax.f32 %v5142_v10, 0.0  ;;  %v8340_v11 = vmax.f32 %v5146_v26, 0.0 }
 0x239   :  { %8321 = vst [vmem:[#allocation26_spill] sm:$0xff] %v5366_v3  ;;  %8324 = vst [vmem:[#allocation4_spill] sm:$0xff] %v5378_v25  ;;  %v8332_v8 = vmov %v5366_v3  ;;  %v1253_v47 = vsel %vm644_vm1, %v8336_v7, -inf  ;;  %v8338_v25 = vmax.f32 %v5134_v58, 0.0  ;;  %v8341_v46 = vmax.f32 %v5154_v33, 0.0 }
 0x23a   :  { %v1254_v39 = vsel %vm644_vm1, %v8337_v21, -inf  ;;  %v1257_v15 = vsel %vm644_vm1, %v8339_v51, -inf  ;;  %v1259_v7 = vsel %vm644_vm1, %v8340_v11, -inf  ;;  %v8342_v58 = vmax.f32 %v5150_v30, 0.0 }
 0x23b   :  { %v1256_v23 = vsel %vm644_vm1, %v8338_v25, -inf  ;;  %v5460_v14 = vmax.f32 %v1253_v47, %v1254_v39  ;;  %v1260_v21 = vsel %vm644_vm1, %v8341_v46, -inf  ;;  %v8343_v25 = vmax.f32 %v5158_v6, 0.0 }
 0x23c   :  { %v8329_v40 = vld [vmem:[#allocation25_spill] sm:$0xff]  ;;  %v5462_v3 = vmax.f32 %v1256_v23, %v1257_v15  ;;  %v5470_v41 = vmax.f32 %v1259_v7, %v1260_v21  ;;  %v1262_v10 = vsel %vm644_vm1, %v8342_v58, -inf  ;;  %v8344_v15 = vmax.f32 %v5162_v17, 0.0 }
 0x23d   :  { %v8330_v52 = vld [vmem:[#allocation27_spill] sm:$0xff]  ;;  %v1263_v47 = vsel %vm644_vm1, %v8343_v25, -inf  ;;  %v8345_v33 = vmax.f32 %v5170_v20, 0.0  ;;  %v8346_v51 = vmax.f32 %v5166_v53, 0.0  ;;  %v8347_v11 = vmax.f32 %v5174_v24, 0.0 }
 0x23e   :  { %v1265_v26 = vsel %vm644_vm1, %v8344_v15, -inf  ;;  %v5481_v39 = vmax.f32 %v1262_v10, %v1263_v47  ;;  %v8348_v17 = vmax.f32 %v5178_v35, 0.0  ;;  %v8349_v20 = vmax.f32 %v5186_v34, 0.0 }
 0x23f   :  { %v8331_v9 = vld [vmem:[#allocation29_spill] sm:$0xff]  ;;  %v1266_v23 = vsel %vm644_vm1, %v8345_v33, -inf  ;;  %v1268_v30 = vsel %vm644_vm1, %v8346_v51, -inf  ;;  %v1269_v6 = vsel %vm644_vm1, %v8347_v11, -inf  ;;  %v8350_v53 = vmax.f32 %v5182_v37, 0.0 }
 0x240   :  { %v5492_v7 = vmax.f32 %v1265_v26, %v1266_v23  ;;  %v5494_v46 = vmax.f32 %v1268_v30, %v1269_v6  ;;  %v1271_v21 = vsel %vm644_vm1, %v8348_v17, -inf  ;;  %v1272_v58 = vsel %vm644_vm1, %v8349_v20, -inf }
 0x241   :  { %v5502_v10 = vmax.f32 %v1271_v21, %v1272_v58  ;;  %v1274_v24 = vsel %vm644_vm1, %v8350_v53, -inf  ;;  %v8351_v25 = vmax.f32 %v5190_v36, 0.0  ;;  %v8352_v15 = vmax.f32 %v5194_v49, 0.0 }
 0x242   :  { %v8353_v34 = vmax.f32 %v5202_v44, 0.0  ;;  %v8354_v23 = vmax.f32 %v5198_v55, 0.0  ;;  %v8355_v51 = vmax.f32 %v5206_v48, 0.0  ;;  %v8356_v49 = vmax.f32 %v5210_v61, 0.0 }
 0x243   :  { %v1275_v47 = vsel %vm644_vm1, %v8351_v25, -inf  ;;  %v1277_v35 = vsel %vm644_vm1, %v8352_v15, -inf  ;;  %v8357_v44 = vmax.f32 %v5218_v60, 0.0  ;;  %v8358_v55 = vmax.f32 %v5214_v2, 0.0 }
 0x244   :  { %v5513_v26 = vmax.f32 %v1274_v24, %v1275_v47  ;;  %v1278_v33 = vsel %vm644_vm1, %v8353_v34, -inf  ;;  %v1280_v37 = vsel %vm644_vm1, %v8354_v23, -inf  ;;  %v1281_v36 = vsel %vm644_vm1, %v8355_v51, -inf }
 0x245   :  { %v5524_v30 = vmax.f32 %v1277_v35, %v1278_v33  ;;  %v5526_v11 = vmax.f32 %v1280_v37, %v1281_v36  ;;  %v1283_v6 = vsel %vm644_vm1, %v8356_v49, -inf  ;;  %v1284_v17 = vsel %vm644_vm1, %v8357_v44, -inf }
 0x246   :  { %v5534_v21 = vmax.f32 %v1283_v6, %v1284_v17  ;;  %v1286_v48 = vsel %vm644_vm1, %v8358_v55, -inf  ;;  %v8359_v20 = vmax.f32 %v5222_v0, 0.0  ;;  %v8360_v53 = vmax.f32 %v5226_v13, 0.0 }
 0x247   :  { %v8361_v60 = vmax.f32 %v5234_v29, 0.0  ;;  %v8362_v47 = vmax.f32 %v5230_v12, 0.0  ;;  %v8363_v15 = vmax.f32 %v5238_v38, 0.0  ;;  %v8364_v13 = vmax.f32 %v5242_v28, 0.0 }
 0x248   :  { %v1287_v58 = vsel %vm644_vm1, %v8359_v20, -inf  ;;  %v1289_v61 = vsel %vm644_vm1, %v8360_v53, -inf  ;;  %v8365_v29 = vmax.f32 %v5250_v59, 0.0  ;;  %v8366_v12 = vmax.f32 %v5246_v32, 0.0 }
 0x249   :  { %v5545_v24 = vmax.f32 %v1286_v48, %v1287_v58  ;;  %v1290_v25 = vsel %vm644_vm1, %v8361_v60, -inf  ;;  %v1292_v2 = vsel %vm644_vm1, %v8362_v47, -inf  ;;  %v1293_v0 = vsel %vm644_vm1, %v8363_v15, -inf  ;;  %v8378_v15 = vld [vmem:[#allocation19_spill] sm:$0xff] }
 0x24a   :  { %v5556_v35 = vmax.f32 %v1289_v61, %v1290_v25  ;;  %v5558_v34 = vmax.f32 %v1292_v2, %v1293_v0  ;;  %v1295_v33 = vsel %vm644_vm1, %v8364_v13, -inf  ;;  %v1296_v23 = vsel %vm644_vm1, %v8365_v29, -inf  ;;  %v8376_v25 = vld [vmem:[#allocation14_spill] sm:$0xff] }
 0x24b   :  { %v5566_v37 = vmax.f32 %v1295_v33, %v1296_v23  ;;  %v1298_v38 = vsel %vm644_vm1, %v8366_v12, -inf  ;;  %v8367_v51 = vmax.f32 %v5254_v62, 0.0  ;;  %v8368_v49 = vmax.f32 %v5258_v63, 0.0  ;;  %v8380_v33 = vld [vmem:[#allocation18_spill] sm:$0xff]  ;;  %v8382_v23 = vld [vmem:[#allocation21_spill] sm:$0xff] }
 0x24c   :  { %v8369_v59 = vmax.f32 %v5266_v31, 0.0  ;;  %v8370_v17 = vmax.f32 %v5262_v27, 0.0  ;;  %v8371_v55 = vmax.f32 %v5270_v22, 0.0  ;;  %v8372_v63 = vmax.f32 %v5274_v42, 0.0  ;;  %v8374_v27 = vld [vmem:[#allocation12_spill] sm:$0xff] }
 0x24d   :  { %v1299_v36 = vsel %vm644_vm1, %v8367_v51, -inf  ;;  %v1301_v28 = vsel %vm644_vm1, %v8368_v49, -inf  ;;  %v8373_v31 = vmax.f32 %v5282_v57, 0.0  ;;  %v8375_v60 = vmax.f32 %v8374_v27, 0.0 }
 0x24e   :  { %v5577_v6 = vmax.f32 %v1298_v38, %v1299_v36  ;;  %v1302_v44 = vsel %vm644_vm1, %v8369_v59, -inf  ;;  %v1304_v32 = vsel %vm644_vm1, %v8370_v17, -inf  ;;  %v1305_v62 = vsel %vm644_vm1, %v8371_v55, -inf }
 0x24f   :  { %v5588_v48 = vmax.f32 %v1301_v28, %v1302_v44  ;;  %v5590_v20 = vmax.f32 %v1304_v32, %v1305_v62  ;;  %v1307_v58 = vsel %vm644_vm1, %v8372_v63, -inf  ;;  %v1308_v53 = vsel %vm644_vm1, %v8373_v31, -inf  ;;  %v8388_v63 = vld [vmem:[#allocation20_spill] sm:$0xff] }
 0x250   :  { %v5598_v61 = vmax.f32 %v1307_v58, %v1308_v53  ;;  %v1310_v22 = vsel %vm644_vm1, %v8375_v60, -inf  ;;  %v8377_v47 = vmax.f32 %v8376_v25, 0.0  ;;  %v8379_v0 = vmax.f32 %v8378_v15, 0.0  ;;  %v8390_v53 = vld [vmem:[#allocation5_spill] sm:$0xff]  ;;  %v8396_v15 = vld [vmem:[#allocation23_spill] sm:$0xff] }
 0x251   :  { %v8381_v57 = vmax.f32 %v8380_v33, 0.0  ;;  %v8383_v12 = vmax.f32 %v8382_v23, 0.0  ;;  %v8384_v51 = vmax.f32 %v5302_v1, 0.0  ;;  %v8385_v59 = vmax.f32 %v5306_v54, 0.0 }
 0x252   :  { %v1311_v2 = vsel %vm644_vm1, %v8377_v47, -inf  ;;  %v1313_v42 = vsel %vm644_vm1, %v8379_v0, -inf  ;;  %v8386_v17 = vmax.f32 %v5314_v5, 0.0  ;;  %v8387_v62 = vmax.f32 %v5310_v45, 0.0  ;;  %v8394_v47 = vld [vmem:[#allocation16_spill] sm:$0xff] }
 0x253   :  { %v5609_v13 = vmax.f32 %v1310_v22, %v1311_v2  ;;  %v1314_v29 = vsel %vm644_vm1, %v8381_v57, -inf  ;;  %v1316_v38 = vsel %vm644_vm1, %v8383_v12, -inf  ;;  %v1317_v36 = vsel %vm644_vm1, %v8384_v51, -inf  ;;  %v8392_v22 = vld [vmem:[#allocation17_spill] sm:$0xff] }
 0x254   :  { %v5620_v49 = vmax.f32 %v1313_v42, %v1314_v29  ;;  %v5622_v28 = vmax.f32 %v1316_v38, %v1317_v36  ;;  %v1319_v44 = vsel %vm644_vm1, %v8385_v59, -inf  ;;  %v1320_v32 = vsel %vm644_vm1, %v8386_v17, -inf }
 0x255   :  { %v5630_v55 = vmax.f32 %v1319_v44, %v1320_v32  ;;  %v1322_v1 = vsel %vm644_vm1, %v8387_v62, -inf  ;;  %v8389_v58 = vmax.f32 %v8388_v63, 0.0  ;;  %v8391_v27 = vmax.f32 %v8390_v53, 0.0 }
 0x256   :  { %v8393_v5 = vmax.f32 %v8392_v22, 0.0  ;;  %v8395_v2 = vmax.f32 %v8394_v47, 0.0  ;;  %v8397_v0 = vmax.f32 %v8396_v15, 0.0  ;;  %v8398_v29 = vmax.f32 %v8329_v40, 0.0 }
 0x257   :  { %v1323_v31 = vsel %vm644_vm1, %v8389_v58, -inf  ;;  %v1325_v54 = vsel %vm644_vm1, %v8391_v27, -inf  ;;  %v8399_v12 = vmax.f32 %v5346_v18, 0.0  ;;  %v8400_v36 = vmax.f32 %v8330_v52, 0.0 }
 0x258   :  { %v5641_v60 = vmax.f32 %v1322_v1, %v1323_v31  ;;  %v1326_v25 = vsel %vm644_vm1, %v8393_v5, -inf  ;;  %v1328_v45 = vsel %vm644_vm1, %v8395_v2, -inf  ;;  %v1329_v42 = vsel %vm644_vm1, %v8397_v0, -inf }
 0x259   :  { %v5652_v33 = vmax.f32 %v1325_v54, %v1326_v25  ;;  %v5654_v57 = vmax.f32 %v1328_v45, %v1329_v42  ;;  %v1331_v23 = vsel %vm644_vm1, %v8398_v29, -inf  ;;  %v1332_v38 = vsel %vm644_vm1, %v8399_v12, -inf  ;;  %v8411_v45 = vld [vmem:[#allocation15_spill] sm:$0xff] }
 0x25a   :  { %v5662_v51 = vmax.f32 %v1331_v23, %v1332_v38  ;;  %v1334_v59 = vsel %vm644_vm1, %v8400_v36, -inf  ;;  %v8401_v44 = vmax.f32 %v5350_v16, 0.0  ;;  %v8402_v32 = vmax.f32 %v5354_v4, 0.0 }
 0x25b   :  { %v8403_v18 = vmax.f32 %v8331_v9, 0.0  ;;  %v8404_v63 = vmax.f32 %v5358_v43, 0.0  ;;  %v8405_v58 = vmax.f32 %v8332_v8, 0.0  ;;  %v8406_v4 = vmax.f32 %v8333_v56, 0.0  ;;  %v8408_v43 = vld [vmem:[#allocation7_spill] sm:$0xff] }
 0x25c   :  { %v1335_v17 = vsel %vm644_vm1, %v8401_v44, -inf  ;;  %v1337_v40 = vsel %vm644_vm1, %v8402_v32, -inf  ;;  %v8407_v9 = vmax.f32 %v8335_v50, 0.0  ;;  %v8409_v5 = vmax.f32 %v8408_v43, 0.0 }
 0x25d   :  { %v5673_v62 = vmax.f32 %v1334_v59, %v1335_v17  ;;  %v1338_v1 = vsel %vm644_vm1, %v8403_v18, -inf  ;;  %v1340_v52 = vsel %vm644_vm1, %v8404_v63, -inf  ;;  %v1341_v16 = vsel %vm644_vm1, %v8405_v58, -inf }
 0x25e   :  { %v5684_v31 = vmax.f32 %v1337_v40, %v1338_v1  ;;  %v5686_v53 = vmax.f32 %v1340_v52, %v1341_v16  ;;  %v1343_v27 = vsel %vm644_vm1, %v8406_v4, -inf  ;;  %v1344_v54 = vsel %vm644_vm1, %v8407_v9, -inf }
 0x25f   :  { %v5694_v22 = vmax.f32 %v1343_v27, %v1344_v54  ;;  %v1346_v8 = vsel %vm644_vm1, %v8409_v5, -inf  ;;  %v8410_v25 = vmax.f32 %v5382_v19, 0.0  ;;  %v1381_v2 = vcombine.high %v5460_v14, %v5460_v14 }
 0x260   :  { %v5708_v50 = vrot.slane %v5460_v14, %v8411_v45  ;;  %v1398_v15 = vcombine.high %v5462_v3, %v5462_v3  ;;  %v5714_v0 = vrot.slane %v5462_v3, %v8411_v45  ;;  %v1415_v42 = vcombine.high %v5470_v41, %v5470_v41 }
 0x261   :  { %v1347_v47 = vsel %vm644_vm1, %v8410_v25, -inf  ;;  %v5717_v19 = vrot.slane %v1381_v2, %v8411_v45  ;;  %v5723_v29 = vrot.slane %v5470_v41, %v8411_v45  ;;  %v1432_v14 = vcombine.high %v5481_v39, %v5481_v39 }
 0x262   :  { %v5704_v56 = vmax.f32 %v1346_v8, %v1347_v47  ;;  %v5730_v12 = vrot.slane %v1398_v15, %v8411_v45  ;;  %v5736_v38 = vrot.slane %v5481_v39, %v8411_v45  ;;  %v5741_v36 = vrot.slane %v1415_v42, %v8411_v45 }
 0x263   :  { %v5746_v44 = vrot.slane %v1432_v14, %v8411_v45  ;;  %v1449_v39 = vcombine.high %v5492_v7, %v5492_v7  ;;  %v5756_v40 = vrot.slane %v5492_v7, %v8411_v45  ;;  %v1466_v63 = vcombine.high %v5494_v46, %v5494_v46 }
 0x264   :  { %v5766_v52 = vrot.slane %v5494_v46, %v8411_v45  ;;  %v1483_v16 = vcombine.high %v5502_v10, %v5502_v10  ;;  %v5777_v4 = vrot.slane %v5502_v10, %v8411_v45  ;;  %v1500_v9 = vcombine.high %v5513_v26, %v5513_v26 }
 0x265   :  { %v5769_v58 = vrot.slane %v1449_v39, %v8411_v45  ;;  %v5780_v27 = vrot.slane %v1466_v63, %v8411_v45  ;;  %v5788_v54 = vrot.slane %v5513_v26, %v8411_v45  ;;  %v1517_v8 = vcombine.high %v5524_v30, %v5524_v30 }
 0x266   :  { %v5793_v5 = vrot.slane %v1483_v16, %v8411_v45  ;;  %v5802_v47 = vrot.slane %v1500_v9, %v8411_v45  ;;  %v5808_v2 = vrot.slane %v5524_v30, %v8411_v45  ;;  %v1534_v14 = vcombine.high %v5526_v11, %v5526_v11 }
 0x267   :  { %v5813_v42 = vrot.slane %v1517_v8, %v8411_v45  ;;  %v5819_v39 = vrot.slane %v5526_v11, %v8411_v45  ;;  %v1551_v16 = vcombine.high %v5534_v21, %v5534_v21  ;;  %v5829_v9 = vrot.slane %v5534_v21, %v8411_v45 }
 0x268   :  { %v5834_v26 = vrot.slane %v1534_v14, %v8411_v45  ;;  %v1568_v63 = vcombine.high %v5545_v24, %v5545_v24  ;;  %v5847_v21 = vrot.slane %v5545_v24, %v8411_v45  ;;  %v1585_v14 = vcombine.high %v5556_v35, %v5556_v35 }
 0x269   :  { %v5841_v30 = vrot.slane %v1551_v16, %v8411_v45  ;;  %v5858_v16 = vrot.slane %v5556_v35, %v8411_v45  ;;  %v1602_v15 = vcombine.high %v5558_v34, %v5558_v34  ;;  %v1619_v24 = vcombine.high %v5566_v37, %v5566_v37 }
 0x26a   :  { %v5854_v11 = vrot.slane %v1568_v63, %v8411_v45  ;;  %v5867_v25 = vrot.slane %v1585_v14, %v8411_v45  ;;  %v5871_v63 = vrot.slane %v5558_v34, %v8411_v45  ;;  %v5888_v34 = vrot.slane %v5566_v37, %v8411_v45 }
 0x26b   :  { %v5878_v46 = vrot.slane %v1602_v15, %v8411_v45  ;;  %v1636_v35 = vcombine.high %v5577_v6, %v5577_v6  ;;  %v5895_v8 = vrot.slane %v1619_v24, %v8411_v45  ;;  %v5899_v43 = vrot.slane %v5577_v6, %v8411_v45 }
 0x26c   :  { %v1653_v10 = vcombine.high %v5588_v48, %v5588_v48  ;;  %v5910_v7 = vrot.slane %v5588_v48, %v8411_v45  ;;  %v1670_v24 = vcombine.high %v5590_v20, %v5590_v20  ;;  %v1687_v6 = vcombine.high %v5598_v61, %v5598_v61 }
 0x26d   :  { %v5906_v14 = vrot.slane %v1636_v35, %v8411_v45  ;;  %v5923_v35 = vrot.slane %v5590_v20, %v8411_v45  ;;  %v5940_v20 = vrot.slane %v5598_v61, %v8411_v45  ;;  %v1704_v48 = vcombine.high %v5609_v13, %v5609_v13 }
 0x26e   :  { %v5919_v1 = vrot.slane %v1653_v10, %v8411_v45  ;;  %v5930_v32 = vrot.slane %v1670_v24, %v8411_v45  ;;  %v5947_v37 = vrot.slane %v1687_v6, %v8411_v45  ;;  %v5951_v18 = vrot.slane %v5609_v13, %v8411_v45 }
 0x26f   :  { %v1721_v15 = vcombine.high %v5620_v49, %v5620_v49  ;;  %v5958_v10 = vrot.slane %v1704_v48, %v8411_v45  ;;  %v5962_v59 = vrot.slane %v5620_v49, %v8411_v45  ;;  %v1738_v6 = vcombine.high %v5622_v28, %v5622_v28 }
 0x270   :  { %8412 = vst [vmem:[#allocation6_spill] sm:$0xff] %v5947_v37  ;;  %8413 = vst [vmem:[#allocation22_spill] sm:$0xff] %v5951_v18  ;;  %v5975_v48 = vrot.slane %v5622_v28, %v8411_v45  ;;  %v1755_v13 = vcombine.high %v5630_v55, %v5630_v55  ;;  %v5992_v28 = vrot.slane %v5630_v55, %v8411_v45 }
 0x271   :  { %8414 = vst [vmem:[#allocation24_spill] sm:$0xff] %v5958_v10  ;;  %8415 = vst [vmem:[#allocation2_spill] sm:$0xff] %v5962_v59  ;;  %v5971_v17 = vrot.slane %v1721_v15, %v8411_v45  ;;  %v5982_v3 = vrot.slane %v1738_v6, %v8411_v45  ;;  %v1772_v49 = vcombine.high %v5641_v60, %v5641_v60 }
 0x272   :  { %8417 = vst [vmem:[#allocation9_spill] sm:$0xff] %v5975_v48  ;;  %8419 = vst [vmem:[#allocation8_spill] sm:$0xff] %v5992_v28  ;;  %v5999_v61 = vrot.slane %v1755_v13, %v8411_v45  ;;  %v6003_v15 = vrot.slane %v5641_v60, %v8411_v45  ;;  %v1789_v24 = vcombine.high %v5652_v33, %v5652_v33 }
 0x273   :  { %8416 = vst [vmem:[#allocation3_spill] sm:$0xff] %v5971_v17  ;;  %8418 = vst [vmem:[#allocation11_spill] sm:$0xff] %v5982_v3  ;;  %v6010_v41 = vrot.slane %v1772_v49, %v8411_v45  ;;  %v6014_v23 = vrot.slane %v5652_v33, %v8411_v45  ;;  %v1806_v13 = vcombine.high %v5654_v57, %v5654_v57 }
 0x274   :  { %8420 = vst [vmem:[#allocation10_spill] sm:$0xff] %v5999_v61  ;;  %8421 = vst [vmem:[#allocation13_spill] sm:$0xff] %v6003_v15  ;;  %v6023_v3 = vrot.slane %v1789_v24, %v8411_v45  ;;  %v6027_v49 = vrot.slane %v5654_v57, %v8411_v45  ;;  %v1823_v60 = vcombine.high %v5662_v51, %v5662_v51 }
 0x275   :  { %8422 = vst [vmem:[#allocation25_spill] sm:$0xff] %v6010_v41  ;;  %8423 = vst [vmem:[#allocation27_spill] sm:$0xff] %v6014_v23  ;;  %v6034_v28 = vrot.slane %v1806_v13, %v8411_v45  ;;  %v6044_v57 = vrot.slane %v5662_v51, %v8411_v45  ;;  %v1840_v33 = vcombine.high %v5673_v62, %v5673_v62  ;;  %v2054_v13 = vsel %vm2053_vm2, %v5708_v50, -inf }
 0x276   :  { %8424 = vst [vmem:[#allocation29_spill] sm:$0xff] %v6023_v3  ;;  %8425 = vst [vmem:[#allocation26_spill] sm:$0xff] %v6027_v49  ;;  %v6051_v55 = vrot.slane %v1823_v60, %v8411_v45  ;;  %v6055_v23 = vrot.slane %v5673_v62, %v8411_v45  ;;  %v1857_v6 = vcombine.high %v5684_v31, %v5684_v31 }
 0x277   :  { %8426 = vst [vmem:[#allocation28_spill] sm:$0xff] %v6034_v28  ;;  %8427 = vst [vmem:[#allocation4_spill] sm:$0xff] %v6044_v57  ;;  %v6062_v24 = vrot.slane %v1840_v33, %v8411_v45  ;;  %v6066_v49 = vrot.slane %v5684_v31, %v8411_v45  ;;  %v1874_v60 = vcombine.high %v5686_v53, %v5686_v53 }
 0x278   :  { %8428 = vst [vmem:[#allocation12_spill] sm:$0xff] %v6051_v55  ;;  %8429 = vst [vmem:[#allocation14_spill] sm:$0xff] %v6055_v23  ;;  %v6075_v28 = vrot.slane %v1857_v6, %v8411_v45  ;;  %v6079_v33 = vrot.slane %v5686_v53, %v8411_v45  ;;  %v1891_v62 = vcombine.high %v5694_v22, %v5694_v22 }
 0x279   :  { %8430 = vst [vmem:[#allocation19_spill] sm:$0xff] %v6062_v24  ;;  %8431 = vst [vmem:[#allocation18_spill] sm:$0xff] %v6066_v49  ;;  %v6086_v57 = vrot.slane %v1874_v60, %v8411_v45  ;;  %v6096_v53 = vrot.slane %v5694_v22, %v8411_v45  ;;  %v1908_v31 = vcombine.high %v5704_v56, %v5704_v56  ;;  %v2068_v24 = vsel %vm2053_vm2, %v5717_v19, -inf }
 0x27a   :  { %8432 = vst [vmem:[#allocation21_spill] sm:$0xff] %v6075_v28  ;;  %8433 = vst [vmem:[#allocation20_spill] sm:$0xff] %v6079_v33  ;;  %v6103_v51 = vrot.slane %v1891_v62, %v8411_v45  ;;  %v6107_v49 = vrot.slane %v5704_v56, %v8411_v45  ;;  %v2055_v33 = vrot.slane %v2054_v13, 4  ;;  %v8439_v60 = vcombine.high %v5708_v50, %v5708_v50 }
 0x27b   :  { %8434 = vst [vmem:[#allocation5_spill] sm:$0xff] %v6086_v57  ;;  %8435 = vst [vmem:[#allocation17_spill] sm:$0xff] %v6096_v53  ;;  %v6114_v6 = vrot.slane %v1908_v31, %v8411_v45  ;;  %v2069_v22 = vrot.slane %v2068_v24, 4  ;;  %v8440_v50 = vcombine.high %v5717_v19, %v5717_v19  ;;  %v2082_v57 = vsel %vm2053_vm2, %v5714_v0, -inf }
 0x27c   :  { %8436 = vst [vmem:[#allocation16_spill] sm:$0xff] %v6103_v51  ;;  %8437 = vst [vmem:[#allocation23_spill] sm:$0xff] %v6107_v49  ;;  %v2061_v62 = vsel %vm2053_vm2, %v8439_v60, -inf  ;;  %v2056_v31 = vmax.f32 %v2054_v13, %v2055_v33  ;;  %v8441_v56 = vcombine.high %v5714_v0, %v5714_v0  ;;  %v2083_v45 = vrot.slane %v2082_v57, 4 }
 0x27d   :  { %8438 = vst [vmem:[#allocation7_spill] sm:$0xff] %v6114_v6  ;;  %v2062_v28 = vrot.slane %v2061_v62, 4  ;;  %v2075_v60 = vsel %vm2053_vm2, %v8440_v50, -inf  ;;  %v2070_v55 = vmax.f32 %v2068_v24, %v2069_v22  ;;  %v2096_v19 = vsel %vm2053_vm2, %v5730_v12, -inf }
 0x27e   :  { %v2076_v23 = vrot.slane %v2075_v60, 4  ;;  %v2089_v49 = vsel %vm2053_vm2, %v8441_v56, -inf  ;;  %v2057_v51 = vrot.slane %v2056_v31, 2  ;;  %v2084_v41 = vmax.f32 %v2082_v57, %v2083_v45 }
 0x27f   :  { %v2063_v53 = vmax.f32 %v2061_v62, %v2062_v28  ;;  %v2090_v13 = vrot.slane %v2089_v49, 4  ;;  %v8442_v28 = vcombine.high %v5730_v12, %v5730_v12  ;;  %v2071_v3 = vrot.slane %v2070_v55, 2 }
 0x280   :  { %v2077_v6 = vmax.f32 %v2075_v60, %v2076_v23  ;;  %v2058_v50 = vmax.f32 %v2056_v31, %v2057_v51  ;;  %v2097_v61 = vrot.slane %v2096_v19, 4  ;;  %v2085_v17 = vrot.slane %v2084_v41, 2 }
 0x281   :  { %v2064_v33 = vrot.slane %v2063_v53, 2  ;;  %v2103_v62 = vsel %vm2053_vm2, %v8442_v28, -inf  ;;  %v2091_v0 = vmax.f32 %v2089_v49, %v2090_v13  ;;  %v2072_v48 = vmax.f32 %v2070_v55, %v2071_v3 }
 0x282   :  { %v2078_v56 = vrot.slane %v2077_v6, 2  ;;  %v2104_v24 = vrot.slane %v2103_v62, 4  ;;  %v2059_v22 = vrot.slane %v2058_v50, 1  ;;  %v2098_v10 = vmax.f32 %v2096_v19, %v2097_v61 }
 0x283   :  { %v2065_v15 = vmax.f32 %v2063_v53, %v2064_v33  ;;  %v2092_v23 = vrot.slane %v2091_v0, 2  ;;  %v2073_v12 = vrot.slane %v2072_v48, 1  ;;  %v2086_v28 = vmax.f32 %v2084_v41, %v2085_v17 }
 0x284   :  { %v2079_v59 = vmax.f32 %v2077_v6, %v2078_v56  ;;  %v2105_v18 = vmax.f32 %v2103_v62, %v2104_v24  ;;  %v6144_v37 = vmax.f32 %v2058_v50, %v2059_v22  ;;  %v2099_v57 = vrot.slane %v2098_v10, 2 }
 0x285   :  { %v2066_v60 = vrot.slane %v2065_v15, 1  ;;  %v2093_v51 = vmax.f32 %v2091_v0, %v2092_v23  ;;  %v6148_v45 = vmax.f32 %v2072_v48, %v2073_v12  ;;  %v2087_v13 = vrot.slane %v2086_v28, 1 }
 0x286   :  { %v2080_v49 = vrot.slane %v2079_v59, 1  ;;  %v2106_v53 = vrot.slane %v2105_v18, 2  ;;  %v2110_v55 = vsel %vm2053_vm2, %v5723_v29, -inf  ;;  %v2100_v61 = vmax.f32 %v2098_v10, %v2099_v57 }
 0x287   :  { %v6146_v31 = vmax.f32 %v2065_v15, %v2066_v60  ;;  %v2094_v3 = vrot.slane %v2093_v51, 1  ;;  %v2111_v19 = vrot.slane %v2110_v55, 4  ;;  %v6154_v62 = vmax.f32 %v2086_v28, %v2087_v13 }
 0x288   :  { %v6152_v6 = vmax.f32 %v2079_v59, %v2080_v49  ;;  %v2107_v33 = vmax.f32 %v2105_v18, %v2106_v53  ;;  %v8446_v17 = vcombine.high %v5723_v29, %v5723_v29  ;;  %v2124_v15 = vsel %vm2053_vm2, %v5741_v36, -inf }
 0x289   :  { %8444 = vst [vmem:[#allocation30_spill] sm:$0xff] %v6154_v62  ;;  %v6156_v41 = vmax.f32 %v2093_v51, %v2094_v3  ;;  %v2101_v50 = vrot.slane %v2100_v61, 1  ;;  %v2112_v56 = vmax.f32 %v2110_v55, %v2111_v19  ;;  %v2125_v24 = vrot.slane %v2124_v15, 4 }
 0x28a   :  { %8443 = vst [vmem:[#allocation15_spill] sm:$0xff] %v6152_v6  ;;  %v2117_v48 = vsel %vm2053_vm2, %v8446_v17, -inf  ;;  %v2108_v0 = vrot.slane %v2107_v33, 1  ;;  %v8447_v18 = vcombine.high %v5741_v36, %v5741_v36  ;;  %v2138_v22 = vsel %vm2053_vm2, %v5736_v38, -inf }
 0x28b   :  { %8445 = vst [vmem:[#allocation31_spill] sm:$0xff] %v6156_v41  ;;  %v2118_v59 = vrot.slane %v2117_v48, 4  ;;  %v8448_v29 = vcombine.high %v5736_v38, %v5736_v38  ;;  %v6174_v60 = vmax.f32 %v2100_v61, %v2101_v50  ;;  %v2113_v28 = vrot.slane %v2112_v56, 2 }
 0x28c   :  { %v2131_v10 = vsel %vm2053_vm2, %v8447_v18, -inf  ;;  %v6176_v12 = vmax.f32 %v2107_v33, %v2108_v0  ;;  %v2126_v49 = vmax.f32 %v2124_v15, %v2125_v24  ;;  %v2139_v53 = vrot.slane %v2138_v22, 4 }
 0x28d   :  { %v2145_v23 = vsel %vm2053_vm2, %v8448_v29, -inf  ;;  %8449 = vst [vmem:[#allocation32_spill] sm:$0xff] %v6174_v60  ;;  %v2119_v51 = vmax.f32 %v2117_v48, %v2118_v59  ;;  %v2132_v57 = vrot.slane %v2131_v10, 4  ;;  %v2114_v13 = vmax.f32 %v2112_v56, %v2113_v28 }
 0x28e   :  { %8450 = vst [vmem:[#allocation33_spill] sm:$0xff] %v6176_v12  ;;  %v2146_v36 = vrot.slane %v2145_v23, 4  ;;  %v2152_v55 = vsel %vm2053_vm2, %v5746_v44, -inf  ;;  %v8451_v38 = vcombine.high %v5746_v44, %v5746_v44  ;;  %v2127_v61 = vrot.slane %v2126_v49, 2 }
 0x28f   :  { %v2120_v3 = vrot.slane %v2119_v51, 2  ;;  %v2133_v17 = vmax.f32 %v2131_v10, %v2132_v57  ;;  %v2140_v33 = vmax.f32 %v2138_v22, %v2139_v53  ;;  %v2115_v0 = vrot.slane %v2114_v13, 1 }
 0x290   :  { %v2159_v19 = vsel %vm2053_vm2, %v8451_v38, -inf  ;;  %v2147_v50 = vmax.f32 %v2145_v23, %v2146_v36  ;;  %v2153_v15 = vrot.slane %v2152_v55, 4  ;;  %v2128_v24 = vmax.f32 %v2126_v49, %v2127_v61 }
 0x291   :  { %v2121_v48 = vmax.f32 %v2119_v51, %v2120_v3  ;;  %v2160_v59 = vrot.slane %v2159_v19, 4  ;;  %v2134_v18 = vrot.slane %v2133_v17, 2  ;;  %v2141_v56 = vrot.slane %v2140_v33, 2 }
 0x292   :  { %v2148_v29 = vrot.slane %v2147_v50, 2  ;;  %v6184_v28 = vmax.f32 %v2114_v13, %v2115_v0  ;;  %v2154_v60 = vmax.f32 %v2152_v55, %v2153_v15  ;;  %v2129_v44 = vrot.slane %v2128_v24, 1 }
 0x293   :  { %v2122_v12 = vrot.slane %v2121_v48, 1  ;;  %v2161_v41 = vmax.f32 %v2159_v19, %v2160_v59  ;;  %v2135_v62 = vmax.f32 %v2133_v17, %v2134_v18  ;;  %v2142_v38 = vmax.f32 %v2140_v33, %v2141_v56 }
 0x294   :  { %v2149_v6 = vmax.f32 %v2147_v50, %v2148_v29  ;;  %v2155_v22 = vrot.slane %v2154_v60, 2  ;;  %v2166_v51 = vsel %vm2053_vm2, %v5756_v40, -inf  ;;  %v6190_v49 = vmax.f32 %v2128_v24, %v2129_v44 }
 0x295   :  { %v6186_v10 = vmax.f32 %v2121_v48, %v2122_v12  ;;  %v2162_v23 = vrot.slane %v2161_v41, 2  ;;  %v2136_v57 = vrot.slane %v2135_v62, 1  ;;  %v2143_v53 = vrot.slane %v2142_v38, 1 }
 0x296   :  { %v2150_v36 = vrot.slane %v2149_v6, 1  ;;  %v2156_v13 = vmax.f32 %v2154_v60, %v2155_v22  ;;  %v2167_v55 = vrot.slane %v2166_v51, 4  ;;  %v8452_v19 = vcombine.high %v5756_v40, %v5756_v40 }
 0x297   :  { %v2163_v3 = vmax.f32 %v2161_v41, %v2162_v23  ;;  %v6196_v12 = vmax.f32 %v2135_v62, %v2136_v57  ;;  %v6198_v17 = vmax.f32 %v2142_v38, %v2143_v53  ;;  %v2180_v60 = vsel %vm2053_vm2, %v5769_v58, -inf }
 0x298   :  { %v2173_v61 = vsel %vm2053_vm2, %v8452_v19, -inf  ;;  %v6200_v33 = vmax.f32 %v2149_v6, %v2150_v36  ;;  %v2157_v0 = vrot.slane %v2156_v13, 1  ;;  %v2168_v15 = vmax.f32 %v2166_v51, %v2167_v55 }
 0x299   :  { %v2174_v50 = vrot.slane %v2173_v61, 4  ;;  %v2164_v48 = vrot.slane %v2163_v3, 1  ;;  %v2181_v59 = vrot.slane %v2180_v60, 4  ;;  %v8453_v40 = vcombine.high %v5769_v58, %v5769_v58 }
 0x29a   :  { %v2194_v62 = vsel %vm2053_vm2, %v5766_v52, -inf  ;;  %v6210_v18 = vmax.f32 %v2156_v13, %v2157_v0  ;;  %v2169_v56 = vrot.slane %v2168_v15, 2  ;;  %v8455_v23 = vcombine.high %v5766_v52, %v5766_v52 }
 0x29b   :  { %v2175_v41 = vmax.f32 %v2173_v61, %v2174_v50  ;;  %v2187_v24 = vsel %vm2053_vm2, %v8453_v40, -inf  ;;  %v6212_v6 = vmax.f32 %v2163_v3, %v2164_v48  ;;  %v2182_v38 = vmax.f32 %v2180_v60, %v2181_v59 }
 0x29c   :  { %v2188_v29 = vrot.slane %v2187_v24, 4  ;;  %v2195_v22 = vrot.slane %v2194_v62, 4  ;;  %v2201_v51 = vsel %vm2053_vm2, %v8455_v23, -inf  ;;  %v2170_v58 = vmax.f32 %v2168_v15, %v2169_v56 }
 0x29d   :  { %8454 = vst [vmem:[#allocation34_spill] sm:$0xff] %v6212_v6  ;;  %v2176_v44 = vrot.slane %v2175_v41, 2  ;;  %v2202_v53 = vrot.slane %v2201_v51, 4  ;;  %v2208_v36 = vsel %vm2053_vm2, %v5780_v27, -inf  ;;  %v2183_v55 = vrot.slane %v2182_v38, 2 }
 0x29e   :  { %v2189_v57 = vmax.f32 %v2187_v24, %v2188_v29  ;;  %v2196_v3 = vmax.f32 %v2194_v62, %v2195_v22  ;;  %v2209_v19 = vrot.slane %v2208_v36, 4  ;;  %v2171_v61 = vrot.slane %v2170_v58, 1 }
 0x29f   :  { %v2177_v13 = vmax.f32 %v2175_v41, %v2176_v44  ;;  %v2203_v0 = vmax.f32 %v2201_v51, %v2202_v53  ;;  %v8456_v48 = vcombine.high %v5780_v27, %v5780_v27  ;;  %v2184_v59 = vmax.f32 %v2182_v38, %v2183_v55 }
 0x2a0   :  { %v2190_v50 = vrot.slane %v2189_v57, 2  ;;  %v2197_v15 = vrot.slane %v2196_v3, 2  ;;  %v2210_v40 = vmax.f32 %v2208_v36, %v2209_v19  ;;  %v6224_v24 = vmax.f32 %v2170_v58, %v2171_v61 }
 0x2a1   :  { %v2215_v52 = vsel %vm2053_vm2, %v8456_v48, -inf  ;;  %v2178_v60 = vrot.slane %v2177_v13, 1  ;;  %v2204_v29 = vrot.slane %v2203_v0, 2  ;;  %v2185_v62 = vrot.slane %v2184_v59, 1 }
 0x2a2   :  { %v2191_v56 = vmax.f32 %v2189_v57, %v2190_v50  ;;  %v2216_v41 = vrot.slane %v2215_v52, 4  ;;  %v2198_v22 = vmax.f32 %v2196_v3, %v2197_v15  ;;  %v2211_v23 = vrot.slane %v2210_v40, 2 }
 0x2a3   :  { %v6226_v44 = vmax.f32 %v2177_v13, %v2178_v60  ;;  %v2205_v53 = vmax.f32 %v2203_v0, %v2204_v29  ;;  %v2222_v27 = vsel %vm2053_vm2, %v5777_v4, -inf  ;;  %v6230_v48 = vmax.f32 %v2184_v59, %v2185_v62 }
 0x2a4   :  { %v2192_v51 = vrot.slane %v2191_v56, 1  ;;  %v2217_v6 = vmax.f32 %v2215_v52, %v2216_v41  ;;  %v2199_v38 = vrot.slane %v2198_v22, 1  ;;  %v2212_v36 = vmax.f32 %v2210_v40, %v2211_v23 }
 0x2a5   :  { %v2223_v58 = vrot.slane %v2222_v27, 4  ;;  %v2206_v57 = vrot.slane %v2205_v53, 1  ;;  %v8457_v13 = vcombine.high %v5777_v4, %v5777_v4  ;;  %v2236_v15 = vsel %vm2053_vm2, %v5793_v5, -inf }
 0x2a6   :  { %v6232_v55 = vmax.f32 %v2191_v56, %v2192_v51  ;;  %v2218_v19 = vrot.slane %v2217_v6, 2  ;;  %v6238_v61 = vmax.f32 %v2198_v22, %v2199_v38  ;;  %v2213_v50 = vrot.slane %v2212_v36, 1 }
 0x2a7   :  { %v2229_v3 = vsel %vm2053_vm2, %v8457_v13, -inf  ;;  %v2224_v0 = vmax.f32 %v2222_v27, %v2223_v58  ;;  %v6240_v60 = vmax.f32 %v2205_v53, %v2206_v57  ;;  %v8459_v40 = vcombine.high %v5793_v5, %v5793_v5 }
 0x2a8   :  { %v2230_v52 = vrot.slane %v2229_v3, 4  ;;  %v2219_v59 = vmax.f32 %v2217_v6, %v2218_v19  ;;  %v6248_v29 = vmax.f32 %v2212_v36, %v2213_v50  ;;  %v2237_v62 = vrot.slane %v2236_v15, 4 }
 0x2a9   :  { %8458 = vst [vmem:[#allocation35_spill] sm:$0xff] %v6240_v60  ;;  %v2243_v56 = vsel %vm2053_vm2, %v8459_v40, -inf  ;;  %v2225_v4 = vrot.slane %v2224_v0, 2  ;;  %v2250_v51 = vsel %vm2053_vm2, %v5788_v54, -inf  ;;  %v8461_v6 = vcombine.high %v5788_v54, %v5788_v54 }
 0x2aa   :  { %8460 = vst [vmem:[#allocation36_spill] sm:$0xff] %v6248_v29  ;;  %v2231_v41 = vmax.f32 %v2229_v3, %v2230_v52  ;;  %v2220_v22 = vrot.slane %v2219_v59, 1  ;;  %v2244_v23 = vrot.slane %v2243_v56, 4  ;;  %v2238_v5 = vmax.f32 %v2236_v15, %v2237_v62 }
 0x2ab   :  { %v2257_v53 = vsel %vm2053_vm2, %v8461_v6, -inf  ;;  %v2226_v27 = vmax.f32 %v2224_v0, %v2225_v4  ;;  %v2251_v58 = vrot.slane %v2250_v51, 4  ;;  %v2264_v13 = vsel %vm2053_vm2, %v5802_v47, -inf }
 0x2ac   :  { %v2232_v38 = vrot.slane %v2231_v41, 2  ;;  %v6256_v57 = vmax.f32 %v2219_v59, %v2220_v22  ;;  %v2245_v36 = vmax.f32 %v2243_v56, %v2244_v23  ;;  %v2258_v19 = vrot.slane %v2257_v53, 4 }
 0x2ad   :  { %v2227_v3 = vrot.slane %v2226_v27, 1  ;;  %v2239_v52 = vrot.slane %v2238_v5, 2  ;;  %v2252_v40 = vmax.f32 %v2250_v51, %v2251_v58  ;;  %v2265_v54 = vrot.slane %v2264_v13, 4 }
 0x2ae   :  { %8462 = vst [vmem:[#allocation37_spill] sm:$0xff] %v6256_v57  ;;  %v2233_v50 = vmax.f32 %v2231_v41, %v2232_v38  ;;  %v2246_v29 = vrot.slane %v2245_v36, 2  ;;  %v2259_v60 = vmax.f32 %v2257_v53, %v2258_v19  ;;  %v8463_v0 = vcombine.high %v5802_v47, %v5802_v47 }
 0x2af   :  { %v6264_v4 = vmax.f32 %v2226_v27, %v2227_v3  ;;  %v2240_v56 = vmax.f32 %v2238_v5, %v2239_v52  ;;  %v2253_v62 = vrot.slane %v2252_v40, 2  ;;  %v2266_v6 = vmax.f32 %v2264_v13, %v2265_v54 }
 0x2b0   :  { %v2271_v15 = vsel %vm2053_vm2, %v8463_v0, -inf  ;;  %v2234_v59 = vrot.slane %v2233_v50, 1  ;;  %v2247_v22 = vmax.f32 %v2245_v36, %v2246_v29  ;;  %v2260_v23 = vrot.slane %v2259_v60, 2 }
 0x2b1   :  { %8464 = vst [vmem:[#allocation38_spill] sm:$0xff] %v6264_v4  ;;  %v2272_v57 = vrot.slane %v2271_v15, 4  ;;  %v2241_v51 = vrot.slane %v2240_v56, 1  ;;  %v2254_v38 = vmax.f32 %v2252_v40, %v2253_v62  ;;  %v2278_v53 = vsel %vm2053_vm2, %v5808_v2, -inf }
 0x2b2   :  { %v6266_v41 = vmax.f32 %v2233_v50, %v2234_v59  ;;  %v2248_v58 = vrot.slane %v2247_v22, 1  ;;  %v2261_v47 = vmax.f32 %v2259_v60, %v2260_v23  ;;  %v2267_v19 = vrot.slane %v2266_v6, 2 }
 0x2b3   :  { %v2273_v0 = vmax.f32 %v2271_v15, %v2272_v57  ;;  %v6270_v27 = vmax.f32 %v2240_v56, %v2241_v51  ;;  %v2255_v3 = vrot.slane %v2254_v38, 1  ;;  %v2279_v5 = vrot.slane %v2278_v53, 4 }
 0x2b4   :  { %v8465_v29 = vcombine.high %v5808_v2, %v5808_v2  ;;  %v6276_v13 = vmax.f32 %v2247_v22, %v2248_v58  ;;  %v2262_v50 = vrot.slane %v2261_v47, 1  ;;  %v2268_v52 = vmax.f32 %v2266_v6, %v2267_v19 }
 0x2b5   :  { %v2274_v40 = vrot.slane %v2273_v0, 2  ;;  %v6278_v54 = vmax.f32 %v2254_v38, %v2255_v3  ;;  %v2280_v59 = vmax.f32 %v2278_v53, %v2279_v5  ;;  %v2292_v57 = vsel %vm2053_vm2, %v5813_v42, -inf }
 0x2b6   :  { %v2285_v36 = vsel %vm2053_vm2, %v8465_v29, -inf  ;;  %v6282_v15 = vmax.f32 %v2261_v47, %v2262_v50  ;;  %v2269_v56 = vrot.slane %v2268_v52, 1  ;;  %v2293_v23 = vrot.slane %v2292_v57, 4 }
 0x2b7   :  { %8466 = vst [vmem:[#allocation39_spill] sm:$0xff] %v6278_v54  ;;  %v2286_v60 = vrot.slane %v2285_v36, 4  ;;  %v2275_v62 = vmax.f32 %v2273_v0, %v2274_v40  ;;  %v2281_v2 = vrot.slane %v2280_v59, 2  ;;  %v8468_v22 = vcombine.high %v5813_v42, %v5813_v42 }
 0x2b8   :  { %8467 = vst [vmem:[#allocation40_spill] sm:$0xff] %v6282_v15  ;;  %v2306_v38 = vsel %vm2053_vm2, %v5819_v39, -inf  ;;  %v6290_v53 = vmax.f32 %v2268_v52, %v2269_v56  ;;  %v2294_v19 = vmax.f32 %v2292_v57, %v2293_v23  ;;  %v8470_v0 = vcombine.high %v5819_v39, %v5819_v39 }
 0x2b9   :  { %v2287_v51 = vmax.f32 %v2285_v36, %v2286_v60  ;;  %v2299_v6 = vsel %vm2053_vm2, %v8468_v22, -inf  ;;  %v2276_v58 = vrot.slane %v2275_v62, 1  ;;  %v2282_v47 = vmax.f32 %v2280_v59, %v2281_v2 }
 0x2ba   :  { %8469 = vst [vmem:[#allocation41_spill] sm:$0xff] %v6290_v53  ;;  %v2300_v3 = vrot.slane %v2299_v6, 4  ;;  %v2307_v29 = vrot.slane %v2306_v38, 4  ;;  %v2313_v36 = vsel %vm2053_vm2, %v8470_v0, -inf  ;;  %v2295_v42 = vrot.slane %v2294_v19, 2 }
 0x2bb   :  { %v2288_v5 = vrot.slane %v2287_v51, 2  ;;  %v6296_v50 = vmax.f32 %v2275_v62, %v2276_v58  ;;  %v2314_v60 = vrot.slane %v2313_v36, 4  ;;  %v2283_v22 = vrot.slane %v2282_v47, 1 }
 0x2bc   :  { %v2301_v40 = vmax.f32 %v2299_v6, %v2300_v3  ;;  %v2308_v52 = vmax.f32 %v2306_v38, %v2307_v29  ;;  %v2320_v57 = vsel %vm2053_vm2, %v5834_v26, -inf  ;;  %v2296_v56 = vmax.f32 %v2294_v19, %v2295_v42 }
 0x2bd   :  { %v2289_v15 = vmax.f32 %v2287_v51, %v2288_v5  ;;  %v2315_v23 = vmax.f32 %v2313_v36, %v2314_v60  ;;  %v2321_v2 = vrot.slane %v2320_v57, 4  ;;  %v6300_v53 = vmax.f32 %v2282_v47, %v2283_v22 }
 0x2be   :  { %v2302_v59 = vrot.slane %v2301_v40, 2  ;;  %v2309_v54 = vrot.slane %v2308_v52, 2  ;;  %v8472_v62 = vcombine.high %v5834_v26, %v5834_v26  ;;  %v2297_v58 = vrot.slane %v2296_v56, 1 }
 0x2bf   :  { %8471 = vst [vmem:[#allocation42_spill] sm:$0xff] %v6300_v53  ;;  %v2290_v39 = vrot.slane %v2289_v15, 1  ;;  %v2316_v51 = vrot.slane %v2315_v23, 2  ;;  %v2322_v38 = vmax.f32 %v2320_v57, %v2321_v2  ;;  %v2334_v0 = vsel %vm2053_vm2, %v5829_v9, -inf }
 0x2c0   :  { %v2327_v6 = vsel %vm2053_vm2, %v8472_v62, -inf  ;;  %v2303_v3 = vmax.f32 %v2301_v40, %v2302_v59  ;;  %v2310_v29 = vmax.f32 %v2308_v52, %v2309_v54  ;;  %v6310_v47 = vmax.f32 %v2296_v56, %v2297_v58 }
 0x2c1   :  { %v6306_v5 = vmax.f32 %v2289_v15, %v2290_v39  ;;  %v2328_v19 = vrot.slane %v2327_v6, 4  ;;  %v2317_v42 = vmax.f32 %v2315_v23, %v2316_v51  ;;  %v2323_v60 = vrot.slane %v2322_v38, 2 }
 0x2c2   :  { %v2304_v36 = vrot.slane %v2303_v3, 1  ;;  %v2311_v22 = vrot.slane %v2310_v29, 1  ;;  %v2335_v53 = vrot.slane %v2334_v0, 4  ;;  %v8473_v40 = vcombine.high %v5829_v9, %v5829_v9 }
 0x2c3   :  { %v2329_v26 = vmax.f32 %v2327_v6, %v2328_v19  ;;  %v2318_v54 = vrot.slane %v2317_v42, 1  ;;  %v2324_v52 = vmax.f32 %v2322_v38, %v2323_v60  ;;  %v2348_v23 = vsel %vm2053_vm2, %v5841_v30, -inf }
 0x2c4   :  { %v2341_v57 = vsel %vm2053_vm2, %v8473_v40, -inf  ;;  %v6316_v15 = vmax.f32 %v2303_v3, %v2304_v36  ;;  %v6318_v2 = vmax.f32 %v2310_v29, %v2311_v22  ;;  %v2336_v39 = vmax.f32 %v2334_v0, %v2335_v53 }
 0x2c5   :  { %v2342_v59 = vrot.slane %v2341_v57, 4  ;;  %v2330_v56 = vrot.slane %v2329_v26, 2  ;;  %v6322_v62 = vmax.f32 %v2317_v42, %v2318_v54  ;;  %v2325_v6 = vrot.slane %v2324_v52, 1 }
 0x2c6   :  { %8474 = vst [vmem:[#allocation43_spill] sm:$0xff] %v6318_v2  ;;  %v2349_v51 = vrot.slane %v2348_v23, 4  ;;  %v2337_v19 = vrot.slane %v2336_v39, 2  ;;  %v8476_v3 = vcombine.high %v5841_v30, %v5841_v30  ;;  %v2362_v29 = vsel %vm2053_vm2, %v5847_v21, -inf }
 0x2c7   :  { %8475 = vst [vmem:[#allocation44_spill] sm:$0xff] %v6322_v62  ;;  %v2343_v58 = vmax.f32 %v2341_v57, %v2342_v59  ;;  %v2331_v9 = vmax.f32 %v2329_v26, %v2330_v56  ;;  %v6330_v36 = vmax.f32 %v2324_v52, %v2325_v6  ;;  %v2363_v40 = vrot.slane %v2362_v29, 4 }
 0x2c8   :  { %v2355_v38 = vsel %vm2053_vm2, %v8476_v3, -inf  ;;  %v2350_v0 = vmax.f32 %v2348_v23, %v2349_v51  ;;  %v2338_v22 = vmax.f32 %v2336_v39, %v2337_v19  ;;  %v8478_v26 = vcombine.high %v5847_v21, %v5847_v21 }
 0x2c9   :  { %8477 = vst [vmem:[#allocation45_spill] sm:$0xff] %v6330_v36  ;;  %v2344_v53 = vrot.slane %v2343_v58, 2  ;;  %v2356_v60 = vrot.slane %v2355_v38, 4  ;;  %v2332_v42 = vrot.slane %v2331_v9, 1  ;;  %v2364_v52 = vmax.f32 %v2362_v29, %v2363_v40 }
 0x2ca   :  { %v2369_v57 = vsel %vm2053_vm2, %v8478_v26, -inf  ;;  %v2351_v30 = vrot.slane %v2350_v0, 2  ;;  %v2339_v62 = vrot.slane %v2338_v22, 1  ;;  %v2376_v23 = vsel %vm2053_vm2, %v5854_v11, -inf }
 0x2cb   :  { %v2345_v54 = vmax.f32 %v2343_v58, %v2344_v53  ;;  %v2357_v59 = vmax.f32 %v2355_v38, %v2356_v60  ;;  %v2370_v56 = vrot.slane %v2369_v57, 4  ;;  %v6336_v3 = vmax.f32 %v2331_v9, %v2332_v42 }
 0x2cc   :  { %v2352_v51 = vmax.f32 %v2350_v0, %v2351_v30  ;;  %v6340_v36 = vmax.f32 %v2338_v22, %v2339_v62  ;;  %v2365_v21 = vrot.slane %v2364_v52, 2  ;;  %v2377_v2 = vrot.slane %v2376_v23, 4 }
 0x2cd   :  { %v2346_v6 = vrot.slane %v2345_v54, 1  ;;  %v2358_v39 = vrot.slane %v2357_v59, 2  ;;  %v2371_v19 = vmax.f32 %v2369_v57, %v2370_v56  ;;  %v8480_v58 = vcombine.high %v5854_v11, %v5854_v11 }
 0x2ce   :  { %8479 = vst [vmem:[#allocation46_spill] sm:$0xff] %v6340_v36  ;;  %v2353_v53 = vrot.slane %v2352_v51, 1  ;;  %v2366_v42 = vmax.f32 %v2364_v52, %v2365_v21  ;;  %v2378_v40 = vmax.f32 %v2376_v23, %v2377_v2  ;;  %v2390_v0 = vsel %vm2053_vm2, %v5858_v16, -inf }
 0x2cf   :  { %v2383_v38 = vsel %vm2053_vm2, %v8480_v58, -inf  ;;  %v6346_v9 = vmax.f32 %v2345_v54, %v2346_v6  ;;  %v2359_v29 = vmax.f32 %v2357_v59, %v2358_v39  ;;  %v2372_v60 = vrot.slane %v2371_v19, 2 }
 0x2d0   :  { %v2384_v26 = vrot.slane %v2383_v38, 4  ;;  %v6350_v62 = vmax.f32 %v2352_v51, %v2353_v53  ;;  %v2391_v30 = vrot.slane %v2390_v0, 4  ;;  %v2367_v56 = vrot.slane %v2366_v42, 1 }
 0x2d1   :  { %v2360_v22 = vrot.slane %v2359_v29, 1  ;;  %v2373_v57 = vmax.f32 %v2371_v19, %v2372_v60  ;;  %v2379_v11 = vrot.slane %v2378_v40, 2  ;;  %v8481_v54 = vcombine.high %v5858_v16, %v5858_v16 }
 0x2d2   :  { %v2385_v36 = vmax.f32 %v2383_v38, %v2384_v26  ;;  %v2392_v52 = vmax.f32 %v2390_v0, %v2391_v30  ;;  %v6358_v39 = vmax.f32 %v2366_v42, %v2367_v56  ;;  %v2404_v19 = vsel %vm2053_vm2, %v5867_v25, -inf }
 0x2d3   :  { %v2397_v59 = vsel %vm2053_vm2, %v8481_v54, -inf  ;;  %v6356_v6 = vmax.f32 %v2359_v29, %v2360_v22  ;;  %v2374_v2 = vrot.slane %v2373_v57, 1  ;;  %v2380_v51 = vmax.f32 %v2378_v40, %v2379_v11 }
 0x2d4   :  { %v2398_v23 = vrot.slane %v2397_v59, 4  ;;  %8482 = vst [vmem:[#allocation47_spill] sm:$0xff] %v6358_v39  ;;  %v2386_v21 = vrot.slane %v2385_v36, 2  ;;  %v2393_v38 = vrot.slane %v2392_v52, 2  ;;  %v2405_v60 = vrot.slane %v2404_v19, 4 }
 0x2d5   :  { %v6362_v58 = vmax.f32 %v2373_v57, %v2374_v2  ;;  %v2381_v16 = vrot.slane %v2380_v51, 1  ;;  %v8484_v29 = vcombine.high %v5867_v25, %v5867_v25  ;;  %v2418_v42 = vsel %vm2053_vm2, %v5871_v63, -inf }
 0x2d6   :  { %v2399_v53 = vmax.f32 %v2397_v59, %v2398_v23  ;;  %v2387_v26 = vmax.f32 %v2385_v36, %v2386_v21  ;;  %v2394_v40 = vmax.f32 %v2392_v52, %v2393_v38  ;;  %v2406_v30 = vmax.f32 %v2404_v19, %v2405_v60 }
 0x2d7   :  { %8483 = vst [vmem:[#allocation48_spill] sm:$0xff] %v6362_v58  ;;  %v2411_v0 = vsel %vm2053_vm2, %v8484_v29, -inf  ;;  %v6370_v11 = vmax.f32 %v2380_v51, %v2381_v16  ;;  %v2419_v54 = vrot.slane %v2418_v42, 4  ;;  %v8486_v59 = vcombine.high %v5871_v63, %v5871_v63 }
 0x2d8   :  { %v2400_v22 = vrot.slane %v2399_v53, 2  ;;  %v2412_v56 = vrot.slane %v2411_v0, 4  ;;  %v2388_v57 = vrot.slane %v2387_v26, 1  ;;  %v2395_v2 = vrot.slane %v2394_v40, 1 }
 0x2d9   :  { %8485 = vst [vmem:[#allocation49_spill] sm:$0xff] %v6370_v11  ;;  %v2425_v36 = vsel %vm2053_vm2, %v8486_v59, -inf  ;;  %v2407_v23 = vrot.slane %v2406_v30, 2  ;;  %v2420_v58 = vmax.f32 %v2418_v42, %v2419_v54  ;;  %v2432_v19 = vsel %vm2053_vm2, %v5878_v46, -inf }
 0x2da   :  { %v2401_v25 = vmax.f32 %v2399_v53, %v2400_v22  ;;  %v2413_v21 = vmax.f32 %v2411_v0, %v2412_v56  ;;  %v6376_v29 = vmax.f32 %v2387_v26, %v2388_v57  ;;  %v2426_v52 = vrot.slane %v2425_v36, 4 }
 0x2db   :  { %v6380_v51 = vmax.f32 %v2394_v40, %v2395_v2  ;;  %v2408_v60 = vmax.f32 %v2406_v30, %v2407_v23  ;;  %v2421_v11 = vrot.slane %v2420_v58, 2  ;;  %v2433_v39 = vrot.slane %v2432_v19, 4 }
 0x2dc   :  { %v2402_v38 = vrot.slane %v2401_v25, 1  ;;  %v2414_v16 = vrot.slane %v2413_v21, 2  ;;  %v2427_v63 = vmax.f32 %v2425_v36, %v2426_v52  ;;  %v8488_v53 = vcombine.high %v5878_v46, %v5878_v46 }
 0x2dd   :  { %8487 = vst [vmem:[#allocation50_spill] sm:$0xff] %v6380_v51  ;;  %v2409_v42 = vrot.slane %v2408_v60, 1  ;;  %v2422_v57 = vmax.f32 %v2420_v58, %v2421_v11  ;;  %v2434_v40 = vmax.f32 %v2432_v19, %v2433_v39  ;;  %v2446_v30 = vsel %vm2053_vm2, %v5888_v34, -inf }
 0x2de   :  { %v2439_v0 = vsel %vm2053_vm2, %v8488_v53, -inf  ;;  %v6386_v26 = vmax.f32 %v2401_v25, %v2402_v38  ;;  %v2415_v22 = vmax.f32 %v2413_v21, %v2414_v16  ;;  %v2428_v54 = vrot.slane %v2427_v63, 2 }
 0x2df   :  { %v2440_v56 = vrot.slane %v2439_v0, 4  ;;  %v6390_v59 = vmax.f32 %v2408_v60, %v2409_v42  ;;  %v2447_v23 = vrot.slane %v2446_v30, 4  ;;  %v2423_v52 = vrot.slane %v2422_v57, 1 }
 0x2e0   :  { %v2416_v36 = vrot.slane %v2415_v22, 1  ;;  %v2429_v46 = vmax.f32 %v2427_v63, %v2428_v54  ;;  %v2435_v51 = vrot.slane %v2434_v40, 2  ;;  %v8489_v25 = vcombine.high %v5888_v34, %v5888_v34 }
 0x2e1   :  { %v2441_v2 = vmax.f32 %v2439_v0, %v2440_v56  ;;  %v2448_v39 = vmax.f32 %v2446_v30, %v2447_v23  ;;  %v6398_v19 = vmax.f32 %v2422_v57, %v2423_v52  ;;  %v2460_v53 = vsel %vm2053_vm2, %v5895_v8, -inf }
 0x2e2   :  { %v2453_v21 = vsel %vm2053_vm2, %v8489_v25, -inf  ;;  %v6396_v38 = vmax.f32 %v2415_v22, %v2416_v36  ;;  %v2430_v60 = vrot.slane %v2429_v46, 1  ;;  %v2436_v16 = vmax.f32 %v2434_v40, %v2435_v51 }
 0x2e3   :  { %v2442_v58 = vrot.slane %v2441_v2, 2  ;;  %v2454_v11 = vrot.slane %v2453_v21, 4  ;;  %8490 = vst [vmem:[#allocation51_spill] sm:$0xff] %v6398_v19  ;;  %v2449_v63 = vrot.slane %v2448_v39, 2  ;;  %v2461_v56 = vrot.slane %v2460_v53, 4 }
 0x2e4   :  { %v6402_v54 = vmax.f32 %v2429_v46, %v2430_v60  ;;  %v2437_v34 = vrot.slane %v2436_v16, 1  ;;  %v8492_v22 = vcombine.high %v5895_v8, %v5895_v8  ;;  %v2474_v57 = vsel %vm2053_vm2, %v5899_v43, -inf }
 0x2e5   :  { %v2443_v0 = vmax.f32 %v2441_v2, %v2442_v58  ;;  %v2455_v42 = vmax.f32 %v2453_v21, %v2454_v11  ;;  %v2450_v51 = vmax.f32 %v2448_v39, %v2449_v63  ;;  %v2462_v23 = vmax.f32 %v2460_v53, %v2461_v56 }
 0x2e6   :  { %8491 = vst [vmem:[#allocation52_spill] sm:$0xff] %v6402_v54  ;;  %v2467_v30 = vsel %vm2053_vm2, %v8492_v22, -inf  ;;  %v6410_v52 = vmax.f32 %v2436_v16, %v2437_v34  ;;  %v2475_v25 = vrot.slane %v2474_v57, 4  ;;  %v8494_v46 = vcombine.high %v5899_v43, %v5899_v43 }
 0x2e7   :  { %v2444_v36 = vrot.slane %v2443_v0, 1  ;;  %v2456_v40 = vrot.slane %v2455_v42, 2  ;;  %v2468_v2 = vrot.slane %v2467_v30, 4  ;;  %v2451_v8 = vrot.slane %v2450_v51, 1 }
 0x2e8   :  { %8493 = vst [vmem:[#allocation53_spill] sm:$0xff] %v6410_v52  ;;  %v2481_v21 = vsel %vm2053_vm2, %v8494_v46, -inf  ;;  %v2463_v60 = vrot.slane %v2462_v23, 2  ;;  %v2476_v54 = vmax.f32 %v2474_v57, %v2475_v25  ;;  %v2488_v39 = vsel %vm2053_vm2, %v5906_v14, -inf }
 0x2e9   :  { %v6416_v58 = vmax.f32 %v2443_v0, %v2444_v36  ;;  %v2457_v11 = vmax.f32 %v2455_v42, %v2456_v40  ;;  %v2469_v22 = vmax.f32 %v2467_v30, %v2468_v2  ;;  %v2482_v19 = vrot.slane %v2481_v21, 4 }
 0x2ea   :  { %v6420_v16 = vmax.f32 %v2450_v51, %v2451_v8  ;;  %v2464_v63 = vmax.f32 %v2462_v23, %v2463_v60  ;;  %v2489_v56 = vrot.slane %v2488_v39, 4  ;;  %v2477_v43 = vrot.slane %v2476_v54, 2 }
 0x2eb   :  { %v2458_v53 = vrot.slane %v2457_v11, 1  ;;  %v2470_v34 = vrot.slane %v2469_v22, 2  ;;  %v2483_v52 = vmax.f32 %v2481_v21, %v2482_v19  ;;  %v8496_v0 = vcombine.high %v5906_v14, %v5906_v14 }
 0x2ec   :  { %8495 = vst [vmem:[#allocation54_spill] sm:$0xff] %v6420_v16  ;;  %v2465_v30 = vrot.slane %v2464_v63, 1  ;;  %v2490_v57 = vmax.f32 %v2488_v39, %v2489_v56  ;;  %v2478_v25 = vmax.f32 %v2476_v54, %v2477_v43  ;;  %v2502_v23 = vsel %vm2053_vm2, %v5910_v7, -inf }
 0x2ed   :  { %v2495_v42 = vsel %vm2053_vm2, %v8496_v0, -inf  ;;  %v6426_v36 = vmax.f32 %v2457_v11, %v2458_v53  ;;  %v2471_v2 = vmax.f32 %v2469_v22, %v2470_v34  ;;  %v2484_v51 = vrot.slane %v2483_v52, 2 }
 0x2ee   :  { %v2496_v40 = vrot.slane %v2495_v42, 4  ;;  %v6430_v46 = vmax.f32 %v2464_v63, %v2465_v30  ;;  %v2491_v8 = vrot.slane %v2490_v57, 2  ;;  %v2503_v21 = vrot.slane %v2502_v23, 4 }
 0x2ef   :  { %8497 = vst [vmem:[#allocation55_spill] sm:$0xff] %v6426_v36  ;;  %v2472_v60 = vrot.slane %v2471_v2, 1  ;;  %v2479_v14 = vrot.slane %v2478_v25, 1  ;;  %v2485_v16 = vmax.f32 %v2483_v52, %v2484_v51  ;;  %v8499_v11 = vcombine.high %v5910_v7, %v5910_v7 }
 0x2f0   :  { %8498 = vst [vmem:[#allocation56_spill] sm:$0xff] %v6430_v46  ;;  %v2497_v19 = vmax.f32 %v2495_v42, %v2496_v40  ;;  %v2492_v53 = vmax.f32 %v2490_v57, %v2491_v8  ;;  %v2504_v54 = vmax.f32 %v2502_v23, %v2503_v21  ;;  %v2516_v0 = vsel %vm2053_vm2, %v5919_v1, -inf }
 0x2f1   :  { %v2509_v39 = vsel %vm2053_vm2, %v8499_v11, -inf  ;;  %v6436_v34 = vmax.f32 %v2471_v2, %v2472_v60  ;;  %v6438_v43 = vmax.f32 %v2478_v25, %v2479_v14  ;;  %v2486_v63 = vrot.slane %v2485_v16, 1 }
 0x2f2   :  { %v2498_v22 = vrot.slane %v2497_v19, 2  ;;  %v2510_v56 = vrot.slane %v2509_v39, 4  ;;  %v2493_v42 = vrot.slane %v2492_v53, 1  ;;  %v2505_v52 = vrot.slane %v2504_v54, 2 }
 0x2f3   :  { %8500 = vst [vmem:[#allocation57_spill] sm:$0xff] %v6436_v34  ;;  %8501 = vst [vmem:[#allocation58_spill] sm:$0xff] %v6438_v43  ;;  %v6442_v51 = vmax.f32 %v2485_v16, %v2486_v63  ;;  %v2517_v7 = vrot.slane %v2516_v0, 4  ;;  %v8503_v57 = vcombine.high %v5919_v1, %v5919_v1  ;;  %v2530_v2 = vsel %vm2053_vm2, %v5923_v35, -inf }
 0x2f4   :  { %v2499_v30 = vmax.f32 %v2497_v19, %v2498_v22  ;;  %v2511_v40 = vmax.f32 %v2509_v39, %v2510_v56  ;;  %v6450_v25 = vmax.f32 %v2492_v53, %v2493_v42  ;;  %v2506_v21 = vmax.f32 %v2504_v54, %v2505_v52 }
 0x2f5   :  { %8502 = vst [vmem:[#allocation59_spill] sm:$0xff] %v6442_v51  ;;  %v2523_v23 = vsel %vm2053_vm2, %v8503_v57, -inf  ;;  %v2518_v14 = vmax.f32 %v2516_v0, %v2517_v7  ;;  %v2531_v11 = vrot.slane %v2530_v2, 4  ;;  %v8505_v16 = vcombine.high %v5923_v35, %v5923_v35 }
 0x2f6   :  { %8504 = vst [vmem:[#allocation60_spill] sm:$0xff] %v6450_v25  ;;  %v2500_v8 = vrot.slane %v2499_v30, 1  ;;  %v2512_v60 = vrot.slane %v2511_v40, 2  ;;  %v2524_v19 = vrot.slane %v2523_v23, 4  ;;  %v2507_v1 = vrot.slane %v2506_v21, 1 }
 0x2f7   :  { %v2537_v39 = vsel %vm2053_vm2, %v8505_v16, -inf  ;;  %v2519_v57 = vrot.slane %v2518_v14, 2  ;;  %v2532_v53 = vmax.f32 %v2530_v2, %v2531_v11  ;;  %v2544_v54 = vsel %vm2053_vm2, %v5930_v32, -inf }
 0x2f8   :  { %v6456_v22 = vmax.f32 %v2499_v30, %v2500_v8  ;;  %v2513_v56 = vmax.f32 %v2511_v40, %v2512_v60  ;;  %v2538_v63 = vrot.slane %v2537_v39, 4  ;;  %v2525_v51 = vmax.f32 %v2523_v23, %v2524_v19 }
 0x2f9   :  { %v6460_v42 = vmax.f32 %v2506_v21, %v2507_v1  ;;  %v2545_v7 = vrot.slane %v2544_v54, 4  ;;  %v2520_v25 = vmax.f32 %v2518_v14, %v2519_v57  ;;  %v2533_v43 = vrot.slane %v2532_v53, 2 }
 0x2fa   :  { %8506 = vst [vmem:[#allocation61_spill] sm:$0xff] %v6456_v22  ;;  %v2514_v0 = vrot.slane %v2513_v56, 1  ;;  %v2539_v52 = vmax.f32 %v2537_v39, %v2538_v63  ;;  %v2526_v35 = vrot.slane %v2525_v51, 2  ;;  %v8508_v30 = vcombine.high %v5930_v32, %v5930_v32 }
 0x2fb   :  { %8507 = vst [vmem:[#allocation62_spill] sm:$0xff] %v6460_v42  ;;  %v2546_v2 = vmax.f32 %v2544_v54, %v2545_v7  ;;  %v2521_v19 = vrot.slane %v2520_v25, 1  ;;  %v2534_v21 = vmax.f32 %v2532_v53, %v2533_v43  ;;  %v2558_v16 = vsel %vm2053_vm2, %v5940_v20, -inf }
 0x2fc   :  { %v2551_v40 = vsel %vm2053_vm2, %v8508_v30, -inf  ;;  %v6466_v8 = vmax.f32 %v2513_v56, %v2514_v0  ;;  %v2540_v23 = vrot.slane %v2539_v52, 2  ;;  %v2527_v11 = vmax.f32 %v2525_v51, %v2526_v35  ;;  %v8514_v30 = vld [vmem:[#allocation6_spill] sm:$0xff] }
 0x2fd   :  { %v2552_v60 = vrot.slane %v2551_v40, 4  ;;  %v2547_v14 = vrot.slane %v2546_v2, 2  ;;  %v2559_v63 = vrot.slane %v2558_v16, 4  ;;  %v6470_v57 = vmax.f32 %v2520_v25, %v2521_v19 }
 0x2fe   :  { %8509 = vst [vmem:[#allocation63_spill] sm:$0xff] %v6466_v8  ;;  %v2541_v39 = vmax.f32 %v2539_v52, %v2540_v23  ;;  %v2528_v32 = vrot.slane %v2527_v11, 1  ;;  %v2535_v42 = vrot.slane %v2534_v21, 1  ;;  %v8511_v56 = vcombine.high %v5940_v20, %v5940_v20 }
 0x2ff   :  { %v2553_v1 = vmax.f32 %v2551_v40, %v2552_v60  ;;  %8510 = vst [vmem:[#allocation64_spill] sm:$0xff] %v6470_v57  ;;  %v2548_v7 = vmax.f32 %v2546_v2, %v2547_v14  ;;  %v2560_v43 = vmax.f32 %v2558_v16, %v2559_v63  ;;  %v2572_v25 = vsel %vm2053_vm2, %v8514_v30, -inf }
 0x300   :  { %v2565_v54 = vsel %vm2053_vm2, %v8511_v56, -inf  ;;  %v2542_v0 = vrot.slane %v2541_v39, 1  ;;  %v6476_v53 = vmax.f32 %v2527_v11, %v2528_v32  ;;  %v6478_v35 = vmax.f32 %v2534_v21, %v2535_v42  ;;  %v8517_v11 = vld [vmem:[#allocation22_spill] sm:$0xff] }
 0x301   :  { %v2554_v51 = vrot.slane %v2553_v1, 2  ;;  %v2566_v52 = vrot.slane %v2565_v54, 4  ;;  %v2549_v23 = vrot.slane %v2548_v7, 1  ;;  %v2561_v19 = vrot.slane %v2560_v43, 2 }
 0x302   :  { %8512 = vst [vmem:[#allocation65_spill] sm:$0xff] %v6476_v53  ;;  %8513 = vst [vmem:[#allocation66_spill] sm:$0xff] %v6478_v35  ;;  %v6482_v40 = vmax.f32 %v2541_v39, %v2542_v0  ;;  %v2573_v57 = vrot.slane %v2572_v25, 4  ;;  %v8516_v2 = vcombine.high %v8514_v30, %v8514_v30  ;;  %v2586_v42 = vsel %vm2053_vm2, %v8517_v11, -inf }
 0x303   :  { %v2555_v60 = vmax.f32 %v2553_v1, %v2554_v51  ;;  %v2567_v20 = vmax.f32 %v2565_v54, %v2566_v52  ;;  %v6490_v21 = vmax.f32 %v2548_v7, %v2549_v23  ;;  %v2562_v63 = vmax.f32 %v2560_v43, %v2561_v19  ;;  %v8521_v23 = vld [vmem:[#allocation24_spill] sm:$0xff] }
 0x304   :  { %8515 = vst [vmem:[#allocation6_spill] sm:$0xff] %v6482_v40  ;;  %v2579_v16 = vsel %vm2053_vm2, %v8516_v2, -inf  ;;  %v2574_v56 = vmax.f32 %v2572_v25, %v2573_v57  ;;  %v2587_v0 = vrot.slane %v2586_v42, 4  ;;  %v8519_v1 = vcombine.high %v8517_v11, %v8517_v11 }
 0x305   :  { %8518 = vst [vmem:[#allocation22_spill] sm:$0xff] %v6490_v21  ;;  %v2556_v14 = vrot.slane %v2555_v60, 1  ;;  %v2580_v32 = vrot.slane %v2579_v16, 4  ;;  %v2568_v39 = vrot.slane %v2567_v20, 2  ;;  %v2563_v52 = vrot.slane %v2562_v63, 1 }
 0x306   :  { %v2593_v54 = vsel %vm2053_vm2, %v8519_v1, -inf  ;;  %v2575_v35 = vrot.slane %v2574_v56, 2  ;;  %v2588_v7 = vmax.f32 %v2586_v42, %v2587_v0  ;;  %v2600_v43 = vsel %vm2053_vm2, %v8521_v23, -inf  ;;  %v8525_v1 = vld [vmem:[#allocation2_spill] sm:$0xff] }
 0x307   :  { %v6496_v51 = vmax.f32 %v2555_v60, %v2556_v14  ;;  %v2581_v30 = vmax.f32 %v2579_v16, %v2580_v32  ;;  %v2594_v2 = vrot.slane %v2593_v54, 4  ;;  %v2569_v40 = vmax.f32 %v2567_v20, %v2568_v39 }
 0x308   :  { %v6500_v19 = vmax.f32 %v2562_v63, %v2563_v52  ;;  %v2601_v21 = vrot.slane %v2600_v43, 4  ;;  %v2576_v11 = vmax.f32 %v2574_v56, %v2575_v35  ;;  %v2589_v8 = vrot.slane %v2588_v7, 2 }
 0x309   :  { %8520 = vst [vmem:[#allocation67_spill] sm:$0xff] %v6496_v51  ;;  %v2582_v57 = vrot.slane %v2581_v30, 2  ;;  %v2595_v25 = vmax.f32 %v2593_v54, %v2594_v2  ;;  %v2570_v53 = vrot.slane %v2569_v40, 1  ;;  %v8523_v60 = vcombine.high %v8521_v23, %v8521_v23 }
 0x30a   :  { %8522 = vst [vmem:[#allocation24_spill] sm:$0xff] %v6500_v19  ;;  %v2602_v32 = vmax.f32 %v2600_v43, %v2601_v21  ;;  %v2577_v0 = vrot.slane %v2576_v11, 1  ;;  %v2590_v63 = vmax.f32 %v2588_v7, %v2589_v8  ;;  %v2614_v54 = vsel %vm2053_vm2, %v8525_v1, -inf }
 0x30b   :  { %v2607_v16 = vsel %vm2053_vm2, %v8523_v60, -inf  ;;  %v2583_v14 = vmax.f32 %v2581_v30, %v2582_v57  ;;  %v2596_v20 = vrot.slane %v2595_v25, 2  ;;  %v6506_v39 = vmax.f32 %v2569_v40, %v2570_v53  ;;  %v8530_v60 = vld [vmem:[#allocation3_spill] sm:$0xff] }
 0x30c   :  { %v2608_v42 = vrot.slane %v2607_v16, 4  ;;  %v2603_v35 = vrot.slane %v2602_v32, 2  ;;  %v6510_v19 = vmax.f32 %v2576_v11, %v2577_v0  ;;  %v2591_v23 = vrot.slane %v2590_v63, 1 }
 0x30d   :  { %8524 = vst [vmem:[#allocation68_spill] sm:$0xff] %v6506_v39  ;;  %v2584_v52 = vrot.slane %v2583_v14, 1  ;;  %v2597_v2 = vmax.f32 %v2595_v25, %v2596_v20  ;;  %v2615_v51 = vrot.slane %v2614_v54, 4  ;;  %v8527_v30 = vcombine.high %v8525_v1, %v8525_v1 }
 0x30e   :  { %v2609_v56 = vmax.f32 %v2607_v16, %v2608_v42  ;;  %8526 = vst [vmem:[#allocation2_spill] sm:$0xff] %v6510_v19  ;;  %v2604_v8 = vmax.f32 %v2602_v32, %v2603_v35  ;;  %v6518_v43 = vmax.f32 %v2590_v63, %v2591_v23  ;;  %v2628_v11 = vsel %vm2053_vm2, %v8530_v60, -inf }
 0x30f   :  { %v2621_v21 = vsel %vm2053_vm2, %v8527_v30, -inf  ;;  %v6516_v53 = vmax.f32 %v2583_v14, %v2584_v52  ;;  %v2598_v40 = vrot.slane %v2597_v2, 1  ;;  %v2616_v57 = vmax.f32 %v2614_v54, %v2615_v51  ;;  %v8533_v52 = vld [vmem:[#allocation9_spill] sm:$0xff] }
 0x310   :  { %v2610_v7 = vrot.slane %v2609_v56, 2  ;;  %8529 = vst [vmem:[#allocation70_spill] sm:$0xff] %v6518_v43  ;;  %v2622_v25 = vrot.slane %v2621_v21, 4  ;;  %v2605_v20 = vrot.slane %v2604_v8, 1  ;;  %v2629_v0 = vrot.slane %v2628_v11, 4 }
 0x311   :  { %8528 = vst [vmem:[#allocation69_spill] sm:$0xff] %v6516_v53  ;;  %v6522_v16 = vmax.f32 %v2597_v2, %v2598_v40  ;;  %v2617_v1 = vrot.slane %v2616_v57, 2  ;;  %v8532_v14 = vcombine.high %v8530_v60, %v8530_v60  ;;  %v2642_v63 = vsel %vm2053_vm2, %v8533_v52, -inf }
 0x312   :  { %v2611_v42 = vmax.f32 %v2609_v56, %v2610_v7  ;;  %v2623_v19 = vmax.f32 %v2621_v21, %v2622_v25  ;;  %v6530_v51 = vmax.f32 %v2604_v8, %v2605_v20  ;;  %v2630_v35 = vmax.f32 %v2628_v11, %v2629_v0  ;;  %v8537_v20 = vld [vmem:[#allocation11_spill] sm:$0xff] }
 0x313   :  { %8531 = vst [vmem:[#allocation3_spill] sm:$0xff] %v6522_v16  ;;  %v2635_v32 = vsel %vm2053_vm2, %v8532_v14, -inf  ;;  %v2618_v2 = vmax.f32 %v2616_v57, %v2617_v1  ;;  %v2643_v40 = vrot.slane %v2642_v63, 4  ;;  %v8535_v56 = vcombine.high %v8533_v52, %v8533_v52 }
 0x314   :  { %8534 = vst [vmem:[#allocation9_spill] sm:$0xff] %v6530_v51  ;;  %v2612_v54 = vrot.slane %v2611_v42, 1  ;;  %v2636_v23 = vrot.slane %v2635_v32, 4  ;;  %v2624_v30 = vrot.slane %v2623_v19, 2  ;;  %v2631_v25 = vrot.slane %v2630_v35, 2 }
 0x315   :  { %v2649_v21 = vsel %vm2053_vm2, %v8535_v56, -inf  ;;  %v2619_v16 = vrot.slane %v2618_v2, 1  ;;  %v2644_v8 = vmax.f32 %v2642_v63, %v2643_v40  ;;  %v2656_v11 = vsel %vm2053_vm2, %v8537_v20, -inf  ;;  %v8541_v56 = vld [vmem:[#allocation8_spill] sm:$0xff] }
 0x316   :  { %v6536_v7 = vmax.f32 %v2611_v42, %v2612_v54  ;;  %v2637_v60 = vmax.f32 %v2635_v32, %v2636_v23  ;;  %v2650_v14 = vrot.slane %v2649_v21, 4  ;;  %v2625_v43 = vmax.f32 %v2623_v19, %v2624_v30 }
 0x317   :  { %v2632_v0 = vmax.f32 %v2630_v35, %v2631_v25  ;;  %v2657_v51 = vrot.slane %v2656_v11, 4  ;;  %v6540_v53 = vmax.f32 %v2618_v2, %v2619_v16  ;;  %v2645_v39 = vrot.slane %v2644_v8, 2 }
 0x318   :  { %8536 = vst [vmem:[#allocation71_spill] sm:$0xff] %v6536_v7  ;;  %v2638_v57 = vrot.slane %v2637_v60, 2  ;;  %v2651_v1 = vmax.f32 %v2649_v21, %v2650_v14  ;;  %v2626_v52 = vrot.slane %v2625_v43, 1  ;;  %v8539_v42 = vcombine.high %v8537_v20, %v8537_v20 }
 0x319   :  { %8538 = vst [vmem:[#allocation11_spill] sm:$0xff] %v6540_v53  ;;  %v2633_v54 = vrot.slane %v2632_v0, 1  ;;  %v2658_v63 = vmax.f32 %v2656_v11, %v2657_v51  ;;  %v2646_v40 = vmax.f32 %v2644_v8, %v2645_v39  ;;  %v2670_v21 = vsel %vm2053_vm2, %v8541_v56, -inf }
 0x31a   :  { %v2663_v32 = vsel %vm2053_vm2, %v8539_v42, -inf  ;;  %v2639_v23 = vmax.f32 %v2637_v60, %v2638_v57  ;;  %v2652_v19 = vrot.slane %v2651_v1, 2  ;;  %v6546_v30 = vmax.f32 %v2625_v43, %v2626_v52  ;;  %v8546_v42 = vld [vmem:[#allocation10_spill] sm:$0xff] }
 0x31b   :  { %v2664_v35 = vrot.slane %v2663_v32, 4  ;;  %v6550_v16 = vmax.f32 %v2632_v0, %v2633_v54  ;;  %v2659_v14 = vrot.slane %v2658_v63, 2  ;;  %v2647_v53 = vrot.slane %v2646_v40, 1 }
 0x31c   :  { %8540 = vst [vmem:[#allocation72_spill] sm:$0xff] %v6546_v30  ;;  %v2640_v2 = vrot.slane %v2639_v23, 1  ;;  %v2653_v25 = vmax.f32 %v2651_v1, %v2652_v19  ;;  %v2671_v7 = vrot.slane %v2670_v21, 4  ;;  %v8543_v60 = vcombine.high %v8541_v56, %v8541_v56 }
 0x31d   :  { %8542 = vst [vmem:[#allocation8_spill] sm:$0xff] %v6550_v16  ;;  %v2665_v20 = vmax.f32 %v2663_v32, %v2664_v35  ;;  %v2660_v8 = vmax.f32 %v2658_v63, %v2659_v14  ;;  %v6558_v57 = vmax.f32 %v2646_v40, %v2647_v53  ;;  %v2684_v1 = vsel %vm2053_vm2, %v8546_v42, -inf }
 0x31e   :  { %v2677_v51 = vsel %vm2053_vm2, %v8543_v60, -inf  ;;  %v6556_v43 = vmax.f32 %v2639_v23, %v2640_v2  ;;  %v2654_v39 = vrot.slane %v2653_v25, 1  ;;  %v2672_v52 = vmax.f32 %v2670_v21, %v2671_v7  ;;  %v8549_v2 = vld [vmem:[#allocation13_spill] sm:$0xff] }
 0x31f   :  { %v2678_v11 = vrot.slane %v2677_v51, 4  ;;  %8545 = vst [vmem:[#allocation74_spill] sm:$0xff] %v6558_v57  ;;  %v2666_v0 = vrot.slane %v2665_v20, 2  ;;  %v2661_v32 = vrot.slane %v2660_v8, 1  ;;  %v2685_v35 = vrot.slane %v2684_v1, 4 }
 0x320   :  { %8544 = vst [vmem:[#allocation73_spill] sm:$0xff] %v6556_v43  ;;  %v6562_v54 = vmax.f32 %v2653_v25, %v2654_v39  ;;  %v2673_v16 = vrot.slane %v2672_v52, 2  ;;  %v8548_v23 = vcombine.high %v8546_v42, %v8546_v42  ;;  %v2698_v53 = vsel %vm2053_vm2, %v8549_v2, -inf }
 0x321   :  { %v2679_v19 = vmax.f32 %v2677_v51, %v2678_v11  ;;  %v2667_v56 = vmax.f32 %v2665_v20, %v2666_v0  ;;  %v6570_v40 = vmax.f32 %v2660_v8, %v2661_v32  ;;  %v2686_v21 = vmax.f32 %v2684_v1, %v2685_v35  ;;  %v8553_v32 = vld [vmem:[#allocation25_spill] sm:$0xff] }
 0x322   :  { %8547 = vst [vmem:[#allocation10_spill] sm:$0xff] %v6562_v54  ;;  %v2691_v63 = vsel %vm2053_vm2, %v8548_v23, -inf  ;;  %v2674_v60 = vmax.f32 %v2672_v52, %v2673_v16  ;;  %v2699_v39 = vrot.slane %v2698_v53, 4  ;;  %v8551_v20 = vcombine.high %v8549_v2, %v8549_v2 }
 0x323   :  { %8550 = vst [vmem:[#allocation13_spill] sm:$0xff] %v6570_v40  ;;  %v2680_v7 = vrot.slane %v2679_v19, 2  ;;  %v2692_v14 = vrot.slane %v2691_v63, 4  ;;  %v2668_v25 = vrot.slane %v2667_v56, 1  ;;  %v2687_v0 = vrot.slane %v2686_v21, 2 }
 0x324   :  { %v2705_v51 = vsel %vm2053_vm2, %v8551_v20, -inf  ;;  %v2675_v57 = vrot.slane %v2674_v60, 1  ;;  %v2700_v8 = vmax.f32 %v2698_v53, %v2699_v39  ;;  %v2712_v1 = vsel %vm2053_vm2, %v8553_v32, -inf }
 0x325   :  { %v2681_v11 = vmax.f32 %v2679_v19, %v2680_v7  ;;  %v2693_v42 = vmax.f32 %v2691_v63, %v2692_v14  ;;  %v2706_v23 = vrot.slane %v2705_v51, 4  ;;  %v6576_v54 = vmax.f32 %v2667_v56, %v2668_v25 }
 0x326   :  { %v2688_v40 = vmax.f32 %v2686_v21, %v2687_v0  ;;  %v6580_v43 = vmax.f32 %v2674_v60, %v2675_v57  ;;  %v2701_v2 = vrot.slane %v2700_v8, 2  ;;  %v2713_v30 = vrot.slane %v2712_v1, 4  ;;  %v8557_v21 = vld [vmem:[#allocation27_spill] sm:$0xff] }
 0x327   :  { %8552 = vst [vmem:[#allocation75_spill] sm:$0xff] %v6576_v54  ;;  %v2682_v35 = vrot.slane %v2681_v11, 1  ;;  %v2694_v16 = vrot.slane %v2693_v42, 2  ;;  %v2707_v52 = vmax.f32 %v2705_v51, %v2706_v23  ;;  %v8555_v19 = vcombine.high %v8553_v32, %v8553_v32 }
 0x328   :  { %8554 = vst [vmem:[#allocation25_spill] sm:$0xff] %v6580_v43  ;;  %v2689_v7 = vrot.slane %v2688_v40, 1  ;;  %v2702_v25 = vmax.f32 %v2700_v8, %v2701_v2  ;;  %v2714_v39 = vmax.f32 %v2712_v1, %v2713_v30  ;;  %v2726_v51 = vsel %vm2053_vm2, %v8557_v21, -inf }
 0x329   :  { %v2719_v63 = vsel %vm2053_vm2, %v8555_v19, -inf  ;;  %v6586_v56 = vmax.f32 %v2681_v11, %v2682_v35  ;;  %v2695_v53 = vmax.f32 %v2693_v42, %v2694_v16  ;;  %v2708_v14 = vrot.slane %v2707_v52, 2  ;;  %v8562_v19 = vld [vmem:[#allocation29_spill] sm:$0xff] }
 0x32a   :  { %v2720_v20 = vrot.slane %v2719_v63, 4  ;;  %v6590_v57 = vmax.f32 %v2688_v40, %v2689_v7  ;;  %v2727_v23 = vrot.slane %v2726_v51, 4  ;;  %v2703_v43 = vrot.slane %v2702_v25, 1 }
 0x32b   :  { %8556 = vst [vmem:[#allocation76_spill] sm:$0xff] %v6586_v56  ;;  %v2696_v60 = vrot.slane %v2695_v53, 1  ;;  %v2709_v0 = vmax.f32 %v2707_v52, %v2708_v14  ;;  %v2715_v32 = vrot.slane %v2714_v39, 2  ;;  %v8559_v11 = vcombine.high %v8557_v21, %v8557_v21 }
 0x32c   :  { %8558 = vst [vmem:[#allocation27_spill] sm:$0xff] %v6590_v57  ;;  %v2721_v54 = vmax.f32 %v2719_v63, %v2720_v20  ;;  %v2728_v8 = vmax.f32 %v2726_v51, %v2727_v23  ;;  %v6598_v16 = vmax.f32 %v2702_v25, %v2703_v43  ;;  %v2740_v52 = vsel %vm2053_vm2, %v8562_v19, -inf }
 0x32d   :  { %v2733_v42 = vsel %vm2053_vm2, %v8559_v11, -inf  ;;  %v6596_v35 = vmax.f32 %v2695_v53, %v2696_v60  ;;  %v2710_v30 = vrot.slane %v2709_v0, 1  ;;  %v2716_v40 = vmax.f32 %v2714_v39, %v2715_v32  ;;  %v8565_v60 = vld [vmem:[#allocation26_spill] sm:$0xff] }
 0x32e   :  { %v2734_v1 = vrot.slane %v2733_v42, 4  ;;  %8561 = vst [vmem:[#allocation78_spill] sm:$0xff] %v6598_v16  ;;  %v2722_v2 = vrot.slane %v2721_v54, 2  ;;  %v2729_v63 = vrot.slane %v2728_v8, 2  ;;  %v2741_v20 = vrot.slane %v2740_v52, 4 }
 0x32f   :  { %8560 = vst [vmem:[#allocation77_spill] sm:$0xff] %v6596_v35  ;;  %v6602_v7 = vmax.f32 %v2709_v0, %v2710_v30  ;;  %v2717_v21 = vrot.slane %v2716_v40, 1  ;;  %v8564_v53 = vcombine.high %v8562_v19, %v8562_v19  ;;  %v2754_v43 = vsel %vm2053_vm2, %v8565_v60, -inf }
 0x330   :  { %v2735_v14 = vmax.f32 %v2733_v42, %v2734_v1  ;;  %v2723_v57 = vmax.f32 %v2721_v54, %v2722_v2  ;;  %v2730_v25 = vmax.f32 %v2728_v8, %v2729_v63  ;;  %v2742_v23 = vmax.f32 %v2740_v52, %v2741_v20  ;;  %v8569_v63 = vld [vmem:[#allocation28_spill] sm:$0xff] }
 0x331   :  { %8563 = vst [vmem:[#allocation29_spill] sm:$0xff] %v6602_v7  ;;  %v2747_v51 = vsel %vm2053_vm2, %v8564_v53, -inf  ;;  %v6610_v11 = vmax.f32 %v2716_v40, %v2717_v21  ;;  %v2755_v30 = vrot.slane %v2754_v43, 4  ;;  %v8567_v42 = vcombine.high %v8565_v60, %v8565_v60 }
 0x332   :  { %v2736_v39 = vrot.slane %v2735_v14, 2  ;;  %v2748_v32 = vrot.slane %v2747_v51, 4  ;;  %v2724_v0 = vrot.slane %v2723_v57, 1  ;;  %v2731_v1 = vrot.slane %v2730_v25, 1 }
 0x333   :  { %8566 = vst [vmem:[#allocation26_spill] sm:$0xff] %v6610_v11  ;;  %v2761_v54 = vsel %vm2053_vm2, %v8567_v42, -inf  ;;  %v2743_v19 = vrot.slane %v2742_v23, 2  ;;  %v2756_v16 = vmax.f32 %v2754_v43, %v2755_v30  ;;  %v2768_v52 = vsel %vm2053_vm2, %v8569_v63, -inf  ;;  %v8573_v42 = vld [vmem:[#allocation4_spill] sm:$0xff] }
 0x334   :  { %v2737_v2 = vmax.f32 %v2735_v14, %v2736_v39  ;;  %v2749_v53 = vmax.f32 %v2747_v51, %v2748_v32  ;;  %v6616_v7 = vmax.f32 %v2723_v57, %v2724_v0  ;;  %v2762_v8 = vrot.slane %v2761_v54, 4 }
 0x335   :  { %v6620_v40 = vmax.f32 %v2730_v25, %v2731_v1  ;;  %v2744_v21 = vmax.f32 %v2742_v23, %v2743_v19  ;;  %v2757_v35 = vrot.slane %v2756_v16, 2  ;;  %v2769_v56 = vrot.slane %v2768_v52, 4 }
 0x336   :  { %8568 = vst [vmem:[#allocation79_spill] sm:$0xff] %v6616_v7  ;;  %v2738_v20 = vrot.slane %v2737_v2, 1  ;;  %v2750_v11 = vrot.slane %v2749_v53, 2  ;;  %v2763_v60 = vmax.f32 %v2761_v54, %v2762_v8  ;;  %v8571_v14 = vcombine.high %v8569_v63, %v8569_v63 }
 0x337   :  { %8570 = vst [vmem:[#allocation28_spill] sm:$0xff] %v6620_v40  ;;  %v2745_v43 = vrot.slane %v2744_v21, 1  ;;  %v2758_v0 = vmax.f32 %v2756_v16, %v2757_v35  ;;  %v2770_v25 = vmax.f32 %v2768_v52, %v2769_v56  ;;  %v2782_v23 = vsel %vm2053_vm2, %v8573_v42, -inf }
 0x338   :  { %v2775_v51 = vsel %vm2053_vm2, %v8571_v14, -inf  ;;  %v6626_v57 = vmax.f32 %v2737_v2, %v2738_v20  ;;  %v2751_v39 = vmax.f32 %v2749_v53, %v2750_v11  ;;  %v2764_v30 = vrot.slane %v2763_v60, 2  ;;  %v8578_v14 = vld [vmem:[#allocation12_spill] sm:$0xff] }
 0x339   :  { %v2776_v32 = vrot.slane %v2775_v51, 4  ;;  %v6630_v1 = vmax.f32 %v2744_v21, %v2745_v43  ;;  %v2783_v8 = vrot.slane %v2782_v23, 4  ;;  %v2759_v40 = vrot.slane %v2758_v0, 1 }
 0x33a   :  { %8572 = vst [vmem:[#allocation80_spill] sm:$0xff] %v6626_v57  ;;  %v2752_v54 = vrot.slane %v2751_v39, 1  ;;  %v2765_v63 = vmax.f32 %v2763_v60, %v2764_v30  ;;  %v2771_v7 = vrot.slane %v2770_v25, 2  ;;  %v8575_v2 = vcombine.high %v8573_v42, %v8573_v42 }
 0x33b   :  { %8574 = vst [vmem:[#allocation4_spill] sm:$0xff] %v6630_v1  ;;  %v2777_v19 = vmax.f32 %v2775_v51, %v2776_v32  ;;  %v2784_v56 = vmax.f32 %v2782_v23, %v2783_v8  ;;  %v6638_v52 = vmax.f32 %v2758_v0, %v2759_v40  ;;  %v2796_v51 = vsel %vm2053_vm2, %v8578_v14, -inf }
 0x33c   :  { %v2789_v11 = vsel %vm2053_vm2, %v8575_v2, -inf  ;;  %v6636_v53 = vmax.f32 %v2751_v39, %v2752_v54  ;;  %v2766_v20 = vrot.slane %v2765_v63, 1  ;;  %v2772_v21 = vmax.f32 %v2770_v25, %v2771_v7  ;;  %v8581_v54 = vld [vmem:[#allocation14_spill] sm:$0xff] }
 0x33d   :  { %v2778_v35 = vrot.slane %v2777_v19, 2  ;;  %v2790_v16 = vrot.slane %v2789_v11, 4  ;;  %8577 = vst [vmem:[#allocation82_spill] sm:$0xff] %v6638_v52  ;;  %v2785_v60 = vrot.slane %v2784_v56, 2  ;;  %v2797_v30 = vrot.slane %v2796_v51, 4 }
 0x33e   :  { %8576 = vst [vmem:[#allocation81_spill] sm:$0xff] %v6636_v53  ;;  %v6642_v1 = vmax.f32 %v2765_v63, %v2766_v20  ;;  %v2773_v42 = vrot.slane %v2772_v21, 1  ;;  %v8580_v39 = vcombine.high %v8578_v14, %v8578_v14  ;;  %v2810_v40 = vsel %vm2053_vm2, %v8581_v54, -inf }
 0x33f   :  { %v2779_v43 = vmax.f32 %v2777_v19, %v2778_v35  ;;  %v2791_v32 = vmax.f32 %v2789_v11, %v2790_v16  ;;  %v2786_v7 = vmax.f32 %v2784_v56, %v2785_v60  ;;  %v2798_v8 = vmax.f32 %v2796_v51, %v2797_v30  ;;  %v8585_v56 = vld [vmem:[#allocation19_spill] sm:$0xff] }
 0x340   :  { %8579 = vst [vmem:[#allocation12_spill] sm:$0xff] %v6642_v1  ;;  %v2803_v23 = vsel %vm2053_vm2, %v8580_v39, -inf  ;;  %v6650_v2 = vmax.f32 %v2772_v21, %v2773_v42  ;;  %v2811_v11 = vrot.slane %v2810_v40, 4  ;;  %v8583_v63 = vcombine.high %v8581_v54, %v8581_v54 }
 0x341   :  { %v2780_v0 = vrot.slane %v2779_v43, 1  ;;  %v2792_v25 = vrot.slane %v2791_v32, 2  ;;  %v2804_v19 = vrot.slane %v2803_v23, 4  ;;  %v2787_v20 = vrot.slane %v2786_v7, 1 }
 0x342   :  { %8582 = vst [vmem:[#allocation14_spill] sm:$0xff] %v6650_v2  ;;  %v2817_v35 = vsel %vm2053_vm2, %v8583_v63, -inf  ;;  %v2799_v39 = vrot.slane %v2798_v8, 2  ;;  %v2812_v52 = vmax.f32 %v2810_v40, %v2811_v11  ;;  %v2824_v51 = vsel %vm2053_vm2, %v8585_v56, -inf  ;;  %v8589_v63 = vld [vmem:[#allocation18_spill] sm:$0xff] }
 0x343   :  { %v6656_v16 = vmax.f32 %v2779_v43, %v2780_v0  ;;  %v2793_v14 = vmax.f32 %v2791_v32, %v2792_v25  ;;  %v2805_v1 = vmax.f32 %v2803_v23, %v2804_v19  ;;  %v2818_v53 = vrot.slane %v2817_v35, 4 }
 0x344   :  { %v6660_v21 = vmax.f32 %v2786_v7, %v2787_v20  ;;  %v2800_v30 = vmax.f32 %v2798_v8, %v2799_v39  ;;  %v2825_v42 = vrot.slane %v2824_v51, 4  ;;  %v2813_v54 = vrot.slane %v2812_v52, 2 }
 0x345   :  { %8584 = vst [vmem:[#allocation83_spill] sm:$0xff] %v6656_v16  ;;  %v2794_v60 = vrot.slane %v2793_v14, 1  ;;  %v2806_v2 = vrot.slane %v2805_v1, 2  ;;  %v2819_v57 = vmax.f32 %v2817_v35, %v2818_v53  ;;  %v8587_v43 = vcombine.high %v8585_v56, %v8585_v56 }
 0x346   :  { %8586 = vst [vmem:[#allocation19_spill] sm:$0xff] %v6660_v21  ;;  %v2801_v23 = vrot.slane %v2800_v30, 1  ;;  %v2826_v40 = vmax.f32 %v2824_v51, %v2825_v42  ;;  %v2814_v11 = vmax.f32 %v2812_v52, %v2813_v54  ;;  %v2838_v8 = vsel %vm2053_vm2, %v8589_v63, -inf }
 0x347   :  { %v2831_v32 = vsel %vm2053_vm2, %v8587_v43, -inf  ;;  %v6666_v0 = vmax.f32 %v2793_v14, %v2794_v60  ;;  %v2807_v19 = vmax.f32 %v2805_v1, %v2806_v2  ;;  %v2820_v7 = vrot.slane %v2819_v57, 2  ;;  %v8594_v43 = vld [vmem:[#allocation21_spill] sm:$0xff] }
 0x348   :  { %v2832_v25 = vrot.slane %v2831_v32, 4  ;;  %v6670_v20 = vmax.f32 %v2800_v30, %v2801_v23  ;;  %v2827_v39 = vrot.slane %v2826_v40, 2  ;;  %v2839_v35 = vrot.slane %v2838_v8, 4 }
 0x349   :  { %8588 = vst [vmem:[#allocation84_spill] sm:$0xff] %v6666_v0  ;;  %v2808_v21 = vrot.slane %v2807_v19, 1  ;;  %v2815_v56 = vrot.slane %v2814_v11, 1  ;;  %v2821_v16 = vmax.f32 %v2819_v57, %v2820_v7  ;;  %v8591_v14 = vcombine.high %v8589_v63, %v8589_v63 }
 0x34a   :  { %8590 = vst [vmem:[#allocation18_spill] sm:$0xff] %v6670_v20  ;;  %v2833_v53 = vmax.f32 %v2831_v32, %v2832_v25  ;;  %v2828_v60 = vmax.f32 %v2826_v40, %v2827_v39  ;;  %v2840_v52 = vmax.f32 %v2838_v8, %v2839_v35  ;;  %v2852_v32 = vsel %vm2053_vm2, %v8594_v43, -inf }
 0x34b   :  { %v2845_v51 = vsel %vm2053_vm2, %v8591_v14, -inf  ;;  %v6676_v42 = vmax.f32 %v2807_v19, %v2808_v21  ;;  %v6678_v54 = vmax.f32 %v2814_v11, %v2815_v56  ;;  %v2822_v30 = vrot.slane %v2821_v16, 1  ;;  %v8597_v21 = vld [vmem:[#allocation20_spill] sm:$0xff] }
 0x34c   :  { %v2834_v1 = vrot.slane %v2833_v53, 2  ;;  %v2846_v2 = vrot.slane %v2845_v51, 4  ;;  %v2829_v23 = vrot.slane %v2828_v60, 1  ;;  %v2841_v57 = vrot.slane %v2840_v52, 2 }
 0x34d   :  { %8592 = vst [vmem:[#allocation85_spill] sm:$0xff] %v6676_v42  ;;  %8593 = vst [vmem:[#allocation86_spill] sm:$0xff] %v6678_v54  ;;  %v6682_v20 = vmax.f32 %v2821_v16, %v2822_v30  ;;  %v2853_v63 = vrot.slane %v2852_v32, 4  ;;  %v8596_v40 = vcombine.high %v8594_v43, %v8594_v43  ;;  %v2866_v19 = vsel %vm2053_vm2, %v8597_v21, -inf }
 0x34e   :  { %v2835_v25 = vmax.f32 %v2833_v53, %v2834_v1  ;;  %v2847_v7 = vmax.f32 %v2845_v51, %v2846_v2  ;;  %v6690_v11 = vmax.f32 %v2828_v60, %v2829_v23  ;;  %v2842_v35 = vmax.f32 %v2840_v52, %v2841_v57  ;;  %v8601_v23 = vld [vmem:[#allocation5_spill] sm:$0xff] }
 0x34f   :  { %8595 = vst [vmem:[#allocation21_spill] sm:$0xff] %v6682_v20  ;;  %v2859_v8 = vsel %vm2053_vm2, %v8596_v40, -inf  ;;  %v2854_v14 = vmax.f32 %v2852_v32, %v2853_v63  ;;  %v2867_v1 = vrot.slane %v2866_v19, 4  ;;  %v8599_v16 = vcombine.high %v8597_v21, %v8597_v21 }
 0x350   :  { %8598 = vst [vmem:[#allocation20_spill] sm:$0xff] %v6690_v11  ;;  %v2836_v39 = vrot.slane %v2835_v25, 1  ;;  %v2848_v56 = vrot.slane %v2847_v7, 2  ;;  %v2860_v53 = vrot.slane %v2859_v8, 4  ;;  %v2843_v30 = vrot.slane %v2842_v35, 1 }
 0x351   :  { %v2873_v51 = vsel %vm2053_vm2, %v8599_v16, -inf  ;;  %v2855_v20 = vrot.slane %v2854_v14, 2  ;;  %v2868_v60 = vmax.f32 %v2866_v19, %v2867_v1  ;;  %v2880_v52 = vsel %vm2053_vm2, %v8601_v23, -inf  ;;  %v8605_v16 = vld [vmem:[#allocation17_spill] sm:$0xff] }
 0x352   :  { %v6696_v2 = vmax.f32 %v2835_v25, %v2836_v39  ;;  %v2849_v43 = vmax.f32 %v2847_v7, %v2848_v56  ;;  %v2874_v40 = vrot.slane %v2873_v51, 4  ;;  %v2861_v54 = vmax.f32 %v2859_v8, %v2860_v53 }
 0x353   :  { %v6700_v57 = vmax.f32 %v2842_v35, %v2843_v30  ;;  %v2881_v11 = vrot.slane %v2880_v52, 4  ;;  %v2856_v42 = vmax.f32 %v2854_v14, %v2855_v20  ;;  %v2869_v0 = vrot.slane %v2868_v60, 2 }
 0x354   :  { %8600 = vst [vmem:[#allocation87_spill] sm:$0xff] %v6696_v2  ;;  %v2850_v32 = vrot.slane %v2849_v43, 1  ;;  %v2875_v63 = vmax.f32 %v2873_v51, %v2874_v40  ;;  %v2862_v21 = vrot.slane %v2861_v54, 2  ;;  %v8603_v25 = vcombine.high %v8601_v23, %v8601_v23 }
 0x355   :  { %8602 = vst [vmem:[#allocation5_spill] sm:$0xff] %v6700_v57  ;;  %v2882_v19 = vmax.f32 %v2880_v52, %v2881_v11  ;;  %v2857_v53 = vrot.slane %v2856_v42, 1  ;;  %v2870_v35 = vmax.f32 %v2868_v60, %v2869_v0  ;;  %v2894_v51 = vsel %vm2053_vm2, %v8605_v16, -inf }
 0x356   :  { %v2887_v7 = vsel %vm2053_vm2, %v8603_v25, -inf  ;;  %v6706_v39 = vmax.f32 %v2849_v43, %v2850_v32  ;;  %v2876_v8 = vrot.slane %v2875_v63, 2  ;;  %v2863_v1 = vmax.f32 %v2861_v54, %v2862_v21  ;;  %v8610_v25 = vld [vmem:[#allocation16_spill] sm:$0xff] }
 0x357   :  { %v2888_v56 = vrot.slane %v2887_v7, 4  ;;  %v2883_v20 = vrot.slane %v2882_v19, 2  ;;  %v2895_v40 = vrot.slane %v2894_v51, 4  ;;  %v6710_v57 = vmax.f32 %v2856_v42, %v2857_v53 }
 0x358   :  { %8604 = vst [vmem:[#allocation88_spill] sm:$0xff] %v6706_v39  ;;  %v2877_v30 = vmax.f32 %v2875_v63, %v2876_v8  ;;  %v2864_v23 = vrot.slane %v2863_v1, 1  ;;  %v2871_v2 = vrot.slane %v2870_v35, 1  ;;  %v8607_v43 = vcombine.high %v8605_v16, %v8605_v16 }
 0x359   :  { %v2889_v14 = vmax.f32 %v2887_v7, %v2888_v56  ;;  %8606 = vst [vmem:[#allocation17_spill] sm:$0xff] %v6710_v57  ;;  %v2884_v32 = vmax.f32 %v2882_v19, %v2883_v20  ;;  %v2896_v0 = vmax.f32 %v2894_v51, %v2895_v40  ;;  %v2908_v42 = vsel %vm2053_vm2, %v8610_v25, -inf }
 0x35a   :  { %v2901_v11 = vsel %vm2053_vm2, %v8607_v43, -inf  ;;  %v2878_v52 = vrot.slane %v2877_v30, 1  ;;  %v6716_v60 = vmax.f32 %v2863_v1, %v2864_v23  ;;  %v6718_v21 = vmax.f32 %v2870_v35, %v2871_v2  ;;  %v8613_v1 = vld [vmem:[#allocation23_spill] sm:$0xff] }
 0x35b   :  { %v2890_v54 = vrot.slane %v2889_v14, 2  ;;  %v2902_v63 = vrot.slane %v2901_v11, 4  ;;  %v2885_v8 = vrot.slane %v2884_v32, 1  ;;  %v2897_v53 = vrot.slane %v2896_v0, 2  ;;  %v8695_v22 = vld [vmem:[#allocation87_spill] sm:$0xff] }
 0x35c   :  { %8608 = vst [vmem:[#allocation89_spill] sm:$0xff] %v6716_v60  ;;  %8609 = vst [vmem:[#allocation90_spill] sm:$0xff] %v6718_v21  ;;  %v6722_v7 = vmax.f32 %v2877_v30, %v2878_v52  ;;  %v2909_v57 = vrot.slane %v2908_v42, 4  ;;  %v8612_v19 = vcombine.high %v8610_v25, %v8610_v25  ;;  %v2922_v2 = vsel %vm2053_vm2, %v8613_v1, -inf  ;;  %v8696_v4 = vld [vmem:[#allocation5_spill] sm:$0xff] }
 0x35d   :  { %v2891_v56 = vmax.f32 %v2889_v14, %v2890_v54  ;;  %v2903_v16 = vmax.f32 %v2901_v11, %v2902_v63  ;;  %v6730_v35 = vmax.f32 %v2884_v32, %v2885_v8  ;;  %v2898_v40 = vmax.f32 %v2896_v0, %v2897_v53  ;;  %v8616_v8 = vld [vmem:[#allocation7_spill] sm:$0xff] }
 0x35e   :  { %8611 = vst [vmem:[#allocation16_spill] sm:$0xff] %v6722_v7  ;;  %v2915_v51 = vsel %vm2053_vm2, %v8612_v19, -inf  ;;  %v2910_v43 = vmax.f32 %v2908_v42, %v2909_v57  ;;  %v2923_v52 = vrot.slane %v2922_v2, 4  ;;  %v8615_v14 = vcombine.high %v8613_v1, %v8613_v1 }
 0x35f   :  { %8614 = vst [vmem:[#allocation23_spill] sm:$0xff] %v6730_v35  ;;  %v2892_v20 = vrot.slane %v2891_v56, 1  ;;  %v2916_v23 = vrot.slane %v2915_v51, 4  ;;  %v2904_v30 = vrot.slane %v2903_v16, 2  ;;  %v2899_v63 = vrot.slane %v2898_v40, 1  ;;  %v8697_v36 = vld [vmem:[#allocation88_spill] sm:$0xff] }
 0x360   :  { %v2929_v11 = vsel %vm2053_vm2, %v8615_v14, -inf  ;;  %v2911_v21 = vrot.slane %v2910_v43, 2  ;;  %v2924_v32 = vmax.f32 %v2922_v2, %v2923_v52  ;;  %v2936_v0 = vsel %vm2053_vm2, %v8616_v8, -inf  ;;  %v8698_v46 = vld [vmem:[#allocation17_spill] sm:$0xff] }
 0x361   :  { %v6736_v54 = vmax.f32 %v2891_v56, %v2892_v20  ;;  %v2917_v25 = vmax.f32 %v2915_v51, %v2916_v23  ;;  %v2930_v19 = vrot.slane %v2929_v11, 4  ;;  %v2905_v7 = vmax.f32 %v2903_v16, %v2904_v30 }
 0x362   :  { %v6740_v53 = vmax.f32 %v2898_v40, %v2899_v63  ;;  %v2937_v35 = vrot.slane %v2936_v0, 4  ;;  %v2912_v1 = vmax.f32 %v2910_v43, %v2911_v21  ;;  %v2925_v39 = vrot.slane %v2924_v32, 2 }
 0x363   :  { %v2918_v57 = vrot.slane %v2917_v25, 2  ;;  %v2931_v42 = vmax.f32 %v2929_v11, %v2930_v19  ;;  %v2906_v60 = vrot.slane %v2905_v7, 1  ;;  %v8617_v56 = vcombine.high %v8616_v8, %v8616_v8  ;;  %v8699_v34 = vld [vmem:[#allocation89_spill] sm:$0xff] }
 0x364   :  { %v2938_v23 = vmax.f32 %v2936_v0, %v2937_v35  ;;  %v2913_v52 = vrot.slane %v2912_v1, 1  ;;  %v2926_v40 = vmax.f32 %v2924_v32, %v2925_v39 }
 0x365   :  { %v2943_v51 = vsel %vm2053_vm2, %v8617_v56, -inf  ;;  %v2919_v20 = vmax.f32 %v2917_v25, %v2918_v57  ;;  %v2932_v16 = vrot.slane %v2931_v42, 2  ;;  %v6746_v30 = vmax.f32 %v2905_v7, %v2906_v60  ;;  %v8619_v57 = vld [vmem:[#allocation15_spill] sm:$0xff]  ;;  %v8620_v56 = vld [vmem:[#allocation30_spill] sm:$0xff]  ;;  %v8701_v25 = vld [vmem:[#allocation16_spill] sm:$0xff] }
 0x366   :  { %v2944_v2 = vrot.slane %v2943_v51, 4  ;;  %v2939_v21 = vrot.slane %v2938_v23, 2  ;;  %v6750_v19 = vmax.f32 %v2912_v1, %v2913_v52  ;;  %v2927_v8 = vrot.slane %v2926_v40, 1  ;;  %v8626_v1 = vld [vmem:[#allocation35_spill] sm:$0xff] }
 0x367   :  { %8618 = vst [vmem:[#allocation7_spill] sm:$0xff] %v6746_v30  ;;  %v2920_v11 = vrot.slane %v2919_v20, 1  ;;  %v2933_v63 = vmax.f32 %v2931_v42, %v2932_v16  ;;  %v8700_v42 = vld [vmem:[#allocation90_spill] sm:$0xff]  ;;  %v8702_v14 = vld [vmem:[#allocation23_spill] sm:$0xff] }
 0x368   :  { %v2945_v43 = vmax.f32 %v2943_v51, %v2944_v2  ;;  %v2940_v39 = vmax.f32 %v2938_v23, %v2939_v21  ;;  %v6758_v0 = vmax.f32 %v2926_v40, %v2927_v8  ;;  %v8621_v51 = vld [vmem:[#allocation31_spill] sm:$0xff]  ;;  %v8623_v23 = vld [vmem:[#allocation33_spill] sm:$0xff]  ;;  %v8625_v40 = vld [vmem:[#allocation34_spill] sm:$0xff]  ;;  %v8706_v8 = vpack.c.bf16 %v8619_v57, %v8619_v57 }
 0x369   :  { %v6756_v60 = vmax.f32 %v2919_v20, %v2920_v11  ;;  %v2934_v7 = vrot.slane %v2933_v63, 1  ;;  %v8622_v20 = vld [vmem:[#allocation32_spill] sm:$0xff]  ;;  %v8710_v57 = vpack.c.bf16 %v8623_v23, %v8623_v23  ;;  %v8714_v23 = vpack.c.bf16 %v6196_v12, %v6196_v12 }
 0x36a   :  { %v2946_v32 = vrot.slane %v2945_v43, 2  ;;  %v2941_v52 = vrot.slane %v2940_v39, 1  ;;  %v8627_v11 = vld [vmem:[#allocation36_spill] sm:$0xff]  ;;  %v8719_v12 = vpack.c.bf16 %v8625_v40, %v8625_v40  ;;  %v8724_v40 = vpack.c.bf16 %v6232_v55, %v6232_v55 }
 0x36b   :  { %v6766_v2 = vmax.f32 %v2933_v63, %v2934_v7  ;;  %v8704_v7 = vpack.c.bf16 %v6146_v31, %v6146_v31  ;;  %v8708_v31 = vpack.c.bf16 %v8621_v51, %v8621_v51  ;;  %v8712_v51 = vpack.c.bf16 %v6186_v10, %v6186_v10 }
 0x36c   :  { %v2947_v35 = vmax.f32 %v2945_v43, %v2946_v32  ;;  %v6778_v16 = vmax.f32 %v2940_v39, %v2941_v52  ;;  %v8705_v32 = vpack.c.bf16 %v6148_v45, %v6148_v45  ;;  %v8709_v45 = vpack.c.bf16 %v8622_v20, %v8622_v20  ;;  %v8731_v39 = vld [vmem:[#allocation38_spill] sm:$0xff] }
 0x36d   :  { %v7024_v43 = vunpack.c.l.b16 %v8704_v7  ;;  %v7044_v7 = vunpack.c.l.b16 %v8708_v31  ;;  %v7064_v31 = vunpack.c.l.b16 %v8712_v51  ;;  %v8713_v20 = vpack.c.bf16 %v6190_v49, %v6190_v49 }
 0x36e   :  { %8624 = vst [vmem:[#allocation15_spill] sm:$0xff] %v6778_v16  ;;  %v2948_v63 = vrot.slane %v2947_v35, 1  ;;  %v7029_v21 = vunpack.c.l.b16 %v8705_v32  ;;  %v7034_v16 = vunpack.c.l.b16 %v8706_v8  ;;  %v7049_v32 = vunpack.c.l.b16 %v8709_v45 }
 0x36f   :  { %v7054_v8 = vunpack.c.l.b16 %v8710_v57  ;;  %v7069_v45 = vunpack.c.l.b16 %v8713_v20  ;;  %v7074_v57 = vunpack.c.l.b16 %v8714_v23  ;;  %v8716_v10 = vpack.c.bf16 %v6200_v33, %v6200_v33 }
 0x370   :  { %v6792_v52 = vmax.f32 %v2947_v35, %v2948_v63  ;;  %v8628_v35 = vld [vmem:[#allocation37_spill] sm:$0xff]  ;;  %v8703_v63 = vpack.c.bf16 %v6144_v37, %v6144_v37  ;;  %v8707_v37 = vpack.c.bf16 %v8620_v56, %v8620_v56  ;;  %v8711_v56 = vpack.c.bf16 %v6184_v28, %v6184_v28 }
 0x371   :  { %v8715_v28 = vpack.c.bf16 %v6198_v17, %v6198_v17  ;;  %v7084_v51 = vunpack.c.l.b16 %v8716_v10  ;;  %v8717_v49 = vpack.c.bf16 %v6210_v18, %v6210_v18  ;;  %v7094_v23 = vunpack.c.l.b16 %v8719_v12 }
 0x372   :  { %v7019_v30 = vunpack.c.l.b16 %v8703_v63  ;;  %v7039_v63 = vunpack.c.l.b16 %v8707_v37  ;;  %v7059_v37 = vunpack.c.l.b16 %v8711_v56  ;;  %v8721_v17 = vpack.c.bf16 %v6224_v24, %v6224_v24 }
 0x373   :  { %v7079_v56 = vunpack.c.l.b16 %v8715_v28  ;;  %v7089_v20 = vunpack.c.l.b16 %v8717_v49  ;;  %8720 = vst [vmem:[#allocation31_spill] sm:$0xff] %v7094_v23  ;;  %v8722_v33 = vpack.c.bf16 %v6226_v44, %v6226_v44  ;;  %v8723_v18 = vpack.c.bf16 %v6230_v48, %v6230_v48  ;;  %v8738_v23 = vld [vmem:[#allocation40_spill] sm:$0xff] }
 0x374   :  { %v7099_v28 = vunpack.c.l.b16 %v8721_v17  ;;  %v7114_v12 = vunpack.c.l.b16 %v8724_v40  ;;  %v8725_v24 = vpack.c.bf16 %v6238_v61, %v6238_v61  ;;  %v8726_v44 = vpack.c.bf16 %v8626_v1, %v8626_v1 }
 0x375   :  { %8718 = vst [vmem:[#allocation30_spill] sm:$0xff] %v7089_v20  ;;  %v7104_v10 = vunpack.c.l.b16 %v8722_v33  ;;  %v7109_v49 = vunpack.c.l.b16 %v8723_v18  ;;  %v8727_v48 = vpack.c.bf16 %v8627_v11, %v8627_v11  ;;  %v8729_v55 = vpack.c.bf16 %v8628_v35, %v8628_v35  ;;  %v8744_v20 = vld [vmem:[#allocation42_spill] sm:$0xff] }
 0x376   :  { %v7119_v17 = vunpack.c.l.b16 %v8725_v24  ;;  %v7124_v33 = vunpack.c.l.b16 %v8726_v44  ;;  %v8732_v61 = vpack.c.bf16 %v8731_v39, %v8731_v39  ;;  %v8733_v1 = vpack.c.bf16 %v6266_v41, %v6266_v41 }
 0x377   :  { %v7129_v18 = vunpack.c.l.b16 %v8727_v48  ;;  %v7134_v40 = vunpack.c.l.b16 %v8729_v55  ;;  %v8734_v11 = vpack.c.bf16 %v6270_v27, %v6270_v27  ;;  %v8735_v35 = vpack.c.bf16 %v6276_v13, %v6276_v13 }
 0x378   :  { %v7139_v24 = vunpack.c.l.b16 %v8732_v61  ;;  %v7144_v44 = vunpack.c.l.b16 %v8733_v1  ;;  %v8739_v41 = vpack.c.bf16 %v8738_v23, %v8738_v23  ;;  %v8742_v13 = vpack.c.bf16 %v6296_v50, %v6296_v50 }
 0x379   :  { %8728 = vst [vmem:[#allocation32_spill] sm:$0xff] %v7129_v18  ;;  %8730 = vst [vmem:[#allocation33_spill] sm:$0xff] %v7134_v40  ;;  %v7149_v48 = vunpack.c.l.b16 %v8734_v11  ;;  %v7154_v55 = vunpack.c.l.b16 %v8735_v35  ;;  %v8736_v40 = vld [vmem:[#allocation39_spill] sm:$0xff]  ;;  %v8740_v18 = vld [vmem:[#allocation41_spill] sm:$0xff]  ;;  %v8747_v23 = vpack.c.bf16 %v6306_v5, %v6306_v5  ;;  %v8750_v50 = vpack.c.bf16 %v6316_v15, %v6316_v15 }
 0x37a   :  { %v8737_v39 = vpack.c.bf16 %v8736_v40, %v8736_v40  ;;  %v7164_v1 = vunpack.c.l.b16 %v8739_v41  ;;  %v8741_v27 = vpack.c.bf16 %v8740_v18, %v8740_v18  ;;  %v7174_v35 = vunpack.c.l.b16 %v8742_v13 }
 0x37b   :  { %v8745_v40 = vpack.c.bf16 %v8744_v20, %v8744_v20  ;;  %v7184_v41 = vunpack.c.l.b16 %v8747_v23  ;;  %v8749_v18 = vpack.c.bf16 %v6310_v47, %v6310_v47  ;;  %v7194_v13 = vunpack.c.l.b16 %v8750_v50 }
 0x37c   :  { %v7159_v61 = vunpack.c.l.b16 %v8737_v39  ;;  %v7169_v11 = vunpack.c.l.b16 %v8741_v27  ;;  %8743 = vst [vmem:[#allocation34_spill] sm:$0xff] %v7174_v35  ;;  %v8752_v35 = vld [vmem:[#allocation43_spill] sm:$0xff]  ;;  %v8761_v15 = vpack.c.bf16 %v6336_v3, %v6336_v3  ;;  %v8767_v3 = vpack.c.bf16 %v6356_v6, %v6356_v6 }
 0x37d   :  { %v7179_v39 = vunpack.c.l.b16 %v8745_v40  ;;  %8748 = vst [vmem:[#allocation36_spill] sm:$0xff] %v7184_v41  ;;  %v7189_v27 = vunpack.c.l.b16 %v8749_v18  ;;  %8751 = vst [vmem:[#allocation37_spill] sm:$0xff] %v7194_v13  ;;  %v8753_v20 = vpack.c.bf16 %v8752_v35, %v8752_v35  ;;  %v8758_v41 = vld [vmem:[#allocation45_spill] sm:$0xff]  ;;  %v8763_v13 = vld [vmem:[#allocation46_spill] sm:$0xff]  ;;  %v8778_v6 = vpack.c.bf16 %v6376_v29, %v6376_v29 }
 0x37e   :  { %v8759_v47 = vpack.c.bf16 %v8758_v41, %v8758_v41  ;;  %v7214_v50 = vunpack.c.l.b16 %v8761_v15  ;;  %v8764_v35 = vpack.c.bf16 %v8763_v13, %v8763_v13  ;;  %v8766_v41 = vpack.c.bf16 %v6350_v62, %v6350_v62 }
 0x37f   :  { %8746 = vst [vmem:[#allocation35_spill] sm:$0xff] %v7179_v39  ;;  %v7199_v40 = vunpack.c.l.b16 %v8753_v20  ;;  %v8755_v39 = vld [vmem:[#allocation44_spill] sm:$0xff]  ;;  %v7234_v15 = vunpack.c.l.b16 %v8767_v3  ;;  %v7254_v3 = vunpack.c.l.b16 %v8778_v6  ;;  %v8784_v29 = vpack.c.bf16 %v6396_v38, %v6396_v38 }
 0x380   :  { %v8756_v5 = vpack.c.bf16 %v8755_v39, %v8755_v39  ;;  %v7209_v18 = vunpack.c.l.b16 %v8759_v47  ;;  %8762 = vst [vmem:[#allocation17_spill] sm:$0xff] %v7214_v50  ;;  %v7219_v20 = vunpack.c.l.b16 %v8764_v35  ;;  %v8765_v39 = vpack.c.bf16 %v6346_v9, %v6346_v9  ;;  %v8769_v50 = vld [vmem:[#allocation47_spill] sm:$0xff] }
 0x381   :  { %8754 = vst [vmem:[#allocation87_spill] sm:$0xff] %v7199_v40  ;;  %v7229_v47 = vunpack.c.l.b16 %v8766_v41  ;;  %8768 = vst [vmem:[#allocation89_spill] sm:$0xff] %v7234_v15  ;;  %v8770_v13 = vpack.c.bf16 %v8769_v50, %v8769_v50  ;;  %v8780_v15 = vld [vmem:[#allocation50_spill] sm:$0xff]  ;;  %v7274_v6 = vunpack.c.l.b16 %v8784_v29  ;;  %v8795_v38 = vpack.c.bf16 %v6416_v58, %v6416_v58  ;;  %v8813_v40 = vld [vmem:[#allocation60_spill] sm:$0xff] }
 0x382   :  { %v7204_v23 = vunpack.c.l.b16 %v8756_v5  ;;  %8760 = vst [vmem:[#allocation88_spill] sm:$0xff] %v7209_v18  ;;  %v7224_v5 = vunpack.c.l.b16 %v8765_v39  ;;  %v8772_v18 = vld [vmem:[#allocation48_spill] sm:$0xff]  ;;  %8779 = vst [vmem:[#allocation38_spill] sm:$0xff] %v7254_v3  ;;  %v8781_v50 = vpack.c.bf16 %v8780_v15, %v8780_v15  ;;  %v8786_v3 = vld [vmem:[#allocation51_spill] sm:$0xff] }
 0x383   :  { %v7239_v35 = vunpack.c.l.b16 %v8770_v13  ;;  %v8773_v9 = vpack.c.bf16 %v8772_v18, %v8772_v18  ;;  %v8782_v18 = vpack.c.bf16 %v6386_v26, %v6386_v26  ;;  %8785 = vst [vmem:[#allocation39_spill] sm:$0xff] %v7274_v6  ;;  %v8787_v15 = vpack.c.bf16 %v8786_v3, %v8786_v3  ;;  %v8810_v6 = vld [vmem:[#allocation59_spill] sm:$0xff] }
 0x384   :  { %8757 = vst [vmem:[#allocation5_spill] sm:$0xff] %v7204_v23  ;;  %v8775_v23 = vld [vmem:[#allocation49_spill] sm:$0xff]  ;;  %v7259_v13 = vunpack.c.l.b16 %v8781_v50  ;;  %v7294_v29 = vunpack.c.l.b16 %v8795_v38 }
 0x385   :  { %8771 = vst [vmem:[#allocation90_spill] sm:$0xff] %v7239_v35  ;;  %v7244_v39 = vunpack.c.l.b16 %v8773_v9  ;;  %v8776_v62 = vpack.c.bf16 %v8775_v23, %v8775_v23  ;;  %v7264_v9 = vunpack.c.l.b16 %v8782_v18  ;;  %v8783_v23 = vpack.c.bf16 %v6390_v59, %v6390_v59  ;;  %v8797_v35 = vld [vmem:[#allocation54_spill] sm:$0xff] }
 0x386   :  { %v7279_v50 = vunpack.c.l.b16 %v8787_v15  ;;  %8796 = vst [vmem:[#allocation43_spill] sm:$0xff] %v7294_v29  ;;  %v8798_v3 = vpack.c.bf16 %v8797_v35, %v8797_v35  ;;  %v8807_v29 = vld [vmem:[#allocation58_spill] sm:$0xff] }
 0x387   :  { %8774 = vst [vmem:[#allocation16_spill] sm:$0xff] %v7244_v39  ;;  %v7249_v41 = vunpack.c.l.b16 %v8776_v62  ;;  %v7269_v62 = vunpack.c.l.b16 %v8783_v23  ;;  %v8792_v39 = vld [vmem:[#allocation53_spill] sm:$0xff]  ;;  %v8808_v35 = vpack.c.bf16 %v8807_v29, %v8807_v29 }
 0x388   :  { %8788 = vst [vmem:[#allocation40_spill] sm:$0xff] %v7279_v50  ;;  %v8793_v59 = vpack.c.bf16 %v8792_v39, %v8792_v39  ;;  %v7299_v15 = vunpack.c.l.b16 %v8798_v3  ;;  %v8799_v50 = vld [vmem:[#allocation55_spill] sm:$0xff] }
 0x389   :  { %8777 = vst [vmem:[#allocation23_spill] sm:$0xff] %v7249_v41  ;;  %v8789_v41 = vld [vmem:[#allocation52_spill] sm:$0xff]  ;;  %v7319_v3 = vunpack.c.l.b16 %v8808_v35 }
 0x38a   :  { %v8790_v26 = vpack.c.bf16 %v8789_v41, %v8789_v41  ;;  %v7289_v23 = vunpack.c.l.b16 %v8793_v59  ;;  %v8800_v41 = vpack.c.bf16 %v8799_v50, %v8799_v50  ;;  %v8811_v50 = vpack.c.bf16 %v8810_v6, %v8810_v6 }
 0x38b   :  { %8809 = vst [vmem:[#allocation46_spill] sm:$0xff] %v7319_v3  ;;  %v8822_v3 = vld [vmem:[#allocation63_spill] sm:$0xff] }
 0x38c   :  { %v7284_v18 = vunpack.c.l.b16 %v8790_v26  ;;  %8794 = vst [vmem:[#allocation42_spill] sm:$0xff] %v7289_v23  ;;  %v7304_v26 = vunpack.c.l.b16 %v8800_v41  ;;  %v8804_v23 = vld [vmem:[#allocation57_spill] sm:$0xff]  ;;  %v7324_v41 = vunpack.c.l.b16 %v8811_v50  ;;  %v8823_v6 = vpack.c.bf16 %v8822_v3, %v8822_v3 }
 0x38d   :  { %v8805_v58 = vpack.c.bf16 %v8804_v23, %v8804_v23 }
 0x38e   :  { %8791 = vst [vmem:[#allocation41_spill] sm:$0xff] %v7284_v18  ;;  %v8801_v18 = vld [vmem:[#allocation56_spill] sm:$0xff]  ;;  %8812 = vst [vmem:[#allocation47_spill] sm:$0xff] %v7324_v41  ;;  %v7344_v50 = vunpack.c.l.b16 %v8823_v6 }
 0x38f   :  { %v8802_v39 = vpack.c.bf16 %v8801_v18, %v8801_v18  ;;  %v7314_v38 = vunpack.c.l.b16 %v8805_v58  ;;  %v8814_v18 = vpack.c.bf16 %v8813_v40, %v8813_v40  ;;  %v8825_v41 = vld [vmem:[#allocation64_spill] sm:$0xff] }
 0x390   :  { %8824 = vst [vmem:[#allocation51_spill] sm:$0xff] %v7344_v50  ;;  %v8826_v40 = vpack.c.bf16 %v8825_v41, %v8825_v41  ;;  %v8837_v50 = vld [vmem:[#allocation22_spill] sm:$0xff] }
 0x391   :  { %v7309_v59 = vunpack.c.l.b16 %v8802_v39  ;;  %8806 = vst [vmem:[#allocation45_spill] sm:$0xff] %v7314_v38  ;;  %v7329_v39 = vunpack.c.l.b16 %v8814_v18  ;;  %v8819_v38 = vld [vmem:[#allocation62_spill] sm:$0xff]  ;;  %v8838_v41 = vpack.c.bf16 %v8837_v50, %v8837_v50 }
 0x392   :  { %v8820_v29 = vpack.c.bf16 %v8819_v38, %v8819_v38  ;;  %v7349_v18 = vunpack.c.l.b16 %v8826_v40 }
 0x393   :  { %8803 = vst [vmem:[#allocation44_spill] sm:$0xff] %v7309_v59  ;;  %8815 = vst [vmem:[#allocation48_spill] sm:$0xff] %v7329_v39  ;;  %v8816_v59 = vld [vmem:[#allocation61_spill] sm:$0xff]  ;;  %v7369_v40 = vunpack.c.l.b16 %v8838_v41 }
 0x394   :  { %v8817_v23 = vpack.c.bf16 %v8816_v59, %v8816_v59  ;;  %v7339_v35 = vunpack.c.l.b16 %v8820_v29  ;;  %8827 = vst [vmem:[#allocation52_spill] sm:$0xff] %v7349_v18  ;;  %v8828_v39 = vld [vmem:[#allocation65_spill] sm:$0xff]  ;;  %v8840_v18 = vld [vmem:[#allocation67_spill] sm:$0xff] }
 0x395   :  { %v8829_v59 = vpack.c.bf16 %v8828_v39, %v8828_v39  ;;  %8839 = vst [vmem:[#allocation56_spill] sm:$0xff] %v7369_v40  ;;  %v8841_v39 = vpack.c.bf16 %v8840_v18, %v8840_v18  ;;  %v8852_v40 = vld [vmem:[#allocation69_spill] sm:$0xff] }
 0x396   :  { %v7334_v58 = vunpack.c.l.b16 %v8817_v23  ;;  %8821 = vst [vmem:[#allocation50_spill] sm:$0xff] %v7339_v35  ;;  %v8834_v35 = vld [vmem:[#allocation6_spill] sm:$0xff]  ;;  %v8853_v18 = vpack.c.bf16 %v8852_v40, %v8852_v40 }
 0x397   :  { %v7354_v23 = vunpack.c.l.b16 %v8829_v59  ;;  %v8835_v3 = vpack.c.bf16 %v8834_v35, %v8834_v35  ;;  %v7374_v59 = vunpack.c.l.b16 %v8841_v39 }
 0x398   :  { %8818 = vst [vmem:[#allocation49_spill] sm:$0xff] %v7334_v58  ;;  %v8831_v58 = vld [vmem:[#allocation66_spill] sm:$0xff]  ;;  %v7394_v39 = vunpack.c.l.b16 %v8853_v18 }
 0x399   :  { %8830 = vst [vmem:[#allocation53_spill] sm:$0xff] %v7354_v23  ;;  %v8832_v38 = vpack.c.bf16 %v8831_v58, %v8831_v58  ;;  %v7364_v6 = vunpack.c.l.b16 %v8835_v3  ;;  %8842 = vst [vmem:[#allocation57_spill] sm:$0xff] %v7374_v59  ;;  %v8843_v23 = vld [vmem:[#allocation24_spill] sm:$0xff]  ;;  %v8855_v59 = vld [vmem:[#allocation70_spill] sm:$0xff] }
 0x39a   :  { %v8844_v58 = vpack.c.bf16 %v8843_v23, %v8843_v23  ;;  %8854 = vst [vmem:[#allocation61_spill] sm:$0xff] %v7394_v39  ;;  %v8856_v23 = vpack.c.bf16 %v8855_v59, %v8855_v59  ;;  %v8867_v39 = vld [vmem:[#allocation11_spill] sm:$0xff] }
 0x39b   :  { %v7359_v29 = vunpack.c.l.b16 %v8832_v38  ;;  %8836 = vst [vmem:[#allocation55_spill] sm:$0xff] %v7364_v6  ;;  %v8849_v6 = vld [vmem:[#allocation2_spill] sm:$0xff]  ;;  %v8868_v59 = vpack.c.bf16 %v8867_v39, %v8867_v39 }
 0x39c   :  { %v7379_v38 = vunpack.c.l.b16 %v8844_v58  ;;  %v8850_v50 = vpack.c.bf16 %v8849_v6, %v8849_v6  ;;  %v7399_v58 = vunpack.c.l.b16 %v8856_v23 }
 0x39d   :  { %8833 = vst [vmem:[#allocation54_spill] sm:$0xff] %v7359_v29  ;;  %v8846_v29 = vld [vmem:[#allocation68_spill] sm:$0xff]  ;;  %v7419_v23 = vunpack.c.l.b16 %v8868_v59 }
 0x39e   :  { %8845 = vst [vmem:[#allocation58_spill] sm:$0xff] %v7379_v38  ;;  %v8847_v35 = vpack.c.bf16 %v8846_v29, %v8846_v29  ;;  %v7389_v41 = vunpack.c.l.b16 %v8850_v50  ;;  %8857 = vst [vmem:[#allocation62_spill] sm:$0xff] %v7399_v58  ;;  %v8858_v38 = vld [vmem:[#allocation3_spill] sm:$0xff]  ;;  %v8870_v58 = vld [vmem:[#allocation72_spill] sm:$0xff] }
 0x39f   :  { %v8859_v29 = vpack.c.bf16 %v8858_v38, %v8858_v38  ;;  %8869 = vst [vmem:[#allocation66_spill] sm:$0xff] %v7419_v23  ;;  %v8871_v38 = vpack.c.bf16 %v8870_v58, %v8870_v58  ;;  %v8882_v23 = vld [vmem:[#allocation10_spill] sm:$0xff] }
 0x3a0   :  { %v7384_v3 = vunpack.c.l.b16 %v8847_v35  ;;  %8851 = vst [vmem:[#allocation60_spill] sm:$0xff] %v7389_v41  ;;  %v8864_v41 = vld [vmem:[#allocation71_spill] sm:$0xff]  ;;  %v8883_v58 = vpack.c.bf16 %v8882_v23, %v8882_v23 }
 0x3a1   :  { %v7404_v35 = vunpack.c.l.b16 %v8859_v29  ;;  %v8865_v40 = vpack.c.bf16 %v8864_v41, %v8864_v41  ;;  %v7424_v29 = vunpack.c.l.b16 %v8871_v38 }
 0x3a2   :  { %8848 = vst [vmem:[#allocation59_spill] sm:$0xff] %v7384_v3  ;;  %v8861_v3 = vld [vmem:[#allocation9_spill] sm:$0xff]  ;;  %v7444_v38 = vunpack.c.l.b16 %v8883_v58 }
 0x3a3   :  { %8860 = vst [vmem:[#allocation63_spill] sm:$0xff] %v7404_v35  ;;  %v8862_v6 = vpack.c.bf16 %v8861_v3, %v8861_v3  ;;  %v7414_v18 = vunpack.c.l.b16 %v8865_v40  ;;  %8872 = vst [vmem:[#allocation6_spill] sm:$0xff] %v7424_v29  ;;  %v8873_v35 = vld [vmem:[#allocation8_spill] sm:$0xff]  ;;  %v8885_v29 = vld [vmem:[#allocation13_spill] sm:$0xff] }
 0x3a4   :  { %v8874_v3 = vpack.c.bf16 %v8873_v35, %v8873_v35  ;;  %8884 = vst [vmem:[#allocation68_spill] sm:$0xff] %v7444_v38  ;;  %v8886_v35 = vpack.c.bf16 %v8885_v29, %v8885_v29  ;;  %v8897_v38 = vld [vmem:[#allocation27_spill] sm:$0xff] }
 0x3a5   :  { %v7409_v50 = vunpack.c.l.b16 %v8862_v6  ;;  %8866 = vst [vmem:[#allocation65_spill] sm:$0xff] %v7414_v18  ;;  %v8879_v18 = vld [vmem:[#allocation74_spill] sm:$0xff]  ;;  %v8898_v29 = vpack.c.bf16 %v8897_v38, %v8897_v38 }
 0x3a6   :  { %v7429_v6 = vunpack.c.l.b16 %v8874_v3  ;;  %v8880_v39 = vpack.c.bf16 %v8879_v18, %v8879_v18  ;;  %v7449_v3 = vunpack.c.l.b16 %v8886_v35 }
 0x3a7   :  { %8863 = vst [vmem:[#allocation64_spill] sm:$0xff] %v7409_v50  ;;  %v8876_v50 = vld [vmem:[#allocation73_spill] sm:$0xff]  ;;  %v7469_v35 = vunpack.c.l.b16 %v8898_v29 }
 0x3a8   :  { %8875 = vst [vmem:[#allocation22_spill] sm:$0xff] %v7429_v6  ;;  %v8877_v41 = vpack.c.bf16 %v8876_v50, %v8876_v50  ;;  %v7439_v59 = vunpack.c.l.b16 %v8880_v39  ;;  %8887 = vst [vmem:[#allocation2_spill] sm:$0xff] %v7449_v3  ;;  %v8888_v6 = vld [vmem:[#allocation75_spill] sm:$0xff]  ;;  %v8900_v3 = vld [vmem:[#allocation77_spill] sm:$0xff] }
 0x3a9   :  { %v8889_v50 = vpack.c.bf16 %v8888_v6, %v8888_v6  ;;  %8899 = vst [vmem:[#allocation9_spill] sm:$0xff] %v7469_v35  ;;  %v8901_v6 = vpack.c.bf16 %v8900_v3, %v8900_v3  ;;  %v8912_v35 = vld [vmem:[#allocation79_spill] sm:$0xff] }
 0x3aa   :  { %v7434_v40 = vunpack.c.l.b16 %v8877_v41  ;;  %8881 = vst [vmem:[#allocation24_spill] sm:$0xff] %v7439_v59  ;;  %v8894_v59 = vld [vmem:[#allocation76_spill] sm:$0xff]  ;;  %v8913_v3 = vpack.c.bf16 %v8912_v35, %v8912_v35 }
 0x3ab   :  { %v7454_v41 = vunpack.c.l.b16 %v8889_v50  ;;  %v8895_v23 = vpack.c.bf16 %v8894_v59, %v8894_v59  ;;  %v7474_v50 = vunpack.c.l.b16 %v8901_v6 }
 0x3ac   :  { %8878 = vst [vmem:[#allocation67_spill] sm:$0xff] %v7434_v40  ;;  %v8891_v40 = vld [vmem:[#allocation25_spill] sm:$0xff]  ;;  %v7494_v6 = vunpack.c.l.b16 %v8913_v3 }
 0x3ad   :  { %8890 = vst [vmem:[#allocation69_spill] sm:$0xff] %v7454_v41  ;;  %v8892_v18 = vpack.c.bf16 %v8891_v40, %v8891_v40  ;;  %v7464_v58 = vunpack.c.l.b16 %v8895_v23  ;;  %8902 = vst [vmem:[#allocation71_spill] sm:$0xff] %v7474_v50  ;;  %v8903_v41 = vld [vmem:[#allocation78_spill] sm:$0xff]  ;;  %v8915_v50 = vld [vmem:[#allocation28_spill] sm:$0xff] }
 0x3ae   :  { %v8904_v40 = vpack.c.bf16 %v8903_v41, %v8903_v41  ;;  %8914 = vst [vmem:[#allocation73_spill] sm:$0xff] %v7494_v6  ;;  %v8916_v41 = vpack.c.bf16 %v8915_v50, %v8915_v50  ;;  %v8927_v6 = vld [vmem:[#allocation82_spill] sm:$0xff] }
 0x3af   :  { %v7459_v39 = vunpack.c.l.b16 %v8892_v18  ;;  %8896 = vst [vmem:[#allocation3_spill] sm:$0xff] %v7464_v58  ;;  %v8909_v58 = vld [vmem:[#allocation26_spill] sm:$0xff]  ;;  %v8928_v50 = vpack.c.bf16 %v8927_v6, %v8927_v6 }
 0x3b0   :  { %v7479_v18 = vunpack.c.l.b16 %v8904_v40  ;;  %v8910_v38 = vpack.c.bf16 %v8909_v58, %v8909_v58  ;;  %v7499_v40 = vunpack.c.l.b16 %v8916_v41 }
 0x3b1   :  { %8893 = vst [vmem:[#allocation70_spill] sm:$0xff] %v7459_v39  ;;  %v8906_v39 = vld [vmem:[#allocation29_spill] sm:$0xff]  ;;  %v7519_v41 = vunpack.c.l.b16 %v8928_v50 }
 0x3b2   :  { %8905 = vst [vmem:[#allocation11_spill] sm:$0xff] %v7479_v18  ;;  %v8907_v59 = vpack.c.bf16 %v8906_v39, %v8906_v39  ;;  %v7489_v29 = vunpack.c.l.b16 %v8910_v38  ;;  %8917 = vst [vmem:[#allocation74_spill] sm:$0xff] %v7499_v40  ;;  %v8918_v18 = vld [vmem:[#allocation80_spill] sm:$0xff] }
 0x3b3   :  { %v8919_v39 = vpack.c.bf16 %v8918_v18, %v8918_v18  ;;  %8929 = vst [vmem:[#allocation25_spill] sm:$0xff] %v7519_v41  ;;  %v8930_v40 = vld [vmem:[#allocation12_spill] sm:$0xff] }
 0x3b4   :  { %v7484_v23 = vunpack.c.l.b16 %v8907_v59  ;;  %8911 = vst [vmem:[#allocation8_spill] sm:$0xff] %v7489_v29  ;;  %v8924_v29 = vld [vmem:[#allocation81_spill] sm:$0xff]  ;;  %v8931_v18 = vpack.c.bf16 %v8930_v40, %v8930_v40  ;;  %v8942_v41 = vld [vmem:[#allocation84_spill] sm:$0xff] }
 0x3b5   :  { %v7504_v59 = vunpack.c.l.b16 %v8919_v39  ;;  %v8925_v35 = vpack.c.bf16 %v8924_v29, %v8924_v29  ;;  %v8943_v40 = vpack.c.bf16 %v8942_v41, %v8942_v41 }
 0x3b6   :  { %8908 = vst [vmem:[#allocation72_spill] sm:$0xff] %v7484_v23  ;;  %v8921_v23 = vld [vmem:[#allocation4_spill] sm:$0xff]  ;;  %v7524_v39 = vunpack.c.l.b16 %v8931_v18 }
 0x3b7   :  { %8920 = vst [vmem:[#allocation10_spill] sm:$0xff] %v7504_v59  ;;  %v8922_v58 = vpack.c.bf16 %v8921_v23, %v8921_v23  ;;  %v7514_v3 = vunpack.c.l.b16 %v8925_v35  ;;  %v8933_v59 = vld [vmem:[#allocation14_spill] sm:$0xff]  ;;  %v7544_v18 = vunpack.c.l.b16 %v8943_v40 }
 0x3b8   :  { %8932 = vst [vmem:[#allocation76_spill] sm:$0xff] %v7524_v39  ;;  %v8934_v23 = vpack.c.bf16 %v8933_v59, %v8933_v59  ;;  %v8945_v39 = vld [vmem:[#allocation18_spill] sm:$0xff] }
 0x3b9   :  { %v7509_v38 = vunpack.c.l.b16 %v8922_v58  ;;  %8926 = vst [vmem:[#allocation75_spill] sm:$0xff] %v7514_v3  ;;  %v8939_v3 = vld [vmem:[#allocation19_spill] sm:$0xff]  ;;  %8944 = vst [vmem:[#allocation29_spill] sm:$0xff] %v7544_v18  ;;  %v8946_v59 = vpack.c.bf16 %v8945_v39, %v8945_v39  ;;  %v8953_v18 = vld [vmem:[#allocation20_spill] sm:$0xff] }
 0x3ba   :  { %v7529_v58 = vunpack.c.l.b16 %v8934_v23  ;;  %v8940_v6 = vpack.c.bf16 %v8939_v3, %v8939_v3  ;;  %v8954_v39 = vpack.c.bf16 %v8953_v18, %v8953_v18  ;;  %v8959_v18 = vpack.c.bf16 %v8698_v46, %v8698_v46 }
 0x3bb   :  { %8923 = vst [vmem:[#allocation13_spill] sm:$0xff] %v7509_v38  ;;  %v8936_v38 = vld [vmem:[#allocation83_spill] sm:$0xff]  ;;  %v7549_v23 = vunpack.c.l.b16 %v8946_v59  ;;  %v8963_v46 = vpack.c.bf16 %v8702_v14, %v8702_v14  ;;  %v8969_v14 = vpack.c.bf16 %v6750_v19, %v6750_v19 }
 0x3bc   :  { %8935 = vst [vmem:[#allocation27_spill] sm:$0xff] %v7529_v58  ;;  %v8937_v29 = vpack.c.bf16 %v8936_v38, %v8936_v38  ;;  %v7539_v50 = vunpack.c.l.b16 %v8940_v6  ;;  %v8947_v58 = vld [vmem:[#allocation85_spill] sm:$0xff]  ;;  %v7569_v59 = vunpack.c.l.b16 %v8954_v39  ;;  %v7589_v39 = vunpack.c.l.b16 %v8959_v18 }
 0x3bd   :  { %v8948_v38 = vpack.c.bf16 %v8947_v58, %v8947_v58  ;;  %v8955_v58 = vpack.c.bf16 %v8695_v22, %v8695_v22  ;;  %v8960_v22 = vpack.c.bf16 %v8699_v34, %v8699_v34  ;;  %v7609_v18 = vunpack.c.l.b16 %v8963_v46 }
 0x3be   :  { %v7534_v35 = vunpack.c.l.b16 %v8937_v29  ;;  %8941 = vst [vmem:[#allocation78_spill] sm:$0xff] %v7539_v50  ;;  %v8951_v50 = vld [vmem:[#allocation21_spill] sm:$0xff]  ;;  %v8964_v34 = vpack.c.bf16 %v6736_v54, %v6736_v54  ;;  %v7629_v46 = vunpack.c.l.b16 %v8969_v14  ;;  %v8970_v54 = vpack.c.bf16 %v6756_v60, %v6756_v60 }
 0x3bf   :  { %v7554_v29 = vunpack.c.l.b16 %v8948_v38  ;;  %v8952_v41 = vpack.c.bf16 %v8951_v50, %v8951_v50  ;;  %v7574_v38 = vunpack.c.l.b16 %v8955_v58  ;;  %v8958_v50 = vpack.c.bf16 %v8697_v36, %v8697_v36 }
 0x3c0   :  { %8938 = vst [vmem:[#allocation77_spill] sm:$0xff] %v7534_v35  ;;  %v8949_v35 = vld [vmem:[#allocation86_spill] sm:$0xff]  ;;  %v7594_v58 = vunpack.c.l.b16 %v8960_v22  ;;  %v8962_v36 = vpack.c.bf16 %v8701_v25, %v8701_v25  ;;  %v7614_v22 = vunpack.c.l.b16 %v8964_v34  ;;  %v7634_v34 = vunpack.c.l.b16 %v8970_v54 }
 0x3c1   :  { %v8950_v3 = vpack.c.bf16 %v8949_v35, %v8949_v35  ;;  %v7564_v40 = vunpack.c.l.b16 %v8952_v41  ;;  %8956 = vst [vmem:[#allocation26_spill] sm:$0xff] %v7574_v38  ;;  %v8957_v35 = vpack.c.bf16 %v8696_v4, %v8696_v4  ;;  %v7584_v41 = vunpack.c.l.b16 %v8958_v50  ;;  %v8967_v38 = vld [vmem:[#allocation7_spill] sm:$0xff] }
 0x3c2   :  { %v8961_v4 = vpack.c.bf16 %v8700_v42, %v8700_v42  ;;  %v7604_v50 = vunpack.c.l.b16 %v8962_v36  ;;  %8965 = vst [vmem:[#allocation79_spill] sm:$0xff] %v7614_v22  ;;  %v8966_v42 = vpack.c.bf16 %v6740_v53, %v6740_v53  ;;  %v8968_v25 = vpack.c.bf16 %v8967_v38, %v8967_v38  ;;  %v8973_v22 = vld [vmem:[#allocation15_spill] sm:$0xff] }
 0x3c3   :  { %v7559_v6 = vunpack.c.l.b16 %v8950_v3  ;;  %v7579_v3 = vunpack.c.l.b16 %v8957_v35  ;;  %v8971_v53 = vpack.c.bf16 %v6758_v0, %v6758_v0  ;;  %v8972_v38 = vpack.c.bf16 %v6766_v2, %v6766_v2 }
 0x3c4   :  { %v7599_v35 = vunpack.c.l.b16 %v8961_v4  ;;  %v7619_v4 = vunpack.c.l.b16 %v8966_v42  ;;  %v7624_v36 = vunpack.c.l.b16 %v8968_v25  ;;  %v8974_v19 = vpack.c.bf16 %v8973_v22, %v8973_v22 }
 0x3c5   :  { %v7639_v42 = vunpack.c.l.b16 %v8971_v53  ;;  %v7644_v25 = vunpack.c.l.b16 %v8972_v38  ;;  %v8975_v60 = vpack.c.bf16 %v6792_v52, %v6792_v52  ;;  %v3591_v0 = vsel %vm3590_vm3, %v7024_v43, %v7019_v30 }
 0x3c6   :  { %v7649_v14 = vunpack.c.l.b16 %v8974_v19  ;;  %v3593_v2 = vsel %vm3592_vm4, %v7029_v21, %v3591_v0  ;;  %v3604_v52 = vsel %vm3590_vm3, %v7064_v31, %v7059_v37  ;;  %v3611_v22 = vsel %vm3590_vm3, %v7104_v10, %v7099_v28  ;;  %v8980_v19 = vld [vmem:[#allocation34_spill] sm:$0xff]  ;;  %v8982_v0 = vld [vmem:[#allocation36_spill] sm:$0xff] }
 0x3c7   :  { %v7654_v54 = vunpack.c.l.b16 %v8975_v60  ;;  %v3618_v53 = vsel %vm3590_vm3, %v7144_v44, %v7139_v24  ;;  %v3595_v30 = vsel %vm3594_vm5, %v7034_v16, %v3593_v2  ;;  %v3605_v43 = vsel %vm3592_vm4, %v7069_v45, %v3604_v52  ;;  %v8981_v60 = vld [vmem:[#allocation35_spill] sm:$0xff] }
 0x3c8   :  { %v3612_v21 = vsel %vm3592_vm4, %v7109_v49, %v3611_v22  ;;  %v3619_v37 = vsel %vm3592_vm4, %v7149_v48, %v3618_v53  ;;  %v3597_v31 = vsel %vm3596_vm6, %v7039_v63, %v3595_v30  ;;  %v3606_v28 = vsel %vm3594_vm5, %v7074_v57, %v3605_v43  ;;  %v8983_v30 = vld [vmem:[#allocation37_spill] sm:$0xff] }
 0x3c9   :  { %v3613_v10 = vsel %vm3594_vm5, %v7114_v12, %v3612_v21  ;;  %v3620_v16 = vsel %vm3594_vm5, %v7154_v55, %v3619_v37  ;;  %v3599_v45 = vsel %vm3598_vm7, %v7044_v7, %v3597_v31  ;;  %v3607_v49 = vsel %vm3596_vm6, %v7079_v56, %v3606_v28  ;;  %v8977_v55 = vld [vmem:[#allocation32_spill] sm:$0xff]  ;;  %v8987_v28 = vld [vmem:[#allocation39_spill] sm:$0xff] }
 0x3ca   :  { %v3614_v24 = vsel %vm3596_vm6, %v7119_v17, %v3613_v10  ;;  %v3621_v63 = vsel %vm3596_vm6, %v7159_v61, %v3620_v16  ;;  %v3601_v57 = vsel %vm3600_vm8, %v7049_v32, %v3599_v45  ;;  %v3608_v12 = vsel %vm3598_vm7, %v7084_v51, %v3607_v49  ;;  %v8976_v17 = vld [vmem:[#allocation30_spill] sm:$0xff]  ;;  %v8978_v51 = vld [vmem:[#allocation31_spill] sm:$0xff]  ;;  %v8984_v37 = vld [vmem:[#allocation44_spill] sm:$0xff] }
 0x3cb   :  { %v3615_v44 = vsel %vm3598_vm7, %v7124_v33, %v3614_v24  ;;  %v3622_v7 = vsel %vm3598_vm7, %v7164_v1, %v3621_v63  ;;  %v7704_v56 = vsel %vm3602_vm9, %v7054_v8, %v3601_v57  ;;  %v3609_v48 = vsel %vm3600_vm8, %v8976_v17, %v3608_v12  ;;  %v8979_v33 = vld [vmem:[#allocation33_spill] sm:$0xff]  ;;  %v8990_v45 = vld [vmem:[#allocation90_spill] sm:$0xff]  ;;  %v8991_v49 = vld [vmem:[#allocation40_spill] sm:$0xff] }
 0x3cc   :  { %v3616_v61 = vsel %vm3600_vm8, %v8977_v55, %v3615_v44  ;;  %v3623_v32 = vsel %vm3600_vm8, %v7169_v11, %v3622_v7  ;;  %v7714_v38 = vsel %vm3602_vm9, %v8978_v51, %v3609_v48  ;;  %v3625_v2 = vsel %vm3590_vm3, %v8982_v0, %v8981_v60  ;;  %v8989_v16 = vld [vmem:[#allocation5_spill] sm:$0xff]  ;;  %v8992_v63 = vld [vmem:[#allocation46_spill] sm:$0xff]  ;;  %v8993_v12 = vld [vmem:[#allocation88_spill] sm:$0xff] }
 0x3cd   :  { %v7718_v1 = vsel %vm3602_vm9, %v8979_v33, %v3616_v61  ;;  %v7722_v8 = vsel %vm3602_vm9, %v8980_v19, %v3623_v32  ;;  %v3626_v52 = vsel %vm3592_vm4, %v7189_v27, %v3625_v2  ;;  %v3632_v11 = vsel %vm3590_vm3, %v7224_v5, %v7219_v20  ;;  %v8985_v5 = vld [vmem:[#allocation87_spill] sm:$0xff]  ;;  %v8994_v7 = vld [vmem:[#allocation16_spill] sm:$0xff]  ;;  %v8995_v48 = vld [vmem:[#allocation41_spill] sm:$0xff] }
 0x3ce   :  { %v3639_v22 = vsel %vm3590_vm3, %v7264_v9, %v7259_v13  ;;  %v3646_v53 = vsel %vm3590_vm3, %v7304_v26, %v7299_v15  ;;  %v3627_v43 = vsel %vm3594_vm5, %v8983_v30, %v3626_v52  ;;  %v3633_v21 = vsel %vm3592_vm4, %v7229_v47, %v3632_v11  ;;  %v8986_v13 = vld [vmem:[#allocation89_spill] sm:$0xff]  ;;  %v8996_v61 = vld [vmem:[#allocation47_spill] sm:$0xff]  ;;  %v8999_v0 = vld [vmem:[#allocation42_spill] sm:$0xff] }
 0x3cf   :  { %v3640_v27 = vsel %vm3592_vm4, %v7269_v62, %v3639_v22  ;;  %v3647_v20 = vsel %vm3592_vm4, %v8984_v37, %v3646_v53  ;;  %v3628_v31 = vsel %vm3596_vm6, %v8985_v5, %v3627_v43  ;;  %v3634_v9 = vsel %vm3594_vm5, %v8986_v13, %v3633_v21  ;;  %v8988_v26 = vld [vmem:[#allocation45_spill] sm:$0xff]  ;;  %v8998_v19 = vld [vmem:[#allocation23_spill] sm:$0xff]  ;;  %v9000_v52 = vld [vmem:[#allocation48_spill] sm:$0xff] }
 0x3d0   :  { %v3641_v15 = vsel %vm3594_vm5, %v8987_v28, %v3640_v27  ;;  %v3648_v10 = vsel %vm3594_vm5, %v8988_v26, %v3647_v20  ;;  %v3629_v47 = vsel %vm3598_vm7, %v8989_v16, %v3628_v31  ;;  %v3635_v62 = vsel %vm3596_vm6, %v8990_v45, %v3634_v9  ;;  %v8997_v51 = vld [vmem:[#allocation17_spill] sm:$0xff]  ;;  %v9001_v22 = vld [vmem:[#allocation38_spill] sm:$0xff]  ;;  %v9002_v30 = vld [vmem:[#allocation43_spill] sm:$0xff] }
 0x3d1   :  { %v3642_v24 = vsel %vm3596_vm6, %v8991_v49, %v3641_v15  ;;  %v3649_v57 = vsel %vm3596_vm6, %v8992_v63, %v3648_v10  ;;  %v3630_v44 = vsel %vm3600_vm8, %v8993_v12, %v3629_v47  ;;  %v3636_v17 = vsel %vm3598_vm7, %v8994_v7, %v3635_v62  ;;  %v9003_v21 = vld [vmem:[#allocation49_spill] sm:$0xff]  ;;  %v9004_v37 = vld [vmem:[#allocation50_spill] sm:$0xff]  ;;  %v9005_v20 = vld [vmem:[#allocation51_spill] sm:$0xff] }
 0x3d2   :  { %v3643_v55 = vsel %vm3598_vm7, %v8995_v48, %v3642_v24  ;;  %v3650_v32 = vsel %vm3598_vm7, %v8996_v61, %v3649_v57  ;;  %v7772_v33 = vsel %vm3602_vm9, %v8997_v51, %v3630_v44  ;;  %v3637_v60 = vsel %vm3600_vm8, %v8998_v19, %v3636_v17  ;;  %v9006_v31 = vld [vmem:[#allocation52_spill] sm:$0xff]  ;;  %v9007_v9 = vld [vmem:[#allocation58_spill] sm:$0xff]  ;;  %v9008_v28 = vld [vmem:[#allocation59_spill] sm:$0xff] }
 0x3d3   :  { %v3644_v2 = vsel %vm3600_vm8, %v8999_v0, %v3643_v55  ;;  %v3651_v11 = vsel %vm3600_vm8, %v9000_v52, %v3650_v32  ;;  %v7782_v53 = vsel %vm3602_vm9, %v9001_v22, %v3637_v60  ;;  %v3653_v5 = vsel %vm3590_vm3, %v9005_v20, %v9004_v37  ;;  %v9009_v26 = vld [vmem:[#allocation66_spill] sm:$0xff]  ;;  %v9012_v45 = vld [vmem:[#allocation3_spill] sm:$0xff]  ;;  %v9013_v49 = vld [vmem:[#allocation53_spill] sm:$0xff] }
 0x3d4   :  { %v7786_v43 = vsel %vm3602_vm9, %v9002_v30, %v3644_v2  ;;  %v7790_v27 = vsel %vm3602_vm9, %v9003_v21, %v3651_v11  ;;  %v3654_v13 = vsel %vm3592_vm4, %v9006_v31, %v3653_v5  ;;  %v3660_v15 = vsel %vm3590_vm3, %v9008_v28, %v9007_v9  ;;  %v9010_v10 = vld [vmem:[#allocation6_spill] sm:$0xff]  ;;  %v9014_v63 = vld [vmem:[#allocation60_spill] sm:$0xff]  ;;  %v9016_v7 = vld [vmem:[#allocation9_spill] sm:$0xff] }
 0x3d5   :  { %v3667_v16 = vsel %vm3590_vm3, %v9010_v10, %v9009_v26  ;;  %v9011_v47 = vld [vmem:[#allocation70_spill] sm:$0xff]  ;;  %v3655_v24 = vsel %vm3594_vm5, %v9013_v49, %v3654_v13  ;;  %v3661_v57 = vsel %vm3592_vm4, %v9014_v63, %v3660_v15  ;;  %v9018_v61 = vld [vmem:[#allocation61_spill] sm:$0xff]  ;;  %v9019_v51 = vld [vmem:[#allocation67_spill] sm:$0xff] }
 0x3d6   :  { %v3674_v62 = vsel %vm3590_vm3, %v9012_v45, %v9011_v47  ;;  %v9015_v12 = vld [vmem:[#allocation22_spill] sm:$0xff]  ;;  %v3662_v32 = vsel %vm3594_vm5, %v9018_v61, %v3661_v57  ;;  %v9020_v60 = vld [vmem:[#allocation71_spill] sm:$0xff]  ;;  %v9023_v30 = vld [vmem:[#allocation24_spill] sm:$0xff] }
 0x3d7   :  { %v3668_v44 = vsel %vm3592_vm4, %v9015_v12, %v3667_v16  ;;  %v3675_v17 = vsel %vm3592_vm4, %v9016_v7, %v3674_v62  ;;  %v9017_v48 = vld [vmem:[#allocation54_spill] sm:$0xff]  ;;  %v9021_v2 = vld [vmem:[#allocation55_spill] sm:$0xff]  ;;  %v9025_v5 = vld [vmem:[#allocation56_spill] sm:$0xff] }
 0x3d8   :  { %v3656_v55 = vsel %vm3596_vm6, %v9017_v48, %v3655_v24  ;;  %v3669_v19 = vsel %vm3594_vm5, %v9019_v51, %v3668_v44  ;;  %v3676_v0 = vsel %vm3594_vm5, %v9020_v60, %v3675_v17  ;;  %v9022_v11 = vld [vmem:[#allocation62_spill] sm:$0xff]  ;;  %v9024_v37 = vld [vmem:[#allocation11_spill] sm:$0xff]  ;;  %v9027_v28 = vld [vmem:[#allocation68_spill] sm:$0xff] }
 0x3d9   :  { %v3657_v52 = vsel %vm3598_vm7, %v9021_v2, %v3656_v55  ;;  %v3663_v22 = vsel %vm3596_vm6, %v9022_v11, %v3662_v32  ;;  %v3670_v21 = vsel %vm3596_vm6, %v9023_v30, %v3669_v19  ;;  %v3677_v20 = vsel %vm3596_vm6, %v9024_v37, %v3676_v0  ;;  %v9026_v13 = vld [vmem:[#allocation63_spill] sm:$0xff]  ;;  %v9028_v26 = vld [vmem:[#allocation72_spill] sm:$0xff]  ;;  %v9029_v16 = vld [vmem:[#allocation57_spill] sm:$0xff] }
 0x3da   :  { %v3658_v31 = vsel %vm3600_vm8, %v9025_v5, %v3657_v52  ;;  %v3664_v9 = vsel %vm3598_vm7, %v9026_v13, %v3663_v22  ;;  %v3671_v15 = vsel %vm3598_vm7, %v9027_v28, %v3670_v21  ;;  %v3678_v10 = vsel %vm3598_vm7, %v9028_v26, %v3677_v20  ;;  %v9030_v45 = vld [vmem:[#allocation64_spill] sm:$0xff]  ;;  %v9031_v49 = vld [vmem:[#allocation2_spill] sm:$0xff]  ;;  %v9033_v12 = vld [vmem:[#allocation65_spill] sm:$0xff] }
 0x3db   :  { %v3659_v47 = vsel %vm3602_vm9, %v9029_v16, %v3658_v31  ;;  %v3665_v62 = vsel %vm3600_vm8, %v9030_v45, %v3664_v9  ;;  %v3672_v24 = vsel %vm3600_vm8, %v9031_v49, %v3671_v15  ;;  %v9032_v63 = vld [vmem:[#allocation8_spill] sm:$0xff]  ;;  %v9034_v7 = vld [vmem:[#allocation69_spill] sm:$0xff]  ;;  %v9036_v61 = vld [vmem:[#allocation74_spill] sm:$0xff]  ;;  %v3695_v11 = vsel %vm3590_vm3, %v7584_v41, %v7579_v3 }
 0x3dc   :  { %v3679_v57 = vsel %vm3600_vm8, %v9032_v63, %v3678_v10  ;;  %v3666_v44 = vsel %vm3602_vm9, %v9033_v12, %v3665_v62  ;;  %v3673_v17 = vsel %vm3602_vm9, %v9034_v7, %v3672_v24  ;;  %v9035_v48 = vld [vmem:[#allocation73_spill] sm:$0xff]  ;;  %v9037_v32 = vld [vmem:[#allocation10_spill] sm:$0xff]  ;;  %v3702_v22 = vsel %vm3590_vm3, %v7624_v36, %v7619_v4  ;;  %v9041_v30 = vld [vmem:[#allocation75_spill] sm:$0xff] }
 0x3dd   :  { %v3680_v55 = vsel %vm3602_vm9, %v9035_v48, %v3679_v57  ;;  %v3681_v51 = vsel %vm3590_vm3, %v9037_v32, %v9036_v61  ;;  %v9038_v19 = vld [vmem:[#allocation13_spill] sm:$0xff]  ;;  %v9039_v0 = vld [vmem:[#allocation78_spill] sm:$0xff]  ;;  %v3696_v20 = vsel %vm3592_vm4, %v7589_v39, %v3695_v11  ;;  %v3703_v5 = vsel %vm3592_vm4, %v7629_v46, %v3702_v22  ;;  %v9043_v36 = vld [vmem:[#allocation76_spill] sm:$0xff] }
 0x3de   :  { %v3682_v60 = vsel %vm3592_vm4, %v9038_v19, %v3681_v51  ;;  %v9040_v2 = vld [vmem:[#allocation29_spill] sm:$0xff]  ;;  %v3697_v41 = vsel %vm3594_vm5, %v7594_v58, %v3696_v20  ;;  %v3704_v4 = vsel %vm3594_vm5, %v7634_v34, %v3703_v5  ;;  %v9044_v28 = vld [vmem:[#allocation27_spill] sm:$0xff]  ;;  %v9046_v16 = vld [vmem:[#allocation26_spill] sm:$0xff]  ;;  %v3709_v62 = vpack.c.b16 %v7704_v56, %v7704_v56 }
 0x3df   :  { %v3688_v52 = vsel %vm3590_vm3, %v9040_v2, %v9039_v0  ;;  %v3683_v21 = vsel %vm3594_vm5, %v9041_v30, %v3682_v60  ;;  %v9042_v31 = vld [vmem:[#allocation25_spill] sm:$0xff]  ;;  %v3698_v46 = vsel %vm3596_vm6, %v7599_v35, %v3697_v41  ;;  %v3705_v9 = vsel %vm3596_vm6, %v7639_v42, %v3704_v4  ;;  %v9047_v45 = vld [vmem:[#allocation79_spill] sm:$0xff] }
 0x3e0   :  { %v3689_v37 = vsel %vm3592_vm4, %v7549_v23, %v3688_v52  ;;  %v3684_v13 = vsel %vm3596_vm6, %v9042_v31, %v3683_v21  ;;  %v3699_v34 = vsel %vm3598_vm7, %v7604_v50, %v3698_v46  ;;  %v3706_v15 = vsel %vm3598_vm7, %v7644_v25, %v3705_v9  ;;  %v9045_v26 = vld [vmem:[#allocation77_spill] sm:$0xff]  ;;  %3742 = vst.msk [vmem:[%s7996_s4] sm:$0xf] %vm3741_vm10, %v3709_v62 }
 0x3e1   :  { %v3690_v3 = vsel %vm3594_vm5, %v7554_v29, %v3689_v37  ;;  %v3685_v23 = vsel %vm3598_vm7, %v9043_v36, %v3684_v13  ;;  %v3700_v42 = vsel %vm3600_vm8, %v7609_v18, %v3699_v34  ;;  %v3707_v10 = vsel %vm3600_vm8, %v7649_v14, %v3706_v15 }
 0x3e2   :  { %v3691_v39 = vsel %vm3596_vm6, %v7559_v6, %v3690_v3  ;;  %v3686_v29 = vsel %vm3600_vm8, %v9044_v28, %v3685_v23  ;;  %v3701_v50 = vsel %vm3602_vm9, %v9047_v45, %v3700_v42  ;;  %v3708_v25 = vsel %vm3602_vm9, %v7654_v54, %v3707_v10 }
 0x3e3   :  { %v3692_v58 = vsel %vm3598_vm7, %v7564_v40, %v3691_v39  ;;  %v3687_v6 = vsel %vm3602_vm9, %v9045_v26, %v3686_v29  ;;  %v3711_v18 = vpack.c.b16 %v7718_v1, %v7718_v1  ;;  %v3712_v14 = vpack.c.b16 %v7722_v8, %v7722_v8 }
 0x3e4   :  { %v3693_v35 = vsel %vm3600_vm8, %v7569_v59, %v3692_v58  ;;  %v3710_v59 = vpack.c.b16 %v7714_v38, %v7714_v38  ;;  %v3713_v49 = vpack.c.b16 %v7772_v33, %v7772_v33  ;;  %v3714_v24 = vpack.c.b16 %v7782_v53, %v7782_v53 }
 0x3e5   :  { %v3694_v40 = vsel %vm3602_vm9, %v9046_v16, %v3693_v35  ;;  %v3715_v54 = vpack.c.b16 %v7786_v43, %v7786_v43  ;;  %v3716_v56 = vpack.c.b16 %v7790_v27, %v7790_v27  ;;  %v3717_v63 = vpack.c.b16 %v3659_v47, %v3659_v47  ;;  %3744 = vst.msk [vmem:[%s7996_s4 + $0x8] sm:$0xf] %vm3741_vm10, %v3711_v18 }
 0x3e6   :  { %v3718_v38 = vpack.c.b16 %v3666_v44, %v3666_v44  ;;  %v3719_v57 = vpack.c.b16 %v3673_v17, %v3673_v17  ;;  %v3720_v12 = vpack.c.b16 %v3680_v55, %v3680_v55  ;;  %v3721_v1 = vpack.c.b16 %v3687_v6, %v3687_v6  ;;  %3743 = vst.msk [vmem:[%s7996_s4 + $0x4] sm:$0xf] %vm3741_vm10, %v3710_v59 }
 0x3e7   :  { %v3722_v7 = vpack.c.b16 %v3694_v40, %v3694_v40  ;;  %v3723_v48 = vpack.c.b16 %v3701_v50, %v3701_v50  ;;  %v3724_v8 = vpack.c.b16 %v3708_v25, %v3708_v25  ;;  %3745 = vst.msk [vmem:[%s7996_s4 + $0xc] sm:$0xf] %vm3741_vm10, %v3712_v14  ;;  %3746 = vst.msk [vmem:[%s7996_s4 + $0x10] sm:$0xf] %vm3741_vm10, %v3713_v49 }
 0x3e8   :  { %3747 = vst.msk [vmem:[%s7996_s4 + $0x14] sm:$0xf] %vm3741_vm10, %v3714_v24  ;;  %3748 = vst.msk [vmem:[%s7996_s4 + $0x18] sm:$0xf] %vm3741_vm10, %v3715_v54 }
 0x3e9   :  { %3749 = vst.msk [vmem:[%s7996_s4 + $0x1c] sm:$0xf] %vm3741_vm10, %v3716_v56  ;;  %3750 = vst.msk [vmem:[%s7996_s4 + $0x20] sm:$0xf] %vm3741_vm10, %v3717_v63 }
 0x3ea   :  { %3751 = vst.msk [vmem:[%s7996_s4 + $0x24] sm:$0xf] %vm3741_vm10, %v3718_v38  ;;  %3752 = vst.msk [vmem:[%s7996_s4 + $0x28] sm:$0xf] %vm3741_vm10, %v3719_v57 }
 0x3eb   :  { %3753 = vst.msk [vmem:[%s7996_s4 + $0x2c] sm:$0xf] %vm3741_vm10, %v3720_v12  ;;  %3754 = vst.msk [vmem:[%s7996_s4 + $0x30] sm:$0xf] %vm3741_vm10, %v3721_v1 }
 0x3ec   :  { %3755 = vst.msk [vmem:[%s7996_s4 + $0x34] sm:$0xf] %vm3741_vm10, %v3722_v7  ;;  %3756 = vst.msk [vmem:[%s7996_s4 + $0x38] sm:$0xf] %vm3741_vm10, %v3723_v48 }
 0x3ed   :  { %3757 = vst.msk [vmem:[%s7996_s4 + $0x3c] sm:$0xf] %vm3741_vm10, %v3724_v8 }

// kernel: customized_cnn1_forward.3
= control target key start
LH: loop header
LB: loop body
LE: loop exit
PB: predicated region body
PF: predicated region fallthrough
CT: control target
= control target key end

     0   :  { %vm561_vm0 = vcmask 523264   ;;  %s4763_s0 = inlined_call_operand.vmem [shape: bf16[128,576], index: 0, kind: input, shape index: {}]   ;;  %s4764_s1 = inlined_call_operand.vmem [shape: bf16[576,64], index: 1, kind: input, shape index: {}]   ;;  %s4765_s2 = inlined_call_operand.vmem [shape: f32[1,64], index: 2, kind: input, shape index: {}]   ;;  %s4766_s3 = inlined_call_operand.vmem [shape: f32[1,64], index: 3, kind: input, shape index: {}]   ;;  %s4767_s4 = inlined_call_operand.vmem [shape: bf16[16,64,128], index: 4, kind: input, shape index: {}]   ;;  %s4768_s5 = inlined_call_operand.vmem [shape: f32[1,128], index: 5, kind: input, shape index: {}]   ;;  %s4769_s6 = inlined_call_operand.hbm [shape: f32[2,128], index: 6, kind: output, shape index: {}]  }
   0x1   :  { %v3584_v0 = vld [vmem:[%s4764_s1 + $0x40] sm:$0xff]   ;;  %v3588_v4 = vld [vmem:[%s4764_s1 + $0x48] sm:$0xff]   ;;  %v3592_v8 = vld [vmem:[%s4764_s1 + $0x50] sm:$0xff]  }
   0x2   :  { %v3585_v1 = vld [vmem:[%s4764_s1 + $0xc0] sm:$0xff]   ;;  %3144 = vmatprep.subr.bf16.mxu0 %v3584_v0  ;;  %v3589_v5 = vld [vmem:[%s4764_s1 + $0xc8] sm:$0xff]   ;;  %v3593_v9 = vld [vmem:[%s4764_s1 + $0xd0] sm:$0xff]  }
   0x3   :  { %v3586_v2 = vld [vmem:[%s4764_s1] sm:$0xff]   ;;  %3208 = vmatprep.subr.bf16.mxu1 %v3585_v1  ;;  %v3590_v6 = vld [vmem:[%s4764_s1 + $0x8] sm:$0xff]   ;;  %v3594_v10 = vld [vmem:[%s4764_s1 + $0x10] sm:$0xff]  }
   0x4   :  { %v3587_v3 = vld [vmem:[%s4764_s1 + $0x80] sm:$0xff]   ;;  %3145 = vmatpush3.bf16.msra.mxu0 %v3586_v2  ;;  %v3591_v7 = vld [vmem:[%s4764_s1 + $0x88] sm:$0xff]   ;;  %v3595_v11 = vld [vmem:[%s4764_s1 + $0x90] sm:$0xff]  }
   0x5   :  { %3209 = vmatpush3.bf16.msra.mxu1 %v3587_v3  ;;  %3146 = vmatprep.subr.bf16.mxu0 %v3588_v4  ;;  %v3596_v12 = vld [vmem:[%s4764_s1 + $0x58] sm:$0xff]   ;;  %v3600_v16 = vld [vmem:[%s4764_s1 + $0x60] sm:$0xff]   ;;  %v3604_v20 = vld [vmem:[%s4764_s1 + $0x68] sm:$0xff]  }
   0x6   :  { %3210 = vmatprep.subr.bf16.mxu1 %v3589_v5  ;;  %v3597_v13 = vld [vmem:[%s4764_s1 + $0xd8] sm:$0xff]   ;;  %v3601_v17 = vld [vmem:[%s4764_s1 + $0xe0] sm:$0xff]   ;;  %v3605_v21 = vld [vmem:[%s4764_s1 + $0xe8] sm:$0xff]  }
   0x7   :  { %v3598_v14 = vld [vmem:[%s4764_s1 + $0x18] sm:$0xff]   ;;  %v3602_v18 = vld [vmem:[%s4764_s1 + $0x20] sm:$0xff]   ;;  %v3606_v22 = vld [vmem:[%s4764_s1 + $0x28] sm:$0xff]  }
   0x8   :  { %3147 = vmatpush3.bf16.msra.mxu0 %v3590_v6  ;;  %v3599_v15 = vld [vmem:[%s4764_s1 + $0x98] sm:$0xff]   ;;  %v3603_v19 = vld [vmem:[%s4764_s1 + $0xa0] sm:$0xff]   ;;  %v3607_v23 = vld [vmem:[%s4764_s1 + $0xa8] sm:$0xff]  }
   0x9   :  { %3211 = vmatpush3.bf16.msra.mxu1 %v3591_v7  ;;  %3148 = vmatprep.subr.bf16.mxu0 %v3592_v8  ;;  %v3608_v24 = vld [vmem:[%s4764_s1 + $0x70] sm:$0xff]   ;;  %v3612_v28 = vld [vmem:[%s4764_s1 + $0x78] sm:$0xff]   ;;  %v3621_v35 = vld [vmem:[%s4763_s0 + $0xc] ss:$20 sps:$4 sm:$0xff]  }
   0xa   :  { %3212 = vmatprep.subr.bf16.mxu1 %v3593_v9  ;;  %v3609_v25 = vld [vmem:[%s4764_s1 + $0xf0] sm:$0xff]   ;;  %v3613_v29 = vld [vmem:[%s4764_s1 + $0xf8] sm:$0xff]   ;;  %v3622_v36 = vld [vmem:[%s4764_s1 + $0x100] sm:$0xff]   ;;  %715 = vmatprep.mubr.bf16.mxu1 %v3621_v35 }
   0xb   :  { %v3610_v26 = vld [vmem:[%s4764_s1 + $0x30] sm:$0xff]   ;;  %v3614_v30 = vld [vmem:[%s4764_s1 + $0x38] sm:$0xff]   ;;  %v3623_v37 = vld [vmem:[%s4763_s0 + $0x2c] ss:$20 sps:$4 sm:$0xff]  }
   0xc   :  { %3149 = vmatpush3.bf16.msra.mxu0 %v3594_v10  ;;  %v3611_v27 = vld [vmem:[%s4764_s1 + $0xb0] sm:$0xff]   ;;  %v3615_v31 = vld [vmem:[%s4764_s1 + $0xb8] sm:$0xff]   ;;  %v3635_v42 = vld [vmem:[%s4764_s1 + $0x108] sm:$0xff]  }
   0xd   :  { %3213 = vmatpush3.bf16.msra.mxu1 %v3595_v11  ;;  %3150 = vmatprep.subr.bf16.mxu0 %v3596_v12  ;;  %v3616_v32 = vld [vmem:[%s4763_s0] ss:$20 sps:$4 sm:$0xff]   ;;  %v3618_v33 = vld [vmem:[%s4763_s0 + $0x4] ss:$20 sps:$4 sm:$0xff]   ;;  %v3619_v34 = vld [vmem:[%s4763_s0 + $0x8] ss:$20 sps:$4 sm:$0xff]  }
   0xe   :  { %3214 = vmatprep.subr.bf16.mxu1 %v3597_v13  ;;  %618 = vmatprep.mubr.bf16.mxu0 %v3618_v33  ;;  %v3625_v38 = vld [vmem:[%s4763_s0 + $0x34] ss:$20 sps:$4 sm:$0xff]   ;;  %v3628_v40 = vld [vmem:[%s4763_s0 + $0x30] ss:$20 sps:$4 sm:$0xff]   ;;  %v3634_v45 = vld [vmem:[%s4763_s0 + $0x58] ss:$20 sps:$4 sm:$0xff]  }
   0xf   :  { %v3627_v39 = vld [vmem:[%s4763_s0 + $0x28] ss:$20 sps:$4 sm:$0xff]   ;;  %v3633_v44 = vld [vmem:[%s4763_s0 + $0x50] ss:$20 sps:$4 sm:$0xff]   ;;  %v3640_v50 = vld [vmem:[%s4763_s0 + $0x78] ss:$20 sps:$4 sm:$0xff]  }
  0x10   :  { %3151 = vmatpush3.bf16.msra.mxu0 %v3598_v14  ;;  %v3629_v41 = vld [vmem:[%s4763_s0 + $0x54] ss:$20 sps:$4 sm:$0xff]   ;;  %v3631_v43 = vld [vmem:[%s4763_s0 + $0x5c] ss:$20 sps:$4 sm:$0xff]   ;;  %v3638_v48 = vld [vmem:[%s4763_s0 + $0x84] ss:$20 sps:$4 sm:$0xff]  }
  0x11   :  { %3215 = vmatpush3.bf16.msra.mxu1 %v3599_v15  ;;  %3152 = vmatprep.subr.bf16.mxu0 %v3600_v16  ;;  %v3648_v46 = vld [vmem:[%s4764_s1 + $0x110] sm:$0xff]   ;;  %v3661_v49 = vld [vmem:[%s4764_s1 + $0x118] sm:$0xff]   ;;  %v3644_v53 = vld [vmem:[%s4763_s0 + $0xac] ss:$20 sps:$4 sm:$0xff]  }
  0x12   :  { %3216 = vmatprep.subr.bf16.mxu1 %v3601_v17  ;;  %v3636_v47 = vld [vmem:[%s4763_s0 + $0x7c] ss:$20 sps:$4 sm:$0xff]   ;;  %v3641_v51 = vld [vmem:[%s4763_s0 + $0x80] ss:$20 sps:$4 sm:$0xff]   ;;  %v3642_v52 = vld [vmem:[%s4763_s0 + $0xa4] ss:$20 sps:$4 sm:$0xff]  }
  0x13   :  { %v3646_v54 = vld [vmem:[%s4763_s0 + $0xa0] ss:$20 sps:$4 sm:$0xff]   ;;  %v3647_v55 = vld [vmem:[%s4763_s0 + $0xa8] ss:$20 sps:$4 sm:$0xff]   ;;  %v3654_v59 = vld [vmem:[%s4763_s0 + $0xd0] ss:$20 sps:$4 sm:$0xff]  }
  0x14   :  { %3153 = vmatpush3.bf16.msra.mxu0 %v3602_v18  ;;  %v3649_v56 = vld [vmem:[%s4763_s0 + $0xcc] ss:$20 sps:$4 sm:$0xff]   ;;  %v3651_v57 = vld [vmem:[%s4763_s0 + $0xd4] ss:$20 sps:$4 sm:$0xff]   ;;  %v3657_v61 = vld [vmem:[%s4763_s0 + $0xfc] ss:$20 sps:$4 sm:$0xff]  }
  0x15   :  { %3217 = vmatpush3.bf16.msra.mxu1 %v3603_v19  ;;  %3154 = vmatprep.subr.bf16.mxu0 %v3604_v20  ;;  %v3653_v58 = vld [vmem:[%s4763_s0 + $0xc8] ss:$20 sps:$4 sm:$0xff]   ;;  %v3659_v62 = vld [vmem:[%s4763_s0 + $0xf0] ss:$20 sps:$4 sm:$0xff]   ;;  %v3660_v63 = vld [vmem:[%s4763_s0 + $0xf8] ss:$20 sps:$4 sm:$0xff]  }
  0x16   :  { %3218 = vmatprep.subr.bf16.mxu1 %v3605_v21  ;;  %v3655_v60 = vld [vmem:[%s4763_s0 + $0xf4] ss:$20 sps:$4 sm:$0xff]   ;;  %v3662_v0 = vld [vmem:[%s4763_s0 + $0x11c] ss:$20 sps:$4 sm:$0xff]   ;;  %v3664_v1 = vld [vmem:[%s4763_s0 + $0x124] ss:$20 sps:$4 sm:$0xff]  }
  0x17   :  { %v3666_v2 = vld [vmem:[%s4763_s0 + $0x118] ss:$20 sps:$4 sm:$0xff]   ;;  %v3667_v3 = vld [vmem:[%s4763_s0 + $0x120] ss:$20 sps:$4 sm:$0xff]   ;;  %v3668_v4 = vld [vmem:[%s4763_s0 + $0x10] ss:$20 sps:$4 sm:$0xff]  }
  0x18   :  { %3155 = vmatpush3.bf16.msra.mxu0 %v3606_v22  ;;  %v3669_v5 = vld [vmem:[%s4763_s0 + $0x38] ss:$20 sps:$4 sm:$0xff]   ;;  %v3670_v6 = vld [vmem:[%s4763_s0 + $0x60] ss:$20 sps:$4 sm:$0xff]   ;;  %v3671_v7 = vld [vmem:[%s4763_s0 + $0x88] ss:$20 sps:$4 sm:$0xff]  }
  0x19   :  { %3219 = vmatpush3.bf16.msra.mxu1 %v3607_v23  ;;  %3156 = vmatprep.subr.bf16.mxu0 %v3608_v24  ;;  %v3672_v8 = vld [vmem:[%s4763_s0 + $0xb0] ss:$20 sps:$4 sm:$0xff]  }
  0x1a   :  { %3220 = vmatprep.subr.bf16.mxu1 %v3609_v25 }
  0x1c   :  { %3157 = vmatpush3.bf16.msra.mxu0 %v3610_v26 }
  0x1d   :  { %3221 = vmatpush3.bf16.msra.mxu1 %v3611_v27  ;;  %3158 = vmatprep.subr.bf16.mxu0 %v3612_v28 }
  0x1e   :  { %3222 = vmatprep.subr.bf16.mxu1 %v3613_v29 }
  0x20   :  { %3159 = vmatpush3.bf16.msra.mxu0 %v3614_v30 }
  0x21   :  { %3223 = vmatpush3.bf16.msra.mxu1 %v3615_v31  ;;  %3364 = vmatprep.subr.bf16.mxu0 %v3622_v36 }
  0x23   :  { %619 = vmatmul.mubr.bf16.vlgmr.msra.gmra.mrb[0].mxu0 %v3616_v32 }
  0x24   :  { %716 = vmatmul.mubr.bf16.vlgmr.msra.gmra.mrb[0].mxu1 %v3619_v34  ;;  %3365 = vmatpush3.bf16.msra.mxu0 %v3622_v36 }
  0x25   :  { %626 = vmatprep.mubr.bf16.mxu0 %v3623_v37  ;;  %723 = vmatprep.mubr.bf16.mxu1 %v3625_v38 }
  0x26   :  { %3366 = vmatprep.subr.bf16.mxu0 %v3635_v42 }
  0x28   :  { %3367 = vmatpush3.bf16.msra.mxu0 %v3635_v42 }
  0x29   :  { %3368 = vmatprep.subr.bf16.mxu0 %v3648_v46 }
  0x2b   :  { %627 = vmatmul.mubr.bf16.gmra.mrb[4].mxu0 %v3627_v39 }
  0x2c   :  { %724 = vmatmul.mubr.bf16.gmra.mrb[4].mxu1 %v3628_v40  ;;  %634 = vmatprep.mubr.bf16.mxu0 %v3629_v41 }
  0x2d   :  { %731 = vmatprep.mubr.bf16.mxu1 %v3631_v43  ;;  %3369 = vmatpush3.bf16.msra.mxu0 %v3648_v46 }
  0x2e   :  { %3370 = vmatprep.subr.bf16.mxu0 %v3661_v49 }
  0x31   :  { %3371 = vmatpush3.bf16.msra.mxu0 %v3661_v49 }
  0x33   :  { %635 = vmatmul.mubr.bf16.gmra.mrb[8].mxu0 %v3633_v44 }
  0x34   :  { %732 = vmatmul.mubr.bf16.gmra.mrb[8].mxu1 %v3634_v45  ;;  %642 = vmatprep.mubr.bf16.mxu0 %v3636_v47 }
  0x35   :  { %739 = vmatprep.mubr.bf16.mxu1 %v3638_v48 }
  0x3b   :  { %643 = vmatmul.mubr.bf16.gmra.mrb[12].mxu0 %v3640_v50 }
  0x3c   :  { %740 = vmatmul.mubr.bf16.gmra.mrb[12].mxu1 %v3641_v51  ;;  %650 = vmatprep.mubr.bf16.mxu0 %v3642_v52 }
  0x3d   :  { %747 = vmatprep.mubr.bf16.mxu1 %v3644_v53 }
  0x43   :  { %651 = vmatmul.mubr.bf16.gmra.mrb[16].mxu0 %v3646_v54 }
  0x44   :  { %748 = vmatmul.mubr.bf16.gmra.mrb[16].mxu1 %v3647_v55  ;;  %658 = vmatprep.mubr.bf16.mxu0 %v3649_v56 }
  0x45   :  { %755 = vmatprep.mubr.bf16.mxu1 %v3651_v57 }
  0x4b   :  { %659 = vmatmul.mubr.bf16.gmra.mrb[20].mxu0 %v3653_v58 }
  0x4c   :  { %756 = vmatmul.mubr.bf16.gmra.mrb[20].mxu1 %v3654_v59  ;;  %666 = vmatprep.mubr.bf16.mxu0 %v3655_v60 }
  0x4d   :  { %763 = vmatprep.mubr.bf16.mxu1 %v3657_v61 }
  0x53   :  { %667 = vmatmul.mubr.bf16.gmra.mrb[24].mxu0 %v3659_v62 }
  0x54   :  { %764 = vmatmul.mubr.bf16.gmra.mrb[24].mxu1 %v3660_v63  ;;  %674 = vmatprep.mubr.bf16.mxu0 %v3662_v0 }
  0x55   :  { %771 = vmatprep.mubr.bf16.mxu1 %v3664_v1 }
  0x5b   :  { %675 = vmatmul.mubr.bf16.gmra.mrb[28].mxu0 %v3666_v2 }
  0x5c   :  { %772 = vmatmul.mubr.bf16.gmra.mrb[28].mxu1 %v3667_v3  ;;  %3372 = vmatprep.mubr.msk.bf16.mxu0 %vm561_vm0, %v3668_v4 }
  0x63   :  { %3373 = vmatmul.mubr.msk.bf16.vlgmr.msra.gmra.mrb[32].mxu0 %vm561_vm0, %v3669_v5 }
  0x64   :  { %3376 = vmatprep.mubr.msk.bf16.mxu0 %vm561_vm0, %v3670_v6 }
  0x6b   :  { %3377 = vmatmul.mubr.msk.bf16.gmra.mrb[36].mxu0 %vm561_vm0, %v3671_v7 }
  0x6c   :  { %11 = vsyncpa [#allocation3], 0  ;;  %3380 = vmatprep.mubr.msk.bf16.mxu0 %vm561_vm0, %v3672_v8  ;;  %v3673_v9 = vld [vmem:[%s4763_s0 + $0xd8] ss:$20 sps:$4 sm:$0xff]   ;;  %v3674_v10 = vld [vmem:[%s4763_s0 + $0x100] ss:$20 sps:$4 sm:$0xff]  }
  0x6d   :  { %v3675_v11 = vld [vmem:[%s4763_s0 + $0x128] ss:$20 sps:$4 sm:$0xff]   ;;  %vm3767_vm1 = vmmov 0   ;;  %vm1253_vm2 = vcmask 517120   ;;  %vm1503_vm3 = vcmask 1041409  }
  0x73   :  { %3381 = vmatmul.mubr.msk.bf16.gmra.mrb[40].mxu0 %vm561_vm0, %v3673_v9 }
  0x74   :  { %3384 = vmatprep.mubr.msk.bf16.mxu0 %vm561_vm0, %v3674_v10 }
  0x7b   :  { %3385 = vmatmul.mubr.msk.bf16.gmra.mrb[44].mxu0 %vm561_vm0, %v3675_v11 }
  0xf6   :  { %v3160_v12 = vpop.f32.mrb[0].mxu0 }
  0xf7   :  { %v3224_v13 = vpop.f32.mrb[0].mxu1  ;;  %v3161_v14 = vpop.f32.mrb[1].mxu0 }
  0xf8   :  { %v3162_v15 = vadd.f32 %v3161_v14, %v3160_v12  ;;  %v3225_v16 = vpop.f32.mrb[1].mxu1  ;;  %v3163_v17 = vpop.f32.mrb[2].mxu0 }
  0xf9   :  { %v3226_v18 = vadd.f32 %v3225_v16, %v3224_v13  ;;  %v3227_v19 = vpop.f32.mrb[2].mxu1  ;;  %v3164_v20 = vpop.f32.mrb[3].mxu0 }
  0xfa   :  { %v3165_v21 = vadd.f32 %v3164_v20, %v3163_v17  ;;  %v3228_v22 = vpop.f32.mrb[3].mxu1 }
  0xfb   :  { %v3229_v23 = vadd.f32 %v3228_v22, %v3227_v19  ;;  %v4041_v24 = vadd.f32 %v3226_v18, %v3162_v15 }
  0xfd   :  { %v4043_v25 = vadd.f32 %v3229_v23, %v3165_v21 }
  0xfe   :  { %v3166_v26 = vpop.f32.mrb[4].mxu0 }
  0xff   :  { %v3230_v27 = vpop.f32.mrb[4].mxu1  ;;  %v3167_v28 = vpop.f32.mrb[5].mxu0 }
 0x100   :  { %v3168_v29 = vadd.f32 %v3167_v28, %v3166_v26  ;;  %v3231_v30 = vpop.f32.mrb[5].mxu1  ;;  %v3169_v31 = vpop.f32.mrb[6].mxu0 }
 0x101   :  { %v3232_v32 = vadd.f32 %v3231_v30, %v3230_v27  ;;  %v3233_v33 = vpop.f32.mrb[6].mxu1  ;;  %v3170_v34 = vpop.f32.mrb[7].mxu0 }
 0x102   :  { %v3171_v35 = vadd.f32 %v3170_v34, %v3169_v31  ;;  %v3234_v36 = vpop.f32.mrb[7].mxu1 }
 0x103   :  { %v3235_v37 = vadd.f32 %v3234_v36, %v3233_v33  ;;  %v4045_v38 = vadd.f32 %v3232_v32, %v3168_v29 }
 0x105   :  { %v4047_v39 = vadd.f32 %v3235_v37, %v3171_v35 }
 0x106   :  { %v3172_v40 = vpop.f32.mrb[8].mxu0 }
 0x107   :  { %v3236_v41 = vpop.f32.mrb[8].mxu1  ;;  %v3173_v42 = vpop.f32.mrb[9].mxu0 }
 0x108   :  { %v3174_v43 = vadd.f32 %v3173_v42, %v3172_v40  ;;  %v3237_v44 = vpop.f32.mrb[9].mxu1  ;;  %v3175_v45 = vpop.f32.mrb[10].mxu0 }
 0x109   :  { %v3238_v46 = vadd.f32 %v3237_v44, %v3236_v41  ;;  %v3239_v47 = vpop.f32.mrb[10].mxu1  ;;  %v3176_v48 = vpop.f32.mrb[11].mxu0 }
 0x10a   :  { %v3177_v49 = vadd.f32 %v3176_v48, %v3175_v45  ;;  %v3240_v50 = vpop.f32.mrb[11].mxu1 }
 0x10b   :  { %v3241_v51 = vadd.f32 %v3240_v50, %v3239_v47  ;;  %v4049_v52 = vadd.f32 %v3238_v46, %v3174_v43 }
 0x10d   :  { %v4051_v53 = vadd.f32 %v3241_v51, %v3177_v49 }
 0x10e   :  { %v3178_v54 = vpop.f32.mrb[12].mxu0 }
 0x10f   :  { %v3242_v55 = vpop.f32.mrb[12].mxu1  ;;  %v3179_v56 = vpop.f32.mrb[13].mxu0 }
 0x110   :  { %v3180_v57 = vadd.f32 %v3179_v56, %v3178_v54  ;;  %v3243_v58 = vpop.f32.mrb[13].mxu1  ;;  %v3181_v59 = vpop.f32.mrb[14].mxu0 }
 0x111   :  { %v3244_v60 = vadd.f32 %v3243_v58, %v3242_v55  ;;  %v3245_v61 = vpop.f32.mrb[14].mxu1  ;;  %v3182_v62 = vpop.f32.mrb[15].mxu0 }
 0x112   :  { %v3183_v63 = vadd.f32 %v3182_v62, %v3181_v59  ;;  %v3246_v0 = vpop.f32.mrb[15].mxu1 }
 0x113   :  { %v3247_v1 = vadd.f32 %v3246_v0, %v3245_v61  ;;  %v4053_v2 = vadd.f32 %v3244_v60, %v3180_v57 }
 0x115   :  { %v4055_v3 = vadd.f32 %v3247_v1, %v3183_v63 }
 0x116   :  { %v3184_v4 = vpop.f32.mrb[16].mxu0 }
 0x117   :  { %v3248_v5 = vpop.f32.mrb[16].mxu1  ;;  %v3185_v6 = vpop.f32.mrb[17].mxu0 }
 0x118   :  { %v3186_v7 = vadd.f32 %v3185_v6, %v3184_v4  ;;  %v3249_v8 = vpop.f32.mrb[17].mxu1  ;;  %v3187_v9 = vpop.f32.mrb[18].mxu0 }
 0x119   :  { %v3250_v10 = vadd.f32 %v3249_v8, %v3248_v5  ;;  %v3251_v11 = vpop.f32.mrb[18].mxu1  ;;  %v3188_v12 = vpop.f32.mrb[19].mxu0 }
 0x11a   :  { %v3189_v13 = vadd.f32 %v3188_v12, %v3187_v9  ;;  %v3252_v14 = vpop.f32.mrb[19].mxu1 }
 0x11b   :  { %v3253_v15 = vadd.f32 %v3252_v14, %v3251_v11  ;;  %v4057_v16 = vadd.f32 %v3250_v10, %v3186_v7 }
 0x11d   :  { %v4059_v17 = vadd.f32 %v3253_v15, %v3189_v13 }
 0x11e   :  { %v3190_v18 = vpop.f32.mrb[20].mxu0 }
 0x11f   :  { %v3254_v19 = vpop.f32.mrb[20].mxu1  ;;  %v3191_v20 = vpop.f32.mrb[21].mxu0 }
 0x120   :  { %v3192_v21 = vadd.f32 %v3191_v20, %v3190_v18  ;;  %v3255_v22 = vpop.f32.mrb[21].mxu1  ;;  %v3193_v23 = vpop.f32.mrb[22].mxu0 }
 0x121   :  { %v3256_v26 = vadd.f32 %v3255_v22, %v3254_v19  ;;  %v3257_v27 = vpop.f32.mrb[22].mxu1  ;;  %v3194_v28 = vpop.f32.mrb[23].mxu0 }
 0x122   :  { %v3195_v29 = vadd.f32 %v3194_v28, %v3193_v23  ;;  %v3258_v30 = vpop.f32.mrb[23].mxu1 }
 0x123   :  { %v3259_v31 = vadd.f32 %v3258_v30, %v3257_v27  ;;  %v4061_v32 = vadd.f32 %v3256_v26, %v3192_v21  ;;  %v3766_v30 = vmov 0.0  }
 0x124   :  { %3388 = vmatprep.subr.bf16.mxu1 %v3766_v30  ;;  %3412 = vmatprep.subr.bf16.mxu0 %v3766_v30 }
 0x125   :  { %v4063_v33 = vadd.f32 %v3259_v31, %v3195_v29  ;;  %3396 = vmatprep.mubr.msk.bf16.mxu1 %vm3767_vm1, %v3766_v30  ;;  %3420 = vmatprep.mubr.msk.bf16.mxu0 %vm3767_vm1, %v3766_v30 }
 0x126   :  { %v3196_v34 = vpop.f32.mrb[24].mxu0 }
 0x127   :  { %v3260_v35 = vpop.f32.mrb[24].mxu1  ;;  %v3197_v36 = vpop.f32.mrb[25].mxu0 }
 0x128   :  { %v3198_v37 = vadd.f32 %v3197_v36, %v3196_v34  ;;  %v3261_v40 = vpop.f32.mrb[25].mxu1  ;;  %v3199_v41 = vpop.f32.mrb[26].mxu0  ;;  %v3677_v34 = vld [vmem:[%s4767_s4 + $0x28] sm:$0xff]  }
 0x129   :  { %v3262_v42 = vadd.f32 %v3261_v40, %v3260_v35  ;;  %v3263_v43 = vpop.f32.mrb[26].mxu1  ;;  %v3200_v44 = vpop.f32.mrb[27].mxu0  ;;  %v3681_v35 = vld [vmem:[%s4767_s4 + $0x48] sm:$0xff]  }
 0x12a   :  { %v3201_v45 = vadd.f32 %v3200_v44, %v3199_v41  ;;  %v3264_v46 = vpop.f32.mrb[27].mxu1 }
 0x12b   :  { %v3265_v47 = vadd.f32 %v3264_v46, %v3263_v43  ;;  %v4065_v48 = vadd.f32 %v3262_v42, %v3198_v37 }
 0x12d   :  { %v4067_v49 = vadd.f32 %v3265_v47, %v3201_v45 }
 0x12e   :  { %v3202_v50 = vpop.f32.mrb[28].mxu0 }
 0x12f   :  { %v3266_v51 = vpop.f32.mrb[28].mxu1  ;;  %v3203_v54 = vpop.f32.mrb[29].mxu0 }
 0x130   :  { %v3204_v55 = vadd.f32 %v3203_v54, %v3202_v50  ;;  %v3267_v56 = vpop.f32.mrb[29].mxu1  ;;  %v3205_v57 = vpop.f32.mrb[30].mxu0  ;;  %v3682_v50 = vld [vmem:[%s4767_s4 + $0x50] sm:$0xff]  }
 0x131   :  { %v3268_v58 = vadd.f32 %v3267_v56, %v3266_v51  ;;  %v3269_v59 = vpop.f32.mrb[30].mxu1  ;;  %v3206_v60 = vpop.f32.mrb[31].mxu0  ;;  %v3680_v56 = vld [vmem:[%s4767_s4 + $0x38] sm:$0xff]  }
 0x132   :  { %v3207_v61 = vadd.f32 %v3206_v60, %v3205_v57  ;;  %v3270_v62 = vpop.f32.mrb[31].mxu1  ;;  %v3683_v57 = vld [vmem:[%s4767_s4 + $0x58] sm:$0xff]  }
 0x133   :  { %v3271_v63 = vadd.f32 %v3270_v62, %v3269_v59  ;;  %v4069_v0 = vadd.f32 %v3268_v58, %v3204_v55 }
 0x135   :  { %v4071_v1 = vadd.f32 %v3271_v63, %v3207_v61 }
 0x136   :  { %v3374_v4 = vpop.f32.mrb[32].mxu0 }
 0x137   :  { %v4074_v5 = vadd.f32 %v3374_v4, %v4045_v38  ;;  %v814_v6 = vpop.f32.mrb[33].mxu0 }
 0x138   :  { %v4077_v7 = vadd.f32 %v814_v6, %v4041_v24  ;;  %v3375_v8 = vpop.f32.mrb[34].mxu0 }
 0x139   :  { %v4080_v9 = vadd.f32 %v3375_v8, %v4047_v39  ;;  %v817_v10 = vpop.f32.mrb[35].mxu0  ;;  %v880_v14 = vsel %vm561_vm0, %v4074_v5, 0.0 }
 0x13a   :  { %v4083_v11 = vadd.f32 %v817_v10, %v4043_v25  ;;  %v877_v12 = vsel %vm561_vm0, %v4077_v7, 0.0 }
 0x13b   :  { %v882_v25 = vsel %vm561_vm0, %v4080_v9, 0.0 }
 0x13c   :  { %v878_v13 = vsel %vm561_vm0, %v4083_v11, 0.0 }
 0x13d   :  { %v879_v38 = vadd.f32 %v878_v13, %v877_v12 }
 0x13e   :  { %v3378_v24 = vpop.f32.mrb[36].mxu0 }
 0x13f   :  { %v881_v15 = vadd.f32 %v880_v14, %v879_v38  ;;  %v4092_v18 = vadd.f32 %v3378_v24, %v4053_v2  ;;  %v830_v39 = vpop.f32.mrb[37].mxu0 }
 0x140   :  { %v4097_v19 = vadd.f32 %v830_v39, %v4049_v52  ;;  %v3379_v20 = vpop.f32.mrb[38].mxu0  ;;  %v3676_v52 = vld [vmem:[%s4767_s4 + $0x20] sm:$0xff]  }
 0x141   :  { %v883_v21 = vadd.f32 %v882_v25, %v881_v15  ;;  %v4100_v22 = vadd.f32 %v3379_v20, %v4055_v3  ;;  %v833_v23 = vpop.f32.mrb[39].mxu0  ;;  %v3679_v3 = vld [vmem:[%s4767_s4 + $0x40] sm:$0xff]   ;;  %3389 = vmatpush3.bf16.msra.mxu1 %v3676_v52 }
 0x142   :  { %v884_v26 = vsel %vm561_vm0, %v4097_v19, 0.0  ;;  %v4105_v27 = vadd.f32 %v833_v23, %v4051_v53  ;;  %v888_v53 = vsel %vm561_vm0, %v4092_v18, 0.0  ;;  %3413 = vmatpush3.bf16.msra.mxu0 %v3679_v3  ;;  %3390 = vmatprep.subr.bf16.mxu1 %v3766_v30 }
 0x143   :  { %v885_v2 = vadd.f32 %v884_v26, %v883_v21  ;;  %3414 = vmatprep.subr.bf16.mxu0 %v3766_v30  ;;  %v890_v41 = vsel %vm561_vm0, %v4100_v22, 0.0 }
 0x144   :  { %v886_v28 = vsel %vm561_vm0, %v4105_v27, 0.0 }
 0x145   :  { %v887_v29 = vadd.f32 %v886_v28, %v885_v2  ;;  %3391 = vmatpush3.bf16.msra.mxu1 %v3677_v34 }
 0x146   :  { %v3382_v31 = vpop.f32.mrb[40].mxu0  ;;  %3415 = vmatpush3.bf16.msra.mxu0 %v3681_v35  ;;  %3392 = vmatprep.subr.bf16.mxu1 %v3766_v30 }
 0x147   :  { %v889_v36 = vadd.f32 %v888_v53, %v887_v29  ;;  %v4126_v37 = vadd.f32 %v3382_v31, %v4061_v32  ;;  %v846_v40 = vpop.f32.mrb[41].mxu0  ;;  %3416 = vmatprep.subr.bf16.mxu0 %v3766_v30 }
 0x148   :  { %v4133_v42 = vadd.f32 %v846_v40, %v4057_v16  ;;  %v3383_v43 = vpop.f32.mrb[42].mxu0  ;;  %v3678_v16 = vld [vmem:[%s4767_s4 + $0x30] sm:$0xff]  }
 0x149   :  { %v891_v32 = vadd.f32 %v890_v41, %v889_v36  ;;  %v4140_v44 = vadd.f32 %v3383_v43, %v4063_v33  ;;  %v849_v45 = vpop.f32.mrb[43].mxu0  ;;  %v896_v54 = vsel %vm561_vm0, %v4126_v37, 0.0  ;;  %3393 = vmatpush3.bf16.msra.mxu1 %v3678_v16 }
 0x14a   :  { %v892_v46 = vsel %vm561_vm0, %v4133_v42, 0.0  ;;  %v4145_v47 = vadd.f32 %v849_v45, %v4059_v17  ;;  %3417 = vmatpush3.bf16.msra.mxu0 %v3682_v50  ;;  %3394 = vmatprep.subr.bf16.mxu1 %v3766_v30 }
 0x14b   :  { %v893_v51 = vadd.f32 %v892_v46, %v891_v32  ;;  %3418 = vmatprep.subr.bf16.mxu0 %v3766_v30  ;;  %v898_v61 = vsel %vm561_vm0, %v4140_v44, 0.0 }
 0x14c   :  { %v894_v33 = vsel %vm561_vm0, %v4145_v47, 0.0 }
 0x14d   :  { %v895_v17 = vadd.f32 %v894_v33, %v893_v51  ;;  %3395 = vmatpush3.bf16.msra.mxu1 %v3680_v56 }
 0x14e   :  { %v3386_v55 = vpop.f32.mrb[44].mxu0  ;;  %3419 = vmatpush3.bf16.msra.mxu0 %v3683_v57  ;;  %3400 = vmatprep.subr.bf16.mxu1 %v3766_v30 }
 0x14f   :  { %v897_v58 = vadd.f32 %v896_v54, %v895_v17  ;;  %v4166_v59 = vadd.f32 %v3386_v55, %v4069_v0  ;;  %v862_v60 = vpop.f32.mrb[45].mxu0  ;;  %3436 = vmatprep.subr.bf16.mxu0 %v3766_v30 }
 0x150   :  { %v4173_v62 = vadd.f32 %v862_v60, %v4065_v48  ;;  %v3387_v63 = vpop.f32.mrb[46].mxu0 }
 0x151   :  { %v899_v4 = vadd.f32 %v898_v61, %v897_v58  ;;  %v4176_v6 = vadd.f32 %v3387_v63, %v4071_v1  ;;  %v865_v8 = vpop.f32.mrb[47].mxu0  ;;  %v904_v1 = vsel %vm561_vm0, %v4166_v59, 0.0 }
 0x152   :  { %v900_v0 = vsel %vm561_vm0, %v4173_v62, 0.0  ;;  %v4181_v10 = vadd.f32 %v865_v8, %v4067_v49 }
 0x153   :  { %v901_v12 = vadd.f32 %v900_v0, %v899_v4  ;;  %v906_v14 = vsel %vm561_vm0, %v4176_v6, 0.0 }
 0x154   :  { %v902_v48 = vsel %vm561_vm0, %v4181_v10, 0.0 }
 0x155   :  { %v903_v13 = vadd.f32 %v902_v48, %v901_v12 }
 0x157   :  { %v905_v38 = vadd.f32 %v904_v1, %v903_v13 }
 0x159   :  { %v907_v49 = vadd.f32 %v906_v14, %v905_v38 }
 0x15b   :  { %v908_v24 = vrot.slane %v907_v49, 4 }
 0x15d   :  { %v909_v15 = vadd.f32 %v908_v24, %v907_v49 }
 0x15f   :  { %v910_v39 = vrot.slane %v909_v15, 2 }
 0x161   :  { %v911_v25 = vadd.f32 %v910_v39, %v909_v15 }
 0x163   :  { %v912_v20 = vrot.slane %v911_v25, 1 }
 0x165   :  { %v913_v21 = vadd.f32 %v912_v20, %v911_v25 }
 0x167   :  { %v4191_v23 = vmul.f32 0.0078125, %v913_v21 }
 0x169   :  { %v916_v26 = vsub.f32 %v4077_v7, %v4191_v23  ;;  %v917_v2 = vsub.f32 %v4083_v11, %v4191_v23  ;;  %v918_v28 = vsub.f32 %v4074_v5, %v4191_v23  ;;  %v919_v52 = vsub.f32 %v4080_v9, %v4191_v23 }
 0x16a   :  { %v920_v53 = vsub.f32 %v4097_v19, %v4191_v23  ;;  %v921_v34 = vsub.f32 %v4105_v27, %v4191_v23  ;;  %v922_v43 = vsub.f32 %v4092_v18, %v4191_v23  ;;  %v923_v16 = vsub.f32 %v4100_v22, %v4191_v23 }
 0x16b   :  { %v932_v3 = vmul.f32 %v916_v26, %v916_v26  ;;  %v933_v29 = vmul.f32 %v917_v2, %v917_v2  ;;  %v934_v31 = vmul.f32 %v918_v28, %v918_v28  ;;  %v935_v35 = vmul.f32 %v919_v52, %v919_v52 }
 0x16c   :  { %v936_v32 = vmul.f32 %v920_v53, %v920_v53  ;;  %v937_v50 = vmul.f32 %v921_v34, %v921_v34  ;;  %v924_v17 = vsub.f32 %v4133_v42, %v4191_v23  ;;  %v938_v54 = vmul.f32 %v922_v43, %v922_v43 }
 0x16d   :  { %v948_v36 = vsel %vm561_vm0, %v932_v3, 0.0  ;;  %v949_v40 = vsel %vm561_vm0, %v933_v29, 0.0  ;;  %v951_v45 = vsel %vm561_vm0, %v934_v31, 0.0  ;;  %v953_v51 = vsel %vm561_vm0, %v935_v35, 0.0 }
 0x16e   :  { %v950_v41 = vadd.f32 %v949_v40, %v948_v36  ;;  %v955_v55 = vsel %vm561_vm0, %v936_v32, 0.0  ;;  %v925_v57 = vsub.f32 %v4145_v47, %v4191_v23  ;;  %v939_v58 = vmul.f32 %v923_v16, %v923_v16 }
 0x16f   :  { %v957_v60 = vsel %vm561_vm0, %v937_v50, 0.0  ;;  %v926_v63 = vsub.f32 %v4126_v37, %v4191_v23  ;;  %v940_v4 = vmul.f32 %v924_v17, %v924_v17  ;;  %v959_v8 = vsel %vm561_vm0, %v938_v54, 0.0 }
 0x170   :  { %v952_v46 = vadd.f32 %v951_v45, %v950_v41  ;;  %v927_v12 = vsub.f32 %v4140_v44, %v4191_v23  ;;  %v941_v48 = vmul.f32 %v925_v57, %v925_v57  ;;  %v961_v13 = vsel %vm561_vm0, %v939_v58, 0.0 }
 0x171   :  { %v928_v38 = vsub.f32 %v4173_v62, %v4191_v23  ;;  %v942_v14 = vmul.f32 %v926_v63, %v926_v63  ;;  %v963_v49 = vsel %vm561_vm0, %v940_v4, 0.0  ;;  %v929_v15 = vsub.f32 %v4181_v10, %v4191_v23 }
 0x172   :  { %v954_v33 = vadd.f32 %v953_v51, %v952_v46  ;;  %v943_v39 = vmul.f32 %v927_v12, %v927_v12  ;;  %v965_v25 = vsel %vm561_vm0, %v941_v48, 0.0  ;;  %v930_v21 = vsub.f32 %v4166_v59, %v4191_v23 }
 0x173   :  { %v944_v26 = vmul.f32 %v928_v38, %v928_v38  ;;  %v967_v2 = vsel %vm561_vm0, %v942_v14, 0.0  ;;  %v931_v52 = vsub.f32 %v4176_v6, %v4191_v23  ;;  %v945_v3 = vmul.f32 %v929_v15, %v929_v15 }
 0x174   :  { %v956_v56 = vadd.f32 %v955_v55, %v954_v33  ;;  %v969_v29 = vsel %vm561_vm0, %v943_v39, 0.0  ;;  %v946_v31 = vmul.f32 %v930_v21, %v930_v21  ;;  %v994_v57 = vlaneseq }
 0x175   :  { %v971_v34 = vsel %vm561_vm0, %v944_v26, 0.0  ;;  %v947_v36 = vmul.f32 %v931_v52, %v931_v52  ;;  %v973_v40 = vsel %vm561_vm0, %v945_v3, 0.0 }
 0x176   :  { %v958_v61 = vadd.f32 %v957_v60, %v956_v56  ;;  %v975_v43 = vsel %vm561_vm0, %v946_v31, 0.0  ;;  %v995_v58 = vshrl.u32 %v994_v57, 7  ;;  %v986_v60 = vld [vmem:[%s4765_s2] sm:$0x1] }
 0x177   :  { %v977_v45 = vsel %vm561_vm0, %v947_v36, 0.0 }
 0x178   :  { %v960_v0 = vadd.f32 %v959_v8, %v958_v61  ;;  %v996_v61 = vsub.s32 0, %v995_v58  ;;  %v990_v8 = vld [vmem:[%s4766_s3] sm:$0x1]  ;;  %s3769_s3 = smov [#allocation2]  }
 0x179   :  { %s2851_s21 = sshll.u32 %s3769_s3, 4  ;;  %s2852_s21 = int_to_ptr.vmem [resolvable:$true] %s2851_s21 }
 0x17a   :  { %v962_v1 = vadd.f32 %v961_v13, %v960_v0  ;;  %v3768_v0 = vmov 1983009808   ;;  %s3742_s22 = scalar_lea.vmem %s2852_s21, 32  ;;  %p3747_p1 = scmp.lt.s32.totalorder %s2852_s21, %s2852_s21 }
 0x17b   :  { %v1087_v12 = vunpack.c.l.s4 %v3768_v0  ;;  %p3743_p0 = scmp.ne.s32.totalorder %s2852_s21, %s3742_s22  ;;  %p3748_p2 = scmp.lt.s32.totalorder %s3742_s22, %s3742_s22 }
 0x17c   :  { %v964_v24 = vadd.f32 %v963_v49, %v962_v1 }
 0x17d   :  { %v1088_v14 = vunpack.c.0.s8 %v1087_v12  ;;  %p3749_p3 = por %p3748_p2, %p3747_p1 }
 0x17e   :  { %v966_v20 = vadd.f32 %v965_v25, %v964_v24 }
 0x17f   :  { %p3750_p4 = pnand %p3749_p3, %p3743_p0 }
 0x180   :  { %v968_v28 = vadd.f32 %v967_v2, %v966_v20  ;;  %v4270_v2 = vsub.s32 %v1088_v14, %v995_v58 }
 0x182   :  { %v970_v53 = vadd.f32 %v969_v29, %v968_v28 }
 0x184   :  { %v972_v35 = vadd.f32 %v971_v34, %v970_v53 }
 0x186   :  { %v974_v41 = vadd.f32 %v973_v40, %v972_v35 }
 0x188   :  { %v976_v32 = vadd.f32 %v975_v43, %v974_v41 }
 0x18a   :  { %v978_v46 = vadd.f32 %v977_v45, %v976_v32 }
 0x18c   :  { %v979_v16 = vrot.slane %v978_v46, 4 }
 0x18e   :  { %v980_v50 = vadd.f32 %v979_v16, %v978_v46 }
 0x190   :  { %v981_v51 = vrot.slane %v980_v50, 2 }
 0x192   :  { %v982_v33 = vadd.f32 %v981_v51, %v980_v50 }
 0x194   :  { %v983_v17 = vrot.slane %v982_v33, 1 }
 0x196   :  { %v984_v54 = vadd.f32 %v983_v17, %v982_v33 }
 0x198   :  { %v985_v55 = vmul.f32 0.0078125, %v984_v54 }
 0x19a   :  { %v987_v56 = vadd.f32 1e-05, %v985_v55 }
 0x19c   :  { %3740 = vrsqrt.f32 %v987_v56 }
 0x1a6   :  { %v3741_v63 = vpop.eup %3740 }
 0x1a7   :  { %v989_v4 = vmul.f32 %v3741_v63, %v986_v60 }
 0x1a9   :  { %v991_v48 = vmul.f32 %v989_v4, %v4191_v23  ;;  %v4248_v13 = vrot.slane %v989_v4, %v996_v61 }
 0x1ab   :  { %v992_v1 = vsub.f32 %v990_v8, %v991_v48  ;;  %v1011_v38 = vmul.f32 %v4248_v13, %v4173_v62  ;;  %v1012_v49 = vmul.f32 %v4248_v13, %v4181_v10  ;;  %v999_v15 = vmul.f32 %v4248_v13, %v4077_v7 }
 0x1ac   :  { %v1000_v39 = vmul.f32 %v4248_v13, %v4083_v11  ;;  %v1007_v23 = vmul.f32 %v4248_v13, %v4133_v42  ;;  %v1008_v25 = vmul.f32 %v4248_v13, %v4145_v47  ;;  %v1001_v40 = vmul.f32 %v4248_v13, %v4074_v5 }
 0x1ad   :  { %v4254_v24 = vrot.slane %v992_v1, %v996_v61  ;;  %v1002_v51 = vmul.f32 %v4248_v13, %v4080_v9  ;;  %v1009_v33 = vmul.f32 %v4248_v13, %v4126_v37  ;;  %v1010_v9 = vmul.f32 %v4248_v13, %v4140_v44 }
 0x1af   :  { %v1033_v62 = vadd.f32 %v4254_v24, %v1011_v38  ;;  %v1034_v20 = vadd.f32 %v4254_v24, %v1012_v49  ;;  %v1021_v10 = vadd.f32 %v4254_v24, %v999_v15  ;;  %v1022_v21 = vadd.f32 %v4254_v24, %v1000_v39 }
 0x1b0   :  { %v1029_v26 = vadd.f32 %v4254_v24, %v1007_v23  ;;  %v1030_v7 = vadd.f32 %v4254_v24, %v1008_v25  ;;  %v1023_v5 = vadd.f32 %v4254_v24, %v1001_v40  ;;  %v1024_v60 = vadd.f32 %v4254_v24, %v1002_v51 }
 0x1b1   :  { %v1037_v11 = vmax.f32 %v1021_v10, 0.0  ;;  %v1038_v28 = vmax.f32 %v1022_v21, 0.0  ;;  %v1049_v42 = vmax.f32 %v1033_v62, 0.0  ;;  %v1050_v52 = vmax.f32 %v1034_v20, 0.0 }
 0x1b2   :  { %v1045_v3 = vmax.f32 %v1029_v26, 0.0  ;;  %v1046_v47 = vmax.f32 %v1030_v7, 0.0  ;;  %v1031_v37 = vadd.f32 %v4254_v24, %v1009_v33  ;;  %v1032_v0 = vadd.f32 %v4254_v24, %v1010_v9 }
 0x1b3   :  { %v1053_v29 = vsel %vm561_vm0, %v1037_v11, -inf  ;;  %v1054_v53 = vsel %vm561_vm0, %v1038_v28, -inf  ;;  %v1071_v41 = vsel %vm561_vm0, %v1049_v42, -inf  ;;  %v1072_v43 = vsel %vm561_vm0, %v1050_v52, -inf }
 0x1b4   :  { %v1055_v31 = vmax.f32 %v1053_v29, %v1054_v53  ;;  %v1065_v34 = vsel %vm561_vm0, %v1045_v3, -inf  ;;  %v1066_v35 = vsel %vm561_vm0, %v1046_v47, -inf  ;;  %v4287_v17 = vmax.f32 %v1071_v41, %v1072_v43 }
 0x1b5   :  { %v1067_v36 = vmax.f32 %v1065_v34, %v1066_v35  ;;  %v1039_v12 = vmax.f32 %v1023_v5, 0.0  ;;  %v1040_v14 = vmax.f32 %v1024_v60, 0.0  ;;  %v1047_v49 = vmax.f32 %v1031_v37, 0.0 }
 0x1b6   :  { %v1092_v32 = vrot.slane %v1055_v31, %v4270_v2  ;;  %v1085_v45 = vcombine.high %v1055_v31, %v1055_v31  ;;  %v4307_v8 = vrot.slane %v4287_v17, %v4270_v2  ;;  %v4312_v15 = vmul.f32 %v4248_v13, %v4097_v19 }
 0x1b7   :  { %v1160_v46 = vrot.slane %v1067_v36, %v4270_v2  ;;  %v1153_v16 = vcombine.high %v1067_v36, %v1067_v36  ;;  %v1048_v10 = vmax.f32 %v1032_v0, 0.0  ;;  %v1056_v21 = vsel %vm561_vm0, %v1039_v12, -inf }
 0x1b8   :  { %v1100_v50 = vcombine.high %v1092_v32, %v1092_v32  ;;  %v4290_v55 = vrot.slane %v1085_v45, %v4270_v2  ;;  %v4316_v20 = vsel %vm1253_vm2, %v4307_v8, -inf  ;;  %v4321_v26 = vmul.f32 %v4248_v13, %v4105_v27 }
 0x1b9   :  { %v1168_v54 = vcombine.high %v1160_v46, %v1160_v46  ;;  %v4293_v56 = vrot.slane %v1153_v16, %v4270_v2  ;;  %v1254_v42 = vsel %vm1253_vm2, %v1092_v32, -inf  ;;  %v1366_v52 = vsel %vm1253_vm2, %v1160_v46, -inf }
 0x1ba   :  { %v1261_v57 = vsel %vm1253_vm2, %v1100_v50, -inf  ;;  %v1268_v63 = vsel %vm1253_vm2, %v4290_v55, -inf  ;;  %v1057_v3 = vsel %vm561_vm0, %v1040_v14, -inf  ;;  %v1068_v47 = vsel %vm561_vm0, %v1047_v49, -inf }
 0x1bb   :  { %v1262_v58 = vrot.slane %v1261_v57, 4  ;;  %v1373_v61 = vsel %vm1253_vm2, %v1168_v54, -inf  ;;  %v1380_v4 = vsel %vm1253_vm2, %v4293_v56, -inf  ;;  %v1269_v1 = vrot.slane %v1268_v63, 4 }
 0x1bc   :  { %v1374_v48 = vrot.slane %v1373_v61, 4  ;;  %v1381_v38 = vrot.slane %v1380_v4, 4  ;;  %v1255_v35 = vrot.slane %v1254_v42, 4  ;;  %v1367_v27 = vrot.slane %v1366_v52, 4 }
 0x1bd   :  { %v1263_v44 = vmax.f32 %v1261_v57, %v1262_v58  ;;  %v1270_v25 = vmax.f32 %v1268_v63, %v1269_v1  ;;  %v4327_v36 = vmax.f32 %v1056_v21, %v1057_v3  ;;  %v1069_v40 = vsel %vm561_vm0, %v1048_v10, -inf }
 0x1be   :  { %v1375_v23 = vmax.f32 %v1373_v61, %v1374_v48  ;;  %v1382_v62 = vmax.f32 %v1380_v4, %v1381_v38  ;;  %v1256_v46 = vmax.f32 %v1254_v42, %v1255_v35  ;;  %v1368_v16 = vmax.f32 %v1366_v52, %v1367_v27 }
 0x1bf   :  { %v1264_v39 = vrot.slane %v1263_v44, 2  ;;  %v1271_v28 = vrot.slane %v1270_v25, 2  ;;  %v4330_v50 = vmax.f32 %v1068_v47, %v1069_v40  ;;  %v4334_v51 = vrot.slane %v4327_v36, %v4270_v2 }
 0x1c0   :  { %v1376_v11 = vrot.slane %v1375_v23, 2  ;;  %v1383_v19 = vrot.slane %v1382_v62, 2  ;;  %v1257_v58 = vrot.slane %v1256_v46, 2  ;;  %v1369_v9 = vrot.slane %v1368_v16, 2 }
 0x1c1   :  { %v1265_v7 = vmax.f32 %v1263_v44, %v1264_v39  ;;  %v1272_v31 = vmax.f32 %v1270_v25, %v1271_v28  ;;  %v4338_v60 = vrot.slane %v4330_v50, %v4270_v2  ;;  %v1282_v37 = vsel %vm1253_vm2, %v4334_v51, -inf  ;;  %v3685_v28 = vld [vmem:[%s4767_s4 + $0x80] sm:$0xff]  }
 0x1c2   :  { %v1377_v53 = vmax.f32 %v1375_v23, %v1376_v11  ;;  %v1384_v34 = vmax.f32 %v1382_v62, %v1383_v19  ;;  %v1258_v12 = vmax.f32 %v1256_v46, %v1257_v58  ;;  %v1370_v44 = vmax.f32 %v1368_v16, %v1369_v9 }
 0x1c3   :  { %v1266_v29 = vrot.slane %v1265_v7, 1  ;;  %v1273_v32 = vrot.slane %v1272_v31, 1  ;;  %v1283_v48 = vrot.slane %v1282_v37, 4  ;;  %v1394_v1 = vsel %vm1253_vm2, %v4338_v60, -inf }
 0x1c4   :  { %v1378_v43 = vrot.slane %v1377_v53, 1  ;;  %v1385_v45 = vrot.slane %v1384_v34, 1  ;;  %v1395_v39 = vrot.slane %v1394_v1, 4  ;;  %v1259_v23 = vrot.slane %v1258_v12, 1 }
 0x1c5   :  { %v1267_v41 = vmax.f32 %v1265_v7, %v1266_v29  ;;  %v1274_v54 = vmax.f32 %v1272_v31, %v1273_v32  ;;  %v1371_v25 = vrot.slane %v1370_v44, 1  ;;  %v1284_v62 = vmax.f32 %v1282_v37, %v1283_v48  ;;  %v3684_v7 = vld [vmem:[%s4767_s4] sm:$0xff]  }
 0x1c6   :  { %v1379_v33 = vmax.f32 %v1377_v53, %v1378_v43  ;;  %v1386_v57 = vmax.f32 %v1384_v34, %v1385_v45  ;;  %v1101_v10 = vcombine.high %v4290_v55, %v4290_v55  ;;  %v1396_v19 = vmax.f32 %v1394_v1, %v1395_v39  ;;  %v3687_v43 = vld [vmem:[%s4767_s4 + $0x88] sm:$0xff]  }
 0x1c7   :  { %v1488_v5 = vpack.c.bf16 %v1267_v41, %v1267_v41  ;;  %v1646_v4 = vpack.c.bf16 %v1274_v54, %v1274_v54  ;;  %v1169_v42 = vcombine.high %v4293_v56, %v4293_v56  ;;  %v1260_v47 = vmax.f32 %v1258_v12, %v1259_v23  ;;  %v3686_v56 = vld [vmem:[%s4767_s4 + $0x8] sm:$0xff]  }
 0x1c8   :  { %v1489_v61 = vpack.c.bf16 %v1379_v33, %v1379_v33  ;;  %v1647_v0 = vpack.c.bf16 %v1386_v57, %v1386_v57  ;;  %v1372_v55 = vmax.f32 %v1370_v44, %v1371_v25  ;;  %v1285_v29 = vrot.slane %v1284_v62, 2 }
 0x1c9   :  { %v1501_v63 = vunpack.c.l.b16 %v1488_v5  ;;  %v1659_v14 = vunpack.c.l.b16 %v1646_v4  ;;  %v1397_v53 = vrot.slane %v1396_v19, 2  ;;  %v1275_v31 = vsel %vm1253_vm2, %v1101_v10, -inf  ;;  %v3688_v4 = vld [vmem:[%s4767_s4 + $0x10] sm:$0xff]  }
 0x1ca   :  { %v1502_v38 = vunpack.c.l.b16 %v1489_v61  ;;  %v1660_v49 = vunpack.c.l.b16 %v1647_v0  ;;  %v1387_v34 = vsel %vm1253_vm2, %v1169_v42, -inf  ;;  %v1478_v35 = vpack.c.bf16 %v1260_v47, %v1260_v47  ;;  %v3689_v0 = vld [vmem:[%s4767_s4 + $0x90] sm:$0xff]  }
 0x1cb   :  { %v1479_v27 = vpack.c.bf16 %v1372_v55, %v1372_v55  ;;  %v1276_v40 = vrot.slane %v1275_v31, 4  ;;  %v1388_v41 = vrot.slane %v1387_v34, 4  ;;  %v1286_v32 = vmax.f32 %v1284_v62, %v1285_v29 }
 0x1cc   :  { %v1504_v21 = vsel %vm1503_vm3, %v1502_v38, %v1501_v63  ;;  %v1661_v11 = vsel %vm1503_vm3, %v1660_v49, %v1659_v14  ;;  %v1398_v45 = vmax.f32 %v1396_v19, %v1397_v53  ;;  %v1102_v46 = vcombine.high %v4327_v36, %v4327_v36 }
 0x1cd   :  { %v1505_v52 = vpack.c.b16 %v1504_v21, %v1504_v21  ;;  %v1662_v3 = vpack.c.b16 %v1661_v11, %v1661_v11  ;;  %v1187_v16 = vcombine.high %v4287_v17, %v4287_v17  ;;  %v1423_v33 = vrot.slane %v4316_v20, 4  ;;  %v3690_v11 = vld [vmem:[%s4767_s4 + $0x18] sm:$0xff]  }
 0x1ce   :  { %v1277_v5 = vmax.f32 %v1275_v31, %v1276_v40  ;;  %v1389_v54 = vmax.f32 %v1387_v34, %v1388_v41  ;;  %v1287_v57 = vrot.slane %v1286_v32, 1  ;;  %v1399_v58 = vrot.slane %v1398_v45, 1 }
 0x1cf   :  { %3397 = vmatmul.mubr.msk.bf16.vlgmr.msra.gmra.mrb[32].mxu1 %vm561_vm0, %v1505_v52  ;;  %3421 = vmatmul.mubr.msk.bf16.vlgmr.msra.gmra.mrb[48].mxu0 %vm561_vm0, %v1662_v3  ;;  %v4378_v36 = vrot.slane %v1102_v46, %v4270_v2  ;;  %v1170_v17 = vcombine.high %v4330_v50, %v4330_v50  ;;  %v1575_v9 = vunpack.c.l.b16 %v1478_v35  ;;  %v1117_v63 = vcombine.high %v4334_v51, %v4334_v51 }
 0x1d0   :  { %3401 = vmatpush3.bf16.msra.mxu1 %v3684_v7  ;;  %3437 = vmatpush3.bf16.msra.mxu0 %v3685_v28  ;;  %v1278_v37 = vrot.slane %v1277_v5, 2  ;;  %v1390_v61 = vrot.slane %v1389_v54, 2  ;;  %v1576_v12 = vunpack.c.l.b16 %v1479_v27  ;;  %v1288_v44 = vmax.f32 %v1286_v32, %v1287_v57  ;;  %v3691_v28 = vld [vmem:[%s4767_s4 + $0x98] sm:$0xff]   ;;  %v3693_v32 = vld [vmem:[%s4767_s4 + $0xc0] sm:$0xff]  }
 0x1d1   :  { %3402 = vmatprep.subr.bf16.mxu1 %v3766_v30  ;;  %3438 = vmatprep.subr.bf16.mxu0 %v3766_v30  ;;  %v1400_v48 = vmax.f32 %v1398_v45, %v1399_v58  ;;  %v1296_v50 = vsel %vm1253_vm2, %v4378_v36, -inf  ;;  %v4395_v38 = vrot.slane %v1170_v17, %v4270_v2  ;;  %v1185_v23 = vcombine.high %v4338_v60, %v4338_v60 }
 0x1d2   :  { %3408 = vmatprep.mubr.msk.bf16.mxu1 %vm3767_vm1, %v3766_v30  ;;  %3444 = vmatprep.mubr.msk.bf16.mxu0 %vm3767_vm1, %v3766_v30  ;;  %v1279_v51 = vmax.f32 %v1277_v5, %v1278_v37  ;;  %v1391_v1 = vmax.f32 %v1389_v54, %v1390_v61  ;;  %v1297_v14 = vrot.slane %v1296_v50, 4  ;;  %v1816_v49 = vpack.c.bf16 %v1288_v44, %v1288_v44 }
 0x1d3   :  { %v1817_v39 = vpack.c.bf16 %v1400_v48, %v1400_v48  ;;  %v1289_v25 = vsel %vm1253_vm2, %v1117_v63, -inf  ;;  %v1408_v7 = vsel %vm1253_vm2, %v4395_v38, -inf  ;;  %v4409_v3 = vrot.slane %v1187_v16, %v4270_v2 }
 0x1d4   :  { %3403 = vmatpush3.bf16.msra.mxu1 %v3686_v56  ;;  %3439 = vmatpush3.bf16.msra.mxu0 %v3687_v43  ;;  %v1280_v62 = vrot.slane %v1279_v51, 1  ;;  %v1392_v10 = vrot.slane %v1391_v1, 1  ;;  %v1298_v21 = vmax.f32 %v1296_v50, %v1297_v14  ;;  %v1829_v19 = vunpack.c.l.b16 %v1816_v49  ;;  %v3692_v43 = vld [vmem:[%s4767_s4 + $0x60] sm:$0xff]  }
 0x1d5   :  { %3404 = vmatprep.subr.bf16.mxu1 %v3766_v30  ;;  %3440 = vmatprep.subr.bf16.mxu0 %v3766_v30  ;;  %v1830_v60 = vunpack.c.l.b16 %v1817_v39  ;;  %v1409_v42 = vrot.slane %v1408_v7, 4  ;;  %v1290_v52 = vrot.slane %v1289_v25, 4  ;;  %v1577_v47 = vsel %vm1503_vm3, %v1576_v12, %v1575_v9 }
 0x1d6   :  { %v1299_v55 = vrot.slane %v1298_v21, 2  ;;  %v1401_v29 = vsel %vm1253_vm2, %v1185_v23, -inf  ;;  %v1424_v27 = vmax.f32 %v4316_v20, %v1423_v33  ;;  %v1281_v40 = vmax.f32 %v1279_v51, %v1280_v62 }
 0x1d7   :  { %v1831_v53 = vsel %vm1503_vm3, %v1830_v60, %v1829_v19  ;;  %v1410_v31 = vmax.f32 %v1408_v7, %v1409_v42  ;;  %v1291_v34 = vmax.f32 %v1289_v25, %v1290_v52  ;;  %v1402_v35 = vrot.slane %v1401_v29, 4  ;;  %v3697_v7 = vld [vmem:[%s4767_s4 + $0xd0] sm:$0xff]  }
 0x1d8   :  { %3405 = vmatpush3.bf16.msra.mxu1 %v3688_v4  ;;  %3441 = vmatpush3.bf16.msra.mxu0 %v3689_v0  ;;  %v1393_v41 = vmax.f32 %v1391_v1, %v1392_v10  ;;  %v1300_v56 = vmax.f32 %v1298_v21, %v1299_v55  ;;  %v1025_v5 = vadd.f32 %v4254_v24, %v4312_v15  ;;  %v1425_v37 = vrot.slane %v1424_v27, 2  ;;  %v3694_v4 = vld [vmem:[%s4767_s4 + $0x68] sm:$0xff]   ;;  %v3696_v21 = vld [vmem:[%s4767_s4 + $0x70] sm:$0xff]  }
 0x1d9   :  { %3406 = vmatprep.subr.bf16.mxu1 %v3766_v30  ;;  %3442 = vmatprep.subr.bf16.mxu0 %v3766_v30  ;;  %v1411_v45 = vrot.slane %v1410_v31, 2  ;;  %v1292_v46 = vrot.slane %v1291_v34, 2  ;;  %v1403_v16 = vmax.f32 %v1401_v29, %v1402_v35  ;;  %v1578_v20 = vpack.c.b16 %v1577_v47, %v1577_v47  ;;  %v3698_v35 = vld [vmem:[%s4767_s4 + $0x78] sm:$0xff]  }
 0x1da   :  { %v1832_v33 = vpack.c.b16 %v1831_v53, %v1831_v53  ;;  %v1301_v54 = vrot.slane %v1300_v56, 1  ;;  %v1026_v57 = vadd.f32 %v4254_v24, %v4321_v26  ;;  %v1041_v9 = vmax.f32 %v1025_v5, 0.0  ;;  %v3695_v26 = vld [vmem:[%s4767_s4 + $0xc8] sm:$0xff]  }
 0x1db   :  { %v1412_v58 = vmax.f32 %v1410_v31, %v1411_v45  ;;  %v1404_v17 = vrot.slane %v1403_v16, 2  ;;  %v1436_v61 = vsel %vm1253_vm2, %v4409_v3, -inf  ;;  %v1731_v0 = vpack.c.bf16 %v1281_v40, %v1281_v40 }
 0x1dc   :  { %3407 = vmatpush3.bf16.msra.mxu1 %v3690_v11  ;;  %3443 = vmatpush3.bf16.msra.mxu0 %v3691_v28  ;;  %v1302_v15 = vmax.f32 %v1300_v56, %v1301_v54  ;;  %v1042_v63 = vmax.f32 %v1026_v57, 0.0  ;;  %v1732_v12 = vpack.c.bf16 %v1393_v41, %v1393_v41  ;;  %v1293_v48 = vmax.f32 %v1291_v34, %v1292_v46 }
 0x1dd   :  { %3424 = vmatprep.subr.bf16.mxu1 %v3766_v30  ;;  %3460 = vmatprep.subr.bf16.mxu0 %v3766_v30  ;;  %v1413_v44 = vrot.slane %v1412_v58, 1  ;;  %v1405_v50 = vmax.f32 %v1403_v16, %v1404_v17  ;;  %v1059_v51 = vsel %vm561_vm0, %v1041_v9, -inf  ;;  %v1426_v23 = vmax.f32 %v1424_v27, %v1425_v37  ;;  %v3699_v27 = vld [vmem:[%s4767_s4 + $0xd8] sm:$0xff]   ;;  %v3700_v17 = vld [vmem:[%s4767_s4 + $0xa0] sm:$0xff]  }
 0x1de   :  { %v1060_v1 = vsel %vm561_vm0, %v1042_v63, -inf  ;;  %v1986_v49 = vpack.c.bf16 %v1302_v15, %v1302_v15  ;;  %v1437_v25 = vrot.slane %v1436_v61, 4  ;;  %v1118_v62 = vcombine.high %v4378_v36, %v4378_v36  ;;  %v3701_v9 = vld [vmem:[%s4767_s4 + $0x100] sm:$0xff]  }
 0x1df   :  { %3409 = vmatmul.mubr.msk.bf16.vlgmr.msra.gmra.mrb[36].mxu1 %vm561_vm0, %v1578_v20  ;;  %3445 = vmatmul.mubr.msk.bf16.vlgmr.msra.gmra.mrb[52].mxu0 %vm561_vm0, %v1832_v33  ;;  %v1414_v14 = vmax.f32 %v1412_v58, %v1413_v44  ;;  %v1061_v39 = vmax.f32 %v1059_v51, %v1060_v1  ;;  %v1186_v10 = vcombine.high %v4395_v38, %v4395_v38  ;;  %v1744_v11 = vunpack.c.l.b16 %v1731_v0  ;;  %v3702_v1 = vld [vmem:[%s4767_s4 + $0xa8] sm:$0xff]  }
 0x1e0   :  { %3425 = vmatpush3.bf16.msra.mxu1 %v3692_v43  ;;  %3461 = vmatpush3.bf16.msra.mxu0 %v3693_v32  ;;  %v1745_v28 = vunpack.c.l.b16 %v1732_v12  ;;  %v1294_v60 = vrot.slane %v1293_v48, 1  ;;  %v1303_v38 = vsel %vm1253_vm2, %v1118_v62, -inf  ;;  %v1999_v47 = vunpack.c.l.b16 %v1986_v49 }
 0x1e1   :  { %3426 = vmatprep.subr.bf16.mxu1 %v3766_v30  ;;  %3462 = vmatprep.subr.bf16.mxu0 %v3766_v30  ;;  %v1987_v19 = vpack.c.bf16 %v1414_v14, %v1414_v14  ;;  %v4460_v36 = vrot.slane %v1061_v39, %v4270_v2  ;;  %v1415_v42 = vsel %vm1253_vm2, %v1186_v10, -inf  ;;  %v1119_v52 = vcombine.high %v1061_v39, %v1061_v39 }
 0x1e2   :  { %3432 = vmatprep.mubr.msk.bf16.mxu1 %vm3767_vm1, %v3766_v30  ;;  %3468 = vmatprep.mubr.msk.bf16.mxu0 %vm3767_vm1, %v3766_v30  ;;  %v1406_v29 = vrot.slane %v1405_v50, 1  ;;  %v1427_v34 = vrot.slane %v1426_v23, 1  ;;  %v1304_v41 = vrot.slane %v1303_v38, 4  ;;  %v1416_v56 = vrot.slane %v1415_v42, 4 }
 0x1e3   :  { %v2000_v55 = vunpack.c.l.b16 %v1987_v19  ;;  %v1310_v53 = vsel %vm1253_vm2, %v4460_v36, -inf  ;;  %v4467_v31 = vrot.slane %v1119_v52, %v4270_v2  ;;  %v1438_v43 = vmax.f32 %v1436_v61, %v1437_v25 }
 0x1e4   :  { %3427 = vmatpush3.bf16.msra.mxu1 %v3694_v4  ;;  %3463 = vmatpush3.bf16.msra.mxu0 %v3695_v26  ;;  %v1311_v40 = vrot.slane %v1310_v53, 4  ;;  %v1746_v32 = vsel %vm1503_vm3, %v1745_v28, %v1744_v11  ;;  %v1295_v45 = vmax.f32 %v1293_v48, %v1294_v60  ;;  %v1407_v5 = vmax.f32 %v1405_v50, %v1406_v29 }
 0x1e5   :  { %3428 = vmatprep.subr.bf16.mxu1 %v3766_v30  ;;  %3464 = vmatprep.subr.bf16.mxu0 %v3766_v30  ;;  %v1324_v46 = vsel %vm1253_vm2, %v4467_v31, -inf  ;;  %v2001_v16 = vsel %vm1503_vm3, %v2000_v55, %v1999_v47  ;;  %v1202_v54 = vcombine.high %v4307_v8, %v4307_v8  ;;  %v1005_v57 = vmul.f32 %v4248_v13, %v4092_v18 }
 0x1e6   :  { %v1312_v20 = vmax.f32 %v1310_v53, %v1311_v40  ;;  %v1325_v33 = vrot.slane %v1324_v46, 4  ;;  %v1006_v58 = vmul.f32 %v4248_v13, %v4100_v22  ;;  %v1428_v61 = vmax.f32 %v1426_v23, %v1427_v34 }
 0x1e7   :  { %v1305_v15 = vmax.f32 %v1303_v38, %v1304_v41  ;;  %v1417_v8 = vmax.f32 %v1415_v42, %v1416_v56  ;;  %v1439_v63 = vrot.slane %v1438_v43, 2  ;;  %v1747_v4 = vpack.c.b16 %v1746_v32, %v1746_v32  ;;  %v3705_v38 = vld [vmem:[%s4767_s4 + $0x110] sm:$0xff]  }
 0x1e8   :  { %3429 = vmatpush3.bf16.msra.mxu1 %v3696_v21  ;;  %3465 = vmatpush3.bf16.msra.mxu0 %v3697_v7  ;;  %v1313_v37 = vrot.slane %v1312_v20, 2  ;;  %v2002_v18 = vpack.c.b16 %v2001_v16, %v2001_v16  ;;  %v1326_v22 = vmax.f32 %v1324_v46, %v1325_v33  ;;  %v1901_v26 = vpack.c.bf16 %v1295_v45, %v1295_v45  ;;  %v3706_v46 = vld [vmem:[%s4767_s4 + $0xb8] sm:$0xff]  }
 0x1e9   :  { %3430 = vmatprep.subr.bf16.mxu1 %v3766_v30  ;;  %3466 = vmatprep.subr.bf16.mxu0 %v3766_v30  ;;  %v1902_v0 = vpack.c.bf16 %v1407_v5, %v1407_v5  ;;  %v1013_v44 = vmul.f32 %v4248_v13, %v4166_v59  ;;  %v1014_v48 = vmul.f32 %v4248_v13, %v4176_v6  ;;  %v3703_v59 = vld [vmem:[%s4767_s4 + $0x108] sm:$0xff]   ;;  %v1306_v49 = vrot.slane %v1305_v15, 2  ;;  %v3707_v16 = vld [vmem:[%s4767_s4 + $0x118] sm:$0xff]  }
 0x1ea   :  { %v1314_v12 = vmax.f32 %v1312_v20, %v1313_v37  ;;  %v1027_v50 = vadd.f32 %v4254_v24, %v1005_v57  ;;  %v1028_v51 = vadd.f32 %v4254_v24, %v1006_v58  ;;  %v1418_v39 = vrot.slane %v1417_v8, 2 }
 0x1eb   :  { %v1134_v6 = vcombine.high %v4460_v36, %v4460_v36  ;;  %v1429_v13 = vsel %vm1253_vm2, %v1202_v54, -inf  ;;  %v1327_v23 = vrot.slane %v1326_v22, 2  ;;  %v1035_v25 = vadd.f32 %v4254_v24, %v1013_v44 }
 0x1ec   :  { %3431 = vmatpush3.bf16.msra.mxu1 %v3698_v35  ;;  %3467 = vmatpush3.bf16.msra.mxu0 %v3699_v27  ;;  %v1315_v14 = vrot.slane %v1314_v12, 1  ;;  %v1036_v62 = vadd.f32 %v4254_v24, %v1014_v48  ;;  %v1440_v10 = vmax.f32 %v1438_v43, %v1439_v63  ;;  %v1914_v21 = vunpack.c.l.b16 %v1901_v26  ;;  %v3704_v24 = vld [vmem:[%s4767_s4 + $0xb0] sm:$0xff]  }
 0x1ed   :  { %3448 = vmatprep.subr.bf16.mxu1 %v3766_v30  ;;  %3484 = vmatprep.subr.bf16.mxu0 %v3766_v30  ;;  %v2157_v11 = vpack.c.bf16 %v1428_v61, %v1428_v61  ;;  %v1915_v28 = vunpack.c.l.b16 %v1902_v0  ;;  %v1043_v19 = vmax.f32 %v1027_v50, 0.0  ;;  %v1044_v60 = vmax.f32 %v1028_v51, 0.0 }
 0x1ee   :  { %v1316_v7 = vmax.f32 %v1314_v12, %v1315_v14  ;;  %v1051_v36 = vmax.f32 %v1035_v25, 0.0  ;;  %v1307_v52 = vmax.f32 %v1305_v15, %v1306_v49  ;;  %v1419_v47 = vmax.f32 %v1417_v8, %v1418_v39 }
 0x1ef   :  { %3433 = vmatmul.mubr.msk.bf16.vlgmr.msra.gmra.mrb[40].mxu1 %vm561_vm0, %v1747_v4  ;;  %3469 = vmatmul.mubr.msk.bf16.vlgmr.msra.gmra.mrb[56].mxu0 %vm561_vm0, %v2002_v18  ;;  %v1317_v55 = vsel %vm1253_vm2, %v1134_v6, -inf  ;;  %v1328_v29 = vmax.f32 %v1326_v22, %v1327_v23  ;;  %v1052_v53 = vmax.f32 %v1036_v62, 0.0  ;;  %v1062_v34 = vsel %vm561_vm0, %v1043_v19, -inf  ;;  %v3708_v4 = vld [vmem:[%s4767_s4 + $0xe0] sm:$0xff]   ;;  %v3710_v6 = vld [vmem:[%s4767_s4 + $0xe8] sm:$0xff]  }
 0x1f0   :  { %3449 = vmatpush3.bf16.msra.mxu1 %v3700_v17  ;;  %3485 = vmatpush3.bf16.msra.mxu0 %v3701_v9  ;;  %v2156_v42 = vpack.c.bf16 %v1316_v7, %v1316_v7  ;;  %v1063_v35 = vsel %vm561_vm0, %v1044_v60, -inf  ;;  %v2170_v40 = vunpack.c.l.b16 %v2157_v11  ;;  %v1430_v56 = vrot.slane %v1429_v13, 4  ;;  %v3709_v18 = vld [vmem:[%s4767_s4 + $0x140] sm:$0xff]  }
 0x1f1   :  { %3450 = vmatprep.subr.bf16.mxu1 %v3766_v30  ;;  %3486 = vmatprep.subr.bf16.mxu0 %v3766_v30  ;;  %v4531_v41 = vmax.f32 %v1062_v34, %v1063_v35  ;;  %v1441_v43 = vrot.slane %v1440_v10, 1  ;;  %v1074_v32 = vsel %vm561_vm0, %v1051_v36, -inf  ;;  %v1075_v45 = vsel %vm561_vm0, %v1052_v53, -inf }
 0x1f2   :  { %3456 = vmatprep.mubr.msk.bf16.mxu1 %vm3767_vm1, %v3766_v30  ;;  %3492 = vmatprep.mubr.msk.bf16.mxu0 %vm3767_vm1, %v3766_v30  ;;  %v2169_v27 = vunpack.c.l.b16 %v2156_v42  ;;  %v1916_v5 = vsel %vm1503_vm3, %v1915_v28, %v1914_v21  ;;  %v1308_v20 = vrot.slane %v1307_v52, 1  ;;  %v1318_v33 = vrot.slane %v1317_v55, 4  ;;  %v3713_v42 = vld [vmem:[%s4767_s4 + $0x150] sm:$0xff]  }
 0x1f3   :  { %v1420_v54 = vrot.slane %v1419_v47, 1  ;;  %v1329_v57 = vrot.slane %v1328_v29, 1  ;;  %v1076_v58 = vmax.f32 %v1074_v32, %v1075_v45  ;;  %v4546_v17 = vrot.slane %v4531_v41, %v4270_v2 }
 0x1f4   :  { %3451 = vmatpush3.bf16.msra.mxu1 %v3702_v1  ;;  %3487 = vmatpush3.bf16.msra.mxu0 %v3703_v59  ;;  %v2171_v9 = vsel %vm1503_vm3, %v2170_v40, %v2169_v27  ;;  %v1431_v37 = vmax.f32 %v1429_v13, %v1430_v56  ;;  %v1442_v61 = vmax.f32 %v1440_v10, %v1441_v43  ;;  %v3711_v13 = vld [vmem:[%s4767_s4 + $0x148] sm:$0xff]   ;;  %v3715_v56 = vld [vmem:[%s4767_s4 + $0x158] sm:$0xff]  }
 0x1f5   :  { %3452 = vmatprep.subr.bf16.mxu1 %v3766_v30  ;;  %3488 = vmatprep.subr.bf16.mxu0 %v3766_v30  ;;  %v4550_v15 = vrot.slane %v1076_v58, %v4270_v2  ;;  %v1338_v8 = vsel %vm1253_vm2, %v4546_v17, -inf  ;;  %v1917_v63 = vpack.c.b16 %v1916_v5, %v1916_v5  ;;  %v1309_v22 = vmax.f32 %v1307_v52, %v1308_v20 }
 0x1f6   :  { %v1319_v26 = vmax.f32 %v1317_v55, %v1318_v33  ;;  %v1339_v0 = vrot.slane %v1338_v8, 4  ;;  %v2172_v12 = vpack.c.b16 %v2171_v9, %v2171_v9  ;;  %v1421_v44 = vmax.f32 %v1419_v47, %v1420_v54  ;;  %v3716_v9 = vld [vmem:[%s4767_s4 + $0x120] sm:$0xff]  }
 0x1f7   :  { %v1330_v48 = vmax.f32 %v1328_v29, %v1329_v57  ;;  %v1450_v50 = vsel %vm1253_vm2, %v4550_v15, -inf  ;;  %v1136_v59 = vcombine.high %v4531_v41, %v4531_v41  ;;  %v1204_v14 = vcombine.high %v1076_v58, %v1076_v58  ;;  %v3714_v41 = vld [vmem:[%s4767_s4 + $0xf8] sm:$0xff]  }
 0x1f8   :  { %3453 = vmatpush3.bf16.msra.mxu1 %v3704_v24  ;;  %3489 = vmatpush3.bf16.msra.mxu0 %v3705_v38  ;;  %v1340_v51 = vmax.f32 %v1338_v8, %v1339_v0  ;;  %v1451_v1 = vrot.slane %v1450_v50, 4  ;;  %v1203_v49 = vcombine.high %v4409_v3, %v4409_v3  ;;  %v1432_v39 = vrot.slane %v1431_v37, 2  ;;  %v3712_v38 = vld [vmem:[%s4767_s4 + $0xf0] sm:$0xff]  }
 0x1f9   :  { %3454 = vmatprep.subr.bf16.mxu1 %v3766_v30  ;;  %3490 = vmatprep.subr.bf16.mxu0 %v3766_v30  ;;  %v2327_v23 = vpack.c.bf16 %v1442_v61, %v1442_v61  ;;  %v2071_v62 = vpack.c.bf16 %v1309_v22, %v1309_v22  ;;  %v2072_v10 = vpack.c.bf16 %v1421_v44, %v1421_v44  ;;  %v1320_v21 = vrot.slane %v1319_v26, 2  ;;  %v3718_v44 = vld [vmem:[%s4767_s4 + $0x128] sm:$0xff]  }
 0x1fa   :  { %v1452_v25 = vmax.f32 %v1450_v50, %v1451_v1  ;;  %v2326_v3 = vpack.c.bf16 %v1330_v48, %v1330_v48  ;;  %v1341_v7 = vrot.slane %v1340_v51, 2  ;;  %v1135_v28 = vcombine.high %v4467_v31, %v4467_v31  ;;  %v3719_v48 = vld [vmem:[%s4767_s4 + $0x188] sm:$0xff]  }
 0x1fb   :  { %v4585_v19 = vrot.slane %v1136_v59, %v4270_v2  ;;  %v4588_v60 = vrot.slane %v1204_v14, %v4270_v2  ;;  %v1433_v36 = vmax.f32 %v1431_v37, %v1432_v39  ;;  %v1443_v24 = vsel %vm1253_vm2, %v1203_v49, -inf  ;;  %v3717_v37 = vld [vmem:[%s4767_s4 + $0x180] sm:$0xff]  }
 0x1fc   :  { %3455 = vmatpush3.bf16.msra.mxu1 %v3706_v46  ;;  %3491 = vmatpush3.bf16.msra.mxu0 %v3707_v16  ;;  %v1453_v11 = vrot.slane %v1452_v25, 2  ;;  %v2340_v31 = vunpack.c.l.b16 %v2327_v23  ;;  %v2084_v2 = vunpack.c.l.b16 %v2071_v62  ;;  %v2085_v52 = vunpack.c.l.b16 %v2072_v10  ;;  %v3720_v23 = vld [vmem:[%s4767_s4 + $0x130] sm:$0xff]  }
 0x1fd   :  { %3472 = vmatprep.subr.bf16.mxu1 %v3766_v30  ;;  %3508 = vmatprep.subr.bf16.mxu0 %v3766_v30  ;;  %v2339_v47 = vunpack.c.l.b16 %v2326_v3  ;;  %v1321_v55 = vmax.f32 %v1319_v26, %v1320_v21  ;;  %v1342_v29 = vmax.f32 %v1340_v51, %v1341_v7  ;;  %v1331_v34 = vsel %vm1253_vm2, %v1135_v28, -inf }
 0x1fe   :  { %v1454_v53 = vmax.f32 %v1452_v25, %v1453_v11  ;;  %v1352_v35 = vsel %vm1253_vm2, %v4585_v19, -inf  ;;  %v1464_v27 = vsel %vm1253_vm2, %v4588_v60, -inf  ;;  %v1444_v40 = vrot.slane %v1443_v24, 4 }
 0x1ff   :  { %3457 = vmatmul.mubr.msk.bf16.vlgmr.msra.gmra.mrb[44].mxu1 %vm561_vm0, %v1917_v63  ;;  %3493 = vmatmul.mubr.msk.bf16.vlgmr.msra.gmra.mrb[60].mxu0 %vm561_vm0, %v2172_v12  ;;  %v1434_v43 = vrot.slane %v1433_v36, 1  ;;  %v2086_v32 = vsel %vm1503_vm3, %v2085_v52, %v2084_v2  ;;  %v2341_v45 = vsel %vm1503_vm3, %v2340_v31, %v2339_v47  ;;  %v1322_v46 = vrot.slane %v1321_v55, 1 }
 0x200   :  { %3473 = vmatpush3.bf16.msra.mxu1 %v3708_v4  ;;  %3509 = vmatpush3.bf16.msra.mxu0 %v3709_v18  ;;  %v1332_v16 = vrot.slane %v1331_v34, 4  ;;  %v1343_v5 = vrot.slane %v1342_v29, 1  ;;  %v1455_v20 = vrot.slane %v1454_v53, 1  ;;  %v1353_v33 = vrot.slane %v1352_v35, 4 }
 0x201   :  { %3474 = vmatprep.subr.bf16.mxu1 %v3766_v30  ;;  %3510 = vmatprep.subr.bf16.mxu0 %v3766_v30  ;;  %v1465_v54 = vrot.slane %v1464_v27, 4  ;;  %v1445_v57 = vmax.f32 %v1443_v24, %v1444_v40  ;;  %v2087_v58 = vpack.c.b16 %v2086_v32, %v2086_v32  ;;  %v1435_v61 = vmax.f32 %v1433_v36, %v1434_v43  ;;  %v3722_v24 = vld [vmem:[%s4767_s4 + $0x138] sm:$0xff]  }
 0x202   :  { %3480 = vmatprep.mubr.msk.bf16.mxu1 %vm3767_vm1, %v3766_v30  ;;  %3516 = vmatprep.mubr.msk.bf16.mxu0 %vm3767_vm1, %v3766_v30  ;;  %v2342_v8 = vpack.c.b16 %v2341_v45, %v2341_v45  ;;  %v1323_v63 = vmax.f32 %v1321_v55, %v1322_v46  ;;  %v1333_v4 = vmax.f32 %v1331_v34, %v1332_v16  ;;  %v3726_v16 = vld [vmem:[%s4767_s4 + $0x168] sm:$0xff]  }
 0x203   :  { %v1344_v18 = vmax.f32 %v1342_v29, %v1343_v5  ;;  %v1456_v22 = vmax.f32 %v1454_v53, %v1455_v20  ;;  %v1354_v26 = vmax.f32 %v1352_v35, %v1353_v33  ;;  %v1466_v0 = vmax.f32 %v1464_v27, %v1465_v54  ;;  %v3724_v35 = vld [vmem:[%s4767_s4 + $0x160] sm:$0xff]   ;;  %v3727_v5 = vld [vmem:[%s4767_s4 + $0x1c8] sm:$0xff]  }
 0x204   :  { %3475 = vmatpush3.bf16.msra.mxu1 %v3710_v6  ;;  %3511 = vmatpush3.bf16.msra.mxu0 %v3711_v13  ;;  %v1446_v12 = vrot.slane %v1445_v57, 2  ;;  %v2241_v50 = vpack.c.bf16 %v1323_v63, %v1323_v63  ;;  %v2242_v51 = vpack.c.bf16 %v1435_v61, %v1435_v61  ;;  %v1334_v1 = vrot.slane %v1333_v4, 2  ;;  %v3725_v27 = vld [vmem:[%s4767_s4 + $0x1c0] sm:$0xff]   ;;  %v3729_v63 = vld [vmem:[%s4767_s4 + $0x1d0] sm:$0xff]  }
 0x205   :  { %3476 = vmatprep.subr.bf16.mxu1 %v3766_v30  ;;  %3512 = vmatprep.subr.bf16.mxu0 %v3766_v30  ;;  %v1151_v59 = vcombine.high %v4546_v17, %v4546_v17  ;;  %v2496_v14 = vpack.c.bf16 %v1344_v18, %v1344_v18  ;;  %v2497_v49 = vpack.c.bf16 %v1456_v22, %v1456_v22  ;;  %v1355_v39 = vrot.slane %v1354_v26, 2  ;;  %v3721_v17 = vld [vmem:[%s4767_s4 + $0x190] sm:$0xff]  }
 0x206   :  { %v1467_v6 = vrot.slane %v1466_v0, 2  ;;  %v1219_v13 = vcombine.high %v4550_v15, %v4550_v15  ;;  %v1447_v25 = vmax.f32 %v1445_v57, %v1446_v12  ;;  %v2254_v62 = vunpack.c.l.b16 %v2241_v50 }
 0x207   :  { %v2255_v10 = vunpack.c.l.b16 %v2242_v51  ;;  %v1335_v3 = vmax.f32 %v1333_v4, %v1334_v1  ;;  %v1345_v15 = vsel %vm1253_vm2, %v1151_v59, -inf  ;;  %v2509_v21 = vunpack.c.l.b16 %v2496_v14 }
 0x208   :  { %3477 = vmatpush3.bf16.msra.mxu1 %v3712_v38  ;;  %3513 = vmatpush3.bf16.msra.mxu0 %v3713_v42  ;;  %v2510_v7 = vunpack.c.l.b16 %v2497_v49  ;;  %v1356_v11 = vmax.f32 %v1354_v26, %v1355_v39  ;;  %v1468_v28 = vmax.f32 %v1466_v0, %v1467_v6  ;;  %v1457_v36 = vsel %vm1253_vm2, %v1219_v13, -inf  ;;  %v3723_v38 = vld [vmem:[%s4767_s4 + $0x198] sm:$0xff]   ;;  %v3732_v39 = vld [vmem:[%s4767_s4 + $0x1a0] sm:$0xff]  }
 0x209   :  { %3478 = vmatprep.subr.bf16.mxu1 %v3766_v30  ;;  %3514 = vmatprep.subr.bf16.mxu0 %v3766_v30  ;;  %v1448_v42 = vrot.slane %v1447_v25, 1  ;;  %v2256_v31 = vsel %vm1503_vm3, %v2255_v10, %v2254_v62  ;;  %v1336_v2 = vrot.slane %v1335_v3, 1  ;;  %v1346_v52 = vrot.slane %v1345_v15, 4  ;;  %v3733_v10 = vld [vmem:[%s4767_s4 + $0x1a8] sm:$0xff]  }
 0x20a   :  { %v2511_v47 = vsel %vm1503_vm3, %v2510_v7, %v2509_v21  ;;  %v1357_v55 = vrot.slane %v1356_v11, 1  ;;  %v1469_v29 = vrot.slane %v1468_v28, 1  ;;  %v1458_v53 = vrot.slane %v1457_v36, 4 }
 0x20b   :  { %v2257_v34 = vpack.c.b16 %v2256_v31, %v2256_v31  ;;  %v1449_v40 = vmax.f32 %v1447_v25, %v1448_v42  ;;  %v1347_v43 = vmax.f32 %v1345_v15, %v1346_v52  ;;  %v1220_v61 = vcombine.high %v4588_v60, %v4588_v60  ;;  %v3735_v42 = vld [vmem:[%s4767_s4 + $0x1b8] sm:$0xff]  }
 0x20c   :  { %3479 = vmatpush3.bf16.msra.mxu1 %v3714_v41  ;;  %3515 = vmatpush3.bf16.msra.mxu0 %v3715_v56  ;;  %v2512_v41 = vpack.c.b16 %v2511_v47, %v2511_v47  ;;  %v1337_v56 = vmax.f32 %v1335_v3, %v1336_v2  ;;  %v1358_v32 = vmax.f32 %v1356_v11, %v1357_v55  ;;  %v3734_v11 = vld [vmem:[%s4767_s4 + $0x1b0] sm:$0xff]   ;;  %v3736_v47 = vld [vmem:[%s4767_s4 + $0x1e0] sm:$0xff]  }
 0x20d   :  { %3496 = vmatprep.subr.bf16.mxu1 %v3766_v30  ;;  %3532 = vmatprep.subr.bf16.mxu0 %v3766_v30  ;;  %v1470_v45 = vmax.f32 %v1468_v28, %v1469_v29  ;;  %v1459_v46 = vmax.f32 %v1457_v36, %v1458_v53  ;;  %v2412_v33 = vpack.c.bf16 %v1449_v40, %v1449_v40  ;;  %v1348_v54 = vrot.slane %v1347_v43, 2  ;;  %v3738_v40 = vld [vmem:[%s4767_s4 + $0x1f0] sm:$0xff]  }
 0x20e   :  { %v2411_v20 = vpack.c.bf16 %v1337_v56, %v1337_v56  ;;  %v2666_v57 = vpack.c.bf16 %v1358_v32, %v1358_v32  ;;  %v1471_v12 = vsel %vm1253_vm2, %v1220_v61, -inf }
 0x20f   :  { %3481 = vmatmul.mubr.msk.bf16.vlgmr.msra.gmra.mrb[48].mxu1 %vm561_vm0, %v2087_v58  ;;  %3517 = vmatmul.mubr.msk.bf16.vlgmr.msra.gmra.mrb[64].mxu0 %vm561_vm0, %v2342_v8  ;;  %v2667_v58 = vpack.c.bf16 %v1470_v45, %v1470_v45  ;;  %v3728_v8 = vld [vmem:[%s4767_s4 + $0x170] sm:$0xff]   ;;  %v2425_v18 = vunpack.c.l.b16 %v2412_v33  ;;  %v1472_v49 = vrot.slane %v1471_v12, 4 }
 0x210   :  { %3497 = vmatpush3.bf16.msra.mxu1 %v3716_v9  ;;  %3533 = vmatpush3.bf16.msra.mxu0 %v3717_v37  ;;  %v1460_v9 = vrot.slane %v1459_v46, 2  ;;  %v1152_v37 = vcombine.high %v4585_v19, %v4585_v19  ;;  %v2424_v4 = vunpack.c.l.b16 %v2411_v20  ;;  %v1349_v19 = vmax.f32 %v1347_v43, %v1348_v54  ;;  %v3739_v43 = vld [vmem:[%s4767_s4 + $0x1f8] sm:$0xff]  }
 0x211   :  { %3498 = vmatprep.subr.bf16.mxu1 %v3766_v30  ;;  %3534 = vmatprep.subr.bf16.mxu0 %v3766_v30  ;;  %v2679_v22 = vunpack.c.l.b16 %v2666_v57  ;;  %v2680_v26 = vunpack.c.l.b16 %v2667_v58  ;;  %v1473_v62 = vmax.f32 %v1471_v12, %v1472_v49 }
 0x212   :  { %3504 = vmatprep.mubr.msk.bf16.mxu1 %vm3767_vm1, %v3766_v30  ;;  %3540 = vmatprep.mubr.msk.bf16.mxu0 %vm3767_vm1, %v3766_v30  ;;  %v1461_v60 = vmax.f32 %v1459_v46, %v1460_v9  ;;  %v1359_v0 = vsel %vm1253_vm2, %v1152_v37, -inf  ;;  %v2426_v50 = vsel %vm1503_vm3, %v2425_v18, %v2424_v4  ;;  %v1350_v51 = vrot.slane %v1349_v19, 1 }
 0x213   :  { %v2681_v1 = vsel %vm1503_vm3, %v2680_v26, %v2679_v22  ;;  %v1360_v14 = vrot.slane %v1359_v0, 4  ;;  %v2427_v6 = vpack.c.b16 %v2426_v50, %v2426_v50  ;;  %v1474_v7 = vrot.slane %v1473_v62, 2 }
 0x214   :  { %3499 = vmatpush3.bf16.msra.mxu1 %v3718_v44  ;;  %3535 = vmatpush3.bf16.msra.mxu0 %v3719_v48  ;;  %v3730_v44 = vld [vmem:[%s4767_s4 + $0x178] sm:$0xff]   ;;  %v1462_v59 = vrot.slane %v1461_v60, 1  ;;  %v2682_v13 = vpack.c.b16 %v2681_v1, %v2681_v1 }
 0x215   :  { %3500 = vmatprep.subr.bf16.mxu1 %v3766_v30  ;;  %3536 = vmatprep.subr.bf16.mxu0 %v3766_v30  ;;  %v3731_v48 = vld [vmem:[%s4767_s4 + $0x1d8] sm:$0xff]   ;;  %v1361_v25 = vmax.f32 %v1359_v0, %v1360_v14 }
 0x217   :  { %v1362_v21 = vrot.slane %v1361_v25, 2 }
 0x218   :  { %3501 = vmatpush3.bf16.msra.mxu1 %v3720_v23  ;;  %3537 = vmatpush3.bf16.msra.mxu0 %v3721_v17  ;;  %v1351_v23 = vmax.f32 %v1349_v19, %v1350_v51  ;;  %v1463_v17 = vmax.f32 %v1461_v60, %v1462_v59 }
 0x219   :  { %3502 = vmatprep.subr.bf16.mxu1 %v3766_v30  ;;  %3538 = vmatprep.subr.bf16.mxu0 %v3766_v30 }
 0x21a   :  { %v2581_v3 = vpack.c.bf16 %v1351_v23, %v1351_v23  ;;  %v2582_v15 = vpack.c.bf16 %v1463_v17, %v1463_v17 }
 0x21c   :  { %3503 = vmatpush3.bf16.msra.mxu1 %v3722_v24  ;;  %3539 = vmatpush3.bf16.msra.mxu0 %v3723_v38  ;;  %v2594_v28 = vunpack.c.l.b16 %v2581_v3  ;;  %v2595_v36 = vunpack.c.l.b16 %v2582_v15  ;;  %v1363_v24 = vmax.f32 %v1361_v25, %v1362_v21  ;;  %v1475_v38 = vmax.f32 %v1473_v62, %v1474_v7 }
 0x21d   :  { %3520 = vmatprep.subr.bf16.mxu1 %v3766_v30  ;;  %3556 = vmatprep.subr.bf16.mxu0 %v3766_v30 }
 0x21e   :  { %v2596_v31 = vsel %vm1503_vm3, %v2595_v36, %v2594_v28  ;;  %v1364_v2 = vrot.slane %v1363_v24, 1  ;;  %v1476_v52 = vrot.slane %v1475_v38, 1 }
 0x21f   :  { %3505 = vmatmul.mubr.msk.bf16.vlgmr.msra.gmra.mrb[52].mxu1 %vm561_vm0, %v2257_v34  ;;  %3541 = vmatmul.mubr.msk.bf16.vlgmr.msra.gmra.mrb[68].mxu0 %vm561_vm0, %v2512_v41  ;;  %v2597_v55 = vpack.c.b16 %v2596_v31, %v2596_v31  ;;  %v3737_v34 = vld [vmem:[%s4767_s4 + $0x1e8] sm:$0xff]  }
 0x220   :  { %3521 = vmatpush3.bf16.msra.mxu1 %v3724_v35  ;;  %3557 = vmatpush3.bf16.msra.mxu0 %v3725_v27  ;;  %v1365_v29 = vmax.f32 %v1363_v24, %v1364_v2  ;;  %v1477_v53 = vmax.f32 %v1475_v38, %v1476_v52 }
 0x221   :  { %3522 = vmatprep.subr.bf16.mxu1 %v3766_v30  ;;  %3558 = vmatprep.subr.bf16.mxu0 %v3766_v30 }
 0x222   :  { %3528 = vmatprep.mubr.msk.bf16.mxu1 %vm3767_vm1, %v3766_v30  ;;  %3564 = vmatprep.mubr.msk.bf16.mxu0 %vm3767_vm1, %v3766_v30  ;;  %v2751_v35 = vpack.c.bf16 %v1365_v29, %v1365_v29  ;;  %v2752_v27 = vpack.c.bf16 %v1477_v53, %v1477_v53 }
 0x224   :  { %3523 = vmatpush3.bf16.msra.mxu1 %v3726_v16  ;;  %3559 = vmatpush3.bf16.msra.mxu0 %v3727_v5  ;;  %v2764_v41 = vunpack.c.l.b16 %v2751_v35  ;;  %v2765_v56 = vunpack.c.l.b16 %v2752_v27 }
 0x225   :  { %3524 = vmatprep.subr.bf16.mxu1 %v3766_v30  ;;  %3560 = vmatprep.subr.bf16.mxu0 %v3766_v30 }
 0x226   :  { %v2766_v32 = vsel %vm1503_vm3, %v2765_v56, %v2764_v41 }
 0x227   :  { %v2767_v45 = vpack.c.b16 %v2766_v32, %v2766_v32 }
 0x228   :  { %3525 = vmatpush3.bf16.msra.mxu1 %v3728_v8  ;;  %3561 = vmatpush3.bf16.msra.mxu0 %v3729_v63 }
 0x229   :  { %3526 = vmatprep.subr.bf16.mxu1 %v3766_v30  ;;  %3562 = vmatprep.subr.bf16.mxu0 %v3766_v30 }
 0x22c   :  { %3527 = vmatpush3.bf16.msra.mxu1 %v3730_v44  ;;  %3563 = vmatpush3.bf16.msra.mxu0 %v3731_v48 }
 0x22d   :  { %3544 = vmatprep.subr.bf16.mxu1 %v3766_v30 }
 0x22f   :  { %3529 = vmatmul.mubr.msk.bf16.vlgmr.msra.gmra.mrb[56].mxu1 %vm561_vm0, %v2427_v6  ;;  %3565 = vmatmul.mubr.msk.bf16.vlgmr.msra.gmra.mrb[72].mxu0 %vm561_vm0, %v2682_v13 }
 0x230   :  { %3545 = vmatpush3.bf16.msra.mxu1 %v3732_v39  ;;  %3552 = vmatprep.mubr.msk.bf16.mxu1 %vm3767_vm1, %v3766_v30 }
 0x231   :  { %3546 = vmatprep.subr.bf16.mxu1 %v3766_v30 }
 0x234   :  { %3547 = vmatpush3.bf16.msra.mxu1 %v3733_v10 }
 0x235   :  { %3548 = vmatprep.subr.bf16.mxu1 %v3766_v30 }
 0x238   :  { %3549 = vmatpush3.bf16.msra.mxu1 %v3734_v11 }
 0x239   :  { %3550 = vmatprep.subr.bf16.mxu1 %v3766_v30 }
 0x23c   :  { %3551 = vmatpush3.bf16.msra.mxu1 %v3735_v42 }
 0x23d   :  { %3568 = vmatprep.subr.bf16.mxu1 %v3766_v30 }
 0x23f   :  { %3553 = vmatmul.mubr.msk.bf16.vlgmr.msra.gmra.mrb[60].mxu1 %vm561_vm0, %v2597_v55 }
 0x240   :  { %3569 = vmatpush3.bf16.msra.mxu1 %v3736_v47  ;;  %3576 = vmatprep.mubr.msk.bf16.mxu1 %vm3767_vm1, %v3766_v30 }
 0x241   :  { %3570 = vmatprep.subr.bf16.mxu1 %v3766_v30 }
 0x244   :  { %3571 = vmatpush3.bf16.msra.mxu1 %v3737_v34 }
 0x245   :  { %3572 = vmatprep.subr.bf16.mxu1 %v3766_v30 }
 0x248   :  { %3573 = vmatpush3.bf16.msra.mxu1 %v3738_v40 }
 0x249   :  { %3574 = vmatprep.subr.bf16.mxu1 %v3766_v30 }
 0x24c   :  { %3575 = vmatpush3.bf16.msra.mxu1 %v3739_v43 }
 0x24f   :  { %3577 = vmatmul.mubr.msk.bf16.vlgmr.msra.gmra.mrb[64].mxu1 %vm561_vm0, %v2767_v45 }
 0x2a2   :  { %v1567_v46 = vpop.f32.mrb[32].mxu1  ;;  %v1724_v16 = vpop.f32.mrb[48].mxu0 }
 0x2a3   :  { %v3398_v5 = vpop.f32.mrb[33].mxu1  ;;  %v3422_v20 = vpop.f32.mrb[49].mxu0 }
 0x2a4   :  { %v1570_v33 = vpop.f32.mrb[34].mxu1  ;;  %v1727_v54 = vpop.f32.mrb[50].mxu0 }
 0x2a5   :  { %v3399_v57 = vpop.f32.mrb[35].mxu1  ;;  %v3423_v58 = vpop.f32.mrb[51].mxu0 }
 0x2b2   :  { %v1640_v9 = vpop.f32.mrb[36].mxu1  ;;  %v1894_v37 = vpop.f32.mrb[52].mxu0 }
 0x2b3   :  { %v1641_v61 = vadd.f32 %v1640_v9, %v1567_v46  ;;  %v3410_v8 = vpop.f32.mrb[37].mxu1  ;;  %v3446_v63 = vpop.f32.mrb[53].mxu0 }
 0x2b4   :  { %v1643_v30 = vpop.f32.mrb[38].mxu1  ;;  %v1897_v4 = vpop.f32.mrb[54].mxu0  ;;  %v3143_v8 = vld [vmem:[%s4768_s5] ss:$0 sm:$0xff] }
 0x2b5   :  { %v3411_v18 = vpop.f32.mrb[39].mxu1  ;;  %v3447_v19 = vpop.f32.mrb[55].mxu0  ;;  %v1730_v22 = vadd.f32 %v1724_v16, %v1641_v61 }
 0x2c2   :  { %v1809_v26 = vpop.f32.mrb[40].mxu1  ;;  %v2064_v60 = vpop.f32.mrb[56].mxu0 }
 0x2c3   :  { %v1815_v0 = vadd.f32 %v1809_v26, %v1730_v22  ;;  %v3434_v12 = vpop.f32.mrb[41].mxu1  ;;  %v3470_v44 = vpop.f32.mrb[57].mxu0 }
 0x2c4   :  { %v1812_v48 = vpop.f32.mrb[42].mxu1  ;;  %v2067_v50 = vpop.f32.mrb[58].mxu0 }
 0x2c5   :  { %v3435_v51 = vpop.f32.mrb[43].mxu1  ;;  %v3471_v1 = vpop.f32.mrb[59].mxu0  ;;  %v1900_v59 = vadd.f32 %v1894_v37, %v1815_v0 }
 0x2d2   :  { %v1979_v14 = vpop.f32.mrb[44].mxu1  ;;  %v2234_v49 = vpop.f32.mrb[60].mxu0 }
 0x2d3   :  { %v1985_v39 = vadd.f32 %v1979_v14, %v1900_v59  ;;  %v3458_v6 = vpop.f32.mrb[45].mxu1  ;;  %v3494_v13 = vpop.f32.mrb[61].mxu0 }
 0x2d4   :  { %v1982_v23 = vpop.f32.mrb[46].mxu1  ;;  %v2237_v17 = vpop.f32.mrb[62].mxu0 }
 0x2d5   :  { %v3459_v25 = vpop.f32.mrb[47].mxu1  ;;  %v3495_v62 = vpop.f32.mrb[63].mxu0  ;;  %v2070_v10 = vadd.f32 %v2064_v60, %v1985_v39 }
 0x2e2   :  { %v2149_v3 = vpop.f32.mrb[48].mxu1  ;;  %v2404_v15 = vpop.f32.mrb[64].mxu0 }
 0x2e3   :  { %v2155_v21 = vadd.f32 %v2149_v3, %v2070_v10  ;;  %v3482_v7 = vpop.f32.mrb[49].mxu1  ;;  %v3518_v11 = vpop.f32.mrb[65].mxu0 }
 0x2e4   :  { %v2152_v28 = vpop.f32.mrb[50].mxu1  ;;  %v2407_v36 = vpop.f32.mrb[66].mxu0 }
 0x2e5   :  { %v3483_v24 = vpop.f32.mrb[51].mxu1  ;;  %v3519_v38 = vpop.f32.mrb[67].mxu0  ;;  %v2240_v42 = vadd.f32 %v2234_v49, %v2155_v21 }
 0x2f2   :  { %v2319_v31 = vpop.f32.mrb[52].mxu1  ;;  %v2574_v2 = vpop.f32.mrb[68].mxu0 }
 0x2f3   :  { %v2325_v52 = vadd.f32 %v2319_v31, %v2240_v42  ;;  %v3506_v47 = vpop.f32.mrb[53].mxu1  ;;  %v3542_v55 = vpop.f32.mrb[69].mxu0 }
 0x2f4   :  { %v2322_v29 = vpop.f32.mrb[54].mxu1  ;;  %v2577_v53 = vpop.f32.mrb[70].mxu0 }
 0x2f5   :  { %v3507_v34 = vpop.f32.mrb[55].mxu1  ;;  %v3543_v35 = vpop.f32.mrb[71].mxu0  ;;  %v2410_v27 = vadd.f32 %v2404_v15, %v2325_v52 }
 0x302   :  { %v2489_v40 = vpop.f32.mrb[56].mxu1  ;;  %v2744_v41 = vpop.f32.mrb[72].mxu0 }
 0x303   :  { %v2495_v56 = vadd.f32 %v2489_v40, %v2410_v27  ;;  %v3530_v43 = vpop.f32.mrb[57].mxu1  ;;  %v3566_v32 = vpop.f32.mrb[73].mxu0 }
 0x304   :  { %v2492_v45 = vpop.f32.mrb[58].mxu1  ;;  %v2747_v46 = vpop.f32.mrb[74].mxu0 }
 0x305   :  { %v3531_v16 = vpop.f32.mrb[59].mxu1  ;;  %v3567_v5 = vpop.f32.mrb[75].mxu0  ;;  %v2580_v20 = vadd.f32 %v2574_v2, %v2495_v56 }
 0x312   :  { %v2659_v33 = vpop.f32.mrb[60].mxu1 }
 0x313   :  { %v2665_v54 = vadd.f32 %v2659_v33, %v2580_v20  ;;  %v3554_v57 = vpop.f32.mrb[61].mxu1 }
 0x314   :  { %v2662_v58 = vpop.f32.mrb[62].mxu1 }
 0x315   :  { %v3555_v9 = vpop.f32.mrb[63].mxu1  ;;  %v2750_v37 = vadd.f32 %v2744_v41, %v2665_v54 }
 0x322   :  { %v2829_v61 = vpop.f32.mrb[64].mxu1 }
 0x323   :  { %v2835_v63 = vadd.f32 %v2829_v61, %v2750_v37  ;;  %v3578_v30 = vpop.f32.mrb[65].mxu1 }
 0x324   :  { %v2832_v4 = vpop.f32.mrb[66].mxu1 }
 0x325   :  { %v3579_v18 = vpop.f32.mrb[67].mxu1  ;;  %v2843_v19 = vadd.f32 %v3143_v8, %v2835_v63 }
 0x327   :  { %2844 = vst [vmem:[#allocation2] sm:$0x3] %v2843_v19 }
 0x328   :  { %3753 = shalt.err (!%p3750_p4)
}
 0x329   :  { %s3754_s5 = scalar_lea.hbm %s4769_s6, 32 }
 0x32a   :  { %p3755_p5 = scmp.ne.s32.totalorder %s4769_s6, %s3754_s5  ;;  %p3758_p6 = scmp.lt.u32.totalorder %s3754_s5, %s4769_s6 }
 0x32c   :  { %p3760_p7 = pnand %p3758_p6, %p3755_p5 }
 0x32e   :  { %3763 = shalt.err (!%p3760_p7)
}
 0x32f   :  { %2854 = dma.vmem_to_hbm [thread:$0]  %s2852_s21, 32, %s4769_s6, [#allocation3]  }
 0x330   :  { %3764 = dma.done.wait [#allocation3], 32  }
 0x331   :  { %3765 = vsyncadd [#allocation3], 4294967264 }
 0x332   :  { %2858 = vsyncpa [#allocation3], 1 }

</bundles_post_ra>
